<compile_context>
chip_gen: v7x
topology: tpu7x:2x2x1
jax: 0.10.0
libtpu: 0.0.40
codegen_flags: <defaults>
</compile_context>

<pallas_src>
import jax
import jax.numpy as jnp
from jax import lax
from jax.experimental import pallas as pl
from jax.experimental.pallas import tpu as pltpu

EPS = 1e-5


def _resnet_block_kernel(x_ref, w1_ref, t1_ref, w2_ref, t2_ref, w3_ref, t3_ref, o_ref):
    """One (B, H, W, Cin) activation block per grid step. bf16 in, bf16 out."""
    B, H, W, Cin = x_ref.shape
    C = w1_ref.shape[1]
    M = B * H * W

    # ---- conv1 (1x1) + folded-BN shift + ReLU ------------------------------
    xf = x_ref[...].reshape(M, Cin)                                     # bf16
    h1 = jnp.dot(xf, w1_ref[...], preferred_element_type=jnp.float32)
    h1 = jnp.maximum(h1 + t1_ref[...], 0.0).reshape(B * H, W, C)        # f32

    # ---- conv2 (3x3, stride 1, pad 1) + folded-BN shift + ReLU -------------
    # Width taps: zero column + shifted slice (== masked roll, but built only
    # from slice/concat).  Each tap cast to bf16 before the lane-aligned
    # channel concat so the largest intermediate moves half the bytes.
    zcol = jnp.zeros((B * H, 1, C), jnp.float32)
    left = jnp.concatenate([zcol, h1[:, :W - 1, :]], axis=1).astype(jnp.bfloat16)   # h1[:, w-1]
    right = jnp.concatenate([h1[:, 1:, :], zcol], axis=1).astype(jnp.bfloat16)      # h1[:, w+1]
    cat = jnp.concatenate([left, h1.astype(jnp.bfloat16), right], axis=-1)          # (BH, W, 3C)

    # Single MXU matmul with N = 3C = 384: output columns [ky*C:(ky+1)*C] hold
    # the contribution of kernel row ky evaluated at its *own* input row.
    big = jnp.dot(cat.reshape(M, 3 * C), w2_ref[...],
                  preferred_element_type=jnp.float32).reshape(B, H, W, 3 * C)

    # Combine the three kernel rows on the output side: out[h] =
    #   big[h-1, 0:C] + big[h, C:2C] + big[h+1, 2C:3C]   (zero outside [0, H)).
    zrow = jnp.zeros((B, 1, W, C), jnp.float32)
    top = jnp.concatenate([zrow, big[:, :H - 1, :, 0:C]], axis=1)        # ky=0 -> row h-1
    bot = jnp.concatenate([big[:, 1:, :, 2 * C:3 * C], zrow], axis=1)    # ky=2 -> row h+1
    acc = top + big[:, :, :, C:2 * C] + bot
    h2 = jnp.maximum(acc.reshape(M, C) + t2_ref[...], 0.0).astype(jnp.bfloat16)

    # ---- conv3 (1x1) + folded-BN shift + residual add + ReLU ---------------
    h3 = jnp.dot(h2, w3_ref[...], preferred_element_type=jnp.float32) + t3_ref[...]
    # Identity read fuses into the add (bf16 -> f32 promotion); no f32 temp.
    y = jnp.maximum(h3 + x_ref[...].reshape(M, Cin), 0.0)
    o_ref[...] = y.reshape(B, H, W, Cin).astype(o_ref.dtype)


@jax.jit
def resnet_block_nhwc(x_nhwc, params):
    """x_nhwc: (N, H, W, 4C) float32. params: folded bf16 weights + f32 shifts."""
    N, H, W, Cin = x_nhwc.shape
    C = params["w1"].shape[1]
    assert Cin == 4 * C, "identity path requires in_channels == 4*out_channels (stride=1)"
    # TODO(synk): stride>1 / identity_downsample branch of the PyTorch module is
    # not implemented (defaults in the spec are stride=1, identity_downsample=None).

    # Two images per grid step (M = 2*H*W feeds the MXU), grid length stays
    # even so both v7x TensorCores get work.
    B_blk = 2 if N % 2 == 0 else 1
    x = x_nhwc.astype(jnp.bfloat16)

    def resident(arr):                           # grid-invariant operand
        nd = arr.ndim
        return pl.BlockSpec(arr.shape, lambda n, _nd=nd: (0,) * _nd)

    return pl.pallas_call(
        _resnet_block_kernel,
        out_shape=jax.ShapeDtypeStruct((N, H, W, Cin), jnp.bfloat16),
        grid=(N // B_blk,),
        in_specs=[
            pl.BlockSpec((B_blk, H, W, Cin), lambda n: (n, 0, 0, 0)),
            resident(params["w1"]),
            resident(params["t1"]),
            resident(params["w2"]),
            resident(params["t2"]),
            resident(params["w3"]),
            resident(params["t3"]),
        ],
        out_specs=pl.BlockSpec((B_blk, H, W, Cin), lambda n: (n, 0, 0, 0)),
        compiler_params=pltpu.CompilerParams(
            dimension_semantics=("parallel",),
            vmem_limit_bytes=32 * 1024 * 1024,
        ),
    )(x, params["w1"], params["t1"], params["w2"], params["t2"],
      params["w3"], params["t3"])


def _fold_bn(gamma, beta, mean, var, conv_bias):
    scale = gamma / jnp.sqrt(var + EPS)
    shift = beta + scale * (conv_bias - mean)
    return scale, shift


def fold_params(raw):
    """Fold BN scale into conv weights (bf16), keep per-channel shifts in f32."""
    C = raw["w1"].shape[1]
    s1, t1 = _fold_bn(raw["g1"], raw["be1"], raw["m1"], raw["v1"], raw["b1"])
    s2, t2 = _fold_bn(raw["g2"], raw["be2"], raw["m2"], raw["v2"], raw["b2"])
    s3, t3 = _fold_bn(raw["g3"], raw["be3"], raw["m3"], raw["v3"], raw["b3"])
    w1 = (raw["w1"] * s1[None, :]).astype(jnp.bfloat16)                 # (Cin, C)
    # w2 raw layout: (ky, kx, ci, co).  Build W_big (3C, 3C):
    #   rows    = (kx, ci)   -> matches the [left, center, right] channel concat
    #   columns = (ky, co)   -> big[:, ky*C:(ky+1)*C] = cat @ w2[ky]
    w2 = (raw["w2"] * s2[None, None, None, :]).reshape(3, 3 * C, C)     # (ky, kx*C+ci, co)
    w2 = jnp.transpose(w2, (1, 0, 2)).reshape(3 * C, 3 * C).astype(jnp.bfloat16)
    w3 = (raw["w3"] * s3[None, :]).astype(jnp.bfloat16)                 # (C, 4C)
    return dict(
        w1=w1, t1=t1.reshape(1, -1).astype(jnp.float32),
        w2=w2, t2=t2.reshape(1, -1).astype(jnp.float32),
        w3=w3, t3=t3.reshape(1, -1).astype(jnp.float32),
    )


def make_raw_params(key, in_channels, out_channels):
    """Deterministic synthetic parameters (fan-in uniform init + BN running stats)."""
    C, Cin = out_channels, in_channels
    C4 = 4 * C
    ks = jax.random.split(key, 16)

    def uni(k, shape, fan_in):
        b = 1.0 / (fan_in ** 0.5)
        return jax.random.uniform(k, shape, jnp.float32, -b, b)

    return dict(
        w1=uni(ks[0], (Cin, C), Cin), b1=uni(ks[1], (C,), Cin),
        g1=1.0 + 0.1 * jax.random.normal(ks[2], (C,), jnp.float32),
        be1=0.1 * jax.random.normal(ks[3], (C,), jnp.float32),
        m1=0.1 * jax.random.normal(ks[4], (C,), jnp.float32),
        v1=0.5 + jax.random.uniform(ks[5], (C,), jnp.float32),

        w2=uni(ks[6], (3, 3, C, C), 9 * C), b2=uni(ks[7], (C,), 9 * C),
        g2=1.0 + 0.1 * jax.random.normal(ks[8], (C,), jnp.float32),
        be2=0.1 * jax.random.normal(ks[9], (C,), jnp.float32),
        m2=0.1 * jax.random.normal(ks[10], (C,), jnp.float32),
        v2=0.5 + jax.random.uniform(ks[11], (C,), jnp.float32),

        w3=uni(ks[12], (C, C4), C), b3=uni(ks[13], (C4,), C),
        g3=1.0 + 0.1 * jax.random.normal(ks[14], (C4,), jnp.float32),
        be3=0.1 * jax.random.normal(ks[15], (C4,), jnp.float32),
        m3=jnp.zeros((C4,), jnp.float32),
        v3=jnp.ones((C4,), jnp.float32),
    )


def reference_forward_nhwc(x, raw):
    """Pure-JAX f32 reference mirroring the PyTorch module (inference-mode BN)."""
    dn = ("NHWC", "HWIO", "NHWC")

    def conv(y, w_hwio, b, pad):
        return lax.conv_general_dilated(y, w_hwio, (1, 1), pad, dimension_numbers=dn) + b

    def bn(y, g, be, m, v):
        return g * (y - m) / jnp.sqrt(v + EPS) + be

    w1 = raw["w1"][None, None]                     # (1,1,Cin,C)
    w3 = raw["w3"][None, None]                     # (1,1,C,4C)
    h = jax.nn.relu(bn(conv(x, w1, raw["b1"], "VALID"),
                       raw["g1"], raw["be1"], raw["m1"], raw["v1"]))
    h = jax.nn.relu(bn(conv(h, raw["w2"], raw["b2"], "SAME"),
                       raw["g2"], raw["be2"], raw["m2"], raw["v2"]))
    h = bn(conv(h, w3, raw["b3"], "VALID"),
           raw["g3"], raw["be3"], raw["m3"], raw["v3"])
    return jax.nn.relu(h + x)


if __name__ == "__main__":
    # Bottleneck block with identity residual (in_channels == 4*out_channels,
    # stride=1).  Channels lane-dense (C=128, 4C=512), spatial small, batch=4
    # so the kernel runs 2 images/step over a length-2 "parallel" grid.
    N, out_channels, H = 4, 128, 16
    in_channels = 4 * out_channels                 # 512

    key = jax.random.PRNGKey(0)
    kx, kp = jax.random.split(key)
    # PyTorch-facing NCHW input; converted once to NHWC here (a real pipeline
    # would stay NHWC end-to-end, so no transposes sit around the kernel).
    x_nchw = jax.random.normal(kx, (N, in_channels, H, H), jnp.float32)
    x_nhwc = jnp.transpose(x_nchw, (0, 2, 3, 1))

    raw = make_raw_params(kp, in_channels, out_channels)
    folded = fold_params(raw)

    out = jax.block_until_ready(resnet_block_nhwc(x_nhwc, folded))
    assert out.shape == (N, H, H, in_channels)
    assert out.dtype == jnp.bfloat16

    ref = reference_forward_nhwc(x_nhwc, raw)
    out_f32 = out.astype(jnp.float32)
    err = float(jnp.max(jnp.abs(out_f32 - ref)))
    # bf16 activations/weights/output vs f32 reference -> loose tolerance.
    assert jnp.allclose(out_f32, ref, atol=1.5e-1, rtol=5e-2), f"max abs err {err}"
    print("KERNEL_OK")
</pallas_src>

<mosaic_0001>
module attributes {stable_mosaic.version = 11 : i64} {
  func.func @_resnet_block_kernel(%arg0: i32, %arg1: memref<2x16x16x512xbf16, #tpu.memory_space<vmem>>, %arg2: memref<512x128xbf16, #tpu.memory_space<vmem>>, %arg3: memref<1x128xf32, #tpu.memory_space<vmem>>, %arg4: memref<384x384xbf16, #tpu.memory_space<vmem>>, %arg5: memref<1x128xf32, #tpu.memory_space<vmem>>, %arg6: memref<128x512xbf16, #tpu.memory_space<vmem>>, %arg7: memref<1x512xf32, #tpu.memory_space<vmem>>, %arg8: memref<2x16x16x512xbf16, #tpu.memory_space<vmem>>) attributes {dimension_semantics = [#tpu.dimension_semantics<parallel>], iteration_bounds = array<i64: 2>, scalar_prefetch = 0 : i64, scratch_operands = 0 : i64, tpu.core_type = #tpu.core_type<tc>, window_params = [{transform_indices = @transform_0, window_bounds = array<i64: 2, 16, 16, 512>}, {pipeline_mode = #tpu.pipeline_mode<synchronous>, transform_indices = @transform_1, window_bounds = array<i64: 512, 128>}, {pipeline_mode = #tpu.pipeline_mode<synchronous>, transform_indices = @transform_2, window_bounds = array<i64: 1, 128>}, {pipeline_mode = #tpu.pipeline_mode<synchronous>, transform_indices = @transform_3, window_bounds = array<i64: 384, 384>}, {pipeline_mode = #tpu.pipeline_mode<synchronous>, transform_indices = @transform_4, window_bounds = array<i64: 1, 128>}, {pipeline_mode = #tpu.pipeline_mode<synchronous>, transform_indices = @transform_5, window_bounds = array<i64: 128, 512>}, {pipeline_mode = #tpu.pipeline_mode<synchronous>, transform_indices = @transform_6, window_bounds = array<i64: 1, 512>}, {transform_indices = @transform_7, window_bounds = array<i64: 2, 16, 16, 512>}]} {
    %c0 = arith.constant 0 : index
    %c0_0 = arith.constant 0 : index
    %c0_1 = arith.constant 0 : index
    %c0_2 = arith.constant 0 : index
    %0 = vector.load %arg1[%c0, %c0_0, %c0_1, %c0_2] : memref<2x16x16x512xbf16, #tpu.memory_space<vmem>>, vector<2x16x16x512xbf16>
    %1 = vector.shape_cast %0 : vector<2x16x16x512xbf16> to vector<512x512xbf16>
    %c0_3 = arith.constant 0 : index
    %c0_4 = arith.constant 0 : index
    %2 = vector.load %arg2[%c0_3, %c0_4] : memref<512x128xbf16, #tpu.memory_space<vmem>>, vector<512x128xbf16>
    %cst = arith.constant dense<0.000000e+00> : vector<512x128xf32>
    %3 = tpu.matmul %1, %2, %cst {dimension_numbers = #tpu.dot_dimension_numbers<[1], [0], [0], [1], [0, 0, 1, 1], [], []>} : vector<512x512xbf16>, vector<512x128xbf16>, vector<512x128xf32> -> vector<512x128xf32>
    %c0_5 = arith.constant 0 : index
    %c0_6 = arith.constant 0 : index
    %4 = vector.load %arg3[%c0_5, %c0_6] : memref<1x128xf32, #tpu.memory_space<vmem>>, vector<1x128xf32>
    %5 = vector.broadcast %4 : vector<1x128xf32> to vector<512x128xf32>
    %6 = arith.addf %3, %5 : vector<512x128xf32>
    %cst_7 = arith.constant 0.000000e+00 : f32
    %7 = vector.broadcast %cst_7 : f32 to vector<512x128xf32>
    %8 = arith.maximumf %6, %7 : vector<512x128xf32>
    %9 = vector.shape_cast %8 : vector<512x128xf32> to vector<32x16x128xf32>
    %cst_8 = arith.constant 0.000000e+00 : f32
    %10 = vector.broadcast %cst_8 : f32 to vector<32x1x128xf32>
    %11 = vector.extract_strided_slice %9 {offsets = [0, 0, 0], sizes = [32, 15, 128], strides = [1, 1, 1]} : vector<32x16x128xf32> to vector<32x15x128xf32>
    %12 = tpu.concatenate %10, %11 in 1 : vector<32x1x128xf32>, vector<32x15x128xf32> -> vector<32x16x128xf32>
    %13 = arith.truncf %12 : vector<32x16x128xf32> to vector<32x16x128xbf16>
    %14 = vector.extract_strided_slice %9 {offsets = [0, 1, 0], sizes = [32, 15, 128], strides = [1, 1, 1]} : vector<32x16x128xf32> to vector<32x15x128xf32>
    %15 = tpu.concatenate %14, %10 in 1 : vector<32x15x128xf32>, vector<32x1x128xf32> -> vector<32x16x128xf32>
    %16 = arith.truncf %15 : vector<32x16x128xf32> to vector<32x16x128xbf16>
    %17 = arith.truncf %9 : vector<32x16x128xf32> to vector<32x16x128xbf16>
    %18 = tpu.concatenate %13, %17, %16 in 2 : vector<32x16x128xbf16>, vector<32x16x128xbf16>, vector<32x16x128xbf16> -> vector<32x16x384xbf16>
    %19 = vector.shape_cast %18 : vector<32x16x384xbf16> to vector<512x384xbf16>
    %c0_9 = arith.constant 0 : index
    %c0_10 = arith.constant 0 : index
    %20 = vector.load %arg4[%c0_9, %c0_10] : memref<384x384xbf16, #tpu.memory_space<vmem>>, vector<384x384xbf16>
    %cst_11 = arith.constant dense<0.000000e+00> : vector<512x384xf32>
    %21 = tpu.matmul %19, %20, %cst_11 {dimension_numbers = #tpu.dot_dimension_numbers<[1], [0], [0], [1], [0, 0, 1, 1], [], []>} : vector<512x384xbf16>, vector<384x384xbf16>, vector<512x384xf32> -> vector<512x384xf32>
    %22 = vector.shape_cast %21 : vector<512x384xf32> to vector<2x16x16x384xf32>
    %cst_12 = arith.constant 0.000000e+00 : f32
    %23 = vector.broadcast %cst_12 : f32 to vector<2x1x16x128xf32>
    %24 = vector.extract_strided_slice %22 {offsets = [0, 0, 0, 0], sizes = [2, 15, 16, 128], strides = [1, 1, 1, 1]} : vector<2x16x16x384xf32> to vector<2x15x16x128xf32>
    %25 = tpu.concatenate %23, %24 in 1 : vector<2x1x16x128xf32>, vector<2x15x16x128xf32> -> vector<2x16x16x128xf32>
    %26 = vector.extract_strided_slice %22 {offsets = [0, 1, 0, 256], sizes = [2, 15, 16, 128], strides = [1, 1, 1, 1]} : vector<2x16x16x384xf32> to vector<2x15x16x128xf32>
    %27 = tpu.concatenate %26, %23 in 1 : vector<2x15x16x128xf32>, vector<2x1x16x128xf32> -> vector<2x16x16x128xf32>
    %28 = vector.extract_strided_slice %22 {offsets = [0, 0, 0, 128], sizes = [2, 16, 16, 128], strides = [1, 1, 1, 1]} : vector<2x16x16x384xf32> to vector<2x16x16x128xf32>
    %29 = arith.addf %25, %28 : vector<2x16x16x128xf32>
    %30 = arith.addf %29, %27 : vector<2x16x16x128xf32>
    %31 = vector.shape_cast %30 : vector<2x16x16x128xf32> to vector<512x128xf32>
    %c0_13 = arith.constant 0 : index
    %c0_14 = arith.constant 0 : index
    %32 = vector.load %arg5[%c0_13, %c0_14] : memref<1x128xf32, #tpu.memory_space<vmem>>, vector<1x128xf32>
    %33 = vector.broadcast %32 : vector<1x128xf32> to vector<512x128xf32>
    %34 = arith.addf %31, %33 : vector<512x128xf32>
    %cst_15 = arith.constant 0.000000e+00 : f32
    %35 = vector.broadcast %cst_15 : f32 to vector<512x128xf32>
    %36 = arith.maximumf %34, %35 : vector<512x128xf32>
    %37 = arith.truncf %36 : vector<512x128xf32> to vector<512x128xbf16>
    %c0_16 = arith.constant 0 : index
    %c0_17 = arith.constant 0 : index
    %38 = vector.load %arg6[%c0_16, %c0_17] : memref<128x512xbf16, #tpu.memory_space<vmem>>, vector<128x512xbf16>
    %cst_18 = arith.constant dense<0.000000e+00> : vector<512x512xf32>
    %39 = tpu.matmul %37, %38, %cst_18 {dimension_numbers = #tpu.dot_dimension_numbers<[1], [0], [0], [1], [0, 0, 1, 1], [], []>} : vector<512x128xbf16>, vector<128x512xbf16>, vector<512x512xf32> -> vector<512x512xf32>
    %c0_19 = arith.constant 0 : index
    %c0_20 = arith.constant 0 : index
    %40 = vector.load %arg7[%c0_19, %c0_20] : memref<1x512xf32, #tpu.memory_space<vmem>>, vector<1x512xf32>
    %41 = vector.broadcast %40 : vector<1x512xf32> to vector<512x512xf32>
    %42 = arith.addf %39, %41 : vector<512x512xf32>
    %c0_21 = arith.constant 0 : index
    %c0_22 = arith.constant 0 : index
    %c0_23 = arith.constant 0 : index
    %c0_24 = arith.constant 0 : index
    %43 = vector.load %arg1[%c0_21, %c0_22, %c0_23, %c0_24] : memref<2x16x16x512xbf16, #tpu.memory_space<vmem>>, vector<2x16x16x512xbf16>
    %44 = vector.shape_cast %43 : vector<2x16x16x512xbf16> to vector<512x512xbf16>
    %45 = arith.extf %44 : vector<512x512xbf16> to vector<512x512xf32>
    %46 = arith.addf %42, %45 : vector<512x512xf32>
    %cst_25 = arith.constant 0.000000e+00 : f32
    %47 = vector.broadcast %cst_25 : f32 to vector<512x512xf32>
    %48 = arith.maximumf %46, %47 : vector<512x512xf32>
    %49 = vector.shape_cast %48 : vector<512x512xf32> to vector<2x16x16x512xf32>
    %50 = arith.truncf %49 : vector<2x16x16x512xf32> to vector<2x16x16x512xbf16>
    %c0_26 = arith.constant 0 : index
    %c0_27 = arith.constant 0 : index
    %c0_28 = arith.constant 0 : index
    %c0_29 = arith.constant 0 : index
    %51 = vector.load %arg8[%c0_26, %c0_27, %c0_28, %c0_29] : memref<2x16x16x512xbf16, #tpu.memory_space<vmem>>, vector<2x16x16x512xbf16>
    tpu.vector_store %arg8[%c0_26, %c0_27, %c0_28, %c0_29], %50 {strides = array<i32>} : memref<2x16x16x512xbf16, #tpu.memory_space<vmem>>, vector<2x16x16x512xbf16>,
    return
  }
  func.func @transform_0(%arg0: i32) -> (i32, i32, i32, i32) {
    %c0_i32 = arith.constant 0 : i32
    %c0_i32_0 = arith.constant 0 : i32
    %c0_i32_1 = arith.constant 0 : i32
    %c0_i32_2 = arith.constant 0 : i32
    return %arg0, %c0_i32, %c0_i32_0, %c0_i32_1 : i32, i32, i32, i32
  }
  func.func @transform_1(%arg0: i32) -> (i32, i32) {
    %c0_i32 = arith.constant 0 : i32
    %c0_i32_0 = arith.constant 0 : i32
    %c0_i32_1 = arith.constant 0 : i32
    return %c0_i32, %c0_i32_0 : i32, i32
  }
  func.func @transform_2(%arg0: i32) -> (i32, i32) {
    %c0_i32 = arith.constant 0 : i32
    %c0_i32_0 = arith.constant 0 : i32
    %c0_i32_1 = arith.constant 0 : i32
    return %c0_i32, %c0_i32_0 : i32, i32
  }
  func.func @transform_3(%arg0: i32) -> (i32, i32) {
    %c0_i32 = arith.constant 0 : i32
    %c0_i32_0 = arith.constant 0 : i32
    %c0_i32_1 = arith.constant 0 : i32
    return %c0_i32, %c0_i32_0 : i32, i32
  }
  func.func @transform_4(%arg0: i32) -> (i32, i32) {
    %c0_i32 = arith.constant 0 : i32
    %c0_i32_0 = arith.constant 0 : i32
    %c0_i32_1 = arith.constant 0 : i32
    return %c0_i32, %c0_i32_0 : i32, i32
  }
  func.func @transform_5(%arg0: i32) -> (i32, i32) {
    %c0_i32 = arith.constant 0 : i32
    %c0_i32_0 = arith.constant 0 : i32
    %c0_i32_1 = arith.constant 0 : i32
    return %c0_i32, %c0_i32_0 : i32, i32
  }
  func.func @transform_6(%arg0: i32) -> (i32, i32) {
    %c0_i32 = arith.constant 0 : i32
    %c0_i32_0 = arith.constant 0 : i32
    %c0_i32_1 = arith.constant 0 : i32
    return %c0_i32, %c0_i32_0 : i32, i32
  }
  func.func @transform_7(%arg0: i32) -> (i32, i32, i32, i32) {
    %c0_i32 = arith.constant 0 : i32
    %c0_i32_0 = arith.constant 0 : i32
    %c0_i32_1 = arith.constant 0 : i32
    %c0_i32_2 = arith.constant 0 : i32
    return %arg0, %c0_i32, %c0_i32_0, %c0_i32_1 : i32, i32, i32, i32
  }
}

</mosaic_0001>

<bundles_post_ra>
// kernel: resnet_block_nhwc.1
= control target key start
LH: loop header
LB: loop body
LE: loop exit
PB: predicated region body
PF: predicated region fallthrough
CT: control target
= control target key end

     0   :  { %12 = vsyncpa [#allocation3], 0  ;;  %s12008_s0 = inlined_call_operand.vmem [shape: bf16[4,16,16,512], index: 0, kind: input, shape index: {}]   ;;  %s12009_s1 = inlined_call_operand.vmem [shape: bf16[512,128], index: 1, kind: input, shape index: {}]   ;;  %s12010_s2 = inlined_call_operand.vmem [shape: f32[1,128], index: 2, kind: input, shape index: {}]   ;;  %s12011_s3 = inlined_call_operand.vmem [shape: bf16[384,384], index: 3, kind: input, shape index: {}]   ;;  %s12012_s4 = inlined_call_operand.vmem [shape: f32[1,128], index: 4, kind: input, shape index: {}]   ;;  %s12013_s5 = inlined_call_operand.vmem [shape: bf16[128,512], index: 5, kind: input, shape index: {}]   ;;  %s12014_s6 = inlined_call_operand.vmem [shape: f32[1,512], index: 6, kind: input, shape index: {}]   ;;  %s12015_s7 = inlined_call_operand.hbm [shape: bf16[4,16,16,512], index: 7, kind: output, shape index: {}]  }
   0x1   :  { %14 = vsyncpa [#allocation3 + $0x1], 0  ;;  %s9261_s24 = smov 0   ;;  %s9263_s25 = smov 0  }
   0x2   :  { %s9265_s26 = smov 0   ;;  %s9267_s27 = smov 0  }
   0x3 LB: > { %s9282_s28 = sadd.s32 4294967295, %s9214_s27   ;;  %s7207_s29 = sadd.s32 4294967294, %s9214_s27   ;;  %s9214_s27 = sphi %s9267_s27, %s12146_s27   ;;  %s9210_s26 = sphi %s9265_s26, %s12145_s26   ;;  %s9206_s25 = sphi %s9263_s25, %s12144_s25   ;;  %s9202_s24 = sphi %s9261_s24, %s12143_s24  }
   0x4   : > { %s9286_s30 = sadd.s32 1, %s9214_s27   ;;  %s179_s8 = sadd.s32 1, %s9210_s26 }
   0x5   : > { %s176_s9 = ssub.s32 %s9214_s27, %s9286_s30  ;;  %p189_p0 = scmp.ne.s32.totalorder %s9210_s26, %s9206_s25 }
   0x6   : > { %p177_p1 = scmp.eq.s32.totalorder %s176_s9, 0  ;;  %p190_p2 = scmp.eq.s32.totalorder %s9282_s28, 1 }
   0x7   : > { %p195_p3 = scmp.ne.s32.totalorder %s9206_s25, %s9202_s24  ;;  %p196_p4 = scmp.eq.s32.totalorder %s7207_s29, 1 }
   0x8   : > { %s9297_s10 = scalar_select %p177_p1, %s9210_s26, %s179_s8  }
   0x9   : > { %p9299_p5 = por %p190_p2, %p189_p0  ;;  %p9303_p6 = por %p196_p4, %p195_p3 }
   0xa   : > { %p7210_p7 = scmp.ge.s32.totalorder %s9214_s27, 1  ;;  %p242_p8 = scmp.lt.s32.totalorder %s9214_s27, 3 }
   0xc   : > { %p243_p9 = pnand %p7210_p7, %p242_p8 }
   0xe   : > { %246 = sbr.rel (%p243_p9) target bundleno = 1885 (0x75d), region = 48 }
  0x15   : > { %v8717_v0 = vld [vmem:[%s12009_s1] sm:$0xff]   ;;  %v12016_v1 = vmov 0   ;;  %s7212_s15 = sshll.u32 %s9282_s28, 1  ;;  %v8718_v2 = vld [vmem:[%s12009_s1 + $0x8] sm:$0xff]   ;;  %v8719_v3 = vld [vmem:[%s12009_s1 + $0x10] sm:$0xff]   ;;  %vm2021_vm0 = vcmask 1040384  }
  0x16   : > { %1315 = vmatprep.subr.bf16.mxu0 %v12016_v1  ;;  %p276_p10 = scmp.lt.s32.totalorder %s7212_s15, 3  ;;  %v8720_v4 = vld [vmem:[%s12009_s1 + $0x18] sm:$0xff]   ;;  %v8721_v5 = vld [vmem:[%s12009_s1 + $0x20] sm:$0xff]   ;;  %v8722_v9 = vld [vmem:[%s12009_s1 + $0x28] sm:$0xff]   ;;  %vm2246_vm1 = vcmask 1046528   ;;  %vm9217_vm3 = vmmov 1  }
  0x17   : > { %1316 = vmatpush1.bf16.msra.mxu0 %v8717_v0  ;;  %v8723_v10 = vld [vmem:[%s12009_s1 + $0x30] sm:$0xff]   ;;  %v8724_v11 = vld [vmem:[%s12009_s1 + $0x38] sm:$0xff]   ;;  %v8725_v12 = vld [vmem:[%s12009_s1 + $0x40] sm:$0xff]   ;;  %s272_s13 = sand.u32 1, %s9206_s25   ;;  %s9218_s23 = smov [#allocation2]  }
  0x18   : > { %1317 = vmatprep.subr.bf16.mxu0 %v12016_v1  ;;  %s12148_s15 = smov (!%p276_p10, %s7212_s15), 3  ;;  %v8726_v13 = vld [vmem:[%s12009_s1 + $0x48] sm:$0xff]   ;;  %v8727_v14 = vld [vmem:[%s12009_s1 + $0x50] sm:$0xff]   ;;  %v8728_v15 = vld [vmem:[%s12009_s1 + $0x58] sm:$0xff]   ;;  %s7211_s14 = sshll.u32 %s272_s13, 10 }
  0x19   : > { %s8063_s22 = sshll.u32 %s12148_s15, 9  ;;  %v8729_v16 = vld [vmem:[%s12009_s1 + $0x60] sm:$0xff]   ;;  %v8730_v17 = vld [vmem:[%s12009_s1 + $0x68] sm:$0xff]   ;;  %v8731_v18 = vld [vmem:[%s12009_s1 + $0x70] sm:$0xff]   ;;  %s11368_s15 = scalar_lea.vmem [#allocation2], %s7211_s14 }
  0x1a   : > { %s9329_s8 = scalar_lea.vmem %s12008_s0, %s8063_s22  ;;  %v8732_v19 = vld [vmem:[%s12009_s1 + $0x78] sm:$0xff]   ;;  %v8735_v22 = vld [vmem:[%s12009_s1 + $0x80] sm:$0xff]   ;;  %v8740_v27 = vld [vmem:[%s12009_s1 + $0x88] sm:$0xff]   ;;  %s7145_s18 = sshll.u32 %s11368_s15, 4  ;;  %s11961_s18 = int_to_ptr.vmem [resolvable:$true] %s7145_s18 }
  0x1b   : > { %1318 = vmatpush1.bf16.msra.mxu0 %v8718_v2  ;;  %v284_v6 = vld [vmem:[%s9329_s8] sm:$0xff]  ;;  %v286_v7 = vld [vmem:[%s9329_s8 + $0x10] sm:$0xff]  ;;  %v8750_v33 = vld [vmem:[%s12009_s1 + $0x98] sm:$0xff]   ;;  %s11967_s22 = scalar_lea.sflag [#allocation3], %s272_s13  ;;  %s9156_s29 = sshll.u32 %s9218_s23, 4  ;;  %s9157_s29 = int_to_ptr.vmem [resolvable:$false] %s9156_s29 }
  0x1c   : > { %1319 = vmatprep.subr.bf16.mxu0 %v12016_v1  ;;  %v7217_v8 = vcombine.high %v284_v6, %v286_v7  ;;  %v288_v20 = vld [vmem:[%s9329_s8 + $0x20] sm:$0xff]  ;;  %v290_v21 = vld [vmem:[%s9329_s8 + $0x30] sm:$0xff]  ;;  %v7216_v23 = vcombine.low %v284_v6, %v286_v7  ;;  %v8760_v39 = vld [vmem:[%s12009_s1 + $0xa8] sm:$0xff]   ;;  %s9158_s9 = scalar_lea.vmem %s9157_s29, 32768  ;;  %p9159_p0 = scmp.lt.s32.totalorder %s11961_s18, %s9157_s29 }
  0x1d   : > { %v7221_v24 = vcombine.high %v288_v20, %v290_v21  ;;  %v292_v25 = vld [vmem:[%s9329_s8 + $0x40] sm:$0xff]  ;;  %v294_v26 = vld [vmem:[%s9329_s8 + $0x50] sm:$0xff]  ;;  %v7220_v29 = vcombine.low %v288_v20, %v290_v21  ;;  %v8770_v43 = vld [vmem:[%s12009_s1 + $0xb8] sm:$0xff]  }
  0x1e   : > { %1347 = vmatprep.mubr.bf16.mxu0 %v7217_v8  ;;  %v8745_v28 = vld [vmem:[%s12009_s1 + $0x90] sm:$0xff]   ;;  %v7225_v30 = vcombine.high %v292_v25, %v294_v26  ;;  %v296_v31 = vld [vmem:[%s9329_s8 + $0x60] sm:$0xff]  ;;  %v7224_v35 = vcombine.low %v292_v25, %v294_v26  ;;  %v8780_v49 = vld [vmem:[%s12009_s1 + $0xc8] sm:$0xff]  }
  0x1f   : > { %1320 = vmatpush1.bf16.msra.mxu0 %v8719_v3  ;;  %v298_v32 = vld [vmem:[%s9329_s8 + $0x70] sm:$0xff]  ;;  %v8755_v34 = vld [vmem:[%s12009_s1 + $0xa0] sm:$0xff]   ;;  %v8790_v59 = vld [vmem:[%s12009_s1 + $0xd8] sm:$0xff]  }
  0x20   : > { %1321 = vmatprep.subr.bf16.mxu0 %v12016_v1  ;;  %v7229_v36 = vcombine.high %v296_v31, %v298_v32  ;;  %v300_v37 = vld [vmem:[%s9329_s8 + $0x80] sm:$0xff]  ;;  %v302_v38 = vld [vmem:[%s9329_s8 + $0x90] sm:$0xff]  ;;  %v7228_v40 = vcombine.low %v296_v31, %v298_v32  ;;  %v8810_v32 = vld [vmem:[%s12009_s1 + $0xf8] sm:$0xff]  }
  0x21   : > { %v7233_v41 = vcombine.high %v300_v37, %v302_v38  ;;  %v8765_v42 = vld [vmem:[%s12009_s1 + $0xb0] sm:$0xff]   ;;  %v304_v44 = vld [vmem:[%s9329_s8 + $0xa0] sm:$0xff]  ;;  %v7232_v46 = vcombine.low %v300_v37, %v302_v38  ;;  %vm7448_vm2 = vmneg %vm2021_vm0 }
  0x22   : > { %v306_v45 = vld [vmem:[%s9329_s8 + $0xb0] sm:$0xff]  ;;  %v8775_v48 = vld [vmem:[%s12009_s1 + $0xc0] sm:$0xff]   ;;  %vm9778_vm4 = vmpackc.low %vm9217_vm3, %vm7448_vm2 }
  0x23   : > { %1322 = vmatpush1.bf16.msra.mxu0 %v8720_v4  ;;  %v7237_v47 = vcombine.high %v304_v44, %v306_v45  ;;  %v308_v50 = vld [vmem:[%s9329_s8 + $0xc0] sm:$0xff]  ;;  %v310_v51 = vld [vmem:[%s9329_s8 + $0xd0] sm:$0xff]  ;;  %v7236_v52 = vcombine.low %v304_v44, %v306_v45  ;;  %vm10418_vm5 = vmpackc.low %vm2246_vm1, %vm9217_vm3 }
  0x24   : > { %1323 = vmatprep.subr.bf16.mxu0 %v12016_v1  ;;  %v7241_v53 = vcombine.high %v308_v50, %v310_v51  ;;  %v8785_v54 = vld [vmem:[%s12009_s1 + $0xd0] sm:$0xff]   ;;  %v312_v55 = vld [vmem:[%s9329_s8 + $0xe0] sm:$0xff]  ;;  %v7240_v57 = vcombine.low %v308_v50, %v310_v51  ;;  %v9495_v51 = vld [vmem:[%s12011_s3 + $0x1c] ss:$12 sps:$4 sm:$0xff]  }
  0x25   : > { %v314_v56 = vld [vmem:[%s9329_s8 + $0xf0] sm:$0xff]  ;;  %v316_v60 = vld [vmem:[%s9329_s8 + $0x100] sm:$0xff] }
  0x26   : > { %v7245_v58 = vcombine.high %v312_v55, %v314_v56  ;;  %v318_v61 = vld [vmem:[%s9329_s8 + $0x110] sm:$0xff]  ;;  %v7244_v62 = vcombine.low %v312_v55, %v314_v56  ;;  %v320_v0 = vld [vmem:[%s9329_s8 + $0x120] sm:$0xff] }
  0x27   : > { %1324 = vmatpush1.bf16.msra.mxu0 %v8721_v5  ;;  %v7249_v63 = vcombine.high %v316_v60, %v318_v61  ;;  %v322_v2 = vld [vmem:[%s9329_s8 + $0x130] sm:$0xff]  ;;  %v7248_v3 = vcombine.low %v316_v60, %v318_v61  ;;  %v8795_v5 = vld [vmem:[%s12009_s1 + $0xe0] sm:$0xff]  }
  0x28   : > { %1325 = vmatprep.subr.bf16.mxu0 %v12016_v1  ;;  %v7253_v4 = vcombine.high %v320_v0, %v322_v2  ;;  %v324_v6 = vld [vmem:[%s9329_s8 + $0x140] sm:$0xff]  ;;  %v326_v7 = vld [vmem:[%s9329_s8 + $0x150] sm:$0xff]  ;;  %v7252_v8 = vcombine.low %v320_v0, %v322_v2 }
  0x29   : > { %v338_v20 = vld [vmem:[%s9329_s8 + $0x1b0] sm:$0xff]  ;;  %v352_v37 = vld [vmem:[%s9329_s8 + $0x220] sm:$0xff] }
  0x2a   : > { %v342_v25 = vld [vmem:[%s9329_s8 + $0x1d0] sm:$0xff] }
  0x2b   : > { %1326 = vmatpush1.bf16.msra.mxu0 %v8722_v9  ;;  %v7257_v9 = vcombine.high %v324_v6, %v326_v7  ;;  %v354_v38 = vld [vmem:[%s9329_s8 + $0x230] sm:$0xff] }
  0x2c   : > { %1327 = vmatprep.subr.bf16.mxu0 %v12016_v1  ;;  %v358_v44 = vld [vmem:[%s9329_s8 + $0x250] sm:$0xff]  ;;  %v7284_v45 = vcombine.low %v352_v37, %v354_v38 }
  0x2d   : > { %v9511_v61 = vld [vmem:[%s12011_s3 + $0x34] ss:$12 sps:$4 sm:$0xff]  }
  0x2e   : > { %v374_v0 = vld [vmem:[%s9329_s8 + $0x2d0] sm:$0xff] }
  0x2f   : > { %1328 = vmatpush1.bf16.msra.mxu0 %v8723_v10  ;;  %v328_v10 = vld [vmem:[%s9329_s8 + $0x160] sm:$0xff] }
  0x30   : > { %1329 = vmatprep.subr.bf16.mxu0 %v12016_v1 }
  0x33   : > { %1330 = vmatpush1.bf16.msra.mxu0 %v8724_v11  ;;  %v330_v11 = vld [vmem:[%s9329_s8 + $0x170] sm:$0xff] }
  0x34   : > { %1331 = vmatprep.subr.bf16.mxu0 %v12016_v1 }
  0x37   : > { %1332 = vmatpush1.bf16.msra.mxu0 %v8725_v12  ;;  %v7256_v12 = vcombine.low %v324_v6, %v326_v7 }
  0x38   : > { %1333 = vmatprep.subr.bf16.mxu0 %v12016_v1 }
  0x3b   : > { %1334 = vmatpush1.bf16.msra.mxu0 %v8726_v13  ;;  %v7261_v13 = vcombine.high %v328_v10, %v330_v11 }
  0x3c   : > { %1335 = vmatprep.subr.bf16.mxu0 %v12016_v1 }
  0x3f   : > { %1336 = vmatpush1.bf16.msra.mxu0 %v8727_v14  ;;  %v8800_v14 = vld [vmem:[%s12009_s1 + $0xe8] sm:$0xff]  }
  0x40   : > { %1337 = vmatprep.subr.bf16.mxu0 %v12016_v1 }
  0x43   : > { %1338 = vmatpush1.bf16.msra.mxu0 %v8728_v15  ;;  %v332_v15 = vld [vmem:[%s9329_s8 + $0x180] sm:$0xff] }
  0x44   : > { %1339 = vmatprep.subr.bf16.mxu0 %v12016_v1 }
  0x47   : > { %1340 = vmatpush1.bf16.msra.mxu0 %v8729_v16  ;;  %v334_v16 = vld [vmem:[%s9329_s8 + $0x190] sm:$0xff] }
  0x48   : > { %1341 = vmatprep.subr.bf16.mxu0 %v12016_v1  ;;  %v7264_v21 = vcombine.low %v332_v15, %v334_v16 }
  0x4b   : > { %1342 = vmatpush1.bf16.msra.mxu0 %v8730_v17  ;;  %v7260_v17 = vcombine.low %v328_v10, %v330_v11  ;;  %v380_v10 = vld [vmem:[%s9329_s8 + $0x300] sm:$0xff]  ;;  %v382_v11 = vld [vmem:[%s9329_s8 + $0x310] sm:$0xff] }
  0x4c   : > { %1343 = vmatprep.subr.bf16.mxu0 %v12016_v1 }
  0x4f   : > { %1344 = vmatpush1.bf16.msra.mxu0 %v8731_v18  ;;  %v7265_v18 = vcombine.high %v332_v15, %v334_v16  ;;  %v386_v15 = vld [vmem:[%s9329_s8 + $0x330] sm:$0xff]  ;;  %v7312_v16 = vcombine.low %v380_v10, %v382_v11 }
  0x50   : > { %1345 = vmatprep.subr.bf16.mxu0 %v12016_v1 }
  0x53   : > { %1346 = vmatpush1.bf16.msra.mxu0 %v8732_v19  ;;  %v336_v19 = vld [vmem:[%s9329_s8 + $0x1a0] sm:$0xff] }
  0x54   : > { %1604 = vmatprep.subr.bf16.mxu0 %v12016_v1  ;;  %v7268_v26 = vcombine.low %v336_v19, %v338_v20 }
  0x56   : > { %1348 = vmatmul.mubr.bf16.vlgmr.msra.gmra.mrb[0].mxu0 %v7216_v23  ;;  %v8805_v23 = vld [vmem:[%s12009_s1 + $0xf0] sm:$0xff]  }
  0x57   : > { %1605 = vmatpush1.bf16.msra.mxu0 %v8735_v22  ;;  %1355 = vmatprep.mubr.bf16.mxu0 %v7221_v24  ;;  %v7269_v22 = vcombine.high %v336_v19, %v338_v20  ;;  %v340_v24 = vld [vmem:[%s9329_s8 + $0x1c0] sm:$0xff] }
  0x58   : > { %1606 = vmatprep.subr.bf16.mxu0 %v12016_v1  ;;  %v9548_v19 = vld [vmem:[%s12011_s3 + $0x60] ss:$12 sps:$4 sm:$0xff]  }
  0x59   : > { %v388_v20 = vld [vmem:[%s9329_s8 + $0x340] sm:$0xff] }
  0x5b   : > { %1607 = vmatpush1.bf16.msra.mxu0 %v8740_v27  ;;  %v7273_v27 = vcombine.high %v340_v24, %v342_v25 }
  0x5c   : > { %1608 = vmatprep.subr.bf16.mxu0 %v12016_v1 }
  0x5e   : > { %1356 = vmatmul.mubr.bf16.gmra.mrb[4].mxu0 %v7220_v29  ;;  %v346_v29 = vld [vmem:[%s9329_s8 + $0x1f0] sm:$0xff] }
  0x5f   : > { %1363 = vmatprep.mubr.bf16.mxu0 %v7225_v30  ;;  %1609 = vmatpush1.bf16.msra.mxu0 %v8745_v28  ;;  %v344_v28 = vld [vmem:[%s9329_s8 + $0x1e0] sm:$0xff]  ;;  %v7272_v30 = vcombine.low %v340_v24, %v342_v25  ;;  %v394_v25 = vld [vmem:[%s9329_s8 + $0x370] sm:$0xff] }
  0x60   : > { %1610 = vmatprep.subr.bf16.mxu0 %v12016_v1  ;;  %v7277_v31 = vcombine.high %v344_v28, %v346_v29  ;;  %v392_v24 = vld [vmem:[%s9329_s8 + $0x360] sm:$0xff] }
  0x63   : > { %1611 = vmatpush1.bf16.msra.mxu0 %v8750_v33  ;;  %v348_v33 = vld [vmem:[%s9329_s8 + $0x200] sm:$0xff] }
  0x64   : > { %1612 = vmatprep.subr.bf16.mxu0 %v12016_v1 }
  0x66   : > { %1364 = vmatmul.mubr.bf16.gmra.mrb[8].mxu0 %v7224_v35  ;;  %v7276_v35 = vcombine.low %v344_v28, %v346_v29  ;;  %v9559_v28 = vld [vmem:[%s12011_s3 + $0x7c] ss:$12 sps:$4 sm:$0xff]   ;;  %v9564_v29 = vld [vmem:[%s12011_s3 + $0x78] ss:$12 sps:$4 sm:$0xff]  }
  0x67   : > { %1371 = vmatprep.mubr.bf16.mxu0 %v7229_v36  ;;  %1613 = vmatpush1.bf16.msra.mxu0 %v8755_v34  ;;  %v350_v34 = vld [vmem:[%s9329_s8 + $0x210] sm:$0xff] }
  0x68   : > { %1614 = vmatprep.subr.bf16.mxu0 %v12016_v1  ;;  %v7281_v36 = vcombine.high %v348_v33, %v350_v34 }
  0x6b   : > { %1615 = vmatpush1.bf16.msra.mxu0 %v8760_v39  ;;  %v7280_v39 = vcombine.low %v348_v33, %v350_v34  ;;  %v400_v34 = vld [vmem:[%s9329_s8 + $0x3a0] sm:$0xff] }
  0x6c   : > { %1616 = vmatprep.subr.bf16.mxu0 %v12016_v1 }
  0x6e   : > { %1372 = vmatmul.mubr.bf16.gmra.mrb[12].mxu0 %v7228_v40  ;;  %v7285_v40 = vcombine.high %v352_v37, %v354_v38  ;;  %v9575_v38 = vld [vmem:[%s12011_s3 + $0x94] ss:$12 sps:$4 sm:$0xff]  }
  0x6f   : > { %1379 = vmatprep.mubr.bf16.mxu0 %v7233_v41  ;;  %1617 = vmatpush1.bf16.msra.mxu0 %v8765_v42  ;;  %v8817_v41 = vld [vmem:[%s12011_s3 + $0x4] ss:$12 sps:$4 sm:$0xff]   ;;  %v9485_v42 = vld [vmem:[%s12011_s3] ss:$12 sps:$4 sm:$0xff]  }
  0x70   : > { %1618 = vmatprep.subr.bf16.mxu0 %v12016_v1  ;;  %8314 = vmatprep.subr.bf16.mxu1 %v8817_v41 }
  0x71   : > { %8330 = vmatpush1.bf16.msra.mxu1 %v9485_v42 }
  0x72   : > { %8315 = vmatprep.subr.bf16.mxu1 %v9495_v51 }
  0x73   : > { %1619 = vmatpush1.bf16.msra.mxu0 %v8770_v43  ;;  %v356_v43 = vld [vmem:[%s9329_s8 + $0x240] sm:$0xff] }
  0x74   : > { %1620 = vmatprep.subr.bf16.mxu0 %v12016_v1 }
  0x76   : > { %1380 = vmatmul.mubr.bf16.gmra.mrb[16].mxu0 %v7232_v46  ;;  %v7289_v46 = vcombine.high %v356_v43, %v358_v44 }
  0x77   : > { %1387 = vmatprep.mubr.bf16.mxu0 %v7237_v47  ;;  %1621 = vmatpush1.bf16.msra.mxu0 %v8775_v48  ;;  %v360_v47 = vld [vmem:[%s9329_s8 + $0x260] sm:$0xff]  ;;  %v362_v48 = vld [vmem:[%s9329_s8 + $0x270] sm:$0xff] }
  0x78   : > { %1622 = vmatprep.subr.bf16.mxu0 %v12016_v1  ;;  %v7293_v50 = vcombine.high %v360_v47, %v362_v48  ;;  %v7292_v55 = vcombine.low %v360_v47, %v362_v48 }
  0x7b   : > { %1623 = vmatpush1.bf16.msra.mxu0 %v8780_v49  ;;  %v7288_v49 = vcombine.low %v356_v43, %v358_v44 }
  0x7c   : > { %1624 = vmatprep.subr.bf16.mxu0 %v12016_v1 }
  0x7e   : > { %1388 = vmatmul.mubr.bf16.gmra.mrb[20].mxu0 %v7236_v52  ;;  %v9500_v52 = vld [vmem:[%s12011_s3 + $0x18] ss:$12 sps:$4 sm:$0xff]  }
  0x7f   : > { %1395 = vmatprep.mubr.bf16.mxu0 %v7241_v53  ;;  %1625 = vmatpush1.bf16.msra.mxu0 %v8785_v54  ;;  %v364_v53 = vld [vmem:[%s9329_s8 + $0x280] sm:$0xff]  ;;  %v366_v54 = vld [vmem:[%s9329_s8 + $0x290] sm:$0xff] }
  0x80   : > { %1626 = vmatprep.subr.bf16.mxu0 %v12016_v1  ;;  %8331 = vmatpush1.bf16.msra.mxu1 %v9500_v52  ;;  %v7297_v56 = vcombine.high %v364_v53, %v366_v54 }
  0x81   : > { %8316 = vmatprep.subr.bf16.mxu1 %v9511_v61 }
  0x83   : > { %1627 = vmatpush1.bf16.msra.mxu0 %v8790_v59  ;;  %v7296_v59 = vcombine.low %v364_v53, %v366_v54  ;;  %v285_v53 = vld [vmem:[%s9329_s8 + $0x8] sm:$0xff]  ;;  %v287_v54 = vld [vmem:[%s9329_s8 + $0x18] sm:$0xff] }
  0x84   : > { %1628 = vmatprep.subr.bf16.mxu0 %v12016_v1 }
  0x86   : > { %1396 = vmatmul.mubr.bf16.gmra.mrb[24].mxu0 %v7240_v57  ;;  %v368_v57 = vld [vmem:[%s9329_s8 + $0x2a0] sm:$0xff] }
  0x87   : > { %1403 = vmatprep.mubr.bf16.mxu0 %v7245_v58  ;;  %1629 = vmatpush1.bf16.msra.mxu0 %v8795_v5  ;;  %v370_v58 = vld [vmem:[%s9329_s8 + $0x2b0] sm:$0xff] }
  0x88   : > { %1630 = vmatprep.subr.bf16.mxu0 %v12016_v1  ;;  %v7301_v60 = vcombine.high %v368_v57, %v370_v58  ;;  %v7300_v2 = vcombine.low %v368_v57, %v370_v58  ;;  %v378_v5 = vld [vmem:[%s9329_s8 + $0x2f0] sm:$0xff]  ;;  %v289_v57 = vld [vmem:[%s9329_s8 + $0x28] sm:$0xff]  ;;  %v291_v58 = vld [vmem:[%s9329_s8 + $0x38] sm:$0xff] }
  0x8b   : > { %1631 = vmatpush1.bf16.msra.mxu0 %v8800_v14  ;;  %v384_v14 = vld [vmem:[%s9329_s8 + $0x320] sm:$0xff] }
  0x8c   : > { %1632 = vmatprep.subr.bf16.mxu0 %v12016_v1 }
  0x8e   : > { %1404 = vmatmul.mubr.bf16.gmra.mrb[28].mxu0 %v7244_v62  ;;  %v9516_v62 = vld [vmem:[%s12011_s3 + $0x30] ss:$12 sps:$4 sm:$0xff]  }
  0x8f   : > { %1411 = vmatprep.mubr.bf16.mxu0 %v7249_v63  ;;  %1633 = vmatpush1.bf16.msra.mxu0 %v8805_v23  ;;  %v372_v63 = vld [vmem:[%s9329_s8 + $0x2c0] sm:$0xff] }
  0x90   : > { %1634 = vmatprep.subr.bf16.mxu0 %v12016_v1  ;;  %8332 = vmatpush1.bf16.msra.mxu1 %v9516_v62  ;;  %v7304_v6 = vcombine.low %v372_v63, %v374_v0 }
  0x93   : > { %1635 = vmatpush1.bf16.msra.mxu0 %v8810_v32  ;;  %v7324_v32 = vcombine.low %v392_v24, %v394_v25 }
  0x94   : > { %2983 = vmatprep.subr.bf16.mxu0 %v8817_v41  ;;  %v406_v41 = vld [vmem:[%s9329_s8 + $0x3d0] sm:$0xff] }
  0x96   : > { %1412 = vmatmul.mubr.bf16.gmra.mrb[32].mxu0 %v7248_v3  ;;  %v7305_v3 = vcombine.high %v372_v63, %v374_v0  ;;  %v8873_v63 = vld [vmem:[%s12011_s3 + $0xc4] ss:$12 sps:$4 sm:$0xff]   ;;  %v8871_v0 = vld [vmem:[%s12011_s3 + $0xc0] ss:$12 sps:$4 sm:$0xff]  }
  0x97   : > { %1419 = vmatprep.mubr.bf16.mxu0 %v7253_v4  ;;  %v376_v4 = vld [vmem:[%s9329_s8 + $0x2e0] sm:$0xff] }
  0x98   : > { %v7309_v7 = vcombine.high %v376_v4, %v378_v5 }
  0x9e   : > { %1420 = vmatmul.mubr.bf16.gmra.mrb[36].mxu0 %v7252_v8  ;;  %v9527_v8 = vld [vmem:[%s12011_s3 + $0x4c] ss:$12 sps:$4 sm:$0xff]  }
  0x9f   : > { %1427 = vmatprep.mubr.bf16.mxu0 %v7257_v9  ;;  %v9532_v9 = vld [vmem:[%s12011_s3 + $0x48] ss:$12 sps:$4 sm:$0xff]   ;;  %8317 = vmatprep.subr.bf16.mxu1 %v9527_v8 }
  0xa0   : > { %8333 = vmatpush1.bf16.msra.mxu1 %v9532_v9 }
  0xa6   : > { %1428 = vmatmul.mubr.bf16.gmra.mrb[40].mxu0 %v7256_v12  ;;  %v7308_v12 = vcombine.low %v376_v4, %v378_v5  ;;  %v7222_v4 = vcombine.low %v289_v57, %v291_v58 }
  0xa7   : > { %1435 = vmatprep.mubr.bf16.mxu0 %v7261_v13  ;;  %v7313_v13 = vcombine.high %v380_v10, %v382_v11  ;;  %v305_v11 = vld [vmem:[%s9329_s8 + $0xa8] sm:$0xff] }
  0xae   : > { %1436 = vmatmul.mubr.bf16.gmra.mrb[44].mxu0 %v7260_v17  ;;  %v7317_v17 = vcombine.high %v384_v14, %v386_v15 }
  0xaf   : > { %1443 = vmatprep.mubr.bf16.mxu0 %v7265_v18  ;;  %v9543_v18 = vld [vmem:[%s12011_s3 + $0x64] ss:$12 sps:$4 sm:$0xff]  }
  0xb0   : > { %8318 = vmatprep.subr.bf16.mxu1 %v9543_v18 }
  0xb1   : > { %8334 = vmatpush1.bf16.msra.mxu1 %v9548_v19 }
  0xb2   : > { %8319 = vmatprep.subr.bf16.mxu1 %v9559_v28 }
  0xb5   : > { %8335 = vmatpush1.bf16.msra.mxu1 %v9564_v29 }
  0xb6   : > { %1444 = vmatmul.mubr.bf16.gmra.mrb[48].mxu0 %v7264_v21  ;;  %v390_v21 = vld [vmem:[%s9329_s8 + $0x350] sm:$0xff]  ;;  %8320 = vmatprep.subr.bf16.mxu1 %v9575_v38 }
  0xb7   : > { %1451 = vmatprep.mubr.bf16.mxu0 %v7269_v22  ;;  %v7316_v22 = vcombine.low %v384_v14, %v386_v15  ;;  %v7321_v23 = vcombine.high %v388_v20, %v390_v21  ;;  %v8887_v15 = vld [vmem:[%s12011_s3 + $0xf4] ss:$12 sps:$4 sm:$0xff]  }
  0xbe   : > { %1452 = vmatmul.mubr.bf16.gmra.mrb[52].mxu0 %v7268_v26  ;;  %v7320_v26 = vcombine.low %v388_v20, %v390_v21  ;;  %v313_v21 = vld [vmem:[%s9329_s8 + $0xe8] sm:$0xff] }
  0xbf   : > { %1459 = vmatprep.mubr.bf16.mxu0 %v7273_v27  ;;  %v7325_v27 = vcombine.high %v392_v24, %v394_v25  ;;  %v8892_v25 = vld [vmem:[%s12011_s3 + $0x108] ss:$12 sps:$4 sm:$0xff]  }
  0xc6   : > { %1460 = vmatmul.mubr.bf16.gmra.mrb[56].mxu0 %v7272_v30  ;;  %v396_v30 = vld [vmem:[%s9329_s8 + $0x380] sm:$0xff] }
  0xc7   : > { %1467 = vmatprep.mubr.bf16.mxu0 %v7277_v31  ;;  %v398_v31 = vld [vmem:[%s9329_s8 + $0x390] sm:$0xff] }
  0xc8   : > { %v7329_v33 = vcombine.high %v396_v30, %v398_v31 }
  0xce   : > { %1468 = vmatmul.mubr.bf16.gmra.mrb[60].mxu0 %v7276_v35  ;;  %v402_v35 = vld [vmem:[%s9329_s8 + $0x3b0] sm:$0xff] }
  0xcf   : > { %1475 = vmatprep.mubr.bf16.mxu0 %v7281_v36  ;;  %v7328_v36 = vcombine.low %v396_v30, %v398_v31  ;;  %v7333_v37 = vcombine.high %v400_v34, %v402_v35  ;;  %v7332_v43 = vcombine.low %v400_v34, %v402_v35  ;;  %v321_v31 = vld [vmem:[%s9329_s8 + $0x128] sm:$0xff] }
  0xd0   : > { %v8899_v35 = vld [vmem:[%s12011_s3 + $0x120] ss:$12 sps:$4 sm:$0xff]  }
  0xd6   : > { %1476 = vmatmul.mubr.bf16.gmra.mrb[64].mxu0 %v7280_v39  ;;  %v9580_v39 = vld [vmem:[%s12011_s3 + $0x90] ss:$12 sps:$4 sm:$0xff]  }
  0xd7   : > { %1483 = vmatprep.mubr.bf16.mxu0 %v7285_v40  ;;  %v404_v40 = vld [vmem:[%s9329_s8 + $0x3c0] sm:$0xff]  ;;  %8336 = vmatpush1.bf16.msra.mxu1 %v9580_v39 }
  0xd8   : > { %v7337_v44 = vcombine.high %v404_v40, %v406_v41  ;;  %v7336_v47 = vcombine.low %v404_v40, %v406_v41  ;;  %v329_v41 = vld [vmem:[%s9329_s8 + $0x168] sm:$0xff] }
  0xde   : > { %1484 = vmatmul.mubr.bf16.gmra.mrb[68].mxu0 %v7284_v45  ;;  %v408_v45 = vld [vmem:[%s9329_s8 + $0x3e0] sm:$0xff] }
  0xdf   : > { %1491 = vmatprep.mubr.bf16.mxu0 %v7289_v46  ;;  %v410_v46 = vld [vmem:[%s9329_s8 + $0x3f0] sm:$0xff] }
  0xe0   : > { %v7341_v48 = vcombine.high %v408_v45, %v410_v46 }
  0xe6   : > { %1492 = vmatmul.mubr.bf16.gmra.mrb[72].mxu0 %v7288_v49  ;;  %v8866_v49 = vld [vmem:[%s12011_s3 + $0xac] ss:$12 sps:$4 sm:$0xff]  }
  0xe7   : > { %1499 = vmatprep.mubr.bf16.mxu0 %v7293_v50  ;;  %v8864_v50 = vld [vmem:[%s12011_s3 + $0xa8] ss:$12 sps:$4 sm:$0xff]   ;;  %8321 = vmatprep.subr.bf16.mxu1 %v8866_v49 }
  0xe8   : > { %8337 = vmatpush1.bf16.msra.mxu1 %v8864_v50 }
  0xe9   : > { %8322 = vmatprep.subr.bf16.mxu1 %v8873_v63 }
  0xec   : > { %8338 = vmatpush1.bf16.msra.mxu1 %v8871_v0 }
  0xee   : > { %1500 = vmatmul.mubr.bf16.gmra.mrb[76].mxu0 %v7292_v55  ;;  %v7340_v55 = vcombine.low %v408_v45, %v410_v46  ;;  %v8906_v46 = vld [vmem:[%s12011_s3 + $0x138] ss:$12 sps:$4 sm:$0xff]  }
  0xef   : > { %1507 = vmatprep.mubr.bf16.mxu0 %v7297_v56  ;;  %v7219_v56 = vcombine.high %v285_v53, %v287_v54 }
  0xf6   : > { %1508 = vmatmul.mubr.bf16.gmra.mrb[80].mxu0 %v7296_v59  ;;  %v7218_v59 = vcombine.low %v285_v53, %v287_v54  ;;  %v337_v54 = vld [vmem:[%s9329_s8 + $0x1a8] sm:$0xff] }
  0xf7   : > { %1515 = vmatprep.mubr.bf16.mxu0 %v7301_v60  ;;  %v7223_v60 = vcombine.high %v289_v57, %v291_v58  ;;  %v341_v58 = vld [vmem:[%s9329_s8 + $0x1c8] sm:$0xff] }
  0xfe   : > { %1516 = vmatmul.mubr.bf16.gmra.mrb[84].mxu0 %v7300_v2  ;;  %v293_v2 = vld [vmem:[%s9329_s8 + $0x48] sm:$0xff] }
  0xff   : > { %1523 = vmatprep.mubr.bf16.mxu0 %v7305_v3  ;;  %v295_v3 = vld [vmem:[%s9329_s8 + $0x58] sm:$0xff] }
 0x100   : > { %v7227_v5 = vcombine.high %v293_v2, %v295_v3 }
 0x106   : > { %1524 = vmatmul.mubr.bf16.gmra.mrb[88].mxu0 %v7304_v6  ;;  %v299_v6 = vld [vmem:[%s9329_s8 + $0x78] sm:$0xff] }
 0x107   : > { %1531 = vmatprep.mubr.bf16.mxu0 %v7309_v7  ;;  %v7226_v7 = vcombine.low %v293_v2, %v295_v3  ;;  %v345_v3 = vld [vmem:[%s9329_s8 + $0x1e8] sm:$0xff] }
 0x10e   : > { %1532 = vmatmul.mubr.bf16.gmra.mrb[92].mxu0 %v7308_v12  ;;  %v307_v12 = vld [vmem:[%s9329_s8 + $0xb8] sm:$0xff] }
 0x10f   : > { %1539 = vmatprep.mubr.bf16.mxu0 %v7313_v13  ;;  %v7239_v14 = vcombine.high %v305_v11, %v307_v12 }
 0x116   : > { %1540 = vmatmul.mubr.bf16.gmra.mrb[96].mxu0 %v7312_v16  ;;  %v8885_v16 = vld [vmem:[%s12011_s3 + $0xf0] ss:$12 sps:$4 sm:$0xff]  }
 0x117   : > { %1547 = vmatprep.mubr.bf16.mxu0 %v7317_v17  ;;  %v309_v17 = vld [vmem:[%s9329_s8 + $0xc8] sm:$0xff] }
 0x11e   : > { %1548 = vmatmul.mubr.bf16.gmra.mrb[100].mxu0 %v7316_v22  ;;  %v315_v22 = vld [vmem:[%s9329_s8 + $0xf8] sm:$0xff] }
 0x11f   : > { %1555 = vmatprep.mubr.bf16.mxu0 %v7321_v23  ;;  %v7247_v24 = vcombine.high %v313_v21, %v315_v22 }
 0x126   : > { %1556 = vmatmul.mubr.bf16.gmra.mrb[104].mxu0 %v7320_v26  ;;  %v8894_v26 = vld [vmem:[%s12011_s3 + $0x10c] ss:$12 sps:$4 sm:$0xff]  }
 0x127   : > { %1563 = vmatprep.mubr.bf16.mxu0 %v7325_v27  ;;  %v317_v27 = vld [vmem:[%s9329_s8 + $0x108] sm:$0xff] }
 0x12e   : > { %1564 = vmatmul.mubr.bf16.gmra.mrb[108].mxu0 %v7324_v32  ;;  %v323_v32 = vld [vmem:[%s9329_s8 + $0x138] sm:$0xff] }
 0x12f   : > { %1571 = vmatprep.mubr.bf16.mxu0 %v7329_v33  ;;  %v7255_v34 = vcombine.high %v321_v31, %v323_v32 }
 0x136   : > { %1572 = vmatmul.mubr.bf16.gmra.mrb[112].mxu0 %v7328_v36  ;;  %v8901_v36 = vld [vmem:[%s12011_s3 + $0x124] ss:$12 sps:$4 sm:$0xff]  }
 0x137   : > { %1579 = vmatprep.mubr.bf16.mxu0 %v7333_v37  ;;  %v325_v37 = vld [vmem:[%s9329_s8 + $0x148] sm:$0xff] }
 0x13e   : > { %1580 = vmatmul.mubr.bf16.gmra.mrb[116].mxu0 %v7332_v43  ;;  %v331_v43 = vld [vmem:[%s9329_s8 + $0x178] sm:$0xff] }
 0x13f   : > { %1587 = vmatprep.mubr.bf16.mxu0 %v7337_v44  ;;  %v7263_v45 = vcombine.high %v329_v41, %v331_v43 }
 0x146   : > { %1588 = vmatmul.mubr.bf16.gmra.mrb[120].mxu0 %v7336_v47  ;;  %v8908_v47 = vld [vmem:[%s12011_s3 + $0x13c] ss:$12 sps:$4 sm:$0xff]  }
 0x147   : > { %1595 = vmatprep.mubr.bf16.mxu0 %v7341_v48  ;;  %v333_v48 = vld [vmem:[%s9329_s8 + $0x188] sm:$0xff] }
 0x14e   : > { %1596 = vmatmul.mubr.bf16.gmra.mrb[124].mxu0 %v7340_v55  ;;  %v339_v55 = vld [vmem:[%s9329_s8 + $0x1b8] sm:$0xff] }
 0x14f   : > { %1636 = vmatprep.mubr.bf16.mxu0 %v7219_v56  ;;  %v7271_v57 = vcombine.high %v337_v54, %v339_v55 }
 0x156   : > { %1637 = vmatmul.mubr.bf16.vlgmr.msra.gmra.mrb[0].mxu0 %v7218_v59  ;;  %v343_v59 = vld [vmem:[%s9329_s8 + $0x1d8] sm:$0xff] }
 0x157   : > { %2984 = vmatpush1.bf16.msra.mxu0 %v9485_v42  ;;  %1644 = vmatprep.mubr.bf16.mxu0 %v7223_v60  ;;  %v297_v42 = vld [vmem:[%s9329_s8 + $0x68] sm:$0xff]  ;;  %v8913_v60 = vld [vmem:[%s12011_s3 + $0x150] ss:$12 sps:$4 sm:$0xff]   ;;  %v7275_v2 = vcombine.high %v341_v58, %v343_v59 }
 0x158   : > { %2985 = vmatprep.subr.bf16.mxu0 %v9495_v51  ;;  %v7231_v51 = vcombine.high %v297_v42, %v299_v6 }
 0x15b   : > { %2986 = vmatpush1.bf16.msra.mxu0 %v9500_v52  ;;  %v8880_v52 = vld [vmem:[%s12011_s3 + $0xdc] ss:$12 sps:$4 sm:$0xff]  }
 0x15c   : > { %2987 = vmatprep.subr.bf16.mxu0 %v9511_v61  ;;  %v8878_v61 = vld [vmem:[%s12011_s3 + $0xd8] ss:$12 sps:$4 sm:$0xff]   ;;  %8323 = vmatprep.subr.bf16.mxu1 %v8880_v52 }
 0x15d   : > { %8339 = vmatpush1.bf16.msra.mxu1 %v8878_v61 }
 0x15e   : > { %1645 = vmatmul.mubr.bf16.gmra.mrb[4].mxu0 %v7222_v4  ;;  %8324 = vmatprep.subr.bf16.mxu1 %v8887_v15  ;;  %v347_v4 = vld [vmem:[%s9329_s8 + $0x1f8] sm:$0xff] }
 0x15f   : > { %1652 = vmatprep.mubr.bf16.mxu0 %v7227_v5  ;;  %2988 = vmatpush1.bf16.msra.mxu0 %v9516_v62  ;;  %v301_v62 = vld [vmem:[%s9329_s8 + $0x88] sm:$0xff]  ;;  %v7274_v5 = vcombine.low %v341_v58, %v343_v59 }
 0x160   : > { %2989 = vmatprep.subr.bf16.mxu0 %v9527_v8  ;;  %v303_v8 = vld [vmem:[%s9329_s8 + $0x98] sm:$0xff] }
 0x161   : > { %v7235_v10 = vcombine.high %v301_v62, %v303_v8  ;;  %v7234_v13 = vcombine.low %v301_v62, %v303_v8  ;;  %8340 = vmatpush1.bf16.msra.mxu1 %v8885_v16  ;;  %v353_v8 = vld [vmem:[%s9329_s8 + $0x228] sm:$0xff] }
 0x162   : > { %8325 = vmatprep.subr.bf16.mxu1 %v8894_v26 }
 0x163   : > { %2990 = vmatpush1.bf16.msra.mxu0 %v9532_v9  ;;  %v7230_v9 = vcombine.low %v297_v42, %v299_v6  ;;  %v7279_v42 = vcombine.high %v345_v3, %v347_v4  ;;  %v349_v6 = vld [vmem:[%s9329_s8 + $0x208] sm:$0xff] }
 0x164   : > { %2991 = vmatprep.subr.bf16.mxu0 %v9543_v18  ;;  %v311_v18 = vld [vmem:[%s9329_s8 + $0xd8] sm:$0xff] }
 0x165   : > { %v7243_v20 = vcombine.high %v309_v17, %v311_v18  ;;  %v7242_v23 = vcombine.low %v309_v17, %v311_v18  ;;  %8341 = vmatpush1.bf16.msra.mxu1 %v8892_v25  ;;  %v363_v17 = vld [vmem:[%s9329_s8 + $0x278] sm:$0xff] }
 0x166   : > { %1653 = vmatmul.mubr.bf16.gmra.mrb[8].mxu0 %v7226_v7  ;;  %8326 = vmatprep.subr.bf16.mxu1 %v8901_v36  ;;  %v351_v7 = vld [vmem:[%s9329_s8 + $0x218] sm:$0xff] }
 0x167   : > { %1660 = vmatprep.mubr.bf16.mxu0 %v7231_v51  ;;  %2992 = vmatpush1.bf16.msra.mxu0 %v9548_v19  ;;  %v7238_v19 = vcombine.low %v305_v11, %v307_v12  ;;  %v8920_v51 = vld [vmem:[%s12011_s3 + $0x168] ss:$12 sps:$4 sm:$0xff]   ;;  %v7283_v62 = vcombine.high %v349_v6, %v351_v7 }
 0x168   : > { %2993 = vmatprep.subr.bf16.mxu0 %v9559_v28  ;;  %v319_v28 = vld [vmem:[%s9329_s8 + $0x118] sm:$0xff]  ;;  %v357_v12 = vld [vmem:[%s9329_s8 + $0x248] sm:$0xff] }
 0x169   : > { %v7251_v30 = vcombine.high %v317_v27, %v319_v28  ;;  %v7250_v33 = vcombine.low %v317_v27, %v319_v28  ;;  %8342 = vmatpush1.bf16.msra.mxu1 %v8899_v35  ;;  %v373_v28 = vld [vmem:[%s9329_s8 + $0x2c8] sm:$0xff] }
 0x16a   : > { %8327 = vmatprep.subr.bf16.mxu1 %v8908_v47 }
 0x16b   : > { %2994 = vmatpush1.bf16.msra.mxu0 %v9564_v29  ;;  %v7246_v29 = vcombine.low %v313_v21, %v315_v22  ;;  %v367_v21 = vld [vmem:[%s9329_s8 + $0x298] sm:$0xff] }
 0x16c   : > { %2995 = vmatprep.subr.bf16.mxu0 %v9575_v38  ;;  %v327_v38 = vld [vmem:[%s9329_s8 + $0x158] sm:$0xff] }
 0x16d   : > { %v7259_v40 = vcombine.high %v325_v37, %v327_v38  ;;  %v7258_v44 = vcombine.low %v325_v37, %v327_v38  ;;  %8343 = vmatpush1.bf16.msra.mxu1 %v8906_v46  ;;  %v383_v37 = vld [vmem:[%s9329_s8 + $0x318] sm:$0xff] }
 0x16e   : > { %1661 = vmatmul.mubr.bf16.gmra.mrb[12].mxu0 %v7230_v9  ;;  %v355_v9 = vld [vmem:[%s9329_s8 + $0x238] sm:$0xff] }
 0x16f   : > { %1668 = vmatprep.mubr.bf16.mxu0 %v7235_v10  ;;  %2996 = vmatpush1.bf16.msra.mxu0 %v9580_v39  ;;  %v7254_v39 = vcombine.low %v321_v31, %v323_v32  ;;  %v7282_v10 = vcombine.low %v349_v6, %v351_v7  ;;  %v7287_v11 = vcombine.high %v353_v8, %v355_v9  ;;  %v377_v32 = vld [vmem:[%s9329_s8 + $0x2e8] sm:$0xff] }
 0x170   : > { %2997 = vmatprep.subr.bf16.mxu0 %v8866_v49  ;;  %v335_v49 = vld [vmem:[%s9329_s8 + $0x198] sm:$0xff] }
 0x171   : > { %v7267_v53 = vcombine.high %v333_v48, %v335_v49  ;;  %v7266_v56 = vcombine.low %v333_v48, %v335_v49  ;;  %v393_v49 = vld [vmem:[%s9329_s8 + $0x368] sm:$0xff] }
 0x173   : > { %2998 = vmatpush1.bf16.msra.mxu0 %v8864_v50  ;;  %v7262_v50 = vcombine.low %v329_v41, %v331_v43  ;;  %v387_v41 = vld [vmem:[%s9329_s8 + $0x338] sm:$0xff] }
 0x174   : > { %2999 = vmatprep.subr.bf16.mxu0 %v8873_v63  ;;  %v8915_v63 = vld [vmem:[%s12011_s3 + $0x154] ss:$12 sps:$4 sm:$0xff]  }
 0x175   : > { %8328 = vmatprep.subr.bf16.mxu1 %v8915_v63 }
 0x176   : > { %1669 = vmatmul.mubr.bf16.gmra.mrb[16].mxu0 %v7234_v13  ;;  %8344 = vmatpush1.bf16.msra.mxu1 %v8913_v60  ;;  %v359_v13 = vld [vmem:[%s9329_s8 + $0x258] sm:$0xff] }
 0x177   : > { %1676 = vmatprep.mubr.bf16.mxu0 %v7239_v14  ;;  %3000 = vmatpush1.bf16.msra.mxu0 %v8871_v0  ;;  %v7270_v0 = vcombine.low %v337_v54, %v339_v55  ;;  %v7286_v14 = vcombine.low %v353_v8, %v355_v9  ;;  %v7290_v18 = vcombine.low %v357_v12, %v359_v13  ;;  %v9715_v55 = vld [vmem:[%s12010_s2] ss:$0 sm:$0xff] }
 0x178   : > { %3001 = vmatprep.subr.bf16.mxu0 %v8880_v52  ;;  %v8922_v52 = vld [vmem:[%s12011_s3 + $0x16c] ss:$12 sps:$4 sm:$0xff]  }
 0x179   : > { %8329 = vmatprep.subr.bf16.mxu1 %v8922_v52 }
 0x17a   : > { %8345 = vmatpush1.bf16.msra.mxu1 %v8920_v51 }
 0x17b   : > { %3002 = vmatpush1.bf16.msra.mxu0 %v8878_v61  ;;  %v7278_v61 = vcombine.low %v345_v3, %v347_v4 }
 0x17c   : > { %3003 = vmatprep.subr.bf16.mxu0 %v8887_v15  ;;  %v7291_v15 = vcombine.high %v357_v12, %v359_v13 }
 0x17e   : > { %1677 = vmatmul.mubr.bf16.gmra.mrb[20].mxu0 %v7238_v19 }
 0x17f   : > { %1684 = vmatprep.mubr.bf16.mxu0 %v7243_v20  ;;  %3004 = vmatpush1.bf16.msra.mxu0 %v8885_v16  ;;  %v361_v16 = vld [vmem:[%s9329_s8 + $0x268] sm:$0xff] }
 0x180   : > { %3005 = vmatprep.subr.bf16.mxu0 %v8894_v26  ;;  %v7295_v19 = vcombine.high %v361_v16, %v363_v17  ;;  %v365_v20 = vld [vmem:[%s9329_s8 + $0x288] sm:$0xff]  ;;  %v7294_v22 = vcombine.low %v361_v16, %v363_v17 }
 0x181   : > { %v7298_v26 = vcombine.low %v365_v20, %v367_v21 }
 0x183   : > { %3006 = vmatpush1.bf16.msra.mxu0 %v8892_v25  ;;  %v371_v25 = vld [vmem:[%s9329_s8 + $0x2b8] sm:$0xff] }
 0x184   : > { %3007 = vmatprep.subr.bf16.mxu0 %v8901_v36  ;;  %v381_v36 = vld [vmem:[%s9329_s8 + $0x308] sm:$0xff] }
 0x185   : > { %v7314_v43 = vcombine.low %v381_v36, %v383_v37 }
 0x186   : > { %1685 = vmatmul.mubr.bf16.gmra.mrb[24].mxu0 %v7242_v23  ;;  %v7299_v23 = vcombine.high %v365_v20, %v367_v21 }
 0x187   : > { %1692 = vmatprep.mubr.bf16.mxu0 %v7247_v24  ;;  %3008 = vmatpush1.bf16.msra.mxu0 %v8899_v35  ;;  %v369_v24 = vld [vmem:[%s9329_s8 + $0x2a8] sm:$0xff] }
 0x188   : > { %3009 = vmatprep.subr.bf16.mxu0 %v8908_v47  ;;  %v7303_v27 = vcombine.high %v369_v24, %v371_v25 }
 0x18b   : > { %3010 = vmatpush1.bf16.msra.mxu0 %v8906_v46  ;;  %v391_v46 = vld [vmem:[%s9329_s8 + $0x358] sm:$0xff] }
 0x18c   : > { %3011 = vmatprep.subr.bf16.mxu0 %v8915_v63 }
 0x18e   : > { %1693 = vmatmul.mubr.bf16.gmra.mrb[28].mxu0 %v7246_v29  ;;  %v375_v29 = vld [vmem:[%s9329_s8 + $0x2d8] sm:$0xff] }
 0x18f   : > { %1700 = vmatprep.mubr.bf16.mxu0 %v7251_v30  ;;  %3012 = vmatpush1.bf16.msra.mxu0 %v8913_v60  ;;  %v7302_v30 = vcombine.low %v369_v24, %v371_v25  ;;  %v7307_v31 = vcombine.high %v373_v28, %v375_v29 }
 0x190   : > { %3013 = vmatprep.subr.bf16.mxu0 %v8922_v52 }
 0x193   : > { %3014 = vmatpush1.bf16.msra.mxu0 %v8920_v51 }
 0x194   : > { %3681 = vmatprep.subr.bf16.mxu0 %v12016_v1 }
 0x196   : > { %1701 = vmatmul.mubr.bf16.gmra.mrb[32].mxu0 %v7250_v33  ;;  %v379_v33 = vld [vmem:[%s9329_s8 + $0x2f8] sm:$0xff] }
 0x197   : > { %1708 = vmatprep.mubr.bf16.mxu0 %v7255_v34  ;;  %v7306_v34 = vcombine.low %v373_v28, %v375_v29  ;;  %v7311_v35 = vcombine.high %v377_v32, %v379_v33  ;;  %v7310_v38 = vcombine.low %v377_v32, %v379_v33  ;;  %v407_v28 = vld [vmem:[%s9329_s8 + $0x3d8] sm:$0xff] }
 0x19e   : > { %1709 = vmatmul.mubr.bf16.gmra.mrb[36].mxu0 %v7254_v39  ;;  %v7315_v39 = vcombine.high %v381_v36, %v383_v37 }
 0x19f   : > { %1716 = vmatprep.mubr.bf16.mxu0 %v7259_v40  ;;  %v385_v40 = vld [vmem:[%s9329_s8 + $0x328] sm:$0xff] }
 0x1a0   : > { %v7318_v47 = vcombine.low %v385_v40, %v387_v41 }
 0x1a6   : > { %1717 = vmatmul.mubr.bf16.gmra.mrb[40].mxu0 %v7258_v44  ;;  %v7319_v44 = vcombine.high %v385_v40, %v387_v41 }
 0x1a7   : > { %1724 = vmatprep.mubr.bf16.mxu0 %v7263_v45  ;;  %v389_v45 = vld [vmem:[%s9329_s8 + $0x348] sm:$0xff] }
 0x1a8   : > { %v7323_v48 = vcombine.high %v389_v45, %v391_v46 }
 0x1ae   : > { %1725 = vmatmul.mubr.bf16.gmra.mrb[44].mxu0 %v7262_v50  ;;  %v395_v50 = vld [vmem:[%s9329_s8 + $0x378] sm:$0xff] }
 0x1af   : > { %1732 = vmatprep.mubr.bf16.mxu0 %v7267_v53  ;;  %v7322_v53 = vcombine.low %v389_v45, %v391_v46  ;;  %v7327_v54 = vcombine.high %v393_v49, %v395_v50  ;;  %v7326_v63 = vcombine.low %v393_v49, %v395_v50  ;;  %v409_v50 = vld [vmem:[%s9329_s8 + $0x3e8] sm:$0xff] }
 0x1b6   : > { %1733 = vmatmul.mubr.bf16.gmra.mrb[48].mxu0 %v7266_v56  ;;  %v397_v56 = vld [vmem:[%s9329_s8 + $0x388] sm:$0xff] }
 0x1b7   : > { %1740 = vmatprep.mubr.bf16.mxu0 %v7271_v57  ;;  %v399_v57 = vld [vmem:[%s9329_s8 + $0x398] sm:$0xff] }
 0x1be   : > { %1741 = vmatmul.mubr.bf16.gmra.mrb[52].mxu0 %v7270_v0 }
 0x1bf   : > { %1748 = vmatprep.mubr.bf16.mxu0 %v7275_v2  ;;  %v7331_v2 = vcombine.high %v397_v56, %v399_v57 }
 0x1c6   : > { %1749 = vmatmul.mubr.bf16.gmra.mrb[56].mxu0 %v7274_v5 }
 0x1c7   : > { %1756 = vmatprep.mubr.bf16.mxu0 %v7279_v42 }
 0x1ce   : > { %1757 = vmatmul.mubr.bf16.gmra.mrb[60].mxu0 %v7278_v61  ;;  %v401_v61 = vld [vmem:[%s9329_s8 + $0x3a8] sm:$0xff] }
 0x1cf   : > { %1764 = vmatprep.mubr.bf16.mxu0 %v7283_v62  ;;  %v403_v62 = vld [vmem:[%s9329_s8 + $0x3b8] sm:$0xff] }
 0x1d6   : > { %1765 = vmatmul.mubr.bf16.gmra.mrb[64].mxu0 %v7282_v10 }
 0x1d7   : > { %1772 = vmatprep.mubr.bf16.mxu0 %v7287_v11 }
 0x1de   : > { %1773 = vmatmul.mubr.bf16.gmra.mrb[68].mxu0 %v7286_v14  ;;  %v7330_v14 = vcombine.low %v397_v56, %v399_v57 }
 0x1df   : > { %1780 = vmatprep.mubr.bf16.mxu0 %v7291_v15 }
 0x1e6   : > { %1781 = vmatmul.mubr.bf16.gmra.mrb[72].mxu0 %v7290_v18  ;;  %v7335_v18 = vcombine.high %v401_v61, %v403_v62 }
 0x1e7   : > { %1788 = vmatprep.mubr.bf16.mxu0 %v7295_v19 }
 0x1ee   : > { %1789 = vmatmul.mubr.bf16.gmra.mrb[76].mxu0 %v7294_v22 }
 0x1ef   : > { %1796 = vmatprep.mubr.bf16.mxu0 %v7299_v23 }
 0x1f6   : > { %1797 = vmatmul.mubr.bf16.gmra.mrb[80].mxu0 %v7298_v26 }
 0x1f7   : > { %1804 = vmatprep.mubr.bf16.mxu0 %v7303_v27  ;;  %v405_v27 = vld [vmem:[%s9329_s8 + $0x3c8] sm:$0xff] }
 0x1fe   : > { %1805 = vmatmul.mubr.bf16.gmra.mrb[84].mxu0 %v7302_v30 }
 0x1ff   : > { %1812 = vmatprep.mubr.bf16.mxu0 %v7307_v31  ;;  %v8945_v31 = vld [vmem:[%s12011_s3 + $0x184] ss:$12 sps:$4 sm:$0xff]  }
 0x200   : > { %3332 = vmatprep.subr.bf16.mxu1 %v8945_v31 }
 0x206   : > { %1813 = vmatmul.mubr.bf16.gmra.mrb[88].mxu0 %v7306_v34  ;;  %v7334_v34 = vcombine.low %v401_v61, %v403_v62 }
 0x207   : > { %1820 = vmatprep.mubr.bf16.mxu0 %v7311_v35 }
 0x20e   : > { %1821 = vmatmul.mubr.bf16.gmra.mrb[92].mxu0 %v7310_v38  ;;  %v7339_v38 = vcombine.high %v405_v27, %v407_v28 }
 0x20f   : > { %1828 = vmatprep.mubr.bf16.mxu0 %v7315_v39 }
 0x216   : > { %1829 = vmatmul.mubr.bf16.gmra.mrb[96].mxu0 %v7314_v43 }
 0x217   : > { %1836 = vmatprep.mubr.bf16.mxu0 %v7319_v44 }
 0x21e   : > { %1837 = vmatmul.mubr.bf16.gmra.mrb[100].mxu0 %v7318_v47 }
 0x21f   : > { %1844 = vmatprep.mubr.bf16.mxu0 %v7323_v48 }
 0x226   : > { %1845 = vmatmul.mubr.bf16.gmra.mrb[104].mxu0 %v7322_v53  ;;  %v411_v53 = vld [vmem:[%s9329_s8 + $0x3f8] sm:$0xff] }
 0x227   : > { %1852 = vmatprep.mubr.bf16.mxu0 %v7327_v54 }
 0x229   : > { %v1638_v58 = vpop.f32.mrb[0].mxu0 }
 0x22a   : > { %v8346_v59 = vadd.f32 %v9715_v55, %v1638_v58  ;;  %v1640_v60 = vpop.f32.mrb[1].mxu0 }
 0x22b   : > { %v1641_v0 = vpop.f32.mrb[2].mxu0 }
 0x22c   : > { %v1893_v3 = vmax.f32 %v8346_v59, 0.0  ;;  %v8347_v4 = vadd.f32 %v9715_v55, %v1641_v0  ;;  %v1643_v5 = vpop.f32.mrb[3].mxu0  ;;  %v7338_v59 = vcombine.low %v405_v27, %v407_v28 }
 0x22e   : > { %v1894_v42 = vmax.f32 %v8347_v4, 0.0  ;;  %1853 = vmatmul.mubr.bf16.gmra.mrb[108].mxu0 %v7326_v63  ;;  %v2022_v6 = vrot.slane %v1893_v3, 7  ;;  %v2247_v7 = vrot.slane %v1893_v3, 1 }
 0x22f   : > { %1860 = vmatprep.mubr.bf16.mxu0 %v7331_v2  ;;  %v7343_v2 = vcombine.high %v409_v50, %v411_v53 }
 0x230   : > { %v2023_v51 = vrot.slane %v1894_v42, 7  ;;  %v2248_v52 = vrot.slane %v1894_v42, 1  ;;  %v9723_v8 = vpack.c.bf16 %v1894_v42, %v1893_v3 }
 0x231   : > { %v1646_v9 = vpop.f32.mrb[4].mxu0 }
 0x232   : > { %v2024_v10 = vsel %vm2021_vm0, %v2022_v6, %v2023_v51  ;;  %v2249_v11 = vsel %vm2246_vm1, %v2247_v7, %v2248_v52  ;;  %v8348_v12 = vadd.f32 %v9715_v55, %v1646_v9  ;;  %v1648_v13 = vpop.f32.mrb[5].mxu0 }
 0x233   : > { %v9728_v15 = vpack.c.bf16 %v2024_v10, %v2022_v6  ;;  %v9730_v16 = vpack.c.bf16 %v2248_v52, %v2249_v11  ;;  %v1649_v17 = vpop.f32.mrb[6].mxu0  ;;  %v7342_v13 = vcombine.low %v409_v50, %v411_v53 }
 0x234   : > { %v1895_v19 = vmax.f32 %v8348_v12, 0.0  ;;  %v8349_v20 = vadd.f32 %v9715_v55, %v1649_v17  ;;  %v1651_v21 = vpop.f32.mrb[7].mxu0 }
 0x236   : > { %v1896_v22 = vmax.f32 %v8349_v20, 0.0  ;;  %1861 = vmatmul.mubr.bf16.gmra.mrb[112].mxu0 %v7330_v14  ;;  %v2025_v23 = vrot.slane %v1895_v19, 7  ;;  %v2250_v24 = vrot.slane %v1895_v19, 1 }
 0x237   : > { %1868 = vmatprep.mubr.bf16.mxu0 %v7335_v18 }
 0x238   : > { %v2026_v25 = vrot.slane %v1896_v22, 7  ;;  %v2251_v26 = vrot.slane %v1896_v22, 1  ;;  %v9735_v29 = vpack.c.bf16 %v1896_v22, %v1895_v19 }
 0x239   : > { %v1654_v30 = vpop.f32.mrb[8].mxu0 }
 0x23a   : > { %v8350_v32 = vadd.f32 %v9715_v55, %v1654_v30  ;;  %v1656_v33 = vpop.f32.mrb[9].mxu0  ;;  %v2027_v35 = vsel %vm2021_vm0, %v2025_v23, %v2026_v25  ;;  %v2252_v36 = vsel %vm2246_vm1, %v2250_v24, %v2251_v26 }
 0x23b   : > { %v1657_v37 = vpop.f32.mrb[10].mxu0  ;;  %v9743_v39 = vpack.c.bf16 %v2027_v35, %v2025_v23  ;;  %v9745_v40 = vpack.c.bf16 %v2251_v26, %v2252_v36 }
 0x23c   : > { %v1897_v41 = vmax.f32 %v8350_v32, 0.0  ;;  %v8351_v43 = vadd.f32 %v9715_v55, %v1657_v37  ;;  %v1659_v44 = vpop.f32.mrb[11].mxu0  ;;  %v8988_v37 = vld [vmem:[%s12013_s5 + $0xa0] ss:$16 sps:$4 sm:$0xff]  }
 0x23e   : > { %v1898_v45 = vmax.f32 %v8351_v43, 0.0  ;;  %1869 = vmatmul.mubr.bf16.gmra.mrb[116].mxu0 %v7334_v34  ;;  %v2028_v46 = vrot.slane %v1897_v41, 7  ;;  %v2253_v47 = vrot.slane %v1897_v41, 1 }
 0x23f   : > { %1876 = vmatprep.mubr.bf16.mxu0 %v7339_v38  ;;  %v8925_v38 = vld [vmem:[%s12011_s3 + $0x8] ss:$12 sps:$4 sm:$0xff]  }
 0x240   : > { %v2029_v48 = vrot.slane %v1898_v45, 7  ;;  %v2254_v49 = vrot.slane %v1898_v45, 1  ;;  %v9750_v54 = vpack.c.bf16 %v1898_v45, %v1897_v41 }
 0x241   : > { %v1662_v56 = vpop.f32.mrb[12].mxu0 }
 0x242   : > { %v8352_v57 = vadd.f32 %v9715_v55, %v1662_v56  ;;  %v1664_v58 = vpop.f32.mrb[13].mxu0  ;;  %v2030_v60 = vsel %vm2021_vm0, %v2028_v46, %v2029_v48  ;;  %v2255_v63 = vsel %vm2246_vm1, %v2253_v47, %v2254_v49 }
 0x243   : > { %v1665_v0 = vpop.f32.mrb[14].mxu0  ;;  %v9755_v3 = vpack.c.bf16 %v2030_v60, %v2028_v46  ;;  %v9757_v4 = vpack.c.bf16 %v2254_v49, %v2255_v63  ;;  %v8926_v49 = vld [vmem:[%s12011_s3 + $0x20] ss:$12 sps:$4 sm:$0xff]  }
 0x244   : > { %v1899_v5 = vmax.f32 %v8352_v57, 0.0  ;;  %v8353_v42 = vadd.f32 %v9715_v55, %v1665_v0  ;;  %v1667_v6 = vpop.f32.mrb[15].mxu0 }
 0x246   : > { %v1900_v7 = vmax.f32 %v8353_v42, 0.0  ;;  %1877 = vmatmul.mubr.bf16.gmra.mrb[120].mxu0 %v7338_v59  ;;  %v2031_v51 = vrot.slane %v1899_v5, 7  ;;  %v2256_v52 = vrot.slane %v1899_v5, 1 }
 0x247   : > { %1884 = vmatprep.mubr.bf16.mxu0 %v7343_v2 }
 0x248   : > { %v2032_v61 = vrot.slane %v1900_v7, 7  ;;  %v2257_v62 = vrot.slane %v1900_v7, 1  ;;  %v9760_v9 = vpack.c.bf16 %v1900_v7, %v1899_v5  ;;  %v8927_v5 = vld [vmem:[%s12011_s3 + $0x38] ss:$12 sps:$4 sm:$0xff]  }
 0x249   : > { %v1670_v10 = vpop.f32.mrb[16].mxu0 }
 0x24a   : > { %v8354_v11 = vadd.f32 %v9715_v55, %v1670_v10  ;;  %v1672_v12 = vpop.f32.mrb[17].mxu0  ;;  %v2033_v14 = vsel %vm2021_vm0, %v2031_v51, %v2032_v61  ;;  %v2258_v17 = vsel %vm2246_vm1, %v2256_v52, %v2257_v62  ;;  %v8928_v10 = vld [vmem:[%s12011_s3 + $0x50] ss:$12 sps:$4 sm:$0xff]  }
 0x24b   : > { %v1673_v18 = vpop.f32.mrb[18].mxu0  ;;  %v9765_v19 = vpack.c.bf16 %v2033_v14, %v2031_v51  ;;  %v9767_v20 = vpack.c.bf16 %v2257_v62, %v2258_v17 }
 0x24c   : > { %v1901_v21 = vmax.f32 %v8354_v11, 0.0  ;;  %v8355_v22 = vadd.f32 %v9715_v55, %v1673_v18  ;;  %v1675_v23 = vpop.f32.mrb[19].mxu0 }
 0x24e   : > { %v1902_v24 = vmax.f32 %v8355_v22, 0.0  ;;  %1885 = vmatmul.mubr.bf16.gmra.mrb[124].mxu0 %v7342_v13  ;;  %v2034_v25 = vrot.slane %v1901_v21, 7  ;;  %v2259_v26 = vrot.slane %v1901_v21, 1 }
 0x24f   : > { %3015 = vmatprep.mubr.bf16.mxu0 %v9723_v8 }
 0x250   : > { %v2035_v27 = vrot.slane %v1902_v24, 7  ;;  %v2260_v28 = vrot.slane %v1902_v24, 1  ;;  %v9772_v30 = vpack.c.bf16 %v1902_v24, %v1901_v21 }
 0x251   : > { %v1678_v31 = vpop.f32.mrb[20].mxu0 }
 0x252   : > { %v8356_v32 = vadd.f32 %v9715_v55, %v1678_v31  ;;  %v1680_v33 = vpop.f32.mrb[21].mxu0  ;;  %v2036_v34 = vsel %vm2021_vm0, %v2034_v25, %v2035_v27  ;;  %v2261_v35 = vsel %vm2246_vm1, %v2259_v26, %v2260_v28 }
 0x253   : > { %v1681_v36 = vpop.f32.mrb[22].mxu0  ;;  %v9785_v41 = vpack.c.bf16 %v2036_v34, %v2034_v25  ;;  %v9787_v43 = vpack.c.bf16 %v2260_v28, %v2261_v35  ;;  %v8929_v25 = vld [vmem:[%s12011_s3 + $0x68] ss:$12 sps:$4 sm:$0xff]   ;;  %v8930_v35 = vld [vmem:[%s12011_s3 + $0x80] ss:$12 sps:$4 sm:$0xff]  }
 0x254   : > { %v1903_v44 = vmax.f32 %v8356_v32, 0.0  ;;  %v8357_v45 = vadd.f32 %v9715_v55, %v1681_v36  ;;  %v1683_v46 = vpop.f32.mrb[23].mxu0 }
 0x256   : > { %v1904_v47 = vmax.f32 %v8357_v45, 0.0  ;;  %7451 = vmatmul.mubr.msk.bf16.vlgmr.msra.gmra.mrb[128].mxu0 %vm9778_vm4, %v9728_v15  ;;  %v2037_v48 = vrot.slane %v1903_v44, 7  ;;  %v2262_v50 = vrot.slane %v1903_v44, 1 }
 0x257   : > { %3025 = vmatprep.mubr.bf16.mxu0 %v9735_v29  ;;  %3682 = vmatpush1.bf16.msra.mxu0 %v8925_v38 }
 0x258   : > { %v2038_v53 = vrot.slane %v1904_v47, 7  ;;  %v2263_v56 = vrot.slane %v1904_v47, 1  ;;  %3683 = vmatprep.subr.bf16.mxu0 %v12016_v1  ;;  %v9798_v57 = vpack.c.bf16 %v1904_v47, %v1903_v44 }
 0x259   : > { %v1686_v58 = vpop.f32.mrb[24].mxu0 }
 0x25a   : > { %v8358_v59 = vadd.f32 %v9715_v55, %v1686_v58  ;;  %v1688_v60 = vpop.f32.mrb[25].mxu0  ;;  %v2039_v63 = vsel %vm2021_vm0, %v2037_v48, %v2038_v53  ;;  %v2264_v0 = vsel %vm2246_vm1, %v2262_v50, %v2263_v56 }
 0x25b   : > { %v1689_v2 = vpop.f32.mrb[26].mxu0  ;;  %3684 = vmatpush1.bf16.msra.mxu0 %v8926_v49  ;;  %v9806_v42 = vpack.c.bf16 %v2039_v63, %v2037_v48  ;;  %v9808_v6 = vpack.c.bf16 %v2263_v56, %v2264_v0  ;;  %v8931_v56 = vld [vmem:[%s12011_s3 + $0x98] ss:$12 sps:$4 sm:$0xff]  }
 0x25c   : > { %v1905_v7 = vmax.f32 %v8358_v59, 0.0  ;;  %v8359_v51 = vadd.f32 %v9715_v55, %v1689_v2  ;;  %v1691_v52 = vpop.f32.mrb[27].mxu0  ;;  %3685 = vmatprep.subr.bf16.mxu0 %v12016_v1 }
 0x25e   : > { %v1906_v61 = vmax.f32 %v8359_v51, 0.0  ;;  %7455 = vmatmul.mubr.msk.bf16.gmra.mrb[132].mxu0 %vm9778_vm4, %v9743_v39  ;;  %v2040_v62 = vrot.slane %v1905_v7, 7  ;;  %v2265_v11 = vrot.slane %v1905_v7, 1 }
 0x25f   : > { %3035 = vmatprep.mubr.bf16.mxu0 %v9750_v54  ;;  %3686 = vmatpush1.bf16.msra.mxu0 %v8927_v5 }
 0x260   : > { %v2041_v12 = vrot.slane %v1906_v61, 7  ;;  %v2266_v13 = vrot.slane %v1906_v61, 1  ;;  %3687 = vmatprep.subr.bf16.mxu0 %v12016_v1  ;;  %v9820_v14 = vpack.c.bf16 %v1906_v61, %v1905_v7  ;;  %v8932_v7 = vld [vmem:[%s12011_s3 + $0xb0] ss:$12 sps:$4 sm:$0xff]  }
 0x261   : > { %v1694_v17 = vpop.f32.mrb[28].mxu0 }
 0x262   : > { %v8360_v18 = vadd.f32 %v9715_v55, %v1694_v17  ;;  %v1696_v21 = vpop.f32.mrb[29].mxu0  ;;  %v2042_v22 = vsel %vm2021_vm0, %v2040_v62, %v2041_v12  ;;  %v2267_v23 = vsel %vm2246_vm1, %v2265_v11, %v2266_v13  ;;  %v8943_v17 = vld [vmem:[%s12011_s3 + $0x180] ss:$12 sps:$4 sm:$0xff]  }
 0x263   : > { %v1697_v24 = vpop.f32.mrb[30].mxu0  ;;  %3688 = vmatpush1.bf16.msra.mxu0 %v8928_v10  ;;  %v9828_v26 = vpack.c.bf16 %v2042_v22, %v2040_v62  ;;  %v9830_v27 = vpack.c.bf16 %v2266_v13, %v2267_v23  ;;  %v8933_v23 = vld [vmem:[%s12011_s3 + $0xc8] ss:$12 sps:$4 sm:$0xff]  }
 0x264   : > { %v1907_v28 = vmax.f32 %v8360_v18, 0.0  ;;  %v8361_v31 = vadd.f32 %v9715_v55, %v1697_v24  ;;  %v1699_v32 = vpop.f32.mrb[31].mxu0  ;;  %3689 = vmatprep.subr.bf16.mxu0 %v12016_v1 }
 0x265   : > { %v8948_v32 = vld [vmem:[%s12011_s3 + $0x19c] ss:$12 sps:$4 sm:$0xff]  }
 0x266   : > { %v1908_v33 = vmax.f32 %v8361_v31, 0.0  ;;  %7459 = vmatmul.mubr.msk.bf16.gmra.mrb[136].mxu0 %vm9778_vm4, %v9755_v3  ;;  %v2043_v34 = vrot.slane %v1907_v28, 7  ;;  %v2268_v36 = vrot.slane %v1907_v28, 1 }
 0x267   : > { %3045 = vmatprep.mubr.bf16.mxu0 %v9760_v9  ;;  %3690 = vmatpush1.bf16.msra.mxu0 %v8929_v25 }
 0x268   : > { %v2044_v38 = vrot.slane %v1908_v33, 7  ;;  %v2269_v44 = vrot.slane %v1908_v33, 1  ;;  %3691 = vmatprep.subr.bf16.mxu0 %v12016_v1  ;;  %v9842_v45 = vpack.c.bf16 %v1908_v33, %v1907_v28 }
 0x269   : > { %v1702_v46 = vpop.f32.mrb[32].mxu0 }
 0x26a   : > { %v8362_v47 = vadd.f32 %v9715_v55, %v1702_v46  ;;  %v1704_v48 = vpop.f32.mrb[33].mxu0  ;;  %v2045_v49 = vsel %vm2021_vm0, %v2043_v34, %v2044_v38  ;;  %v2270_v50 = vsel %vm2246_vm1, %v2268_v36, %v2269_v44  ;;  %v8934_v36 = vld [vmem:[%s12011_s3 + $0xe0] ss:$12 sps:$4 sm:$0xff]  }
 0x26b   : > { %v1705_v53 = vpop.f32.mrb[34].mxu0  ;;  %3692 = vmatpush1.bf16.msra.mxu0 %v8930_v35  ;;  %v9850_v58 = vpack.c.bf16 %v2045_v49, %v2043_v34  ;;  %v9852_v59 = vpack.c.bf16 %v2269_v44, %v2270_v50  ;;  %v8946_v34 = vld [vmem:[%s12011_s3 + $0x198] ss:$12 sps:$4 sm:$0xff]   ;;  %v8952_v38 = vld [vmem:[%s12011_s3 + $0x1b4] ss:$12 sps:$4 sm:$0xff]  }
 0x26c   : > { %v1909_v60 = vmax.f32 %v8362_v47, 0.0  ;;  %v8363_v63 = vadd.f32 %v9715_v55, %v1705_v53  ;;  %v1707_v0 = vpop.f32.mrb[35].mxu0  ;;  %3693 = vmatprep.subr.bf16.mxu0 %v12016_v1 }
 0x26e   : > { %v1910_v2 = vmax.f32 %v8363_v63, 0.0  ;;  %7463 = vmatmul.mubr.msk.bf16.gmra.mrb[140].mxu0 %vm9778_vm4, %v9765_v19  ;;  %v2046_v5 = vrot.slane %v1909_v60, 7  ;;  %v2271_v51 = vrot.slane %v1909_v60, 1 }
 0x26f   : > { %3055 = vmatprep.mubr.bf16.mxu0 %v9772_v30  ;;  %3694 = vmatpush1.bf16.msra.mxu0 %v8931_v56 }
 0x270   : > { %v2047_v52 = vrot.slane %v1910_v2, 7  ;;  %v2272_v61 = vrot.slane %v1910_v2, 1  ;;  %v9863_v62 = vpack.c.bf16 %v1910_v2, %v1909_v60  ;;  %3695 = vmatprep.subr.bf16.mxu0 %v12016_v1  ;;  %v8950_v60 = vld [vmem:[%s12011_s3 + $0x1b0] ss:$12 sps:$4 sm:$0xff]  }
 0x271   : > { %v1710_v10 = vpop.f32.mrb[36].mxu0 }
 0x272   : > { %v8364_v11 = vadd.f32 %v9715_v55, %v1710_v10  ;;  %v1712_v12 = vpop.f32.mrb[37].mxu0  ;;  %3095 = vmatprep.mubr.bf16.mxu1 %v9863_v62  ;;  %v2048_v13 = vsel %vm2021_vm0, %v2046_v5, %v2047_v52  ;;  %v2273_v18 = vsel %vm2246_vm1, %v2271_v51, %v2272_v61 }
 0x273   : > { %v1713_v21 = vpop.f32.mrb[38].mxu0  ;;  %3696 = vmatpush1.bf16.msra.mxu0 %v8932_v7  ;;  %v9873_v22 = vpack.c.bf16 %v2048_v13, %v2046_v5  ;;  %v9878_v24 = vpack.c.bf16 %v2272_v61, %v2273_v18  ;;  %v8935_v5 = vld [vmem:[%s12011_s3 + $0xf8] ss:$12 sps:$4 sm:$0xff]   ;;  %v8936_v13 = vld [vmem:[%s12011_s3 + $0x110] ss:$12 sps:$4 sm:$0xff]  }
 0x274   : > { %v1911_v25 = vmax.f32 %v8364_v11, 0.0  ;;  %v8365_v28 = vadd.f32 %v9715_v55, %v1713_v21  ;;  %v1715_v31 = vpop.f32.mrb[39].mxu0  ;;  %3697 = vmatprep.subr.bf16.mxu0 %v12016_v1 }
 0x275   : > { %7483 = vmatmul.mubr.msk.bf16.vlgmr.msra.gmra.mrb[0].mxu1 %vm9778_vm4, %v9873_v22 }
 0x276   : > { %v1912_v33 = vmax.f32 %v8365_v28, 0.0  ;;  %7467 = vmatmul.mubr.msk.bf16.gmra.mrb[144].mxu0 %vm9778_vm4, %v9785_v41  ;;  %3333 = vmatpush1.bf16.msra.mxu1 %v8943_v17  ;;  %v2049_v35 = vrot.slane %v1911_v25, 7  ;;  %v2274_v44 = vrot.slane %v1911_v25, 1 }
 0x277   : > { %3065 = vmatprep.mubr.bf16.mxu0 %v9798_v57  ;;  %3698 = vmatpush1.bf16.msra.mxu0 %v8933_v23  ;;  %v8954_v23 = vld [vmem:[%s12011_s3 + $0x1c8] ss:$12 sps:$4 sm:$0xff]  }
 0x278   : > { %v2050_v46 = vrot.slane %v1912_v33, 7  ;;  %v2275_v47 = vrot.slane %v1912_v33, 1  ;;  %v9901_v48 = vpack.c.bf16 %v1912_v33, %v1911_v25  ;;  %3699 = vmatprep.subr.bf16.mxu0 %v12016_v1  ;;  %3334 = vmatprep.subr.bf16.mxu1 %v8948_v32  ;;  %v8956_v25 = vld [vmem:[%s12011_s3 + $0x1cc] ss:$12 sps:$4 sm:$0xff]  }
 0x279   : > { %v1718_v49 = vpop.f32.mrb[40].mxu0 }
 0x27a   : > { %v8366_v50 = vadd.f32 %v9715_v55, %v1718_v49  ;;  %v1720_v53 = vpop.f32.mrb[41].mxu0  ;;  %3105 = vmatprep.mubr.bf16.mxu1 %v9901_v48  ;;  %v2051_v56 = vsel %vm2021_vm0, %v2049_v35, %v2050_v46  ;;  %3335 = vmatpush1.bf16.msra.mxu1 %v8946_v34  ;;  %v2276_v63 = vsel %vm2246_vm1, %v2274_v44, %v2275_v47 }
 0x27b   : > { %v1721_v0 = vpop.f32.mrb[42].mxu0  ;;  %3700 = vmatpush1.bf16.msra.mxu0 %v8934_v36  ;;  %v9911_v2 = vpack.c.bf16 %v2051_v56, %v2049_v35  ;;  %3336 = vmatprep.subr.bf16.mxu1 %v8952_v38  ;;  %v9916_v7 = vpack.c.bf16 %v2275_v47, %v2276_v63  ;;  %v8937_v38 = vld [vmem:[%s12011_s3 + $0x128] ss:$12 sps:$4 sm:$0xff]   ;;  %v8938_v56 = vld [vmem:[%s12011_s3 + $0x140] ss:$12 sps:$4 sm:$0xff]  }
 0x27c   : > { %v1913_v51 = vmax.f32 %v8366_v50, 0.0  ;;  %v8367_v52 = vadd.f32 %v9715_v55, %v1721_v0  ;;  %v1723_v61 = vpop.f32.mrb[43].mxu0  ;;  %3701 = vmatprep.subr.bf16.mxu0 %v12016_v1 }
 0x27d   : > { %7487 = vmatmul.mubr.msk.bf16.gmra.mrb[4].mxu1 %vm9778_vm4, %v9911_v2 }
 0x27e   : > { %v1914_v10 = vmax.f32 %v8367_v52, 0.0  ;;  %7471 = vmatmul.mubr.msk.bf16.gmra.mrb[148].mxu0 %vm9778_vm4, %v9806_v42  ;;  %3337 = vmatpush1.bf16.msra.mxu1 %v8950_v60  ;;  %v2052_v11 = vrot.slane %v1913_v51, 7  ;;  %v2277_v12 = vrot.slane %v1913_v51, 1 }
 0x27f   : > { %3075 = vmatprep.mubr.bf16.mxu0 %v9820_v14  ;;  %3702 = vmatpush1.bf16.msra.mxu0 %v8935_v5 }
 0x280   : > { %v2053_v17 = vrot.slane %v1914_v10, 7  ;;  %v2278_v18 = vrot.slane %v1914_v10, 1  ;;  %v9930_v21 = vpack.c.bf16 %v1914_v10, %v1913_v51  ;;  %3703 = vmatprep.subr.bf16.mxu0 %v12016_v1  ;;  %3338 = vmatprep.subr.bf16.mxu1 %v8956_v25 }
 0x281   : > { %v1726_v28 = vpop.f32.mrb[44].mxu0 }
 0x282   : > { %v8368_v31 = vadd.f32 %v9715_v55, %v1726_v28  ;;  %v1728_v32 = vpop.f32.mrb[45].mxu0  ;;  %3115 = vmatprep.mubr.bf16.mxu1 %v9930_v21  ;;  %v2054_v33 = vsel %vm2021_vm0, %v2052_v11, %v2053_v17  ;;  %v2279_v34 = vsel %vm2246_vm1, %v2277_v12, %v2278_v18  ;;  %3339 = vmatpush1.bf16.msra.mxu1 %v8954_v23  ;;  %v8939_v17 = vld [vmem:[%s12011_s3 + $0x158] ss:$12 sps:$4 sm:$0xff]  }
 0x283   : > { %v1729_v35 = vpop.f32.mrb[46].mxu0  ;;  %3704 = vmatpush1.bf16.msra.mxu0 %v8936_v13  ;;  %v9943_v36 = vpack.c.bf16 %v2054_v33, %v2052_v11  ;;  %v9948_v44 = vpack.c.bf16 %v2278_v18, %v2279_v34  ;;  %v8940_v33 = vld [vmem:[%s12011_s3 + $0x170] ss:$12 sps:$4 sm:$0xff]  }
 0x284   : > { %v1915_v46 = vmax.f32 %v8368_v31, 0.0  ;;  %v8369_v47 = vadd.f32 %v9715_v55, %v1729_v35  ;;  %v1731_v49 = vpop.f32.mrb[47].mxu0  ;;  %3705 = vmatprep.subr.bf16.mxu0 %v12016_v1 }
 0x285   : > { %7491 = vmatmul.mubr.msk.bf16.gmra.mrb[8].mxu1 %vm9778_vm4, %v9943_v36 }
 0x286   : > { %v1916_v50 = vmax.f32 %v8369_v47, 0.0  ;;  %7475 = vmatmul.mubr.msk.bf16.gmra.mrb[152].mxu0 %vm9778_vm4, %v9828_v26  ;;  %v2055_v53 = vrot.slane %v1915_v46, 7  ;;  %v2280_v60 = vrot.slane %v1915_v46, 1  ;;  %v8941_v47 = vld [vmem:[%s12011_s3 + $0x188] ss:$12 sps:$4 sm:$0xff]  }
 0x287   : > { %3085 = vmatprep.mubr.bf16.mxu0 %v9842_v45  ;;  %3706 = vmatpush1.bf16.msra.mxu0 %v8937_v38 }
 0x288   : > { %v2056_v63 = vrot.slane %v1916_v50, 7  ;;  %v2281_v0 = vrot.slane %v1916_v50, 1  ;;  %v9962_v5 = vpack.c.bf16 %v1916_v50, %v1915_v46  ;;  %3707 = vmatprep.subr.bf16.mxu0 %v12016_v1 }
 0x289   : > { %v1734_v51 = vpop.f32.mrb[48].mxu0 }
 0x28a   : > { %v8370_v52 = vadd.f32 %v9715_v55, %v1734_v51  ;;  %v1736_v61 = vpop.f32.mrb[49].mxu0  ;;  %3125 = vmatprep.mubr.bf16.mxu1 %v9962_v5  ;;  %v2057_v10 = vsel %vm2021_vm0, %v2055_v53, %v2056_v63  ;;  %v2282_v11 = vsel %vm2246_vm1, %v2280_v60, %v2281_v0 }
 0x28b   : > { %v1737_v12 = vpop.f32.mrb[50].mxu0  ;;  %3708 = vmatpush1.bf16.msra.mxu0 %v8938_v56  ;;  %v9969_v13 = vpack.c.bf16 %v2057_v10, %v2055_v53  ;;  %v9974_v18 = vpack.c.bf16 %v2281_v0, %v2282_v11  ;;  %v8942_v10 = vld [vmem:[%s12011_s3 + $0x1a0] ss:$12 sps:$4 sm:$0xff]  }
 0x28c   : > { %v1917_v23 = vmax.f32 %v8370_v52, 0.0  ;;  %v8371_v25 = vadd.f32 %v9715_v55, %v1737_v12  ;;  %v1739_v28 = vpop.f32.mrb[51].mxu0  ;;  %3709 = vmatprep.subr.bf16.mxu0 %v12016_v1 }
 0x28d   : > { %7495 = vmatmul.mubr.msk.bf16.gmra.mrb[12].mxu1 %vm9778_vm4, %v9969_v13 }
 0x28e   : > { %v1918_v31 = vmax.f32 %v8371_v25, 0.0  ;;  %7479 = vmatmul.mubr.msk.bf16.gmra.mrb[156].mxu0 %vm9778_vm4, %v9850_v58  ;;  %v2058_v32 = vrot.slane %v1917_v23, 7  ;;  %v2283_v34 = vrot.slane %v1917_v23, 1 }
 0x28f   : > { %3710 = vmatpush1.bf16.msra.mxu0 %v8939_v17  ;;  %3713 = vmatprep.mubr.bf16.mxu0 %v9723_v8 }
 0x290   : > { %v2059_v35 = vrot.slane %v1918_v31, 7  ;;  %v2284_v38 = vrot.slane %v1918_v31, 1  ;;  %v9988_v46 = vpack.c.bf16 %v1918_v31, %v1917_v23  ;;  %3711 = vmatprep.subr.bf16.mxu0 %v12016_v1  ;;  %v8949_v31 = vld [vmem:[%s12011_s3 + $0x1b8] ss:$12 sps:$4 sm:$0xff]  }
 0x291   : > { %v1742_v49 = vpop.f32.mrb[52].mxu0 }
 0x292   : > { %v8372_v50 = vadd.f32 %v9715_v55, %v1742_v49  ;;  %v1744_v53 = vpop.f32.mrb[53].mxu0  ;;  %3135 = vmatprep.mubr.bf16.mxu1 %v9988_v46  ;;  %v2060_v8 = vsel %vm2021_vm0, %v2058_v32, %v2059_v35  ;;  %v2285_v56 = vsel %vm2246_vm1, %v2283_v34, %v2284_v38 }
 0x293   : > { %v1745_v60 = vpop.f32.mrb[54].mxu0  ;;  %3712 = vmatpush1.bf16.msra.mxu0 %v8940_v33  ;;  %v9998_v63 = vpack.c.bf16 %v2060_v8, %v2058_v32  ;;  %v10000_v0 = vpack.c.bf16 %v2284_v38, %v2285_v56  ;;  %v8958_v56 = vld [vmem:[%s12011_s3 + $0x1e0] ss:$12 sps:$4 sm:$0xff]  }
 0x294   : > { %v1919_v51 = vmax.f32 %v8372_v50, 0.0  ;;  %v8373_v52 = vadd.f32 %v9715_v55, %v1745_v60  ;;  %v1747_v61 = vpop.f32.mrb[55].mxu0  ;;  %8234 = vmatprep.subr.bf16.mxu0 %v8941_v47  ;;  %v8960_v60 = vld [vmem:[%s12011_s3 + $0x1e4] ss:$12 sps:$4 sm:$0xff]  }
 0x295   : > { %7499 = vmatmul.mubr.msk.bf16.gmra.mrb[16].mxu1 %vm9778_vm4, %v9998_v63  ;;  %3340 = vmatprep.subr.bf16.mxu1 %v8960_v60 }
 0x296   : > { %v1920_v11 = vmax.f32 %v8373_v52, 0.0  ;;  %7675 = vmatmul.mubr.msk.bf16.vlgmr.msra.gmra.mrb[160].mxu0 %vm9778_vm4, %v9728_v15  ;;  %v2061_v12 = vrot.slane %v1919_v51, 7  ;;  %v2286_v17 = vrot.slane %v1919_v51, 1  ;;  %3341 = vmatpush1.bf16.msra.mxu1 %v8958_v56 }
 0x297   : > { %3719 = vmatprep.mubr.bf16.mxu0 %v9735_v29  ;;  %8235 = vmatpush3.bf16.msra.mxu0 %v8941_v47  ;;  %v8953_v47 = vld [vmem:[%s12011_s3 + $0x1d0] ss:$12 sps:$4 sm:$0xff]  }
 0x298   : > { %v2062_v23 = vrot.slane %v1920_v11, 7  ;;  %v2287_v25 = vrot.slane %v1920_v11, 1  ;;  %v10013_v28 = vpack.c.bf16 %v1920_v11, %v1919_v51  ;;  %8236 = vmatprep.subr.bf16.mxu0 %v8942_v10 }
 0x299   : > { %v1750_v32 = vpop.f32.mrb[56].mxu0 }
 0x29a   : > { %v8374_v33 = vadd.f32 %v9715_v55, %v1750_v32  ;;  %v1752_v34 = vpop.f32.mrb[57].mxu0  ;;  %3145 = vmatprep.mubr.bf16.mxu1 %v10013_v28  ;;  %v2063_v15 = vsel %vm2021_vm0, %v2061_v12, %v2062_v23  ;;  %v2288_v29 = vsel %vm2246_vm1, %v2286_v17, %v2287_v25  ;;  %v8957_v17 = vld [vmem:[%s12011_s3 + $0x1e8] ss:$12 sps:$4 sm:$0xff]  }
 0x29b   : > { %v1753_v35 = vpop.f32.mrb[58].mxu0  ;;  %v10022_v38 = vpack.c.bf16 %v2063_v15, %v2061_v12  ;;  %8237 = vmatpush3.bf16.msra.mxu0 %v8942_v10  ;;  %v10027_v49 = vpack.c.bf16 %v2287_v25, %v2288_v29 }
 0x29c   : > { %v1921_v50 = vmax.f32 %v8374_v33, 0.0  ;;  %v8375_v53 = vadd.f32 %v9715_v55, %v1753_v35  ;;  %v1755_v8 = vpop.f32.mrb[59].mxu0  ;;  %8238 = vmatprep.subr.bf16.mxu0 %v8949_v31 }
 0x29d   : > { %7503 = vmatmul.mubr.msk.bf16.gmra.mrb[20].mxu1 %vm9778_vm4, %v10022_v38 }
 0x29e   : > { %v1922_v51 = vmax.f32 %v8375_v53, 0.0  ;;  %7679 = vmatmul.mubr.msk.bf16.gmra.mrb[164].mxu0 %vm9778_vm4, %v9743_v39  ;;  %v2064_v52 = vrot.slane %v1921_v50, 7  ;;  %v2289_v61 = vrot.slane %v1921_v50, 1 }
 0x29f   : > { %3727 = vmatprep.mubr.bf16.mxu0 %v9750_v54  ;;  %8239 = vmatpush3.bf16.msra.mxu0 %v8949_v31 }
 0x2a0   : > { %v2065_v10 = vrot.slane %v1922_v51, 7  ;;  %v2290_v11 = vrot.slane %v1922_v51, 1  ;;  %v10043_v12 = vpack.c.bf16 %v1922_v51, %v1921_v50  ;;  %8240 = vmatprep.subr.bf16.mxu0 %v8953_v47 }
 0x2a1   : > { %v1758_v23 = vpop.f32.mrb[60].mxu0 }
 0x2a2   : > { %v8376_v25 = vadd.f32 %v9715_v55, %v1758_v23  ;;  %v1760_v39 = vpop.f32.mrb[61].mxu0  ;;  %3155 = vmatprep.mubr.bf16.mxu1 %v10043_v12  ;;  %v2066_v54 = vsel %vm2021_vm0, %v2064_v52, %v2065_v10  ;;  %v2291_v31 = vsel %vm2246_vm1, %v2289_v61, %v2290_v11 }
 0x2a3   : > { %v1761_v32 = vpop.f32.mrb[62].mxu0  ;;  %v10052_v33 = vpack.c.bf16 %v2066_v54, %v2064_v52  ;;  %8241 = vmatpush3.bf16.msra.mxu0 %v8953_v47  ;;  %v10054_v34 = vpack.c.bf16 %v2290_v11, %v2291_v31  ;;  %v8963_v47 = vld [vmem:[%s12011_s3 + $0x1fc] ss:$12 sps:$4 sm:$0xff]   ;;  %v8961_v52 = vld [vmem:[%s12011_s3 + $0x1f8] ss:$12 sps:$4 sm:$0xff]  }
 0x2a4   : > { %v1923_v15 = vmax.f32 %v8376_v25, 0.0  ;;  %v8377_v29 = vadd.f32 %v9715_v55, %v1761_v32  ;;  %v1763_v35 = vpop.f32.mrb[63].mxu0  ;;  %8242 = vmatprep.subr.bf16.mxu0 %v8957_v17  ;;  %3342 = vmatprep.subr.bf16.mxu1 %v8963_v47  ;;  %v8966_v25 = vld [vmem:[%s12011_s3 + $0x214] ss:$12 sps:$4 sm:$0xff]  }
 0x2a5   : > { %7507 = vmatmul.mubr.msk.bf16.gmra.mrb[24].mxu1 %vm9778_vm4, %v10052_v33 }
 0x2a6   : > { %v1924_v50 = vmax.f32 %v8377_v29, 0.0  ;;  %7683 = vmatmul.mubr.msk.bf16.gmra.mrb[168].mxu0 %vm9778_vm4, %v9755_v3  ;;  %v2067_v53 = vrot.slane %v1923_v15, 7  ;;  %v2292_v8 = vrot.slane %v1923_v15, 1  ;;  %3343 = vmatpush1.bf16.msra.mxu1 %v8961_v52 }
 0x2a7   : > { %3735 = vmatprep.mubr.bf16.mxu0 %v9760_v9  ;;  %8243 = vmatpush3.bf16.msra.mxu0 %v8957_v17 }
 0x2a8   : > { %v2068_v56 = vrot.slane %v1924_v50, 7  ;;  %v2293_v60 = vrot.slane %v1924_v50, 1  ;;  %v10067_v51 = vpack.c.bf16 %v1924_v50, %v1923_v15  ;;  %v8964_v15 = vld [vmem:[%s12011_s3 + $0x210] ss:$12 sps:$4 sm:$0xff]   ;;  %3344 = vmatprep.subr.bf16.mxu1 %v8966_v25  ;;  %v8969_v50 = vld [vmem:[%s12011_s3 + $0x22c] ss:$12 sps:$4 sm:$0xff]  }
 0x2a9   : > { %v1766_v61 = vpop.f32.mrb[64].mxu0 }
 0x2aa   : > { %v8378_v3 = vadd.f32 %v9715_v55, %v1766_v61  ;;  %v1768_v10 = vpop.f32.mrb[65].mxu0  ;;  %3165 = vmatprep.mubr.bf16.mxu1 %v10067_v51  ;;  %v2069_v9 = vsel %vm2021_vm0, %v2067_v53, %v2068_v56  ;;  %v2294_v11 = vsel %vm2246_vm1, %v2292_v8, %v2293_v60  ;;  %3345 = vmatpush1.bf16.msra.mxu1 %v8964_v15 }
 0x2ab   : > { %v1769_v17 = vpop.f32.mrb[66].mxu0  ;;  %v10076_v23 = vpack.c.bf16 %v2069_v9, %v2067_v53  ;;  %v10081_v39 = vpack.c.bf16 %v2293_v60, %v2294_v11  ;;  %v8967_v60 = vld [vmem:[%s12011_s3 + $0x228] ss:$12 sps:$4 sm:$0xff]   ;;  %3346 = vmatprep.subr.bf16.mxu1 %v8969_v50 }
 0x2ac   : > { %v1925_v54 = vmax.f32 %v8378_v3, 0.0  ;;  %v8379_v31 = vadd.f32 %v9715_v55, %v1769_v17  ;;  %v1771_v32 = vpop.f32.mrb[67].mxu0 }
 0x2ad   : > { %7511 = vmatmul.mubr.msk.bf16.gmra.mrb[28].mxu1 %vm9778_vm4, %v10076_v23  ;;  %v8970_v32 = vld [vmem:[%s12011_s3 + $0x200] ss:$12 sps:$4 sm:$0xff]  }
 0x2ae   : > { %v1926_v29 = vmax.f32 %v8379_v31, 0.0  ;;  %7687 = vmatmul.mubr.msk.bf16.gmra.mrb[172].mxu0 %vm9778_vm4, %v9765_v19  ;;  %v2070_v35 = vrot.slane %v1925_v54, 7  ;;  %v2295_v53 = vrot.slane %v1925_v54, 1  ;;  %3347 = vmatpush1.bf16.msra.mxu1 %v8967_v60 }
 0x2af   : > { %3743 = vmatprep.mubr.bf16.mxu0 %v9772_v30  ;;  %8244 = vmatprep.subr.bf16.mxu0 %v8970_v32 }
 0x2b0   : > { %v2071_v47 = vrot.slane %v1926_v29, 7  ;;  %v2296_v8 = vrot.slane %v1926_v29, 1  ;;  %v10097_v56 = vpack.c.bf16 %v1926_v29, %v1925_v54  ;;  %8245 = vmatpush3.bf16.msra.mxu0 %v8970_v32 }
 0x2b1   : > { %v1774_v52 = vpop.f32.mrb[68].mxu0 }
 0x2b2   : > { %v8380_v19 = vadd.f32 %v9715_v55, %v1774_v52  ;;  %v1776_v61 = vpop.f32.mrb[69].mxu0  ;;  %3173 = vmatprep.mubr.bf16.mxu1 %v10097_v56  ;;  %v2072_v30 = vsel %vm2021_vm0, %v2070_v35, %v2071_v47  ;;  %v2297_v3 = vsel %vm2246_vm1, %v2295_v53, %v2296_v8 }
 0x2b3   : > { %v1777_v10 = vpop.f32.mrb[70].mxu0  ;;  %v10106_v9 = vpack.c.bf16 %v2072_v30, %v2070_v35  ;;  %v10108_v11 = vpack.c.bf16 %v2296_v8, %v2297_v3 }
 0x2b4   : > { %v1927_v17 = vmax.f32 %v8380_v19, 0.0  ;;  %v8381_v25 = vadd.f32 %v9715_v55, %v1777_v10  ;;  %v1779_v54 = vpop.f32.mrb[71].mxu0 }
 0x2b5   : > { %7515 = vmatmul.mubr.msk.bf16.gmra.mrb[32].mxu1 %vm9778_vm4, %v10106_v9 }
 0x2b6   : > { %v1928_v31 = vmax.f32 %v8381_v25, 0.0  ;;  %7691 = vmatmul.mubr.msk.bf16.gmra.mrb[176].mxu0 %vm9778_vm4, %v9785_v41  ;;  %v2073_v15 = vrot.slane %v1927_v17, 7  ;;  %v2298_v29 = vrot.slane %v1927_v17, 1 }
 0x2b7   : > { %3751 = vmatprep.mubr.bf16.mxu0 %v9798_v57 }
 0x2b8   : > { %v2074_v35 = vrot.slane %v1928_v31, 7  ;;  %v2299_v50 = vrot.slane %v1928_v31, 1  ;;  %v10121_v53 = vpack.c.bf16 %v1928_v31, %v1927_v17 }
 0x2b9   : > { %v1782_v47 = vpop.f32.mrb[72].mxu0 }
 0x2ba   : > { %v8382_v8 = vadd.f32 %v9715_v55, %v1782_v47  ;;  %v1784_v60 = vpop.f32.mrb[73].mxu0  ;;  %3183 = vmatprep.mubr.bf16.mxu1 %v10121_v53  ;;  %v2075_v41 = vsel %vm2021_vm0, %v2073_v15, %v2074_v35  ;;  %v2300_v52 = vsel %vm2246_vm1, %v2298_v29, %v2299_v50 }
 0x2bb   : > { %v1785_v19 = vpop.f32.mrb[74].mxu0  ;;  %v10127_v61 = vpack.c.bf16 %v2075_v41, %v2073_v15  ;;  %v10129_v57 = vpack.c.bf16 %v2299_v50, %v2300_v52 }
 0x2bc   : > { %v1929_v30 = vmax.f32 %v8382_v8, 0.0  ;;  %v8383_v3 = vadd.f32 %v9715_v55, %v1785_v19  ;;  %v1787_v10 = vpop.f32.mrb[75].mxu0 }
 0x2bd   : > { %7519 = vmatmul.mubr.msk.bf16.gmra.mrb[36].mxu1 %vm9778_vm4, %v10127_v61 }
 0x2be   : > { %v1930_v17 = vmax.f32 %v8383_v3, 0.0  ;;  %7695 = vmatmul.mubr.msk.bf16.gmra.mrb[180].mxu0 %vm9778_vm4, %v9806_v42  ;;  %v2076_v25 = vrot.slane %v1929_v30, 7  ;;  %v2301_v54 = vrot.slane %v1929_v30, 1 }
 0x2bf   : > { %3759 = vmatprep.mubr.bf16.mxu0 %v9820_v14 }
 0x2c0   : > { %v2077_v31 = vrot.slane %v1930_v17, 7  ;;  %v2302_v32 = vrot.slane %v1930_v17, 1  ;;  %v10139_v15 = vpack.c.bf16 %v1930_v17, %v1929_v30 }
 0x2c1   : > { %v1790_v29 = vpop.f32.mrb[76].mxu0 }
 0x2c2   : > { %v8384_v35 = vadd.f32 %v9715_v55, %v1790_v29  ;;  %v1792_v50 = vpop.f32.mrb[77].mxu0  ;;  %3193 = vmatprep.mubr.bf16.mxu1 %v10139_v15  ;;  %v2078_v47 = vsel %vm2021_vm0, %v2076_v25, %v2077_v31  ;;  %v2303_v8 = vsel %vm2246_vm1, %v2301_v54, %v2302_v32 }
 0x2c3   : > { %v1793_v60 = vpop.f32.mrb[78].mxu0  ;;  %v10145_v42 = vpack.c.bf16 %v2078_v47, %v2076_v25  ;;  %v10147_v41 = vpack.c.bf16 %v2302_v32, %v2303_v8 }
 0x2c4   : > { %v1931_v14 = vmax.f32 %v8384_v35, 0.0  ;;  %v8385_v52 = vadd.f32 %v9715_v55, %v1793_v60  ;;  %v1795_v19 = vpop.f32.mrb[79].mxu0  ;;  %v10162_v55 = vld [vmem:[%s12010_s2] ss:$0 sm:$0xff] }
 0x2c5   : > { %7523 = vmatmul.mubr.msk.bf16.gmra.mrb[40].mxu1 %vm9778_vm4, %v10145_v42 }
 0x2c6   : > { %v1932_v30 = vmax.f32 %v8385_v52, 0.0  ;;  %7699 = vmatmul.mubr.msk.bf16.gmra.mrb[184].mxu0 %vm9778_vm4, %v9828_v26  ;;  %v2079_v3 = vrot.slane %v1931_v14, 7  ;;  %v2304_v10 = vrot.slane %v1931_v14, 1 }
 0x2c7   : > { %3767 = vmatprep.mubr.bf16.mxu0 %v9842_v45 }
 0x2c8   : > { %v2080_v17 = vrot.slane %v1932_v30, 7  ;;  %v2305_v25 = vrot.slane %v1932_v30, 1  ;;  %v10157_v54 = vpack.c.bf16 %v1932_v30, %v1931_v14 }
 0x2c9   : > { %v1798_v31 = vpop.f32.mrb[80].mxu0 }
 0x2ca   : > { %v8386_v32 = vadd.f32 %v10162_v55, %v1798_v31  ;;  %v1800_v29 = vpop.f32.mrb[81].mxu0  ;;  %3203 = vmatprep.mubr.bf16.mxu1 %v10157_v54  ;;  %v2081_v26 = vsel %vm2021_vm0, %v2079_v3, %v2080_v17  ;;  %v2306_v45 = vsel %vm2246_vm1, %v2304_v10, %v2305_v25 }
 0x2cb   : > { %v1801_v35 = vpop.f32.mrb[82].mxu0  ;;  %v10168_v50 = vpack.c.bf16 %v2081_v26, %v2079_v3  ;;  %v10170_v47 = vpack.c.bf16 %v2305_v25, %v2306_v45 }
 0x2cc   : > { %v1933_v8 = vmax.f32 %v8386_v32, 0.0  ;;  %v8387_v60 = vadd.f32 %v10162_v55, %v1801_v35  ;;  %v1803_v14 = vpop.f32.mrb[83].mxu0 }
 0x2cd   : > { %7527 = vmatmul.mubr.msk.bf16.gmra.mrb[44].mxu1 %vm9778_vm4, %v10168_v50 }
 0x2ce   : > { %v1934_v52 = vmax.f32 %v8387_v60, 0.0  ;;  %7703 = vmatmul.mubr.msk.bf16.gmra.mrb[188].mxu0 %vm9778_vm4, %v9850_v58  ;;  %v2082_v19 = vrot.slane %v1933_v8, 7  ;;  %v2307_v30 = vrot.slane %v1933_v8, 1 }
 0x2cf   : > { %3775 = vmatprep.mubr.bf16.mxu0 %v9863_v62 }
 0x2d0   : > { %v2083_v3 = vrot.slane %v1934_v52, 7  ;;  %v2308_v10 = vrot.slane %v1934_v52, 1  ;;  %v10180_v17 = vpack.c.bf16 %v1934_v52, %v1933_v8  ;;  %v8971_v52 = vld [vmem:[%s12011_s3 + $0x218] ss:$12 sps:$4 sm:$0xff]  }
 0x2d1   : > { %v1806_v25 = vpop.f32.mrb[84].mxu0  ;;  %8246 = vmatprep.subr.bf16.mxu0 %v8971_v52 }
 0x2d2   : > { %v8388_v31 = vadd.f32 %v10162_v55, %v1806_v25  ;;  %v1808_v32 = vpop.f32.mrb[85].mxu0  ;;  %3213 = vmatprep.mubr.bf16.mxu1 %v10180_v17  ;;  %v2084_v29 = vsel %vm2021_vm0, %v2082_v19, %v2083_v3  ;;  %v2309_v26 = vsel %vm2246_vm1, %v2307_v30, %v2308_v10  ;;  %8247 = vmatpush3.bf16.msra.mxu0 %v8971_v52 }
 0x2d3   : > { %v1809_v45 = vpop.f32.mrb[86].mxu0  ;;  %v10186_v58 = vpack.c.bf16 %v2084_v29, %v2082_v19  ;;  %v10188_v35 = vpack.c.bf16 %v2308_v10, %v2309_v26 }
 0x2d4   : > { %v1935_v62 = vmax.f32 %v8388_v31, 0.0  ;;  %v8389_v60 = vadd.f32 %v10162_v55, %v1809_v45  ;;  %v1811_v8 = vpop.f32.mrb[87].mxu0 }
 0x2d5   : > { %7531 = vmatmul.mubr.msk.bf16.gmra.mrb[48].mxu1 %vm9778_vm4, %v10186_v58 }
 0x2d6   : > { %v1936_v14 = vmax.f32 %v8389_v60, 0.0  ;;  %7707 = vmatmul.mubr.msk.bf16.gmra.mrb[192].mxu0 %vm9778_vm4, %v9873_v22  ;;  %v2085_v19 = vrot.slane %v1935_v62, 7  ;;  %v2310_v30 = vrot.slane %v1935_v62, 1 }
 0x2d7   : > { %3783 = vmatprep.mubr.bf16.mxu0 %v9901_v48 }
 0x2d8   : > { %v2086_v3 = vrot.slane %v1936_v14, 7  ;;  %v2311_v10 = vrot.slane %v1936_v14, 1  ;;  %v10201_v25 = vpack.c.bf16 %v1936_v14, %v1935_v62 }
 0x2d9   : > { %v1814_v31 = vpop.f32.mrb[88].mxu0 }
 0x2da   : > { %v8390_v32 = vadd.f32 %v10162_v55, %v1814_v31  ;;  %v1816_v29 = vpop.f32.mrb[89].mxu0  ;;  %3223 = vmatprep.mubr.bf16.mxu1 %v10201_v25  ;;  %v2087_v22 = vsel %vm2021_vm0, %v2085_v19, %v2086_v3  ;;  %v2312_v26 = vsel %vm2246_vm1, %v2310_v30, %v2311_v10 }
 0x2db   : > { %v1817_v45 = vpop.f32.mrb[90].mxu0  ;;  %v10207_v60 = vpack.c.bf16 %v2087_v22, %v2085_v19  ;;  %v10209_v48 = vpack.c.bf16 %v2311_v10, %v2312_v26 }
 0x2dc   : > { %v1937_v8 = vmax.f32 %v8390_v32, 0.0  ;;  %v8391_v62 = vadd.f32 %v10162_v55, %v1817_v45  ;;  %v1819_v14 = vpop.f32.mrb[91].mxu0 }
 0x2dd   : > { %12030 = vst [vmem:[#allocation5_spill] sm:$0xff] %v10209_v48  ;;  %7535 = vmatmul.mubr.msk.bf16.gmra.mrb[52].mxu1 %vm9778_vm4, %v10207_v60 }
 0x2de   : > { %v1938_v52 = vmax.f32 %v8391_v62, 0.0  ;;  %7711 = vmatmul.mubr.msk.bf16.gmra.mrb[196].mxu0 %vm9778_vm4, %v9911_v2  ;;  %v2088_v3 = vrot.slane %v1937_v8, 7  ;;  %v2313_v19 = vrot.slane %v1937_v8, 1 }
 0x2df   : > { %3791 = vmatprep.mubr.bf16.mxu0 %v9930_v21 }
 0x2e0   : > { %v2089_v30 = vrot.slane %v1938_v52, 7  ;;  %v2314_v10 = vrot.slane %v1938_v52, 1  ;;  %v10219_v31 = vpack.c.bf16 %v1938_v52, %v1937_v8 }
 0x2e1   : > { %v1822_v32 = vpop.f32.mrb[92].mxu0 }
 0x2e2   : > { %v8392_v29 = vadd.f32 %v10162_v55, %v1822_v32  ;;  %v1824_v22 = vpop.f32.mrb[93].mxu0  ;;  %3233 = vmatprep.mubr.bf16.mxu1 %v10219_v31  ;;  %v2090_v26 = vsel %vm2021_vm0, %v2088_v3, %v2089_v30  ;;  %v2315_v45 = vsel %vm2246_vm1, %v2313_v19, %v2314_v10 }
 0x2e3   : > { %v1825_v62 = vpop.f32.mrb[94].mxu0  ;;  %v10225_v2 = vpack.c.bf16 %v2090_v26, %v2088_v3  ;;  %v10227_v14 = vpack.c.bf16 %v2314_v10, %v2315_v45 }
 0x2e4   : > { %v1939_v21 = vmax.f32 %v8392_v29, 0.0  ;;  %v8393_v1 = vadd.f32 %v10162_v55, %v1825_v62  ;;  %v1827_v8 = vpop.f32.mrb[95].mxu0 }
 0x2e5   : > { %12031 = vst [vmem:[#allocation6_spill] sm:$0xff] %v10227_v14  ;;  %7539 = vmatmul.mubr.msk.bf16.gmra.mrb[56].mxu1 %vm9778_vm4, %v10225_v2 }
 0x2e6   : > { %v1940_v52 = vmax.f32 %v8393_v1, 0.0  ;;  %7715 = vmatmul.mubr.msk.bf16.gmra.mrb[200].mxu0 %vm9778_vm4, %v9943_v36  ;;  %v2091_v30 = vrot.slane %v1939_v21, 7  ;;  %v2316_v3 = vrot.slane %v1939_v21, 1 }
 0x2e7   : > { %3799 = vmatprep.mubr.bf16.mxu0 %v9962_v5 }
 0x2e8   : > { %v2092_v19 = vrot.slane %v1940_v52, 7  ;;  %v2317_v10 = vrot.slane %v1940_v52, 1  ;;  %v10237_v32 = vpack.c.bf16 %v1940_v52, %v1939_v21 }
 0x2e9   : > { %v1830_v29 = vpop.f32.mrb[96].mxu0 }
 0x2ea   : > { %v8394_v22 = vadd.f32 %v10162_v55, %v1830_v29  ;;  %v1832_v26 = vpop.f32.mrb[97].mxu0  ;;  %3243 = vmatprep.mubr.bf16.mxu1 %v10237_v32  ;;  %v2093_v1 = vsel %vm2021_vm0, %v2091_v30, %v2092_v19  ;;  %v2318_v45 = vsel %vm2246_vm1, %v2316_v3, %v2317_v10 }
 0x2eb   : > { %v1833_v62 = vpop.f32.mrb[98].mxu0  ;;  %v10243_v36 = vpack.c.bf16 %v2093_v1, %v2091_v30  ;;  %v10245_v8 = vpack.c.bf16 %v2317_v10, %v2318_v45 }
 0x2ec   : > { %v1941_v5 = vmax.f32 %v8394_v22, 0.0  ;;  %v8395_v14 = vadd.f32 %v10162_v55, %v1833_v62  ;;  %v1835_v21 = vpop.f32.mrb[99].mxu0 }
 0x2ed   : > { %12032 = vst [vmem:[#allocation7_spill] sm:$0xff] %v10245_v8  ;;  %7543 = vmatmul.mubr.msk.bf16.gmra.mrb[60].mxu1 %vm9778_vm4, %v10243_v36 }
 0x2ee   : > { %v1942_v52 = vmax.f32 %v8395_v14, 0.0  ;;  %7719 = vmatmul.mubr.msk.bf16.gmra.mrb[204].mxu0 %vm9778_vm4, %v9969_v13  ;;  %v2094_v19 = vrot.slane %v1941_v5, 7  ;;  %v2319_v30 = vrot.slane %v1941_v5, 1 }
 0x2ef   : > { %3807 = vmatprep.mubr.bf16.mxu0 %v9988_v46 }
 0x2f0   : > { %v2095_v3 = vrot.slane %v1942_v52, 7  ;;  %v2320_v10 = vrot.slane %v1942_v52, 1  ;;  %v10255_v29 = vpack.c.bf16 %v1942_v52, %v1941_v5 }
 0x2f1   : > { %v1838_v22 = vpop.f32.mrb[100].mxu0 }
 0x2f2   : > { %v8396_v26 = vadd.f32 %v10162_v55, %v1838_v22  ;;  %v1840_v1 = vpop.f32.mrb[101].mxu0  ;;  %3253 = vmatprep.mubr.bf16.mxu1 %v10255_v29  ;;  %v2096_v14 = vsel %vm2021_vm0, %v2094_v19, %v2095_v3  ;;  %v2321_v45 = vsel %vm2246_vm1, %v2319_v30, %v2320_v10  ;;  %v8975_v3 = vld [vmem:[%s12013_s5 + $0x4] ss:$16 sps:$4 sm:$0xff]  }
 0x2f3   : > { %v1841_v62 = vpop.f32.mrb[102].mxu0  ;;  %v10261_v13 = vpack.c.bf16 %v2096_v14, %v2094_v19  ;;  %v10263_v21 = vpack.c.bf16 %v2320_v10, %v2321_v45  ;;  %v8972_v19 = vld [vmem:[%s12011_s3 + $0x230] ss:$12 sps:$4 sm:$0xff]   ;;  %4760 = vmatprep.subr.bf16.mxu1 %v8975_v3 }
 0x2f4   : > { %v1943_v46 = vmax.f32 %v8396_v26, 0.0  ;;  %v8397_v8 = vadd.f32 %v10162_v55, %v1841_v62  ;;  %v1843_v5 = vpop.f32.mrb[103].mxu0  ;;  %8248 = vmatprep.subr.bf16.mxu0 %v8972_v19 }
 0x2f5   : > { %12033 = vst [vmem:[#allocation8_spill] sm:$0xff] %v10263_v21  ;;  %7547 = vmatmul.mubr.msk.bf16.gmra.mrb[64].mxu1 %vm9778_vm4, %v10261_v13  ;;  %8249 = vmatpush3.bf16.msra.mxu0 %v8972_v19 }
 0x2f6   : > { %v1944_v52 = vmax.f32 %v8397_v8, 0.0  ;;  %7723 = vmatmul.mubr.msk.bf16.gmra.mrb[208].mxu0 %vm9778_vm4, %v9998_v63  ;;  %v2097_v30 = vrot.slane %v1943_v46, 7  ;;  %v2322_v10 = vrot.slane %v1943_v46, 1 }
 0x2f7   : > { %3815 = vmatprep.mubr.bf16.mxu0 %v10013_v28 }
 0x2f8   : > { %v2098_v22 = vrot.slane %v1944_v52, 7  ;;  %v2323_v26 = vrot.slane %v1944_v52, 1  ;;  %v10279_v1 = vpack.c.bf16 %v1944_v52, %v1943_v46 }
 0x2f9   : > { %v1846_v8 = vpop.f32.mrb[104].mxu0 }
 0x2fa   : > { %v2324_v63 = vsel %vm2246_vm1, %v2322_v10, %v2323_v26  ;;  %v8398_v14 = vadd.f32 %v10162_v55, %v1846_v8  ;;  %v1848_v45 = vpop.f32.mrb[105].mxu0  ;;  %3263 = vmatprep.mubr.bf16.mxu1 %v10279_v1  ;;  %v2099_v28 = vsel %vm2021_vm0, %v2097_v30, %v2098_v22 }
 0x2fb   : > { %v10285_v62 = vpack.c.bf16 %v2323_v26, %v2324_v63  ;;  %v1849_v5 = vpop.f32.mrb[106].mxu0  ;;  %v10287_v21 = vpack.c.bf16 %v2099_v28, %v2097_v30 }
 0x2fc   : > { %v1945_v46 = vmax.f32 %v8398_v14, 0.0  ;;  %v8399_v52 = vadd.f32 %v10162_v55, %v1849_v5  ;;  %v1851_v48 = vpop.f32.mrb[107].mxu0 }
 0x2fd   : > { %7551 = vmatmul.mubr.msk.bf16.gmra.mrb[68].mxu1 %vm9778_vm4, %v10287_v21 }
 0x2fe   : > { %v1946_v19 = vmax.f32 %v8399_v52, 0.0  ;;  %7727 = vmatmul.mubr.msk.bf16.gmra.mrb[212].mxu0 %vm9778_vm4, %v10022_v38  ;;  %v2100_v3 = vrot.slane %v1945_v46, 7  ;;  %v2325_v10 = vrot.slane %v1945_v46, 1 }
 0x2ff   : > { %3823 = vmatprep.mubr.bf16.mxu0 %v10043_v12 }
 0x300   : > { %v2101_v22 = vrot.slane %v1946_v19, 7  ;;  %v2326_v30 = vrot.slane %v1946_v19, 1  ;;  %v10297_v26 = vpack.c.bf16 %v1946_v19, %v1945_v46 }
 0x301   : > { %v1854_v8 = vpop.f32.mrb[108].mxu0 }
 0x302   : > { %v8400_v48 = vadd.f32 %v10162_v55, %v1854_v8  ;;  %v1856_v63 = vpop.f32.mrb[109].mxu0  ;;  %3273 = vmatprep.mubr.bf16.mxu1 %v10297_v26  ;;  %v2102_v14 = vsel %vm2021_vm0, %v2100_v3, %v2101_v22  ;;  %v2327_v45 = vsel %vm2246_vm1, %v2325_v10, %v2326_v30 }
 0x303   : > { %v1857_v28 = vpop.f32.mrb[110].mxu0  ;;  %v10303_v38 = vpack.c.bf16 %v2102_v14, %v2100_v3  ;;  %v10305_v5 = vpack.c.bf16 %v2326_v30, %v2327_v45 }
 0x304   : > { %v1947_v12 = vmax.f32 %v8400_v48, 0.0  ;;  %v8401_v52 = vadd.f32 %v10162_v55, %v1857_v28  ;;  %v1859_v46 = vpop.f32.mrb[111].mxu0 }
 0x305   : > { %12034 = vst [vmem:[#allocation9_spill] sm:$0xff] %v10305_v5  ;;  %7555 = vmatmul.mubr.msk.bf16.gmra.mrb[72].mxu1 %vm9778_vm4, %v10303_v38 }
 0x306   : > { %v1948_v19 = vmax.f32 %v8401_v52, 0.0  ;;  %7731 = vmatmul.mubr.msk.bf16.gmra.mrb[216].mxu0 %vm9778_vm4, %v10052_v33  ;;  %v2103_v22 = vrot.slane %v1947_v12, 7  ;;  %v2328_v3 = vrot.slane %v1947_v12, 1 }
 0x307   : > { %3831 = vmatprep.mubr.bf16.mxu0 %v10067_v51 }
 0x308   : > { %v2104_v10 = vrot.slane %v1948_v19, 7  ;;  %v2329_v30 = vrot.slane %v1948_v19, 1  ;;  %v10315_v8 = vpack.c.bf16 %v1948_v19, %v1947_v12 }
 0x309   : > { %v1862_v48 = vpop.f32.mrb[112].mxu0 }
 0x30a   : > { %v2330_v63 = vsel %vm2246_vm1, %v2328_v3, %v2329_v30  ;;  %v8402_v14 = vadd.f32 %v10162_v55, %v1862_v48  ;;  %v1864_v45 = vpop.f32.mrb[113].mxu0  ;;  %3283 = vmatprep.mubr.bf16.mxu1 %v10315_v8  ;;  %v2105_v28 = vsel %vm2021_vm0, %v2103_v22, %v2104_v10 }
 0x30b   : > { %v10321_v52 = vpack.c.bf16 %v2329_v30, %v2330_v63  ;;  %v1865_v33 = vpop.f32.mrb[114].mxu0  ;;  %v10323_v46 = vpack.c.bf16 %v2105_v28, %v2103_v22 }
 0x30c   : > { %v1949_v51 = vmax.f32 %v8402_v14, 0.0  ;;  %v8403_v5 = vadd.f32 %v10162_v55, %v1865_v33  ;;  %v1867_v12 = vpop.f32.mrb[115].mxu0 }
 0x30d   : > { %12035 = vst [vmem:[#allocation10_spill] sm:$0xff] %v10321_v52  ;;  %7559 = vmatmul.mubr.msk.bf16.gmra.mrb[76].mxu1 %vm9778_vm4, %v10323_v46 }
 0x30e   : > { %v1950_v19 = vmax.f32 %v8403_v5, 0.0  ;;  %7735 = vmatmul.mubr.msk.bf16.gmra.mrb[220].mxu0 %vm9778_vm4, %v10076_v23  ;;  %v2106_v3 = vrot.slane %v1949_v51, 7  ;;  %v2331_v10 = vrot.slane %v1949_v51, 1 }
 0x30f   : > { %3839 = vmatprep.mubr.bf16.mxu0 %v10097_v56 }
 0x310   : > { %v2107_v30 = vrot.slane %v1950_v19, 7  ;;  %v2332_v22 = vrot.slane %v1950_v19, 1  ;;  %v10333_v48 = vpack.c.bf16 %v1950_v19, %v1949_v51 }
 0x311   : > { %v1870_v63 = vpop.f32.mrb[116].mxu0 }
 0x312   : > { %v8404_v14 = vadd.f32 %v10162_v55, %v1870_v63  ;;  %v1872_v45 = vpop.f32.mrb[117].mxu0  ;;  %3293 = vmatprep.mubr.bf16.mxu1 %v10333_v48  ;;  %v2108_v5 = vsel %vm2021_vm0, %v2106_v3, %v2107_v30  ;;  %v2333_v28 = vsel %vm2246_vm1, %v2331_v10, %v2332_v22 }
 0x313   : > { %v1873_v33 = vpop.f32.mrb[118].mxu0  ;;  %v10339_v23 = vpack.c.bf16 %v2108_v5, %v2106_v3  ;;  %v10341_v12 = vpack.c.bf16 %v2332_v22, %v2333_v28 }
 0x314   : > { %v1951_v56 = vmax.f32 %v8404_v14, 0.0  ;;  %v8405_v52 = vadd.f32 %v10162_v55, %v1873_v33  ;;  %v1875_v51 = vpop.f32.mrb[119].mxu0 }
 0x315   : > { %12036 = vst [vmem:[#allocation11_spill] sm:$0xff] %v10341_v12  ;;  %7563 = vmatmul.mubr.msk.bf16.gmra.mrb[80].mxu1 %vm9778_vm4, %v10339_v23 }
 0x316   : > { %v1952_v19 = vmax.f32 %v8405_v52, 0.0  ;;  %7739 = vmatmul.mubr.msk.bf16.gmra.mrb[224].mxu0 %vm9778_vm4, %v10106_v9  ;;  %v2109_v30 = vrot.slane %v1951_v56, 7  ;;  %v2334_v3 = vrot.slane %v1951_v56, 1 }
 0x317   : > { %3845 = vmatprep.mubr.bf16.mxu0 %v10121_v53 }
 0x318   : > { %v2110_v10 = vrot.slane %v1952_v19, 7  ;;  %v2335_v22 = vrot.slane %v1952_v19, 1  ;;  %v10351_v63 = vpack.c.bf16 %v1952_v19, %v1951_v56 }
 0x319   : > { %v1878_v14 = vpop.f32.mrb[120].mxu0 }
 0x31a   : > { %v2336_v45 = vsel %vm2246_vm1, %v2334_v3, %v2335_v22  ;;  %v8406_v5 = vadd.f32 %v10162_v55, %v1878_v14  ;;  %v1880_v28 = vpop.f32.mrb[121].mxu0  ;;  %3303 = vmatprep.mubr.bf16.mxu1 %v10351_v63  ;;  %v2111_v52 = vsel %vm2021_vm0, %v2109_v30, %v2110_v10 }
 0x31b   : > { %v10357_v33 = vpack.c.bf16 %v2335_v22, %v2336_v45  ;;  %v1881_v9 = vpop.f32.mrb[122].mxu0  ;;  %v10359_v51 = vpack.c.bf16 %v2111_v52, %v2109_v30 }
 0x31c   : > { %v1953_v53 = vmax.f32 %v8406_v5, 0.0  ;;  %v8407_v12 = vadd.f32 %v10162_v55, %v1881_v9  ;;  %v1883_v56 = vpop.f32.mrb[123].mxu0 }
 0x31d   : > { %12037 = vst [vmem:[#allocation12_spill] sm:$0xff] %v10357_v33  ;;  %7567 = vmatmul.mubr.msk.bf16.gmra.mrb[84].mxu1 %vm9778_vm4, %v10359_v51 }
 0x31e   : > { %v1954_v19 = vmax.f32 %v8407_v12, 0.0  ;;  %7743 = vmatmul.mubr.msk.bf16.gmra.mrb[228].mxu0 %vm9778_vm4, %v10127_v61  ;;  %v2112_v3 = vrot.slane %v1953_v53, 7  ;;  %v2337_v10 = vrot.slane %v1953_v53, 1 }
 0x31f   : > { %3853 = vmatprep.mubr.bf16.mxu0 %v10139_v15 }
 0x320   : > { %v2113_v22 = vrot.slane %v1954_v19, 7  ;;  %v2338_v30 = vrot.slane %v1954_v19, 1  ;;  %v10369_v14 = vpack.c.bf16 %v1954_v19, %v1953_v53 }
 0x321   : > { %v1886_v45 = vpop.f32.mrb[124].mxu0 }
 0x322   : > { %v8408_v5 = vadd.f32 %v10162_v55, %v1886_v45  ;;  %v1888_v28 = vpop.f32.mrb[125].mxu0  ;;  %3313 = vmatprep.mubr.bf16.mxu1 %v10369_v14  ;;  %v2114_v12 = vsel %vm2021_vm0, %v2112_v3, %v2113_v22  ;;  %v2339_v52 = vsel %vm2246_vm1, %v2337_v10, %v2338_v30 }
 0x323   : > { %v1889_v9 = vpop.f32.mrb[126].mxu0  ;;  %v10375_v61 = vpack.c.bf16 %v2114_v12, %v2112_v3  ;;  %v10377_v56 = vpack.c.bf16 %v2338_v30, %v2339_v52 }
 0x324   : > { %v1955_v15 = vmax.f32 %v8408_v5, 0.0  ;;  %v8409_v33 = vadd.f32 %v10162_v55, %v1889_v9  ;;  %v1891_v53 = vpop.f32.mrb[127].mxu0  ;;  %v12038_v9 = vmov 0  }
 0x325   : > { %7571 = vmatmul.mubr.msk.bf16.gmra.mrb[88].mxu1 %vm9778_vm4, %v10375_v61 }
 0x326   : > { %v1956_v19 = vmax.f32 %v8409_v33, 0.0  ;;  %7747 = vmatmul.mubr.msk.bf16.gmra.mrb[232].mxu0 %vm9778_vm4, %v10145_v42  ;;  %v2115_v22 = vrot.slane %v1955_v15, 7  ;;  %v2340_v3 = vrot.slane %v1955_v15, 1 }
 0x327   : > { %3861 = vmatprep.mubr.bf16.mxu0 %v10157_v54 }
 0x328   : > { %v2116_v10 = vrot.slane %v1956_v19, 7  ;;  %v2341_v30 = vrot.slane %v1956_v19, 1  ;;  %v10387_v45 = vpack.c.bf16 %v1956_v19, %v1955_v15 }
 0x329   : > { %v10389_v5 = vpop.f32.mrb[128].mxu0 }
 0x32a   : > { %v2342_v55 = vsel %vm2246_vm1, %v2340_v3, %v2341_v30  ;;  %v10392_v28 = vpop.f32.mrb[129].mxu0  ;;  %3323 = vmatprep.mubr.bf16.mxu1 %v10387_v45  ;;  %v2117_v33 = vsel %vm2021_vm0, %v2115_v22, %v2116_v10  ;;  %v8976_v10 = vld [vmem:[%s12013_s5 + $0x20] ss:$16 sps:$4 sm:$0xff]  }
 0x32b   : > { %v10396_v12 = vpack.c.bf16 %v2341_v30, %v2342_v55  ;;  %v10398_v42 = vpop.f32.mrb[130].mxu0  ;;  %v10400_v54 = vpack.c.bf16 %v2117_v33, %v2115_v22  ;;  %v8981_v30 = vld [vmem:[%s12013_s5 + $0x44] ss:$16 sps:$4 sm:$0xff]  }
 0x32c   : > { %v10402_v52 = vpop.f32.mrb[131].mxu0 }
 0x32d   : > { %7575 = vmatmul.mubr.msk.bf16.gmra.mrb[92].mxu1 %vm9778_vm4, %v10400_v54 }
 0x32e   : > { %7751 = vmatmul.mubr.msk.bf16.gmra.mrb[236].mxu0 %vm9778_vm4, %v10168_v50  ;;  %3364 = vmatprep.mubr.bf16.mxu1 %v12038_v9  ;;  %v8973_v50 = vld [vmem:[%s12013_s5] ss:$16 sps:$4 sm:$0xff]  }
 0x32f   : > { %3869 = vmatprep.mubr.bf16.mxu0 %v10180_v17  ;;  %v8978_v17 = vld [vmem:[%s12013_s5 + $0x24] ss:$16 sps:$4 sm:$0xff]  }
 0x331   : > { %v10412_v15 = vpop.f32.mrb[132].mxu0 }
 0x332   : > { %v10414_v53 = vpop.f32.mrb[133].mxu0 }
 0x333   : > { %v10422_v22 = vpop.f32.mrb[134].mxu0 }
 0x334   : > { %v10427_v3 = vpop.f32.mrb[135].mxu0 }
 0x335   : > { %12041 = vst [vmem:[#allocation13_spill] sm:$0xff] %v10427_v3  ;;  %7578 = vmatmul.mubr.msk.bf16.vlgmr.msra.gmra.mrb[96].mxu1 %vm10418_vm5, %v9730_v16 }
 0x336   : > { %7755 = vmatmul.mubr.msk.bf16.gmra.mrb[240].mxu0 %vm9778_vm4, %v10186_v58  ;;  %3374 = vmatprep.mubr.bf16.mxu1 %v12038_v9  ;;  %v8979_v58 = vld [vmem:[%s12013_s5 + $0x40] ss:$16 sps:$4 sm:$0xff]  }
 0x337   : > { %3877 = vmatprep.mubr.bf16.mxu0 %v10201_v25  ;;  %4761 = vmatpush1.bf16.msra.mxu1 %v8973_v50 }
 0x338   : > { %4762 = vmatprep.subr.bf16.mxu1 %v8978_v17 }
 0x339   : > { %v10446_v55 = vpop.f32.mrb[136].mxu0 }
 0x33a   : > { %v10448_v33 = vpop.f32.mrb[137].mxu0 }
 0x33b   : > { %v10450_v3 = vpop.f32.mrb[138].mxu0  ;;  %4763 = vmatpush1.bf16.msra.mxu1 %v8976_v10 }
 0x33c   : > { %v10455_v25 = vpop.f32.mrb[139].mxu0  ;;  %4764 = vmatprep.subr.bf16.mxu1 %v8981_v30 }
 0x33d   : > { %7581 = vmatmul.mubr.msk.bf16.gmra.mrb[100].mxu1 %vm10418_vm5, %v9745_v40 }
 0x33e   : > { %7759 = vmatmul.mubr.msk.bf16.gmra.mrb[244].mxu0 %vm9778_vm4, %v10207_v60  ;;  %3384 = vmatprep.mubr.bf16.mxu1 %v12038_v9 }
 0x33f   : > { %3885 = vmatprep.mubr.bf16.mxu0 %v10219_v31  ;;  %4765 = vmatpush1.bf16.msra.mxu1 %v8979_v58 }
 0x341   : > { %v10465_v50 = vpop.f32.mrb[140].mxu0 }
 0x342   : > { %v10467_v17 = vpop.f32.mrb[141].mxu0 }
 0x343   : > { %v10469_v10 = vpop.f32.mrb[142].mxu0 }
 0x344   : > { %12042 = vst [vmem:[#allocation14_spill] sm:$0xff] %v10469_v10  ;;  %v10471_v30 = vpop.f32.mrb[143].mxu0 }
 0x345   : > { %7584 = vmatmul.mubr.msk.bf16.gmra.mrb[104].mxu1 %vm10418_vm5, %v9757_v4 }
 0x346   : > { %7763 = vmatmul.mubr.msk.bf16.gmra.mrb[248].mxu0 %vm9778_vm4, %v10225_v2  ;;  %3394 = vmatprep.mubr.bf16.mxu1 %v12038_v9 }
 0x347   : > { %3893 = vmatprep.mubr.bf16.mxu0 %v10237_v32 }
 0x349   : > { %v10481_v60 = vpop.f32.mrb[144].mxu0 }
 0x34a   : > { %v10483_v31 = vpop.f32.mrb[145].mxu0 }
 0x34b   : > { %12043 = vst [vmem:[#allocation15_spill] sm:$0xff] %v10483_v31  ;;  %v10485_v58 = vpop.f32.mrb[146].mxu0 }
 0x34c   : > { %12044 = vst [vmem:[#allocation16_spill] sm:$0xff] %v10485_v58  ;;  %v10487_v10 = vpop.f32.mrb[147].mxu0 }
 0x34d   : > { %7587 = vmatmul.mubr.msk.bf16.gmra.mrb[108].mxu1 %vm10418_vm5, %v9767_v20 }
 0x34e   : > { %7767 = vmatmul.mubr.msk.bf16.gmra.mrb[252].mxu0 %vm9778_vm4, %v10243_v36  ;;  %3404 = vmatprep.mubr.bf16.mxu1 %v12038_v9  ;;  %v8982_v36 = vld [vmem:[%s12013_s5 + $0x60] ss:$16 sps:$4 sm:$0xff]  }
 0x34f   : > { %3901 = vmatprep.mubr.bf16.mxu0 %v10255_v29  ;;  %v8984_v29 = vld [vmem:[%s12013_s5 + $0x64] ss:$16 sps:$4 sm:$0xff]  }
 0x350   : > { %4766 = vmatprep.subr.bf16.mxu1 %v8984_v29 }
 0x351   : > { %v10497_v2 = vpop.f32.mrb[148].mxu0  ;;  %4767 = vmatpush1.bf16.msra.mxu1 %v8982_v36 }
 0x352   : > { %v10499_v32 = vpop.f32.mrb[149].mxu0 }
 0x353   : > { %12045 = vst [vmem:[#allocation17_spill] sm:$0xff] %v10499_v32  ;;  %v10501_v31 = vpop.f32.mrb[150].mxu0 }
 0x354   : > { %12046 = vst [vmem:[#allocation18_spill] sm:$0xff] %v10501_v31  ;;  %v10503_v58 = vpop.f32.mrb[151].mxu0 }
 0x355   : > { %12047 = vst [vmem:[#allocation19_spill] sm:$0xff] %v10503_v58  ;;  %7590 = vmatmul.mubr.msk.bf16.gmra.mrb[112].mxu1 %vm10418_vm5, %v9787_v43 }
 0x356   : > { %7771 = vmatmul.mubr.msk.bf16.gmra.mrb[0].mxu0 %vm9778_vm4, %v10261_v13  ;;  %3414 = vmatprep.mubr.bf16.mxu1 %v12038_v9 }
 0x357   : > { %3909 = vmatprep.mubr.bf16.mxu0 %v10279_v1 }
 0x359   : > { %v10519_v58 = vpop.f32.mrb[152].mxu0 }
 0x35a   : > { %v10521_v31 = vpop.f32.mrb[153].mxu0 }
 0x35b   : > { %v10523_v32 = vpop.f32.mrb[154].mxu0 }
 0x35c   : > { %12048 = vst [vmem:[#allocation20_spill] sm:$0xff] %v10523_v32  ;;  %v10525_v13 = vpop.f32.mrb[155].mxu0 }
 0x35d   : > { %7593 = vmatmul.mubr.msk.bf16.gmra.mrb[116].mxu1 %vm10418_vm5, %v9808_v6 }
 0x35e   : > { %7775 = vmatmul.mubr.msk.bf16.gmra.mrb[4].mxu0 %vm9778_vm4, %v10287_v21  ;;  %3424 = vmatprep.mubr.bf16.mxu1 %v12038_v9 }
 0x35f   : > { %3917 = vmatprep.mubr.bf16.mxu0 %v10297_v26 }
 0x361   : > { %v10535_v1 = vpop.f32.mrb[156].mxu0 }
 0x362   : > { %12049 = vst [vmem:[#allocation21_spill] sm:$0xff] %v10535_v1  ;;  %v10537_v29 = vpop.f32.mrb[157].mxu0 }
 0x363   : > { %12050 = vst [vmem:[#allocation22_spill] sm:$0xff] %v10537_v29  ;;  %v10539_v36 = vpop.f32.mrb[158].mxu0 }
 0x364   : > { %v10541_v32 = vpop.f32.mrb[159].mxu0 }
 0x365   : > { %7596 = vmatmul.mubr.msk.bf16.gmra.mrb[120].mxu1 %vm10418_vm5, %v9830_v27 }
 0x366   : > { %7779 = vmatmul.mubr.msk.bf16.gmra.mrb[8].mxu0 %vm9778_vm4, %v10303_v38  ;;  %3434 = vmatprep.mubr.bf16.mxu1 %v12038_v9  ;;  %v8985_v38 = vld [vmem:[%s12013_s5 + $0x80] ss:$16 sps:$4 sm:$0xff]  }
 0x367   : > { %3925 = vmatprep.mubr.bf16.mxu0 %v10315_v8  ;;  %v8987_v8 = vld [vmem:[%s12013_s5 + $0x84] ss:$16 sps:$4 sm:$0xff]  }
 0x368   : > { %4768 = vmatprep.subr.bf16.mxu1 %v8987_v8 }
 0x369   : > { %v3715_v21 = vpop.f32.mrb[160].mxu0  ;;  %4769 = vmatpush1.bf16.msra.mxu1 %v8985_v38 }
 0x36a   : > { %v3716_v26 = vpop.f32.mrb[161].mxu0 }
 0x36b   : > { %v3717_v1 = vpop.f32.mrb[162].mxu0 }
 0x36c   : > { %v3718_v29 = vpop.f32.mrb[163].mxu0 }
 0x36d   : > { %7599 = vmatmul.mubr.msk.bf16.gmra.mrb[124].mxu1 %vm10418_vm5, %v9852_v59 }
 0x36e   : > { %7783 = vmatmul.mubr.msk.bf16.gmra.mrb[12].mxu0 %vm9778_vm4, %v10323_v46  ;;  %3444 = vmatprep.mubr.bf16.mxu1 %v12038_v9 }
 0x36f   : > { %3933 = vmatprep.mubr.bf16.mxu0 %v10333_v48 }
 0x375   : > { %7602 = vmatmul.mubr.msk.bf16.gmra.mrb[0].mxu1 %vm10418_vm5, %v9878_v24 }
 0x376   : > { %7787 = vmatmul.mubr.msk.bf16.gmra.mrb[16].mxu0 %vm9778_vm4, %v10339_v23  ;;  %3454 = vmatprep.mubr.bf16.mxu1 %v12038_v9 }
 0x377   : > { %3941 = vmatprep.mubr.bf16.mxu0 %v10351_v63 }
 0x379   : > { %v10573_v46 = vpop.f32.mrb[168].mxu0 }
 0x37a   : > { %v3731_v48 = vpop.f32.mrb[169].mxu0 }
 0x37b   : > { %v10575_v1 = vpop.f32.mrb[170].mxu0 }
 0x37c   : > { %v3734_v23 = vpop.f32.mrb[171].mxu0 }
 0x37d   : > { %7605 = vmatmul.mubr.msk.bf16.gmra.mrb[4].mxu1 %vm10418_vm5, %v9916_v7 }
 0x37e   : > { %7791 = vmatmul.mubr.msk.bf16.gmra.mrb[20].mxu0 %vm9778_vm4, %v10359_v51  ;;  %3464 = vmatprep.mubr.bf16.mxu1 %v12038_v9 }
 0x37f   : > { %3949 = vmatprep.mubr.bf16.mxu0 %v10369_v14 }
 0x381   : > { %v10585_v63 = vpop.f32.mrb[172].mxu0 }
 0x382   : > { %v3739_v29 = vpop.f32.mrb[173].mxu0 }
 0x383   : > { %v10587_v21 = vpop.f32.mrb[174].mxu0 }
 0x384   : > { %v3742_v26 = vpop.f32.mrb[175].mxu0 }
 0x385   : > { %7608 = vmatmul.mubr.msk.bf16.gmra.mrb[8].mxu1 %vm10418_vm5, %v9948_v44 }
 0x386   : > { %7795 = vmatmul.mubr.msk.bf16.gmra.mrb[24].mxu0 %vm9778_vm4, %v10375_v61  ;;  %3474 = vmatprep.mubr.bf16.mxu1 %v12038_v9 }
 0x387   : > { %3957 = vmatprep.mubr.bf16.mxu0 %v10387_v45 }
 0x389   : > { %v10597_v51 = vpop.f32.mrb[176].mxu0 }
 0x38a   : > { %v3747_v14 = vpop.f32.mrb[177].mxu0 }
 0x38b   : > { %v10599_v38 = vpop.f32.mrb[178].mxu0 }
 0x38c   : > { %v3750_v8 = vpop.f32.mrb[179].mxu0 }
 0x38d   : > { %7611 = vmatmul.mubr.msk.bf16.gmra.mrb[12].mxu1 %vm10418_vm5, %v9974_v18 }
 0x38e   : > { %7799 = vmatmul.mubr.msk.bf16.gmra.mrb[28].mxu0 %vm9778_vm4, %v10400_v54  ;;  %3484 = vmatprep.mubr.bf16.mxu1 %v12038_v9  ;;  %v8990_v54 = vld [vmem:[%s12013_s5 + $0xa4] ss:$16 sps:$4 sm:$0xff]  }
 0x38f   : > { %8250 = vmatprep.mubr.msk.bf16.mxu0 %vm10418_vm5, %v9730_v16  ;;  %4770 = vmatprep.subr.bf16.mxu1 %v8990_v54 }
 0x390   : > { %4771 = vmatpush1.bf16.msra.mxu1 %v8988_v37 }
 0x391   : > { %v10611_v61 = vpop.f32.mrb[180].mxu0 }
 0x392   : > { %v3755_v45 = vpop.f32.mrb[181].mxu0 }
 0x393   : > { %v10613_v48 = vpop.f32.mrb[182].mxu0 }
 0x394   : > { %v3758_v23 = vpop.f32.mrb[183].mxu0 }
 0x395   : > { %7614 = vmatmul.mubr.msk.bf16.gmra.mrb[16].mxu1 %vm10418_vm5, %v10000_v0 }
 0x396   : > { %8251 = vmatmul.mubr.msk.bf16.vlgmr.msra.gmra.mrb[164].mxu0 %vm10418_vm5, %v9745_v40  ;;  %3494 = vmatprep.mubr.bf16.mxu1 %v12038_v9 }
 0x397   : > { %8254 = vmatprep.mubr.msk.bf16.mxu0 %vm10418_vm5, %v9757_v4 }
 0x399   : > { %v10631_v16 = vpop.f32.mrb[184].mxu0 }
 0x39a   : > { %v3763_v29 = vpop.f32.mrb[185].mxu0 }
 0x39b   : > { %v10633_v26 = vpop.f32.mrb[186].mxu0 }
 0x39c   : > { %v3766_v14 = vpop.f32.mrb[187].mxu0 }
 0x39d   : > { %7617 = vmatmul.mubr.msk.bf16.gmra.mrb[20].mxu1 %vm10418_vm5, %v10027_v49  ;;  %v8991_v14 = vld [vmem:[%s12013_s5 + $0xc0] ss:$16 sps:$4 sm:$0xff]  }
 0x39e   : > { %8255 = vmatmul.mubr.msk.bf16.gmra.mrb[32].mxu0 %vm10418_vm5, %v9767_v20  ;;  %3504 = vmatprep.mubr.bf16.mxu1 %v12038_v9 }
 0x39f   : > { %8258 = vmatprep.mubr.msk.bf16.mxu0 %vm10418_vm5, %v9787_v43 }
 0x3a1   : > { %v10645_v40 = vpop.f32.mrb[188].mxu0 }
 0x3a2   : > { %v3771_v4 = vpop.f32.mrb[189].mxu0 }
 0x3a3   : > { %v10647_v8 = vpop.f32.mrb[190].mxu0 }
 0x3a4   : > { %v3774_v45 = vpop.f32.mrb[191].mxu0 }
 0x3a5   : > { %7620 = vmatmul.mubr.msk.bf16.gmra.mrb[24].mxu1 %vm10418_vm5, %v10054_v34 }
 0x3a6   : > { %8259 = vmatmul.mubr.msk.bf16.gmra.mrb[36].mxu0 %vm10418_vm5, %v9808_v6  ;;  %3514 = vmatprep.mubr.bf16.mxu1 %v12038_v9 }
 0x3a7   : > { %8262 = vmatprep.mubr.msk.bf16.mxu0 %vm10418_vm5, %v9830_v27 }
 0x3a9   : > { %v10659_v20 = vpop.f32.mrb[192].mxu0 }
 0x3aa   : > { %v3779_v43 = vpop.f32.mrb[193].mxu0 }
 0x3ab   : > { %v10661_v23 = vpop.f32.mrb[194].mxu0 }
 0x3ac   : > { %v3782_v37 = vpop.f32.mrb[195].mxu0 }
 0x3ad   : > { %7623 = vmatmul.mubr.msk.bf16.gmra.mrb[28].mxu1 %vm10418_vm5, %v10081_v39 }
 0x3ae   : > { %8263 = vmatmul.mubr.msk.bf16.gmra.mrb[40].mxu0 %vm10418_vm5, %v9852_v59  ;;  %3522 = vmatprep.mubr.bf16.mxu1 %v12038_v9  ;;  %v8993_v59 = vld [vmem:[%s12013_s5 + $0xc4] ss:$16 sps:$4 sm:$0xff]  }
 0x3af   : > { %8266 = vmatprep.mubr.msk.bf16.mxu0 %vm10418_vm5, %v9878_v24  ;;  %4772 = vmatprep.subr.bf16.mxu1 %v8993_v59 }
 0x3b0   : > { %4773 = vmatpush1.bf16.msra.mxu1 %v8991_v14 }
 0x3b1   : > { %v10673_v6 = vpop.f32.mrb[196].mxu0 }
 0x3b2   : > { %v3787_v27 = vpop.f32.mrb[197].mxu0 }
 0x3b3   : > { %v10675_v54 = vpop.f32.mrb[198].mxu0 }
 0x3b4   : > { %v3790_v29 = vpop.f32.mrb[199].mxu0 }
 0x3b5   : > { %7626 = vmatmul.mubr.msk.bf16.gmra.mrb[32].mxu1 %vm10418_vm5, %v10108_v11 }
 0x3b6   : > { %8267 = vmatmul.mubr.msk.bf16.gmra.mrb[44].mxu0 %vm10418_vm5, %v9916_v7  ;;  %3532 = vmatprep.mubr.bf16.mxu1 %v12038_v9 }
 0x3b7   : > { %8270 = vmatprep.mubr.msk.bf16.mxu0 %vm10418_vm5, %v9948_v44 }
 0x3b9   : > { %v10693_v24 = vpop.f32.mrb[200].mxu0 }
 0x3ba   : > { %v3795_v4 = vpop.f32.mrb[201].mxu0 }
 0x3bb   : > { %v10695_v45 = vpop.f32.mrb[202].mxu0 }
 0x3bc   : > { %v3798_v43 = vpop.f32.mrb[203].mxu0 }
 0x3bd   : > { %7629 = vmatmul.mubr.msk.bf16.gmra.mrb[36].mxu1 %vm10418_vm5, %v10129_v57  ;;  %v8994_v43 = vld [vmem:[%s12013_s5 + $0xe0] ss:$16 sps:$4 sm:$0xff]  }
 0x3be   : > { %8271 = vmatmul.mubr.msk.bf16.gmra.mrb[48].mxu0 %vm10418_vm5, %v9974_v18  ;;  %3542 = vmatprep.mubr.bf16.mxu1 %v12038_v9 }
 0x3bf   : > { %8274 = vmatprep.mubr.msk.bf16.mxu0 %vm10418_vm5, %v10000_v0 }
 0x3c1   : > { %v10707_v7 = vpop.f32.mrb[204].mxu0 }
 0x3c2   : > { %v3803_v44 = vpop.f32.mrb[205].mxu0 }
 0x3c3   : > { %v10709_v37 = vpop.f32.mrb[206].mxu0 }
 0x3c4   : > { %v3806_v27 = vpop.f32.mrb[207].mxu0 }
 0x3c5   : > { %7632 = vmatmul.mubr.msk.bf16.gmra.mrb[40].mxu1 %vm10418_vm5, %v10147_v41 }
 0x3c6   : > { %8275 = vmatmul.mubr.msk.bf16.gmra.mrb[52].mxu0 %vm10418_vm5, %v10027_v49  ;;  %3552 = vmatprep.mubr.bf16.mxu1 %v12038_v9 }
 0x3c7   : > { %8278 = vmatprep.mubr.msk.bf16.mxu0 %vm10418_vm5, %v10054_v34 }
 0x3c9   : > { %v10721_v18 = vpop.f32.mrb[208].mxu0 }
 0x3ca   : > { %12051 = vst [vmem:[#allocation23_spill] sm:$0xff] %v10721_v18  ;;  %v3811_v0 = vpop.f32.mrb[209].mxu0 }
 0x3cb   : > { %v10723_v29 = vpop.f32.mrb[210].mxu0 }
 0x3cc   : > { %12052 = vst [vmem:[#allocation24_spill] sm:$0xff] %v10723_v29  ;;  %v3814_v14 = vpop.f32.mrb[211].mxu0 }
 0x3cd   : > { %7635 = vmatmul.mubr.msk.bf16.gmra.mrb[44].mxu1 %vm10418_vm5, %v10170_v47  ;;  %v12056_v14 = vld [vmem:[#allocation5_spill] sm:$0xff] }
 0x3ce   : > { %8279 = vmatmul.mubr.msk.bf16.gmra.mrb[56].mxu0 %vm10418_vm5, %v10081_v39  ;;  %3562 = vmatprep.mubr.bf16.mxu1 %v12038_v9  ;;  %v8996_v39 = vld [vmem:[%s12013_s5 + $0xe4] ss:$16 sps:$4 sm:$0xff]  }
 0x3cf   : > { %8282 = vmatprep.mubr.msk.bf16.mxu0 %vm10418_vm5, %v10108_v11  ;;  %4774 = vmatprep.subr.bf16.mxu1 %v8996_v39 }
 0x3d0   : > { %4775 = vmatpush1.bf16.msra.mxu1 %v8994_v43  ;;  %v12059_v43 = vld [vmem:[#allocation6_spill] sm:$0xff] }
 0x3d1   : > { %v10735_v49 = vpop.f32.mrb[212].mxu0 }
 0x3d2   : > { %v3819_v34 = vpop.f32.mrb[213].mxu0 }
 0x3d3   : > { %v10737_v59 = vpop.f32.mrb[214].mxu0 }
 0x3d4   : > { %12053 = vst [vmem:[#allocation25_spill] sm:$0xff] %v10737_v59  ;;  %v3822_v4 = vpop.f32.mrb[215].mxu0 }
 0x3d5   : > { %7638 = vmatmul.mubr.msk.bf16.gmra.mrb[48].mxu1 %vm10418_vm5, %v10188_v35 }
 0x3d6   : > { %8283 = vmatmul.mubr.msk.bf16.gmra.mrb[228].mxu0 %vm10418_vm5, %v10129_v57  ;;  %3572 = vmatprep.mubr.bf16.mxu1 %v12038_v9 }
 0x3d7   : > { %8286 = vmatprep.mubr.msk.bf16.mxu0 %vm10418_vm5, %v10147_v41 }
 0x3d9   : > { %v10755_v11 = vpop.f32.mrb[216].mxu0 }
 0x3da   : > { %12054 = vst [vmem:[#allocation26_spill] sm:$0xff] %v10755_v11  ;;  %v3827_v44 = vpop.f32.mrb[217].mxu0 }
 0x3db   : > { %v10757_v27 = vpop.f32.mrb[218].mxu0 }
 0x3dc   : > { %12055 = vst [vmem:[#allocation27_spill] sm:$0xff] %v10757_v27  ;;  %v3830_v0 = vpop.f32.mrb[219].mxu0 }
 0x3dd   : > { %7641 = vmatmul.mubr.msk.bf16.gmra.mrb[52].mxu1 %vm10418_vm5, %v12056_v14  ;;  %v12060_v0 = vld [vmem:[#allocation7_spill] sm:$0xff] }
 0x3de   : > { %8287 = vmatmul.mubr.msk.bf16.gmra.mrb[60].mxu0 %vm10418_vm5, %v10170_v47  ;;  %3582 = vmatprep.mubr.bf16.mxu1 %v12038_v9 }
 0x3df   : > { %8290 = vmatprep.mubr.msk.bf16.mxu0 %vm10418_vm5, %v10188_v35 }
 0x3e1   : > { %v10769_v57 = vpop.f32.mrb[220].mxu0 }
 0x3e2   : > { %12057 = vst [vmem:[#allocation5_spill] sm:$0xff] %v10769_v57  ;;  %v3835_v41 = vpop.f32.mrb[221].mxu0 }
 0x3e3   : > { %v10771_v34 = vpop.f32.mrb[222].mxu0  ;;  %v12062_v41 = vld [vmem:[#allocation9_spill] sm:$0xff] }
 0x3e4   : > { %12058 = vst [vmem:[#allocation28_spill] sm:$0xff] %v10771_v34  ;;  %v3838_v4 = vpop.f32.mrb[223].mxu0 }
 0x3e5   : > { %7644 = vmatmul.mubr.msk.bf16.gmra.mrb[56].mxu1 %vm10418_vm5, %v12059_v43 }
 0x3e6   : > { %8291 = vmatmul.mubr.msk.bf16.gmra.mrb[64].mxu0 %vm10418_vm5, %v12056_v14  ;;  %3592 = vmatprep.mubr.bf16.mxu1 %v12038_v9  ;;  %v12061_v14 = vld [vmem:[#allocation8_spill] sm:$0xff] }
 0x3e7   : > { %8294 = vmatprep.mubr.msk.bf16.mxu0 %vm10418_vm5, %v12059_v43 }
 0x3e9   : > { %v3841_v47 = vpop.f32.mrb[224].mxu0 }
 0x3ea   : > { %v3842_v35 = vpop.f32.mrb[225].mxu0 }
 0x3eb   : > { %v3843_v39 = vpop.f32.mrb[226].mxu0  ;;  %v8999_v35 = vld [vmem:[%s12013_s5 + $0xc] ss:$16 sps:$4 sm:$0xff]  }
 0x3ec   : > { %v3844_v44 = vpop.f32.mrb[227].mxu0  ;;  %5113 = vmatprep.subr.bf16.mxu1 %v8999_v35 }
 0x3ed   : > { %7647 = vmatmul.mubr.msk.bf16.gmra.mrb[60].mxu1 %vm10418_vm5, %v12060_v0  ;;  %v12065_v44 = vld [vmem:[#allocation10_spill] sm:$0xff] }
 0x3ee   : > { %8295 = vmatmul.mubr.msk.bf16.gmra.mrb[68].mxu0 %vm10418_vm5, %v12060_v0  ;;  %3602 = vmatprep.mubr.bf16.mxu1 %v12038_v9  ;;  %v12066_v0 = vld [vmem:[#allocation11_spill] sm:$0xff] }
 0x3ef   : > { %8298 = vmatprep.mubr.msk.bf16.mxu0 %vm10418_vm5, %v12061_v14 }
 0x3f5   : > { %7650 = vmatmul.mubr.msk.bf16.gmra.mrb[64].mxu1 %vm10418_vm5, %v12061_v14 }
 0x3f6   : > { %8299 = vmatmul.mubr.msk.bf16.gmra.mrb[72].mxu0 %vm10418_vm5, %v10285_v62  ;;  %3612 = vmatprep.mubr.bf16.mxu1 %v12038_v9 }
 0x3f7   : > { %8302 = vmatprep.mubr.msk.bf16.mxu0 %vm10418_vm5, %v12062_v41 }
 0x3f9   : > { %v10803_v4 = vpop.f32.mrb[232].mxu0 }
 0x3fa   : > { %12063 = vst [vmem:[#allocation6_spill] sm:$0xff] %v10803_v4  ;;  %v3857_v43 = vpop.f32.mrb[233].mxu0 }
 0x3fb   : > { %v10805_v47 = vpop.f32.mrb[234].mxu0 }
 0x3fc   : > { %12064 = vst [vmem:[#allocation7_spill] sm:$0xff] %v10805_v47  ;;  %v3860_v39 = vpop.f32.mrb[235].mxu0 }
 0x3fd   : > { %7653 = vmatmul.mubr.msk.bf16.gmra.mrb[68].mxu1 %vm10418_vm5, %v10285_v62  ;;  %v12069_v62 = vld [vmem:[#allocation12_spill] sm:$0xff] }
 0x3fe   : > { %8303 = vmatmul.mubr.msk.bf16.gmra.mrb[76].mxu0 %vm10418_vm5, %v12065_v44  ;;  %3622 = vmatprep.mubr.bf16.mxu1 %v12038_v9 }
 0x3ff   : > { %8306 = vmatprep.mubr.msk.bf16.mxu0 %vm10418_vm5, %v12066_v0 }
 0x401   : > { %v10820_v14 = vpop.f32.mrb[236].mxu0 }
 0x402   : > { %12067 = vst [vmem:[#allocation8_spill] sm:$0xff] %v10820_v14  ;;  %v3865_v43 = vpop.f32.mrb[237].mxu0 }
 0x403   : > { %v10822_v47 = vpop.f32.mrb[238].mxu0 }
 0x404   : > { %12068 = vst [vmem:[#allocation9_spill] sm:$0xff] %v10822_v47  ;;  %v3868_v39 = vpop.f32.mrb[239].mxu0 }
 0x405   : > { %7656 = vmatmul.mubr.msk.bf16.gmra.mrb[72].mxu1 %vm10418_vm5, %v12062_v41 }
 0x406   : > { %8307 = vmatmul.mubr.msk.bf16.gmra.mrb[80].mxu0 %vm10418_vm5, %v12069_v62  ;;  %3632 = vmatprep.mubr.bf16.mxu1 %v12038_v9 }
 0x407   : > { %8310 = vmatprep.mubr.msk.bf16.mxu0 %vm10418_vm5, %v10377_v56 }
 0x408   : > { %v3366_v35 = vpop.f32.mrb[96].mxu1 }
 0x409   : > { %v3367_v43 = vadd.f32 %v3366_v35, %v10389_v5  ;;  %v3368_v4 = vpop.f32.mrb[97].mxu1  ;;  %v10835_v47 = vpop.f32.mrb[240].mxu0 }
 0x40a   : > { %12070 = vst [vmem:[#allocation10_spill] sm:$0xff] %v10835_v47  ;;  %v3370_v39 = vpop.f32.mrb[98].mxu1  ;;  %v3873_v14 = vpop.f32.mrb[241].mxu0  ;;  %v10838_v41 = vadd.f32 %v3368_v4, %v10392_v28 }
 0x40b   : > { %v3371_v27 = vadd.f32 %v3370_v39, %v10398_v42  ;;  %v3372_v34 = vpop.f32.mrb[99].mxu1  ;;  %v10841_v11 = vpop.f32.mrb[242].mxu0  ;;  %v12074_v39 = vld [vmem:[#allocation13_spill] sm:$0xff] }
 0x40c   : > { %12071 = vst [vmem:[#allocation11_spill] sm:$0xff] %v10841_v11  ;;  %v3876_v57 = vpop.f32.mrb[243].mxu0  ;;  %v10844_v29 = vadd.f32 %v3372_v34, %v10402_v52 }
 0x40d   : > { %7659 = vmatmul.mubr.msk.bf16.gmra.mrb[76].mxu1 %vm10418_vm5, %v12065_v44 }
 0x40e   : > { %8311 = vmatmul.mubr.msk.bf16.gmra.mrb[84].mxu0 %vm10418_vm5, %v10396_v12  ;;  %3642 = vmatprep.mubr.bf16.mxu1 %v12038_v9 }
 0x410   : > { %v3376_v5 = vpop.f32.mrb[100].mxu1 }
 0x411   : > { %v3377_v28 = vadd.f32 %v3376_v5, %v10412_v15  ;;  %v3378_v42 = vpop.f32.mrb[101].mxu1  ;;  %v10854_v4 = vpop.f32.mrb[244].mxu0 }
 0x412   : > { %12072 = vst [vmem:[#allocation12_spill] sm:$0xff] %v10854_v4  ;;  %v3379_v57 = vadd.f32 %v3378_v42, %v10414_v53  ;;  %v3380_v52 = vpop.f32.mrb[102].mxu1  ;;  %v3881_v34 = vpop.f32.mrb[245].mxu0 }
 0x413   : > { %v3381_v14 = vadd.f32 %v3380_v52, %v10422_v22  ;;  %v3382_v35 = vpop.f32.mrb[103].mxu1  ;;  %v10858_v44 = vpop.f32.mrb[246].mxu0 }
 0x414   : > { %12073 = vst [vmem:[#allocation29_spill] sm:$0xff] %v10858_v44  ;;  %v3383_v11 = vadd.f32 %v3382_v35, %v12074_v39  ;;  %v3884_v47 = vpop.f32.mrb[247].mxu0  ;;  %v10861_v59 = vadd.f32 %v3379_v57, %v3367_v43 }
 0x415   : > { %7662 = vmatmul.mubr.msk.bf16.gmra.mrb[80].mxu1 %vm10418_vm5, %v12066_v0 }
 0x416   : > { %3652 = vmatprep.mubr.bf16.mxu1 %v12038_v9  ;;  %v10867_v15 = vadd.f32 %v3383_v11, %v3371_v27 }
 0x418   : > { %v3386_v53 = vpop.f32.mrb[104].mxu1 }
 0x419   : > { %v3387_v5 = vadd.f32 %v3386_v53, %v10446_v55  ;;  %v3388_v22 = vpop.f32.mrb[105].mxu1  ;;  %v10870_v42 = vpop.f32.mrb[248].mxu0 }
 0x41a   : > { %12075 = vst [vmem:[#allocation13_spill] sm:$0xff] %v10870_v42  ;;  %v3389_v52 = vadd.f32 %v3388_v22, %v10448_v33  ;;  %v3390_v34 = vpop.f32.mrb[106].mxu1  ;;  %v3889_v47 = vpop.f32.mrb[249].mxu0 }
 0x41b   : > { %v3391_v43 = vadd.f32 %v3390_v34, %v10450_v3  ;;  %v3392_v57 = vpop.f32.mrb[107].mxu1  ;;  %v10874_v35 = vpop.f32.mrb[250].mxu0 }
 0x41c   : > { %12076 = vst [vmem:[#allocation30_spill] sm:$0xff] %v10874_v35  ;;  %v3393_v0 = vadd.f32 %v3392_v57, %v10455_v25  ;;  %v3892_v39 = vpop.f32.mrb[251].mxu0  ;;  %v10877_v11 = vadd.f32 %v3389_v52, %v3377_v28  ;;  %v12078_v28 = vld [vmem:[#allocation14_spill] sm:$0xff] }
 0x41d   : > { %7665 = vmatmul.mubr.msk.bf16.gmra.mrb[84].mxu1 %vm10418_vm5, %v12069_v62 }
 0x41e   : > { %3662 = vmatprep.mubr.bf16.mxu1 %v12038_v9  ;;  %v10883_v55 = vadd.f32 %v3393_v0, %v3381_v14 }
 0x420   : > { %v3396_v33 = vpop.f32.mrb[108].mxu1 }
 0x421   : > { %v3397_v27 = vadd.f32 %v3396_v33, %v10465_v50  ;;  %v3398_v3 = vpop.f32.mrb[109].mxu1  ;;  %v10886_v53 = vpop.f32.mrb[252].mxu0 }
 0x422   : > { %12077 = vst [vmem:[#allocation31_spill] sm:$0xff] %v10886_v53  ;;  %v3399_v22 = vadd.f32 %v3398_v3, %v10467_v17  ;;  %v3400_v25 = vpop.f32.mrb[110].mxu1  ;;  %v3897_v34 = vpop.f32.mrb[253].mxu0 }
 0x423   : > { %v3401_v52 = vadd.f32 %v3400_v25, %v12078_v28  ;;  %v3402_v47 = vpop.f32.mrb[111].mxu1  ;;  %v10890_v57 = vpop.f32.mrb[254].mxu0  ;;  %v12081_v25 = vld [vmem:[#allocation15_spill] sm:$0xff] }
 0x424   : > { %12079 = vst [vmem:[#allocation14_spill] sm:$0xff] %v10890_v57  ;;  %v3403_v62 = vadd.f32 %v3402_v47, %v10471_v30  ;;  %v3900_v39 = vpop.f32.mrb[255].mxu0  ;;  %v10893_v14 = vadd.f32 %v3399_v22, %v3387_v5  ;;  %v12082_v5 = vld [vmem:[#allocation16_spill] sm:$0xff] }
 0x425   : > { %7668 = vmatmul.mubr.msk.bf16.gmra.mrb[88].mxu1 %vm10418_vm5, %v10377_v56 }
 0x426   : > { %3672 = vmatprep.mubr.bf16.mxu1 %v12038_v9  ;;  %v10899_v50 = vadd.f32 %v3403_v62, %v3391_v43 }
 0x428   : > { %v3406_v17 = vpop.f32.mrb[112].mxu1 }
 0x429   : > { %v3407_v0 = vadd.f32 %v3406_v17, %v10481_v60  ;;  %v3408_v33 = vpop.f32.mrb[113].mxu1  ;;  %v10902_v3 = vpop.f32.mrb[0].mxu0 }
 0x42a   : > { %12080 = vst [vmem:[#allocation32_spill] sm:$0xff] %v10902_v3  ;;  %v3409_v34 = vadd.f32 %v3408_v33, %v12081_v25  ;;  %v3410_v30 = vpop.f32.mrb[114].mxu1  ;;  %v3905_v28 = vpop.f32.mrb[1].mxu0 }
 0x42b   : > { %v3411_v22 = vadd.f32 %v3410_v30, %v12082_v5  ;;  %v3412_v47 = vpop.f32.mrb[115].mxu1  ;;  %v10906_v39 = vpop.f32.mrb[2].mxu0  ;;  %v12085_v30 = vld [vmem:[#allocation17_spill] sm:$0xff] }
 0x42c   : > { %12083 = vst [vmem:[#allocation15_spill] sm:$0xff] %v10906_v39  ;;  %v3413_v56 = vadd.f32 %v3412_v47, %v10487_v10  ;;  %v3908_v35 = vpop.f32.mrb[3].mxu0  ;;  %v10909_v43 = vadd.f32 %v3409_v34, %v3397_v27  ;;  %v12086_v27 = vld [vmem:[#allocation18_spill] sm:$0xff] }
 0x42d   : > { %7671 = vmatmul.mubr.msk.bf16.gmra.mrb[92].mxu1 %vm10418_vm5, %v10396_v12  ;;  %v12088_v12 = vld [vmem:[#allocation19_spill] sm:$0xff] }
 0x42e   : > { %4792 = vmatprep.mubr.bf16.mxu1 %v12038_v9  ;;  %v10915_v60 = vadd.f32 %v3413_v56, %v3401_v52 }
 0x430   : > { %v3416_v62 = vpop.f32.mrb[116].mxu1 }
 0x431   : > { %v3417_v17 = vadd.f32 %v3416_v62, %v10497_v2  ;;  %v3418_v33 = vpop.f32.mrb[117].mxu1  ;;  %v10918_v25 = vpop.f32.mrb[4].mxu0 }
 0x432   : > { %12084 = vst [vmem:[#allocation16_spill] sm:$0xff] %v10918_v25  ;;  %v3419_v28 = vadd.f32 %v3418_v33, %v12085_v30  ;;  %v3420_v10 = vpop.f32.mrb[118].mxu1  ;;  %v3913_v35 = vpop.f32.mrb[5].mxu0 }
 0x433   : > { %v3421_v34 = vadd.f32 %v3420_v10, %v12086_v27  ;;  %v3422_v5 = vpop.f32.mrb[119].mxu1  ;;  %v10922_v47 = vpop.f32.mrb[6].mxu0  ;;  %v12090_v35 = vld [vmem:[#allocation20_spill] sm:$0xff] }
 0x434   : > { %12087 = vst [vmem:[#allocation17_spill] sm:$0xff] %v10922_v47  ;;  %v3423_v19 = vadd.f32 %v3422_v5, %v12088_v12  ;;  %v3916_v39 = vpop.f32.mrb[7].mxu0  ;;  %v10925_v52 = vadd.f32 %v3419_v28, %v3407_v0  ;;  %v12092_v5 = vld [vmem:[#allocation21_spill] sm:$0xff] }
 0x436   : > { %v10927_v56 = vadd.f32 %v3423_v19, %v3411_v22 }
 0x438   : > { %v3426_v2 = vpop.f32.mrb[120].mxu1 }
 0x439   : > { %v3427_v62 = vadd.f32 %v3426_v2, %v10519_v58  ;;  %v3428_v3 = vpop.f32.mrb[121].mxu1  ;;  %v10930_v25 = vpop.f32.mrb[8].mxu0 }
 0x43a   : > { %12089 = vst [vmem:[#allocation18_spill] sm:$0xff] %v10930_v25  ;;  %v3429_v33 = vadd.f32 %v3428_v3, %v10521_v31  ;;  %v3430_v30 = vpop.f32.mrb[122].mxu1  ;;  %v3921_v10 = vpop.f32.mrb[9].mxu0  ;;  %v12094_v31 = vld [vmem:[#allocation22_spill] sm:$0xff] }
 0x43b   : > { %v3431_v27 = vadd.f32 %v3430_v30, %v12090_v35  ;;  %v3432_v47 = vpop.f32.mrb[123].mxu1  ;;  %v10934_v57 = vpop.f32.mrb[10].mxu0 }
 0x43c   : > { %12091 = vst [vmem:[#allocation19_spill] sm:$0xff] %v10934_v57  ;;  %v3433_v0 = vadd.f32 %v3432_v47, %v10525_v13  ;;  %v3924_v39 = vpop.f32.mrb[11].mxu0  ;;  %v10937_v22 = vadd.f32 %v3429_v33, %v3417_v17 }
 0x43e   : > { %v10939_v28 = vadd.f32 %v3433_v0, %v3421_v34 }
 0x440   : > { %v3436_v58 = vpop.f32.mrb[124].mxu1 }
 0x441   : > { %v3437_v12 = vadd.f32 %v3436_v58, %v12092_v5  ;;  %v3438_v19 = vpop.f32.mrb[125].mxu1  ;;  %v10942_v2 = vpop.f32.mrb[12].mxu0 }
 0x442   : > { %12093 = vst [vmem:[#allocation20_spill] sm:$0xff] %v10942_v2  ;;  %v3439_v3 = vadd.f32 %v3438_v19, %v12094_v31  ;;  %v3440_v10 = vpop.f32.mrb[126].mxu1  ;;  %v3929_v30 = vpop.f32.mrb[13].mxu0 }
 0x443   : > { %v3441_v35 = vadd.f32 %v3440_v10, %v10539_v36  ;;  %v3442_v57 = vpop.f32.mrb[127].mxu1  ;;  %v10946_v25 = vpop.f32.mrb[14].mxu0 }
 0x444   : > { %12095 = vst [vmem:[#allocation21_spill] sm:$0xff] %v10946_v25  ;;  %v3443_v13 = vadd.f32 %v3442_v57, %v10541_v32  ;;  %v3932_v17 = vpop.f32.mrb[15].mxu0  ;;  %v10949_v34 = vadd.f32 %v3439_v3, %v3427_v62 }
 0x446   : > { %v10951_v47 = vadd.f32 %v3443_v13, %v3431_v27 }
 0x448   : > { %v3446_v33 = vpop.f32.mrb[0].mxu1 }
 0x449   : > { %v3448_v0 = vpop.f32.mrb[1].mxu1  ;;  %v10953_v39 = vpop.f32.mrb[16].mxu0 }
 0x44a   : > { %12096 = vst [vmem:[#allocation22_spill] sm:$0xff] %v10953_v39  ;;  %v10955_v58 = vadd.f32 %v3448_v0, %v3437_v12  ;;  %v3450_v5 = vpop.f32.mrb[2].mxu1  ;;  %v3937_v19 = vpop.f32.mrb[17].mxu0 }
 0x44b   : > { %v3452_v31 = vpop.f32.mrb[3].mxu1  ;;  %v10957_v36 = vpop.f32.mrb[18].mxu0 }
 0x44c   : > { %12097 = vst [vmem:[#allocation33_spill] sm:$0xff] %v10957_v36  ;;  %v10959_v10 = vadd.f32 %v3452_v31, %v3441_v35  ;;  %v3940_v30 = vpop.f32.mrb[19].mxu0 }
 0x450   : > { %v3456_v32 = vpop.f32.mrb[4].mxu1 }
 0x451   : > { %v3458_v57 = vpop.f32.mrb[5].mxu1  ;;  %v10961_v62 = vpop.f32.mrb[20].mxu0 }
 0x452   : > { %12098 = vst [vmem:[#allocation34_spill] sm:$0xff] %v10961_v62  ;;  %v10963_v27 = vadd.f32 %v3458_v57, %v3446_v33  ;;  %v3460_v3 = vpop.f32.mrb[6].mxu1  ;;  %v3945_v13 = vpop.f32.mrb[21].mxu0 }
 0x453   : > { %v3462_v17 = vpop.f32.mrb[7].mxu1  ;;  %v10965_v39 = vpop.f32.mrb[22].mxu0 }
 0x454   : > { %12099 = vst [vmem:[#allocation35_spill] sm:$0xff] %v10965_v39  ;;  %v10967_v12 = vadd.f32 %v3462_v17, %v3450_v5  ;;  %v3948_v0 = vpop.f32.mrb[23].mxu0 }
 0x458   : > { %v3466_v19 = vpop.f32.mrb[8].mxu1 }
 0x459   : > { %v3468_v25 = vpop.f32.mrb[9].mxu1  ;;  %v10969_v36 = vpop.f32.mrb[24].mxu0 }
 0x45a   : > { %12100 = vst [vmem:[#allocation36_spill] sm:$0xff] %v10969_v36  ;;  %v10971_v35 = vadd.f32 %v3468_v25, %v3456_v32  ;;  %v3470_v31 = vpop.f32.mrb[10].mxu1  ;;  %v3953_v30 = vpop.f32.mrb[25].mxu0 }
 0x45b   : > { %v3472_v2 = vpop.f32.mrb[11].mxu1  ;;  %v10973_v62 = vpop.f32.mrb[26].mxu0 }
 0x45c   : > { %12101 = vst [vmem:[#allocation37_spill] sm:$0xff] %v10973_v62  ;;  %v10975_v33 = vadd.f32 %v3472_v2, %v3460_v3  ;;  %v3956_v57 = vpop.f32.mrb[27].mxu0  ;;  %v10988_v2 = vld [vmem:[%s12012_s4] ss:$0 sm:$0xff] }
 0x460   : > { %v3476_v13 = vpop.f32.mrb[12].mxu1 }
 0x461   : > { %v3478_v42 = vpop.f32.mrb[13].mxu1  ;;  %v10977_v39 = vpop.f32.mrb[28].mxu0 }
 0x462   : > { %12102 = vst [vmem:[#allocation38_spill] sm:$0xff] %v10977_v39  ;;  %v10979_v5 = vadd.f32 %v3478_v42, %v3466_v19  ;;  %v3480_v17 = vpop.f32.mrb[14].mxu1  ;;  %v3961_v0 = vpop.f32.mrb[29].mxu0 }
 0x463   : > { %v3482_v53 = vpop.f32.mrb[15].mxu1  ;;  %v10981_v36 = vpop.f32.mrb[30].mxu0 }
 0x464   : > { %12103 = vst [vmem:[#allocation39_spill] sm:$0xff] %v10979_v5  ;;  %12104 = vst [vmem:[#allocation40_spill] sm:$0xff] %v10981_v36  ;;  %v10983_v25 = vadd.f32 %v3482_v53, %v3470_v31  ;;  %v3964_v32 = vpop.f32.mrb[31].mxu0 }
 0x466   : > { %12105 = vst [vmem:[#allocation41_spill] sm:$0xff] %v10983_v25 }
 0x468   : > { %v3486_v30 = vpop.f32.mrb[16].mxu1 }
 0x469   : > { %v3488_v44 = vpop.f32.mrb[17].mxu1  ;;  %v8252_v62 = vpop.f32.mrb[164].mxu0 }
 0x46a   : > { %v10990_v3 = vadd.f32 %v3488_v44, %v3476_v13  ;;  %v4315_v42 = vadd.f32 %v8252_v62, %v10838_v41  ;;  %v3490_v19 = vpop.f32.mrb[18].mxu1  ;;  %v4000_v57 = vpop.f32.mrb[165].mxu0  ;;  %v8997_v41 = vld [vmem:[%s12013_s5 + $0x8] ss:$16 sps:$4 sm:$0xff]  }
 0x46b   : > { %v3492_v0 = vpop.f32.mrb[19].mxu1  ;;  %v8253_v39 = vpop.f32.mrb[166].mxu0 }
 0x46c   : > { %v4386_v53 = vadd.f32 %v10988_v2, %v4315_v42  ;;  %v10994_v31 = vadd.f32 %v3492_v0, %v3480_v17  ;;  %v4316_v32 = vadd.f32 %v8253_v39, %v10844_v29  ;;  %v4002_v36 = vpop.f32.mrb[167].mxu0  ;;  %v9002_v39 = vld [vmem:[%s12013_s5 + $0x2c] ss:$16 sps:$4 sm:$0xff]  }
 0x46e   : > { %v4387_v4 = vadd.f32 %v10988_v2, %v4316_v32  ;;  %v4450_v25 = vmax.f32 %v4386_v53, 0.0 }
 0x470   : > { %v4451_v5 = vmax.f32 %v4387_v4, 0.0  ;;  %v3496_v18 = vpop.f32.mrb[20].mxu1 }
 0x471   : > { %v3498_v44 = vpop.f32.mrb[21].mxu1  ;;  %v8256_v13 = vpop.f32.mrb[32].mxu0 }
 0x472   : > { %v11001_v62 = vpack.c.bf16 %v4451_v5, %v4450_v25  ;;  %v11003_v57 = vadd.f32 %v3498_v44, %v3486_v30  ;;  %v4023_v17 = vadd.f32 %v8256_v13, %v10585_v63  ;;  %v3500_v42 = vpop.f32.mrb[22].mxu1  ;;  %v4014_v29 = vpop.f32.mrb[33].mxu0 }
 0x473   : > { %v4015_v4 = vadd.f32 %v4014_v29, %v10573_v46  ;;  %v3502_v36 = vpop.f32.mrb[23].mxu1  ;;  %v8257_v0 = vpop.f32.mrb[34].mxu0  ;;  %v9000_v46 = vld [vmem:[%s12013_s5 + $0x28] ss:$16 sps:$4 sm:$0xff]  }
 0x474   : > { %v4319_v53 = vadd.f32 %v10877_v11, %v4023_v17  ;;  %v11011_v32 = vadd.f32 %v3502_v36, %v3490_v19  ;;  %v4026_v5 = vadd.f32 %v8257_v0, %v10587_v21  ;;  %v4017_v25 = vpop.f32.mrb[35].mxu0  ;;  %4793 = vmatmul.mubr.bf16.vlgmr.msra.gmra.mrb[128].mxu1 %v11001_v62  ;;  %v9005_v21 = vld [vmem:[%s12013_s5 + $0x4c] ss:$16 sps:$4 sm:$0xff]  }
 0x475   : > { %v4317_v63 = vadd.f32 %v10861_v59, %v4015_v4  ;;  %v4018_v30 = vadd.f32 %v4017_v25, %v10575_v1  ;;  %5114 = vmatpush1.bf16.msra.mxu1 %v8997_v41  ;;  %4802 = vmatprep.mubr.bf16.mxu1 %v12038_v9 }
 0x476   : > { %v4390_v11 = vadd.f32 %v10988_v2, %v4319_v53  ;;  %v4320_v19 = vadd.f32 %v10883_v55, %v4026_v5  ;;  %5115 = vmatprep.subr.bf16.mxu1 %v9002_v39  ;;  %v9003_v55 = vld [vmem:[%s12013_s5 + $0x48] ss:$16 sps:$4 sm:$0xff]   ;;  %v9008_v5 = vld [vmem:[%s12013_s5 + $0x6c] ss:$16 sps:$4 sm:$0xff]  }
 0x477   : > { %v4388_v59 = vadd.f32 %v10988_v2, %v4317_v63  ;;  %v4318_v1 = vadd.f32 %v10867_v15, %v4018_v30 }
 0x478   : > { %v4391_v44 = vadd.f32 %v10988_v2, %v4320_v19  ;;  %v3506_v13 = vpop.f32.mrb[24].mxu1  ;;  %v4454_v39 = vmax.f32 %v4390_v11, 0.0 }
 0x479   : > { %v4389_v41 = vadd.f32 %v10988_v2, %v4318_v1  ;;  %v3508_v17 = vpop.f32.mrb[25].mxu1  ;;  %v8260_v29 = vpop.f32.mrb[36].mxu0  ;;  %5116 = vmatpush1.bf16.msra.mxu1 %v9000_v46  ;;  %v4452_v25 = vmax.f32 %v4388_v59, 0.0 }
 0x47a   : > { %v4455_v4 = vmax.f32 %v4391_v44, 0.0  ;;  %v11033_v36 = vadd.f32 %v3508_v17, %v3496_v18  ;;  %v4039_v0 = vadd.f32 %v8260_v29, %v10611_v61  ;;  %v3510_v53 = vpop.f32.mrb[26].mxu1  ;;  %v4030_v15 = vpop.f32.mrb[37].mxu0  ;;  %5117 = vmatprep.subr.bf16.mxu1 %v9005_v21 }
 0x47b   : > { %v4453_v63 = vmax.f32 %v4389_v41, 0.0  ;;  %v4031_v30 = vadd.f32 %v4030_v15, %v10597_v51  ;;  %v3512_v46 = vpop.f32.mrb[27].mxu1  ;;  %v8261_v19 = vpop.f32.mrb[38].mxu0  ;;  %v9006_v51 = vld [vmem:[%s12013_s5 + $0x68] ss:$16 sps:$4 sm:$0xff]  }
 0x47c   : > { %v4323_v11 = vadd.f32 %v10909_v43, %v4039_v0  ;;  %v11041_v1 = vadd.f32 %v3512_v46, %v3500_v42  ;;  %v4042_v18 = vadd.f32 %v8261_v19, %v10613_v48  ;;  %v4033_v61 = vpop.f32.mrb[39].mxu0  ;;  %v11044_v44 = vpack.c.bf16 %v4455_v4, %v4454_v39  ;;  %v9011_v48 = vld [vmem:[%s12013_s5 + $0x8c] ss:$16 sps:$4 sm:$0xff]   ;;  %v9009_v4 = vld [vmem:[%s12013_s5 + $0x88] ss:$16 sps:$4 sm:$0xff]  }
 0x47d   : > { %v4321_v21 = vadd.f32 %v10893_v14, %v4031_v30  ;;  %v4034_v17 = vadd.f32 %v4033_v61, %v10599_v38  ;;  %v11048_v29 = vpack.c.bf16 %v4453_v63, %v4452_v25  ;;  %5118 = vmatpush1.bf16.msra.mxu1 %v9003_v55 }
 0x47e   : > { %v4324_v43 = vadd.f32 %v10915_v60, %v4042_v18  ;;  %5119 = vmatprep.subr.bf16.mxu1 %v9008_v5  ;;  %v4394_v42 = vadd.f32 %v10988_v2, %v4323_v11 }
 0x47f   : > { %v4392_v14 = vadd.f32 %v10988_v2, %v4321_v21  ;;  %v4322_v38 = vadd.f32 %v10899_v50, %v4034_v17  ;;  %4803 = vmatmul.mubr.bf16.gmra.mrb[132].mxu1 %v11048_v29 }
 0x480   : > { %v4395_v59 = vadd.f32 %v10988_v2, %v4324_v43  ;;  %v3516_v41 = vpop.f32.mrb[28].mxu1  ;;  %4812 = vmatprep.mubr.bf16.mxu1 %v12038_v9  ;;  %v4458_v63 = vmax.f32 %v4394_v42, 0.0 }
 0x481   : > { %v4393_v60 = vadd.f32 %v10988_v2, %v4322_v38  ;;  %v3517_v55 = vpop.f32.mrb[29].mxu1  ;;  %v8264_v39 = vpop.f32.mrb[40].mxu0  ;;  %5120 = vmatpush1.bf16.msra.mxu1 %v9006_v51  ;;  %v4456_v30 = vmax.f32 %v4392_v14, 0.0 }
 0x482   : > { %v4459_v0 = vmax.f32 %v4395_v59, 0.0  ;;  %v4281_v15 = vadd.f32 %v3517_v55, %v3506_v13  ;;  %v4055_v50 = vadd.f32 %v8264_v39, %v10645_v40  ;;  %v3519_v5 = vpop.f32.mrb[30].mxu1  ;;  %v4046_v25 = vpop.f32.mrb[41].mxu0  ;;  %5121 = vmatprep.subr.bf16.mxu1 %v9011_v48 }
 0x483   : > { %v4457_v46 = vmax.f32 %v4393_v60, 0.0  ;;  %v4047_v19 = vadd.f32 %v4046_v25, %v10631_v16  ;;  %v3520_v11 = vpop.f32.mrb[31].mxu1  ;;  %v8265_v18 = vpop.f32.mrb[42].mxu0 }
 0x484   : > { %v4416_v61 = vadd.f32 %v10988_v2, %v4281_v15  ;;  %v4327_v21 = vadd.f32 %v10937_v22, %v4055_v50  ;;  %v4282_v17 = vadd.f32 %v3520_v11, %v3510_v53  ;;  %v4058_v51 = vadd.f32 %v8265_v18, %v10647_v8  ;;  %v4049_v13 = vpop.f32.mrb[43].mxu0 }
 0x485   : > { %v4325_v40 = vadd.f32 %v10925_v52, %v4047_v19  ;;  %v4050_v43 = vadd.f32 %v4049_v13, %v10633_v26  ;;  %v11074_v48 = vpack.c.bf16 %v4457_v46, %v4456_v30  ;;  %v11076_v42 = vpack.c.bf16 %v4459_v0, %v4458_v63  ;;  %5122 = vmatpush1.bf16.msra.mxu1 %v9009_v4 }
 0x486   : > { %v4398_v16 = vadd.f32 %v10988_v2, %v4327_v21  ;;  %v4417_v14 = vadd.f32 %v10988_v2, %v4282_v17  ;;  %v4328_v38 = vadd.f32 %v10939_v28, %v4058_v51  ;;  %v4480_v53 = vmax.f32 %v4416_v61, 0.0 }
 0x487   : > { %v4396_v22 = vadd.f32 %v10988_v2, %v4325_v40  ;;  %v4326_v8 = vadd.f32 %v10927_v56, %v4050_v43  ;;  %4813 = vmatmul.mubr.bf16.gmra.mrb[136].mxu1 %v11044_v44 }
 0x488   : > { %v4399_v52 = vadd.f32 %v10988_v2, %v4328_v38  ;;  %v3524_v26 = vpop.f32.mrb[32].mxu1  ;;  %4822 = vmatprep.mubr.bf16.mxu1 %v12038_v9  ;;  %v4481_v59 = vmax.f32 %v4417_v14, 0.0  ;;  %v4462_v39 = vmax.f32 %v4398_v16, 0.0 }
 0x489   : > { %v4397_v41 = vadd.f32 %v10988_v2, %v4326_v8  ;;  %v11087_v60 = vpop.f32.mrb[33].mxu1  ;;  %v8268_v55 = vpop.f32.mrb[44].mxu0  ;;  %v4460_v50 = vmax.f32 %v4396_v22, 0.0 }
 0x48a   : > { %v4463_v28 = vmax.f32 %v4399_v52, 0.0  ;;  %v4071_v4 = vadd.f32 %v8268_v55, %v10673_v6  ;;  %v3528_v0 = vpop.f32.mrb[34].mxu1  ;;  %v4062_v56 = vpop.f32.mrb[45].mxu0  ;;  %v11090_v15 = vpack.c.bf16 %v4481_v59, %v4480_v53 }
 0x48b   : > { %v4461_v5 = vmax.f32 %v4397_v41, 0.0  ;;  %v4063_v25 = vadd.f32 %v4062_v56, %v10659_v20  ;;  %v11093_v63 = vpop.f32.mrb[35].mxu1  ;;  %v8269_v30 = vpop.f32.mrb[46].mxu0 }
 0x48c   : > { %v4331_v46 = vadd.f32 %v10955_v58, %v4071_v4  ;;  %v4074_v19 = vadd.f32 %v8269_v30, %v10675_v54  ;;  %v4065_v11 = vpop.f32.mrb[47].mxu0  ;;  %v11097_v18 = vpack.c.bf16 %v4463_v28, %v4462_v39 }
 0x48d   : > { %v4329_v6 = vadd.f32 %v10949_v34, %v4063_v25  ;;  %v4066_v61 = vadd.f32 %v4065_v11, %v10661_v23  ;;  %v11101_v21 = vpack.c.bf16 %v4461_v5, %v4460_v50 }
 0x48e   : > { %v4402_v17 = vadd.f32 %v10988_v2, %v4331_v46  ;;  %v4332_v20 = vadd.f32 %v10959_v10, %v4074_v19 }
 0x48f   : > { %v4400_v51 = vadd.f32 %v10988_v2, %v4329_v6  ;;  %v4330_v13 = vadd.f32 %v10951_v47, %v4066_v61  ;;  %4823 = vmatmul.mubr.bf16.gmra.mrb[140].mxu1 %v11074_v48 }
 0x490   : > { %v4403_v54 = vadd.f32 %v10988_v2, %v4332_v20  ;;  %v3534_v58 = vpop.f32.mrb[36].mxu1  ;;  %4832 = vmatprep.mubr.bf16.mxu1 %v12038_v9  ;;  %v4466_v43 = vmax.f32 %v4402_v17, 0.0 }
 0x491   : > { %v4401_v34 = vadd.f32 %v10988_v2, %v4330_v13  ;;  %v3536_v23 = vpop.f32.mrb[37].mxu1  ;;  %v8272_v40 = vpop.f32.mrb[48].mxu0  ;;  %v4464_v47 = vmax.f32 %v4400_v51, 0.0  ;;  %v12106_v51 = vld [vmem:[#allocation23_spill] sm:$0xff] }
 0x492   : > { %v4467_v16 = vmax.f32 %v4403_v54, 0.0  ;;  %v11111_v14 = vadd.f32 %v3536_v23, %v3524_v26  ;;  %v4087_v10 = vadd.f32 %v8272_v40, %v10707_v7  ;;  %v3538_v38 = vpop.f32.mrb[38].mxu1  ;;  %v4078_v22 = vpop.f32.mrb[49].mxu0 }
 0x493   : > { %v4465_v8 = vmax.f32 %v4401_v34, 0.0  ;;  %v4079_v52 = vadd.f32 %v4078_v22, %v10693_v24  ;;  %v3540_v53 = vpop.f32.mrb[39].mxu1  ;;  %v8273_v59 = vpop.f32.mrb[50].mxu0  ;;  %v12108_v22 = vld [vmem:[#allocation39_spill] sm:$0xff] }
 0x494   : > { %v4335_v41 = vadd.f32 %v10971_v35, %v4087_v10  ;;  %v11116_v55 = vadd.f32 %v3540_v53, %v3528_v0  ;;  %v4090_v39 = vadd.f32 %v8273_v59, %v10709_v37  ;;  %v4081_v28 = vpop.f32.mrb[51].mxu0  ;;  %v11119_v4 = vpack.c.bf16 %v4467_v16, %v4466_v43  ;;  %v9012_v37 = vld [vmem:[%s12013_s5 + $0xa8] ss:$16 sps:$4 sm:$0xff]   ;;  %v12107_v43 = vld [vmem:[#allocation25_spill] sm:$0xff] }
 0x495   : > { %v4333_v26 = vadd.f32 %v10963_v27, %v4079_v52  ;;  %v4082_v7 = vadd.f32 %v4081_v28, %v10695_v45  ;;  %v11123_v56 = vpack.c.bf16 %v4465_v8, %v4464_v47  ;;  %v9014_v45 = vld [vmem:[%s12013_s5 + $0xac] ss:$16 sps:$4 sm:$0xff]  }
 0x496   : > { %v4406_v50 = vadd.f32 %v10988_v2, %v4335_v41  ;;  %v4336_v24 = vadd.f32 %v10975_v33, %v4090_v39  ;;  %5123 = vmatprep.subr.bf16.mxu1 %v9014_v45  ;;  %v12109_v47 = vld [vmem:[#allocation24_spill] sm:$0xff] }
 0x497   : > { %v4404_v5 = vadd.f32 %v10988_v2, %v4333_v26  ;;  %v4334_v35 = vadd.f32 %v10967_v12, %v4082_v7  ;;  %4833 = vmatmul.mubr.bf16.gmra.mrb[144].mxu1 %v11076_v42 }
 0x498   : > { %v4407_v27 = vadd.f32 %v10988_v2, %v4336_v24  ;;  %v3544_v0 = vpop.f32.mrb[40].mxu1  ;;  %4842 = vmatprep.mubr.bf16.mxu1 %v12038_v9  ;;  %v4470_v12 = vmax.f32 %v4406_v50, 0.0  ;;  %5124 = vmatpush1.bf16.msra.mxu1 %v9012_v37 }
 0x499   : > { %v4405_v33 = vadd.f32 %v10988_v2, %v4334_v35  ;;  %v3546_v25 = vpop.f32.mrb[41].mxu1  ;;  %v8276_v30 = vpop.f32.mrb[52].mxu0  ;;  %v4468_v17 = vmax.f32 %v4404_v5, 0.0 }
 0x49a   : > { %v4471_v46 = vmax.f32 %v4407_v27, 0.0  ;;  %v11139_v19 = vadd.f32 %v3546_v25, %v3534_v58  ;;  %v4103_v11 = vadd.f32 %v8276_v30, %v10735_v49  ;;  %v3548_v6 = vpop.f32.mrb[42].mxu1  ;;  %v4094_v61 = vpop.f32.mrb[53].mxu0  ;;  %v12112_v30 = vld [vmem:[#allocation26_spill] sm:$0xff] }
 0x49b   : > { %v4469_v20 = vmax.f32 %v4405_v33, 0.0  ;;  %v4095_v13 = vadd.f32 %v4094_v61, %v12106_v51  ;;  %v3550_v54 = vpop.f32.mrb[43].mxu1  ;;  %v8277_v34 = vpop.f32.mrb[54].mxu0 }
 0x49c   : > { %v4339_v23 = vadd.f32 %v10990_v3, %v4103_v11  ;;  %v11144_v40 = vadd.f32 %v3550_v54, %v3538_v38  ;;  %v4106_v16 = vadd.f32 %v8277_v34, %v12107_v43  ;;  %v4097_v10 = vpop.f32.mrb[55].mxu0  ;;  %v11147_v58 = vpack.c.bf16 %v4471_v46, %v4470_v12  ;;  %v12110_v3 = vld [vmem:[#allocation41_spill] sm:$0xff]  ;;  %v12114_v34 = vld [vmem:[#allocation27_spill] sm:$0xff] }
 0x49d   : > { %v4337_v49 = vadd.f32 %v12108_v22, %v4095_v13  ;;  %v4098_v8 = vadd.f32 %v4097_v10, %v12109_v47  ;;  %v11151_v52 = vpack.c.bf16 %v4469_v20, %v4468_v17  ;;  %v12113_v20 = vld [vmem:[#allocation28_spill] sm:$0xff] }
 0x49e   : > { %v4410_v53 = vadd.f32 %v10988_v2, %v4339_v23  ;;  %v4340_v59 = vadd.f32 %v10994_v31, %v4106_v16  ;;  %v12111_v31 = vld [vmem:[#allocation5_spill] sm:$0xff] }
 0x49f   : > { %v4408_v41 = vadd.f32 %v10988_v2, %v4337_v49  ;;  %v4338_v38 = vadd.f32 %v12110_v3, %v4098_v8  ;;  %4843 = vmatmul.mubr.bf16.gmra.mrb[148].mxu1 %v11101_v21 }
 0x4a0   : > { %v4411_v39 = vadd.f32 %v10988_v2, %v4340_v59  ;;  %v3554_v28 = vpop.f32.mrb[44].mxu1  ;;  %4852 = vmatprep.mubr.bf16.mxu1 %v12038_v9  ;;  %v4474_v24 = vmax.f32 %v4410_v53, 0.0 }
 0x4a1   : > { %v4409_v26 = vadd.f32 %v10988_v2, %v4338_v38  ;;  %v3556_v7 = vpop.f32.mrb[45].mxu1  ;;  %v8280_v50 = vpop.f32.mrb[56].mxu0  ;;  %v4472_v33 = vmax.f32 %v4408_v41, 0.0 }
 0x4a2   : > { %v4475_v5 = vmax.f32 %v4411_v39, 0.0  ;;  %v11161_v35 = vadd.f32 %v3556_v7, %v3544_v0  ;;  %v4119_v37 = vadd.f32 %v8280_v50, %v12111_v31  ;;  %v3558_v45 = vpop.f32.mrb[46].mxu1  ;;  %v4110_v27 = vpop.f32.mrb[57].mxu0 }
 0x4a3   : > { %v4473_v25 = vmax.f32 %v4409_v26, 0.0  ;;  %v4111_v12 = vadd.f32 %v4110_v27, %v12112_v30  ;;  %v3560_v46 = vpop.f32.mrb[47].mxu1  ;;  %v8281_v11 = vpop.f32.mrb[58].mxu0 }
 0x4a4   : > { %v4343_v61 = vadd.f32 %v11033_v36, %v4119_v37  ;;  %v11166_v17 = vadd.f32 %v3560_v46, %v3548_v6  ;;  %v4122_v51 = vadd.f32 %v8281_v11, %v12113_v20  ;;  %v4113_v13 = vpop.f32.mrb[59].mxu0  ;;  %v11169_v54 = vpack.c.bf16 %v4475_v5, %v4474_v24 }
 0x4a5   : > { %v4341_v0 = vadd.f32 %v11003_v57, %v4111_v12  ;;  %v4114_v23 = vadd.f32 %v4113_v13, %v12114_v34  ;;  %v11173_v43 = vpack.c.bf16 %v4473_v25, %v4472_v33 }
 0x4a6   : > { %v4414_v16 = vadd.f32 %v10988_v2, %v4343_v61  ;;  %v4344_v10 = vadd.f32 %v11041_v1, %v4122_v51  ;;  %v12116_v51 = vld [vmem:[#allocation6_spill] sm:$0xff] }
 0x4a7   : > { %v4412_v22 = vadd.f32 %v10988_v2, %v4341_v0  ;;  %v4342_v36 = vadd.f32 %v11011_v32, %v4114_v23  ;;  %4853 = vmatmul.mubr.bf16.gmra.mrb[152].mxu1 %v11097_v18 }
 0x4a8   : > { %v4415_v6 = vadd.f32 %v10988_v2, %v4344_v10  ;;  %v3564_v49 = vpop.f32.mrb[48].mxu1  ;;  %4862 = vmatprep.mubr.bf16.mxu1 %v12038_v9  ;;  %v4478_v53 = vmax.f32 %v4414_v16, 0.0  ;;  %v12117_v10 = vld [vmem:[#allocation9_spill] sm:$0xff] }
 0x4a9   : > { %v4413_v57 = vadd.f32 %v10988_v2, %v4342_v36  ;;  %v3566_v47 = vpop.f32.mrb[49].mxu1  ;;  %v8284_v8 = vpop.f32.mrb[228].mxu0  ;;  %v4476_v39 = vmax.f32 %v4412_v22, 0.0 }
 0x4aa   : > { %v4479_v59 = vmax.f32 %v4415_v6, 0.0  ;;  %v4291_v41 = vadd.f32 %v3566_v47, %v3554_v28  ;;  %v4347_v1 = vadd.f32 %v8284_v8, %v11087_v60  ;;  %v3568_v3 = vpop.f32.mrb[50].mxu1  ;;  %v4126_v38 = vpop.f32.mrb[229].mxu0 }
 0x4ab   : > { %v4477_v32 = vmax.f32 %v4413_v57, 0.0  ;;  %v3570_v26 = vpop.f32.mrb[51].mxu1  ;;  %v8285_v7 = vpop.f32.mrb[230].mxu0 }
 0x4ac   : > { %v4418_v50 = vadd.f32 %v10988_v2, %v4347_v1  ;;  %v4292_v24 = vadd.f32 %v3570_v26, %v3558_v45  ;;  %v4348_v5 = vadd.f32 %v8285_v7, %v11093_v63  ;;  %v4128_v31 = vpop.f32.mrb[231].mxu0  ;;  %v11186_v37 = vpack.c.bf16 %v4479_v59, %v4478_v53  ;;  %v12115_v45 = vld [vmem:[#allocation8_spill] sm:$0xff] }
 0x4ad   : > { %v11188_v27 = vpack.c.bf16 %v4477_v32, %v4476_v39  ;;  %v12119_v7 = vld [vmem:[#allocation12_spill] sm:$0xff] }
 0x4ae   : > { %v4419_v28 = vadd.f32 %v10988_v2, %v4348_v5  ;;  %v4482_v60 = vmax.f32 %v4418_v50, 0.0 }
 0x4af   : > { %4863 = vmatmul.mubr.bf16.gmra.mrb[156].mxu1 %v11123_v56 }
 0x4b0   : > { %v4483_v33 = vmax.f32 %v4419_v28, 0.0  ;;  %v3574_v25 = vpop.f32.mrb[52].mxu1  ;;  %4872 = vmatprep.mubr.bf16.mxu1 %v12038_v9 }
 0x4b1   : > { %v3576_v30 = vpop.f32.mrb[53].mxu1  ;;  %v8288_v12 = vpop.f32.mrb[60].mxu0 }
 0x4b2   : > { %v11193_v46 = vadd.f32 %v3576_v30, %v3564_v49  ;;  %v4149_v63 = vadd.f32 %v8288_v12, %v12115_v45  ;;  %v3578_v11 = vpop.f32.mrb[54].mxu1  ;;  %v4140_v61 = vpop.f32.mrb[61].mxu0  ;;  %v11196_v20 = vpack.c.bf16 %v4483_v33, %v4482_v60  ;;  %v12118_v49 = vld [vmem:[#allocation7_spill] sm:$0xff]  ;;  %v12120_v33 = vld [vmem:[#allocation10_spill] sm:$0xff] }
 0x4b3   : > { %v4141_v13 = vadd.f32 %v4140_v61, %v12116_v51  ;;  %v3580_v0 = vpop.f32.mrb[55].mxu1  ;;  %v8289_v34 = vpop.f32.mrb[62].mxu0  ;;  %v12121_v51 = vld [vmem:[#allocation29_spill] sm:$0xff] }
 0x4b4   : > { %v4351_v23 = vadd.f32 %v11139_v19, %v4149_v63  ;;  %v11200_v16 = vadd.f32 %v3580_v0, %v3568_v3  ;;  %v4152_v22 = vadd.f32 %v8289_v34, %v12117_v10  ;;  %v4143_v36 = vpop.f32.mrb[63].mxu0  ;;  %v9015_v19 = vld [vmem:[%s12013_s5 + $0xc8] ss:$16 sps:$4 sm:$0xff]  }
 0x4b5   : > { %v4349_v6 = vadd.f32 %v11111_v14, %v4141_v13  ;;  %v4144_v57 = vadd.f32 %v4143_v36, %v12118_v49  ;;  %v9017_v14 = vld [vmem:[%s12013_s5 + $0xcc] ss:$16 sps:$4 sm:$0xff]  }
 0x4b6   : > { %v4422_v47 = vadd.f32 %v10988_v2, %v4351_v23  ;;  %v4352_v8 = vadd.f32 %v11144_v40, %v4152_v22  ;;  %5125 = vmatprep.subr.bf16.mxu1 %v9017_v14  ;;  %v12122_v23 = vld [vmem:[#allocation11_spill] sm:$0xff] }
 0x4b7   : > { %v4420_v53 = vadd.f32 %v10988_v2, %v4349_v6  ;;  %v4350_v59 = vadd.f32 %v11116_v55, %v4144_v57  ;;  %4873 = vmatmul.mubr.bf16.gmra.mrb[160].mxu1 %v11119_v4  ;;  %v12123_v14 = vld [vmem:[#allocation31_spill] sm:$0xff] }
 0x4b8   : > { %v4423_v1 = vadd.f32 %v10988_v2, %v4352_v8  ;;  %v3584_v3 = vpop.f32.mrb[56].mxu1  ;;  %4882 = vmatprep.mubr.bf16.mxu1 %v12038_v9  ;;  %v4486_v55 = vmax.f32 %v4422_v47, 0.0  ;;  %5126 = vmatpush1.bf16.msra.mxu1 %v9015_v19 }
 0x4b9   : > { %v4421_v40 = vadd.f32 %v10988_v2, %v4350_v59  ;;  %v3586_v38 = vpop.f32.mrb[57].mxu1  ;;  %v8292_v39 = vpop.f32.mrb[64].mxu0  ;;  %v4484_v28 = vmax.f32 %v4420_v53, 0.0 }
 0x4ba   : > { %v4487_v32 = vmax.f32 %v4423_v1, 0.0  ;;  %v4295_v26 = vadd.f32 %v3586_v38, %v3574_v25  ;;  %v4165_v50 = vadd.f32 %v8292_v39, %v12119_v7  ;;  %v3588_v5 = vpop.f32.mrb[58].mxu1  ;;  %v4156_v31 = vpop.f32.mrb[65].mxu0  ;;  %v12124_v39 = vld [vmem:[#allocation13_spill] sm:$0xff] }
 0x4bb   : > { %v4485_v60 = vmax.f32 %v4421_v40, 0.0  ;;  %v4157_v30 = vadd.f32 %v4156_v31, %v12120_v33  ;;  %v3590_v12 = vpop.f32.mrb[59].mxu1  ;;  %v8293_v45 = vpop.f32.mrb[66].mxu0 }
 0x4bc   : > { %v4355_v63 = vadd.f32 %v4291_v41, %v4165_v50  ;;  %v4296_v61 = vadd.f32 %v3590_v12, %v3578_v11  ;;  %v4168_v13 = vadd.f32 %v8293_v45, %v12121_v51  ;;  %v4159_v0 = vpop.f32.mrb[67].mxu0  ;;  %v11222_v34 = vpack.c.bf16 %v4487_v32, %v4486_v55 }
 0x4bd   : > { %v4353_v25 = vadd.f32 %v11161_v35, %v4157_v30  ;;  %v4160_v10 = vadd.f32 %v4159_v0, %v12122_v23  ;;  %v11226_v22 = vpack.c.bf16 %v4485_v60, %v4484_v28  ;;  %v12125_v28 = vld [vmem:[#allocation14_spill] sm:$0xff] }
 0x4be   : > { %v4426_v36 = vadd.f32 %v10988_v2, %v4355_v63  ;;  %v4356_v6 = vadd.f32 %v4292_v24, %v4168_v13 }
 0x4bf   : > { %v4424_v49 = vadd.f32 %v10988_v2, %v4353_v25  ;;  %v4354_v57 = vadd.f32 %v11166_v17, %v4160_v10  ;;  %4883 = vmatmul.mubr.bf16.gmra.mrb[164].mxu1 %v11151_v52 }
 0x4c0   : > { %v4427_v41 = vadd.f32 %v10988_v2, %v4356_v6  ;;  %v3594_v11 = vpop.f32.mrb[60].mxu1  ;;  %4892 = vmatprep.mubr.bf16.mxu1 %v12038_v9  ;;  %v4490_v53 = vmax.f32 %v4426_v36, 0.0 }
 0x4c1   : > { %v4425_v35 = vadd.f32 %v10988_v2, %v4354_v57  ;;  %v3596_v47 = vpop.f32.mrb[61].mxu1  ;;  %v8296_v8 = vpop.f32.mrb[68].mxu0  ;;  %v4488_v38 = vmax.f32 %v4424_v49, 0.0  ;;  %v12127_v57 = vld [vmem:[#allocation16_spill] sm:$0xff] }
 0x4c2   : > { %v4491_v59 = vmax.f32 %v4427_v41, 0.0  ;;  %v4297_v19 = vadd.f32 %v3596_v47, %v3584_v3  ;;  %v4181_v24 = vadd.f32 %v8296_v8, %v12123_v14  ;;  %v3598_v1 = vpop.f32.mrb[62].mxu1  ;;  %v4172_v40 = vpop.f32.mrb[69].mxu0  ;;  %v12126_v3 = vld [vmem:[#allocation30_spill] sm:$0xff]  ;;  %v12128_v8 = vld [vmem:[#allocation32_spill] sm:$0xff] }
 0x4c3   : > { %v4489_v17 = vmax.f32 %v4425_v35, 0.0  ;;  %v4173_v55 = vadd.f32 %v4172_v40, %v12124_v39  ;;  %v3600_v32 = vpop.f32.mrb[63].mxu1  ;;  %v8297_v7 = vpop.f32.mrb[70].mxu0 }
 0x4c4   : > { %v4359_v50 = vadd.f32 %v4295_v26, %v4181_v24  ;;  %v4298_v31 = vadd.f32 %v3600_v32, %v3588_v5  ;;  %v4184_v60 = vadd.f32 %v8297_v7, %v12125_v28  ;;  %v4175_v33 = vpop.f32.mrb[71].mxu0  ;;  %v11238_v30 = vpack.c.bf16 %v4491_v59, %v4490_v53  ;;  %v12130_v7 = vld [vmem:[#allocation15_spill] sm:$0xff] }
 0x4c5   : > { %v4357_v12 = vadd.f32 %v11193_v46, %v4173_v55  ;;  %v4176_v45 = vadd.f32 %v4175_v33, %v12126_v3  ;;  %v11242_v63 = vpack.c.bf16 %v4489_v17, %v4488_v38  ;;  %v12129_v38 = vld [vmem:[#allocation17_spill] sm:$0xff] }
 0x4c6   : > { %v4430_v51 = vadd.f32 %v10988_v2, %v4359_v50  ;;  %v4360_v13 = vadd.f32 %v4296_v61, %v4184_v60 }
 0x4c7   : > { %v4428_v0 = vadd.f32 %v10988_v2, %v4357_v12  ;;  %v4358_v25 = vadd.f32 %v11200_v16, %v4176_v45  ;;  %4893 = vmatmul.mubr.bf16.gmra.mrb[168].mxu1 %v11147_v58 }
 0x4c8   : > { %v4431_v26 = vadd.f32 %v10988_v2, %v4360_v13  ;;  %v3604_v5 = vpop.f32.mrb[64].mxu1  ;;  %4902 = vmatprep.mubr.bf16.mxu1 %v12038_v9  ;;  %v4494_v36 = vmax.f32 %v4430_v51, 0.0 }
 0x4c9   : > { %v4429_v46 = vadd.f32 %v10988_v2, %v4358_v25  ;;  %v3606_v23 = vpop.f32.mrb[65].mxu1  ;;  %v8300_v10 = vpop.f32.mrb[72].mxu0  ;;  %v4492_v47 = vmax.f32 %v4428_v0, 0.0 }
 0x4ca   : > { %v4495_v6 = vmax.f32 %v4431_v26, 0.0  ;;  %v4299_v49 = vadd.f32 %v3606_v23, %v3594_v11  ;;  %v4197_v61 = vadd.f32 %v8300_v10, %v12127_v57  ;;  %v3608_v41 = vpop.f32.mrb[66].mxu1  ;;  %v4188_v35 = vpop.f32.mrb[73].mxu0  ;;  %v12131_v26 = vld [vmem:[#allocation20_spill] sm:$0xff] }
 0x4cb   : > { %v4493_v16 = vmax.f32 %v4429_v46, 0.0  ;;  %v4189_v53 = vadd.f32 %v4188_v35, %v12128_v8  ;;  %v3610_v59 = vpop.f32.mrb[67].mxu1  ;;  %v8301_v14 = vpop.f32.mrb[74].mxu0 }
 0x4cc   : > { %v4363_v24 = vadd.f32 %v4299_v49, %v4197_v61  ;;  %v4300_v40 = vadd.f32 %v3610_v59, %v3598_v1  ;;  %v4200_v17 = vadd.f32 %v8301_v14, %v12129_v38  ;;  %v4191_v39 = vpop.f32.mrb[75].mxu0  ;;  %v11254_v55 = vpack.c.bf16 %v4495_v6, %v4494_v36  ;;  %v12132_v6 = vld [vmem:[#allocation18_spill] sm:$0xff]  ;;  %v12134_v14 = vld [vmem:[#allocation19_spill] sm:$0xff] }
 0x4cd   : > { %v4361_v32 = vadd.f32 %v4297_v19, %v4189_v53  ;;  %v4192_v11 = vadd.f32 %v4191_v39, %v12130_v7  ;;  %v11257_v50 = vpack.c.bf16 %v4493_v16, %v4492_v47  ;;  %v12133_v47 = vld [vmem:[#allocation21_spill] sm:$0xff] }
 0x4ce   : > { %v4434_v28 = vadd.f32 %v10988_v2, %v4363_v24  ;;  %v4364_v60 = vadd.f32 %v4300_v40, %v4200_v17 }
 0x4cf   : > { %v4432_v33 = vadd.f32 %v10988_v2, %v4361_v32  ;;  %v4362_v12 = vadd.f32 %v4298_v31, %v4192_v11  ;;  %4903 = vmatmul.mubr.bf16.gmra.mrb[172].mxu1 %v11173_v43  ;;  %v12135_v11 = vld [vmem:[#allocation34_spill] sm:$0xff] }
 0x4d0   : > { %v4435_v1 = vadd.f32 %v10988_v2, %v4364_v60  ;;  %v3614_v3 = vpop.f32.mrb[68].mxu1  ;;  %4912 = vmatprep.mubr.bf16.mxu1 %v12038_v9  ;;  %v4498_v13 = vmax.f32 %v4434_v28, 0.0 }
 0x4d1   : > { %v4433_v45 = vadd.f32 %v10988_v2, %v4362_v12  ;;  %v3616_v19 = vpop.f32.mrb[69].mxu1  ;;  %v8304_v51 = vpop.f32.mrb[76].mxu0  ;;  %v4496_v36 = vmax.f32 %v4432_v33, 0.0 }
 0x4d2   : > { %v4499_v0 = vmax.f32 %v4435_v1, 0.0  ;;  %v4301_v25 = vadd.f32 %v3616_v19, %v3604_v5  ;;  %v4213_v46 = vadd.f32 %v8304_v51, %v12131_v26  ;;  %v3618_v23 = vpop.f32.mrb[70].mxu1  ;;  %v4204_v10 = vpop.f32.mrb[77].mxu0  ;;  %v12137_v26 = vld [vmem:[#allocation35_spill] sm:$0xff] }
 0x4d3   : > { %v4497_v31 = vmax.f32 %v4433_v45, 0.0  ;;  %v4205_v49 = vadd.f32 %v4204_v10, %v12132_v6  ;;  %v3620_v57 = vpop.f32.mrb[71].mxu1  ;;  %v8305_v61 = vpop.f32.mrb[78].mxu0  ;;  %v12136_v45 = vld [vmem:[#allocation22_spill] sm:$0xff] }
 0x4d4   : > { %v4302_v35 = vadd.f32 %v3620_v57, %v3608_v41  ;;  %v4216_v16 = vadd.f32 %v8305_v61, %v12133_v47  ;;  %v4207_v8 = vpop.f32.mrb[79].mxu0  ;;  %v11268_v53 = vpack.c.bf16 %v4499_v0, %v4498_v13  ;;  %v9018_v61 = vld [vmem:[%s12013_s5 + $0xe8] ss:$16 sps:$4 sm:$0xff]  }
 0x4d5   : > { %v4365_v59 = vadd.f32 %v4301_v25, %v4205_v49  ;;  %v4208_v24 = vadd.f32 %v4207_v8, %v12134_v14  ;;  %v11271_v5 = vpack.c.bf16 %v4497_v31, %v4496_v36  ;;  %v12138_v31 = vld [vmem:[#allocation33_spill] sm:$0xff] }
 0x4d7   : > { %v4436_v40 = vadd.f32 %v10988_v2, %v4365_v59  ;;  %v4366_v38 = vadd.f32 %v4302_v35, %v4208_v24  ;;  %4913 = vmatmul.mubr.bf16.gmra.mrb[176].mxu1 %v11169_v54  ;;  %v9020_v35 = vld [vmem:[%s12013_s5 + $0xec] ss:$16 sps:$4 sm:$0xff]  }
 0x4d8   : > { %v3624_v17 = vpop.f32.mrb[72].mxu1  ;;  %4922 = vmatprep.mubr.bf16.mxu1 %v12038_v9  ;;  %5127 = vmatprep.subr.bf16.mxu1 %v9020_v35  ;;  %v12139_v59 = vld [vmem:[#allocation38_spill] sm:$0xff] }
 0x4d9   : > { %v4437_v41 = vadd.f32 %v10988_v2, %v4366_v38  ;;  %v3626_v39 = vpop.f32.mrb[73].mxu1  ;;  %v8308_v32 = vpop.f32.mrb[80].mxu0  ;;  %v4500_v12 = vmax.f32 %v4436_v40, 0.0  ;;  %5128 = vmatpush1.bf16.msra.mxu1 %v9018_v61 }
 0x4da   : > { %v4303_v7 = vadd.f32 %v3626_v39, %v3614_v3  ;;  %v4229_v28 = vadd.f32 %v8308_v32, %v12135_v11  ;;  %v3628_v60 = vpop.f32.mrb[74].mxu1  ;;  %v4220_v33 = vpop.f32.mrb[81].mxu0  ;;  %v12140_v39 = vld [vmem:[#allocation36_spill] sm:$0xff] }
 0x4db   : > { %v4501_v1 = vmax.f32 %v4437_v41, 0.0  ;;  %v4221_v19 = vadd.f32 %v4220_v33, %v12136_v45  ;;  %v3630_v51 = vpop.f32.mrb[75].mxu1  ;;  %v8309_v13 = vpop.f32.mrb[82].mxu0 }
 0x4dc   : > { %v4367_v0 = vadd.f32 %v4303_v7, %v4213_v46  ;;  %v4304_v25 = vadd.f32 %v3630_v51, %v3618_v23  ;;  %v4232_v10 = vadd.f32 %v8309_v13, %v12137_v26  ;;  %v4223_v36 = vpop.f32.mrb[83].mxu0 }
 0x4dd   : > { %v4224_v6 = vadd.f32 %v4223_v36, %v12138_v31  ;;  %v11281_v49 = vpack.c.bf16 %v4501_v1, %v4500_v12  ;;  %v12141_v1 = vld [vmem:[#allocation40_spill] sm:$0xff] }
 0x4de   : > { %v4368_v3 = vadd.f32 %v4304_v25, %v4216_v16  ;;  %v4438_v57 = vadd.f32 %v10988_v2, %v4367_v0  ;;  %v12142_v0 = vld [vmem:[#allocation37_spill] sm:$0xff] }
 0x4df   : > { %4923 = vmatmul.mubr.bf16.gmra.mrb[180].mxu1 %v11188_v27 }
 0x4e0   : > { %v3634_v46 = vpop.f32.mrb[76].mxu1  ;;  %4932 = vmatprep.mubr.bf16.mxu1 %v12038_v9  ;;  %v4439_v23 = vadd.f32 %v10988_v2, %v4368_v3  ;;  %v4502_v38 = vmax.f32 %v4438_v57, 0.0 }
 0x4e1   : > { %v3636_v47 = vpop.f32.mrb[77].mxu1  ;;  %v8312_v16 = vpop.f32.mrb[84].mxu0 }
 0x4e2   : > { %v4305_v8 = vadd.f32 %v3636_v47, %v3624_v17  ;;  %v4245_v14 = vadd.f32 %v8312_v16, %v12139_v59  ;;  %v3638_v24 = vpop.f32.mrb[78].mxu1  ;;  %v4236_v40 = vpop.f32.mrb[85].mxu0  ;;  %v4503_v41 = vmax.f32 %v4439_v23, 0.0 }
 0x4e3   : > { %v4237_v32 = vadd.f32 %v4236_v40, %v12140_v39  ;;  %v3640_v7 = vpop.f32.mrb[79].mxu1  ;;  %v8313_v11 = vpop.f32.mrb[86].mxu0 }
 0x4e4   : > { %v4369_v33 = vadd.f32 %v4305_v8, %v4221_v19  ;;  %v4306_v12 = vadd.f32 %v3640_v7, %v3628_v60  ;;  %v4248_v45 = vadd.f32 %v8313_v11, %v12141_v1  ;;  %v4239_v51 = vpop.f32.mrb[87].mxu0  ;;  %v11296_v13 = vpack.c.bf16 %v4503_v41, %v4502_v38 }
 0x4e5   : > { %v4240_v25 = vadd.f32 %v4239_v51, %v12142_v0 }
 0x4e6   : > { %v4370_v17 = vadd.f32 %v4306_v12, %v4224_v6  ;;  %v4440_v26 = vadd.f32 %v10988_v2, %v4369_v33 }
 0x4e7   : > { %4933 = vmatmul.mubr.bf16.gmra.mrb[184].mxu1 %v11186_v37 }
 0x4e8   : > { %v3644_v36 = vpop.f32.mrb[80].mxu1  ;;  %4942 = vmatprep.mubr.bf16.mxu1 %v12038_v9  ;;  %v4441_v31 = vadd.f32 %v10988_v2, %v4370_v17  ;;  %v4504_v57 = vmax.f32 %v4440_v26, 0.0 }
 0x4e9   : > { %v3646_v3 = vpop.f32.mrb[81].mxu1 }
 0x4ea   : > { %v4307_v19 = vadd.f32 %v3646_v3, %v3634_v46  ;;  %v3648_v60 = vpop.f32.mrb[82].mxu1  ;;  %v4505_v61 = vmax.f32 %v4441_v31, 0.0 }
 0x4eb   : > { %v3650_v35 = vpop.f32.mrb[83].mxu1 }
 0x4ec   : > { %v4371_v23 = vadd.f32 %v4307_v19, %v4229_v28  ;;  %v4308_v47 = vadd.f32 %v3650_v35, %v3638_v24  ;;  %v11303_v16 = vpack.c.bf16 %v4505_v61, %v4504_v57 }
 0x4ee   : > { %v4372_v6 = vadd.f32 %v4308_v47, %v4232_v10  ;;  %v4442_v8 = vadd.f32 %v10988_v2, %v4371_v23 }
 0x4ef   : > { %4943 = vmatmul.mubr.bf16.gmra.mrb[188].mxu1 %v11090_v15 }
 0x4f0   : > { %v3654_v59 = vpop.f32.mrb[84].mxu1  ;;  %4952 = vmatprep.mubr.bf16.mxu1 %v12038_v9  ;;  %v4443_v40 = vadd.f32 %v10988_v2, %v4372_v6  ;;  %v4506_v39 = vmax.f32 %v4442_v8, 0.0 }
 0x4f1   : > { %v3656_v38 = vpop.f32.mrb[85].mxu1 }
 0x4f2   : > { %v4309_v46 = vadd.f32 %v3656_v38, %v3644_v36  ;;  %v3658_v41 = vpop.f32.mrb[86].mxu1  ;;  %v4507_v7 = vmax.f32 %v4443_v40, 0.0 }
 0x4f3   : > { %v3660_v11 = vpop.f32.mrb[87].mxu1 }
 0x4f4   : > { %v4373_v28 = vadd.f32 %v4309_v46, %v4237_v32  ;;  %v4310_v24 = vadd.f32 %v3660_v11, %v3648_v60  ;;  %v11309_v33 = vpack.c.bf16 %v4507_v7, %v4506_v39  ;;  %v4580_v11 = vlaneseq }
 0x4f6   : > { %v4374_v10 = vadd.f32 %v4310_v24, %v4240_v25  ;;  %v4444_v12 = vadd.f32 %v10988_v2, %v4373_v28  ;;  %v11342_v28 = vshrl.u32 %v4580_v11, 7  ;;  %v9025_v11 = vld [vmem:[%s9329_s8 + $0x20] sm:$0xff] }
 0x4f7   : > { %4953 = vmatmul.mubr.bf16.gmra.mrb[192].mxu1 %v11196_v20 }
 0x4f8   : > { %v3664_v1 = vpop.f32.mrb[88].mxu1  ;;  %4962 = vmatprep.mubr.bf16.mxu1 %v12038_v9  ;;  %v4445_v51 = vadd.f32 %v10988_v2, %v4374_v10  ;;  %v4508_v36 = vmax.f32 %v4444_v12, 0.0  ;;  %v4582_v24 = vsub.s32 0, %v11342_v28  ;;  %v4578_v10 = vld [vmem:[%s12014_s6] sm:$0xf]  ;;  %v4586_v12 = vsub.s32 1, %v11342_v28 }
 0x4f9   : > { %v3666_v0 = vpop.f32.mrb[89].mxu1 }
 0x4fa   : > { %v4311_v17 = vadd.f32 %v3666_v0, %v3654_v59  ;;  %v3668_v26 = vpop.f32.mrb[90].mxu1  ;;  %v4509_v31 = vmax.f32 %v4445_v51, 0.0  ;;  %v11353_v51 = vrot.slane %v4578_v10, %v4586_v12  ;;  %v9023_v0 = vld [vmem:[%s9329_s8] sm:$0xff]  ;;  %v5475_v12 = vunpack.c.h.bf16 %v9025_v11 }
 0x4fb   : > { %v3670_v3 = vpop.f32.mrb[91].mxu1 }
 0x4fc   : > { %v4375_v32 = vadd.f32 %v4311_v17, %v4245_v14  ;;  %v4312_v19 = vadd.f32 %v3670_v3, %v3658_v41  ;;  %v11315_v60 = vpack.c.bf16 %v4509_v31, %v4508_v36  ;;  %v9022_v14 = vld [vmem:[%s12012_s4] ss:$0 sm:$0xff]  ;;  %v5466_v17 = vunpack.c.l.bf16 %v9023_v0 }
 0x4fd   : > { %v5467_v36 = vunpack.c.h.bf16 %v9023_v0 }
 0x4fe   : > { %v4376_v25 = vadd.f32 %v4312_v19, %v4248_v45  ;;  %v4446_v57 = vadd.f32 %v10988_v2, %v4375_v32  ;;  %v9024_v32 = vld [vmem:[%s9329_s8 + $0x10] sm:$0xff] }
 0x4ff   : > { %4963 = vmatmul.mubr.bf16.gmra.mrb[196].mxu1 %v11226_v22  ;;  %v5470_v19 = vunpack.c.l.bf16 %v9024_v32 }
 0x500   : > { %v3674_v61 = vpop.f32.mrb[92].mxu1  ;;  %4972 = vmatprep.mubr.bf16.mxu1 %v12038_v9  ;;  %v4447_v35 = vadd.f32 %v10988_v2, %v4376_v25  ;;  %v4510_v8 = vmax.f32 %v4446_v57, 0.0 }
 0x501   : > { %v3675_v23 = vpop.f32.mrb[93].mxu1  ;;  %v5471_v61 = vunpack.c.h.bf16 %v9024_v32 }
 0x502   : > { %v4313_v47 = vadd.f32 %v3675_v23, %v3664_v1  ;;  %v3677_v6 = vpop.f32.mrb[94].mxu1  ;;  %v4511_v59 = vmax.f32 %v4447_v35, 0.0  ;;  %v11351_v1 = vrot.slane %v4578_v10, %v4582_v24  ;;  %v5474_v24 = vunpack.c.l.bf16 %v9025_v11 }
 0x503   : > { %v3678_v40 = vpop.f32.mrb[95].mxu1 }
 0x504   : > { %v4448_v45 = vadd.f32 %v9022_v14, %v4313_v47  ;;  %v4314_v38 = vadd.f32 %v3678_v40, %v3668_v26  ;;  %v11324_v46 = vpack.c.bf16 %v4511_v59, %v4510_v8 }
 0x506   : > { %v4449_v41 = vadd.f32 %v9022_v14, %v4314_v38  ;;  %v4512_v2 = vmax.f32 %v4448_v45, 0.0 }
 0x507   : > { %4973 = vmatmul.mubr.bf16.gmra.mrb[200].mxu1 %v11222_v34 }
 0x508   : > { %4982 = vmatprep.mubr.bf16.mxu1 %v12038_v9  ;;  %v4513_v39 = vmax.f32 %v4449_v41, 0.0 }
 0x50a   : > { %v11328_v7 = vpack.c.bf16 %v4513_v39, %v4512_v2 }
 0x50f   : > { %4983 = vmatmul.mubr.bf16.gmra.mrb[204].mxu1 %v11242_v63 }
 0x510   : > { %4992 = vmatprep.mubr.bf16.mxu1 %v12038_v9 }
 0x517   : > { %4993 = vmatmul.mubr.bf16.gmra.mrb[208].mxu1 %v11238_v30 }
 0x518   : > { %5002 = vmatprep.mubr.bf16.mxu1 %v12038_v9 }
 0x51f   : > { %5003 = vmatmul.mubr.bf16.gmra.mrb[212].mxu1 %v11257_v50 }
 0x520   : > { %5012 = vmatprep.mubr.bf16.mxu1 %v12038_v9 }
 0x527   : > { %5013 = vmatmul.mubr.bf16.gmra.mrb[216].mxu1 %v11254_v55 }
 0x528   : > { %5022 = vmatprep.mubr.bf16.mxu1 %v12038_v9 }
 0x52f   : > { %5023 = vmatmul.mubr.bf16.gmra.mrb[220].mxu1 %v11271_v5 }
 0x530   : > { %5032 = vmatprep.mubr.bf16.mxu1 %v12038_v9 }
 0x537   : > { %5033 = vmatmul.mubr.bf16.gmra.mrb[224].mxu1 %v11268_v53 }
 0x538   : > { %5042 = vmatprep.mubr.bf16.mxu1 %v12038_v9 }
 0x53f   : > { %5043 = vmatmul.mubr.bf16.gmra.mrb[228].mxu1 %v11281_v49 }
 0x540   : > { %5052 = vmatprep.mubr.bf16.mxu1 %v12038_v9 }
 0x547   : > { %v4794_v26 = vpop.f32.mrb[128].mxu1  ;;  %5053 = vmatmul.mubr.bf16.gmra.mrb[232].mxu1 %v11296_v13 }
 0x548   : > { %v4795_v31 = vadd.f32 %v4794_v26, %v11351_v1  ;;  %v4796_v3 = vpop.f32.mrb[129].mxu1  ;;  %5062 = vmatprep.mubr.bf16.mxu1 %v12038_v9  ;;  %v9026_v26 = vld [vmem:[%s9329_s8 + $0x30] sm:$0xff] }
 0x549   : > { %v4797_v25 = vadd.f32 %v4796_v3, %v11353_v51  ;;  %v4798_v57 = vpop.f32.mrb[130].mxu1  ;;  %v5479_v32 = vunpack.c.h.bf16 %v9026_v26 }
 0x54a   : > { %v5722_v35 = vadd.f32 %v5466_v17, %v4795_v31  ;;  %v4799_v23 = vadd.f32 %v4798_v57, %v11351_v1  ;;  %v4800_v47 = vpop.f32.mrb[131].mxu1 }
 0x54b   : > { %v5723_v6 = vadd.f32 %v5467_v36, %v4797_v25  ;;  %v4801_v8 = vadd.f32 %v4800_v47, %v11353_v51  ;;  %v5478_v36 = vunpack.c.l.bf16 %v9026_v26 }
 0x54c   : > { %v5978_v59 = vmax.f32 %v5722_v35, 0.0  ;;  %v5726_v40 = vadd.f32 %v5470_v19, %v4799_v23 }
 0x54d   : > { %v5979_v14 = vmax.f32 %v5723_v6, 0.0  ;;  %v5727_v45 = vadd.f32 %v5471_v61, %v4801_v8 }
 0x54e   : > { %v5982_v38 = vmax.f32 %v5726_v40, 0.0  ;;  %v9027_v40 = vld [vmem:[%s9329_s8 + $0x40] sm:$0xff] }
 0x54f   : > { %v8064_v41 = vpack.c.bf16 %v5979_v14, %v5978_v59  ;;  %v5983_v2 = vmax.f32 %v5727_v45, 0.0  ;;  %5063 = vmatmul.mubr.bf16.gmra.mrb[236].mxu1 %v11303_v16  ;;  %v5482_v14 = vunpack.c.l.bf16 %v9027_v40 }
 0x550   : > { %5072 = vmatprep.mubr.bf16.mxu1 %v12038_v9 }
 0x551   : > { %7002 = vst [vmem:[%s11368_s15] sm:$0xff] %v8064_v41  ;;  %v8066_v39 = vpack.c.bf16 %v5983_v2, %v5982_v38  ;;  %v5483_v2 = vunpack.c.h.bf16 %v9027_v40 }
 0x552   : > { %v4804_v10 = vpop.f32.mrb[132].mxu1 }
 0x553   : > { %7004 = vst [vmem:[%s11368_s15 + $0x10] sm:$0xff] %v8066_v39  ;;  %v4805_v0 = vadd.f32 %v4804_v10, %v11351_v1  ;;  %v4806_v17 = vpop.f32.mrb[133].mxu1 }
 0x554   : > { %v4807_v31 = vadd.f32 %v4806_v17, %v11353_v51  ;;  %v4808_v3 = vpop.f32.mrb[134].mxu1 }
 0x555   : > { %v5730_v19 = vadd.f32 %v5474_v24, %v4805_v0  ;;  %v4809_v25 = vadd.f32 %v4808_v3, %v11351_v1  ;;  %v4810_v57 = vpop.f32.mrb[135].mxu1  ;;  %v9028_v24 = vld [vmem:[%s9329_s8 + $0x50] sm:$0xff] }
 0x556   : > { %v5731_v61 = vadd.f32 %v5475_v12, %v4807_v31  ;;  %v4811_v35 = vadd.f32 %v4810_v57, %v11353_v51  ;;  %v5486_v10 = vunpack.c.l.bf16 %v9028_v24  ;;  %v5487_v26 = vunpack.c.h.bf16 %v9028_v24 }
 0x557   : > { %v5986_v23 = vmax.f32 %v5730_v19, 0.0  ;;  %v5734_v47 = vadd.f32 %v5478_v36, %v4809_v25  ;;  %5073 = vmatmul.mubr.bf16.gmra.mrb[240].mxu1 %v11309_v33 }
 0x558   : > { %v5987_v6 = vmax.f32 %v5731_v61, 0.0  ;;  %v5735_v8 = vadd.f32 %v5479_v32, %v4811_v35  ;;  %5082 = vmatprep.mubr.bf16.mxu1 %v12038_v9 }
 0x559   : > { %v5990_v59 = vmax.f32 %v5734_v47, 0.0  ;;  %v9029_v47 = vld [vmem:[%s9329_s8 + $0x60] sm:$0xff] }
 0x55a   : > { %v8068_v45 = vpack.c.bf16 %v5987_v6, %v5986_v23  ;;  %v5991_v38 = vmax.f32 %v5735_v8, 0.0  ;;  %v4814_v41 = vpop.f32.mrb[136].mxu1  ;;  %v5490_v6 = vunpack.c.l.bf16 %v9029_v47 }
 0x55b   : > { %v4815_v39 = vadd.f32 %v4814_v41, %v11351_v1  ;;  %v4816_v11 = vpop.f32.mrb[137].mxu1  ;;  %v9030_v41 = vld [vmem:[%s9329_s8 + $0x70] sm:$0xff] }
 0x55c   : > { %7006 = vst [vmem:[%s11368_s15 + $0x20] sm:$0xff] %v8068_v45  ;;  %v8070_v12 = vpack.c.bf16 %v5991_v38, %v5990_v59  ;;  %v4817_v0 = vadd.f32 %v4816_v11, %v11353_v51  ;;  %v4818_v17 = vpop.f32.mrb[138].mxu1 }
 0x55d   : > { %v5738_v36 = vadd.f32 %v5482_v14, %v4815_v39  ;;  %v4819_v31 = vadd.f32 %v4818_v17, %v11351_v1  ;;  %v4820_v3 = vpop.f32.mrb[139].mxu1  ;;  %v5491_v14 = vunpack.c.h.bf16 %v9029_v47 }
 0x55e   : > { %7008 = vst [vmem:[%s11368_s15 + $0x30] sm:$0xff] %v8070_v12  ;;  %v5739_v32 = vadd.f32 %v5483_v2, %v4817_v0  ;;  %v4821_v19 = vadd.f32 %v4820_v3, %v11353_v51  ;;  %v5494_v2 = vunpack.c.l.bf16 %v9030_v41 }
 0x55f   : > { %v5994_v25 = vmax.f32 %v5738_v36, 0.0  ;;  %v5742_v57 = vadd.f32 %v5486_v10, %v4819_v31  ;;  %5083 = vmatmul.mubr.bf16.gmra.mrb[244].mxu1 %v11315_v60  ;;  %v5495_v10 = vunpack.c.h.bf16 %v9030_v41 }
 0x560   : > { %v5995_v61 = vmax.f32 %v5739_v32, 0.0  ;;  %v5743_v35 = vadd.f32 %v5487_v26, %v4821_v19  ;;  %5092 = vmatprep.mubr.bf16.mxu1 %v12038_v9 }
 0x561   : > { %v5998_v23 = vmax.f32 %v5742_v57, 0.0  ;;  %v9031_v57 = vld [vmem:[%s9329_s8 + $0x80] sm:$0xff] }
 0x562   : > { %v8072_v8 = vpack.c.bf16 %v5995_v61, %v5994_v25  ;;  %v5999_v59 = vmax.f32 %v5743_v35, 0.0  ;;  %v4824_v40 = vpop.f32.mrb[140].mxu1  ;;  %v5498_v61 = vunpack.c.l.bf16 %v9031_v57 }
 0x563   : > { %v4825_v45 = vadd.f32 %v4824_v40, %v11351_v1  ;;  %v4826_v38 = vpop.f32.mrb[141].mxu1  ;;  %v9032_v40 = vld [vmem:[%s9329_s8 + $0x90] sm:$0xff] }
 0x564   : > { %7010 = vst [vmem:[%s11368_s15 + $0x40] sm:$0xff] %v8072_v8  ;;  %v8074_v39 = vpack.c.bf16 %v5999_v59, %v5998_v23  ;;  %v4827_v11 = vadd.f32 %v4826_v38, %v11353_v51  ;;  %v4828_v24 = vpop.f32.mrb[142].mxu1 }
 0x565   : > { %v5746_v12 = vadd.f32 %v5490_v6, %v4825_v45  ;;  %v4829_v0 = vadd.f32 %v4828_v24, %v11351_v1  ;;  %v4830_v17 = vpop.f32.mrb[143].mxu1  ;;  %v5499_v6 = vunpack.c.h.bf16 %v9031_v57 }
 0x566   : > { %7012 = vst [vmem:[%s11368_s15 + $0x50] sm:$0xff] %v8074_v39  ;;  %v5747_v26 = vadd.f32 %v5491_v14, %v4827_v11  ;;  %v4831_v36 = vadd.f32 %v4830_v17, %v11353_v51  ;;  %v5502_v14 = vunpack.c.l.bf16 %v9032_v40 }
 0x567   : > { %v6002_v31 = vmax.f32 %v5746_v12, 0.0  ;;  %v5750_v3 = vadd.f32 %v5494_v2, %v4829_v0  ;;  %5093 = vmatmul.mubr.bf16.gmra.mrb[248].mxu1 %v11324_v46  ;;  %v5503_v2 = vunpack.c.h.bf16 %v9032_v40 }
 0x568   : > { %v6003_v32 = vmax.f32 %v5747_v26, 0.0  ;;  %v5751_v19 = vadd.f32 %v5495_v10, %v4831_v36  ;;  %5102 = vmatprep.mubr.bf16.mxu1 %v12038_v9 }
 0x569   : > { %v6006_v25 = vmax.f32 %v5750_v3, 0.0  ;;  %v9033_v3 = vld [vmem:[%s9329_s8 + $0xa0] sm:$0xff] }
 0x56a   : > { %v8076_v35 = vpack.c.bf16 %v6003_v32, %v6002_v31  ;;  %v6007_v23 = vmax.f32 %v5751_v19, 0.0  ;;  %v4834_v47 = vpop.f32.mrb[144].mxu1  ;;  %v5506_v32 = vunpack.c.l.bf16 %v9033_v3 }
 0x56b   : > { %v4835_v8 = vadd.f32 %v4834_v47, %v11351_v1  ;;  %v4836_v59 = vpop.f32.mrb[145].mxu1  ;;  %v9034_v47 = vld [vmem:[%s9329_s8 + $0xb0] sm:$0xff] }
 0x56c   : > { %7014 = vst [vmem:[%s11368_s15 + $0x60] sm:$0xff] %v8076_v35  ;;  %v8078_v45 = vpack.c.bf16 %v6007_v23, %v6006_v25  ;;  %v4837_v38 = vadd.f32 %v4836_v59, %v11353_v51  ;;  %v4838_v41 = vpop.f32.mrb[146].mxu1 }
 0x56d   : > { %v5754_v39 = vadd.f32 %v5498_v61, %v4835_v8  ;;  %v4839_v11 = vadd.f32 %v4838_v41, %v11351_v1  ;;  %v4840_v24 = vpop.f32.mrb[147].mxu1  ;;  %v5507_v61 = vunpack.c.h.bf16 %v9033_v3 }
 0x56e   : > { %7016 = vst [vmem:[%s11368_s15 + $0x70] sm:$0xff] %v8078_v45  ;;  %v5755_v10 = vadd.f32 %v5499_v6, %v4837_v38  ;;  %v4841_v12 = vadd.f32 %v4840_v24, %v11353_v51  ;;  %v5510_v6 = vunpack.c.l.bf16 %v9034_v47 }
 0x56f   : > { %v6010_v0 = vmax.f32 %v5754_v39, 0.0  ;;  %v5758_v17 = vadd.f32 %v5502_v14, %v4839_v11  ;;  %5103 = vmatmul.mubr.bf16.gmra.mrb[252].mxu1 %v11328_v7  ;;  %v5511_v14 = vunpack.c.h.bf16 %v9034_v47 }
 0x570   : > { %v6011_v26 = vmax.f32 %v5755_v10, 0.0  ;;  %v5759_v36 = vadd.f32 %v5503_v2, %v4841_v12  ;;  %5145 = vmatprep.mubr.bf16.mxu1 %v12038_v9 }
 0x571   : > { %v6014_v31 = vmax.f32 %v5758_v17, 0.0  ;;  %v9035_v17 = vld [vmem:[%s9329_s8 + $0xc0] sm:$0xff] }
 0x572   : > { %v8080_v19 = vpack.c.bf16 %v6011_v26, %v6010_v0  ;;  %v6015_v25 = vmax.f32 %v5759_v36, 0.0  ;;  %v4844_v57 = vpop.f32.mrb[148].mxu1  ;;  %v5514_v26 = vunpack.c.l.bf16 %v9035_v17 }
 0x573   : > { %v4845_v35 = vadd.f32 %v4844_v57, %v11351_v1  ;;  %v4846_v23 = vpop.f32.mrb[149].mxu1  ;;  %v9036_v57 = vld [vmem:[%s9329_s8 + $0xd0] sm:$0xff] }
 0x574   : > { %7018 = vst [vmem:[%s11368_s15 + $0x80] sm:$0xff] %v8080_v19  ;;  %v8082_v8 = vpack.c.bf16 %v6015_v25, %v6014_v31  ;;  %v4847_v59 = vadd.f32 %v4846_v23, %v11353_v51  ;;  %v4848_v40 = vpop.f32.mrb[150].mxu1  ;;  %v5519_v47 = vunpack.c.h.bf16 %v9036_v57 }
 0x575   : > { %v5762_v45 = vadd.f32 %v5506_v32, %v4845_v35  ;;  %v4849_v38 = vadd.f32 %v4848_v40, %v11351_v1  ;;  %v4850_v41 = vpop.f32.mrb[151].mxu1  ;;  %v5515_v32 = vunpack.c.h.bf16 %v9035_v17 }
 0x576   : > { %7020 = vst [vmem:[%s11368_s15 + $0x90] sm:$0xff] %v8082_v8  ;;  %v5763_v2 = vadd.f32 %v5507_v61, %v4847_v59  ;;  %v4851_v39 = vadd.f32 %v4850_v41, %v11353_v51  ;;  %v5518_v61 = vunpack.c.l.bf16 %v9036_v57 }
 0x577   : > { %v6018_v11 = vmax.f32 %v5762_v45, 0.0  ;;  %v5766_v24 = vadd.f32 %v5510_v6, %v4849_v38  ;;  %5146 = vmatmul.mubr.bf16.vlgmr.msra.gmra.mrb[96].mxu1 %v11001_v62 }
 0x578   : > { %v6019_v10 = vmax.f32 %v5763_v2, 0.0  ;;  %v5767_v12 = vadd.f32 %v5511_v14, %v4851_v39  ;;  %5155 = vmatprep.mubr.bf16.mxu1 %v12038_v9 }
 0x579   : > { %v6022_v0 = vmax.f32 %v5766_v24, 0.0 }
 0x57a   : > { %v8084_v36 = vpack.c.bf16 %v6019_v10, %v6018_v11  ;;  %v6023_v31 = vmax.f32 %v5767_v12, 0.0  ;;  %v4854_v3 = vpop.f32.mrb[152].mxu1  ;;  %v9037_v11 = vld [vmem:[%s9329_s8 + $0xe0] sm:$0xff] }
 0x57b   : > { %v4855_v19 = vadd.f32 %v4854_v3, %v11351_v1  ;;  %v4856_v25 = vpop.f32.mrb[153].mxu1  ;;  %v5522_v24 = vunpack.c.l.bf16 %v9037_v11  ;;  %v5523_v17 = vunpack.c.h.bf16 %v9037_v11 }
 0x57c   : > { %7022 = vst [vmem:[%s11368_s15 + $0xa0] sm:$0xff] %v8084_v36  ;;  %v8086_v35 = vpack.c.bf16 %v6023_v31, %v6022_v0  ;;  %v4857_v62 = vadd.f32 %v4856_v25, %v11353_v51  ;;  %v4858_v23 = vpop.f32.mrb[154].mxu1  ;;  %v9038_v31 = vld [vmem:[%s9329_s8 + $0xf0] sm:$0xff] }
 0x57d   : > { %v5770_v6 = vadd.f32 %v5514_v26, %v4855_v19  ;;  %v4859_v8 = vadd.f32 %v4858_v23, %v11351_v1  ;;  %v4860_v59 = vpop.f32.mrb[155].mxu1  ;;  %v5526_v3 = vunpack.c.l.bf16 %v9038_v31  ;;  %v5527_v25 = vunpack.c.h.bf16 %v9038_v31 }
 0x57e   : > { %7024 = vst [vmem:[%s11368_s15 + $0xb0] sm:$0xff] %v8086_v35  ;;  %v5771_v40 = vadd.f32 %v5515_v32, %v4857_v62  ;;  %v4861_v14 = vadd.f32 %v4860_v59, %v11353_v51 }
 0x57f   : > { %v6026_v45 = vmax.f32 %v5770_v6, 0.0  ;;  %v5774_v38 = vadd.f32 %v5518_v61, %v4859_v8  ;;  %5156 = vmatmul.mubr.bf16.gmra.mrb[100].mxu1 %v11048_v29 }
 0x580   : > { %v6027_v41 = vmax.f32 %v5771_v40, 0.0  ;;  %v5775_v2 = vadd.f32 %v5519_v47, %v4861_v14  ;;  %5165 = vmatprep.mubr.bf16.mxu1 %v12038_v9  ;;  %v9039_v14 = vld [vmem:[%s9329_s8 + $0x100] sm:$0xff] }
 0x581   : > { %v6030_v39 = vmax.f32 %v5774_v38, 0.0 }
 0x582   : > { %v8088_v10 = vpack.c.bf16 %v6027_v41, %v6026_v45  ;;  %v6031_v12 = vmax.f32 %v5775_v2, 0.0  ;;  %v4864_v0 = vpop.f32.mrb[156].mxu1  ;;  %v5530_v45 = vunpack.c.l.bf16 %v9039_v14 }
 0x583   : > { %v4865_v26 = vadd.f32 %v4864_v0, %v11351_v1  ;;  %v4866_v36 = vpop.f32.mrb[157].mxu1 }
 0x584   : > { %7026 = vst [vmem:[%s11368_s15 + $0xc0] sm:$0xff] %v8088_v10  ;;  %v8090_v32 = vpack.c.bf16 %v6031_v12, %v6030_v39  ;;  %v4867_v29 = vadd.f32 %v4866_v36, %v11353_v51  ;;  %v4868_v19 = vpop.f32.mrb[158].mxu1  ;;  %v5531_v39 = vunpack.c.h.bf16 %v9039_v14  ;;  %v9040_v10 = vld [vmem:[%s9329_s8 + $0x110] sm:$0xff] }
 0x585   : > { %v5778_v57 = vadd.f32 %v5522_v24, %v4865_v26  ;;  %v4869_v61 = vadd.f32 %v4868_v19, %v11351_v1  ;;  %v4870_v35 = vpop.f32.mrb[159].mxu1  ;;  %v5534_v12 = vunpack.c.l.bf16 %v9040_v10  ;;  %v5535_v26 = vunpack.c.h.bf16 %v9040_v10 }
 0x586   : > { %7028 = vst [vmem:[%s11368_s15 + $0xd0] sm:$0xff] %v8090_v32  ;;  %v5779_v62 = vadd.f32 %v5523_v17, %v4867_v29  ;;  %v4871_v23 = vadd.f32 %v4870_v35, %v11353_v51 }
 0x587   : > { %v6034_v47 = vmax.f32 %v5778_v57, 0.0  ;;  %v5782_v6 = vadd.f32 %v5526_v3, %v4869_v61  ;;  %5166 = vmatmul.mubr.bf16.gmra.mrb[104].mxu1 %v11044_v44 }
 0x588   : > { %v6035_v8 = vmax.f32 %v5779_v62, 0.0  ;;  %v5783_v59 = vadd.f32 %v5527_v25, %v4871_v23  ;;  %5175 = vmatprep.mubr.bf16.mxu1 %v12038_v9  ;;  %v9041_v62 = vld [vmem:[%s9329_s8 + $0x120] sm:$0xff] }
 0x589   : > { %v6038_v40 = vmax.f32 %v5782_v6, 0.0  ;;  %v5538_v23 = vunpack.c.l.bf16 %v9041_v62 }
 0x58a   : > { %v8092_v38 = vpack.c.bf16 %v6035_v8, %v6034_v47  ;;  %v6039_v41 = vmax.f32 %v5783_v59, 0.0  ;;  %v4874_v2 = vpop.f32.mrb[160].mxu1  ;;  %v5539_v59 = vunpack.c.h.bf16 %v9041_v62  ;;  %v9044_v62 = vld [vmem:[%s9329_s8 + $0x150] sm:$0xff] }
 0x58b   : > { %v4875_v11 = vadd.f32 %v4874_v2, %v11351_v1  ;;  %v4876_v24 = vpop.f32.mrb[161].mxu1 }
 0x58c   : > { %7030 = vst [vmem:[%s11368_s15 + $0xe0] sm:$0xff] %v8092_v38  ;;  %v8094_v0 = vpack.c.bf16 %v6039_v41, %v6038_v40  ;;  %v4877_v44 = vadd.f32 %v4876_v24, %v11353_v51  ;;  %v4878_v17 = vpop.f32.mrb[162].mxu1 }
 0x58d   : > { %v5786_v36 = vadd.f32 %v5530_v45, %v4875_v11  ;;  %v4879_v31 = vadd.f32 %v4878_v17, %v11351_v1  ;;  %v4880_v3 = vpop.f32.mrb[163].mxu1  ;;  %v9042_v45 = vld [vmem:[%s9329_s8 + $0x130] sm:$0xff] }
 0x58e   : > { %7032 = vst [vmem:[%s11368_s15 + $0xf0] sm:$0xff] %v8094_v0  ;;  %v5787_v32 = vadd.f32 %v5531_v39, %v4877_v44  ;;  %v4881_v29 = vadd.f32 %v4880_v3, %v11353_v51  ;;  %v5542_v38 = vunpack.c.l.bf16 %v9042_v45  ;;  %v5543_v39 = vunpack.c.h.bf16 %v9042_v45  ;;  %v9043_v3 = vld [vmem:[%s9329_s8 + $0x140] sm:$0xff] }
 0x58f   : > { %v6042_v19 = vmax.f32 %v5786_v36, 0.0  ;;  %v5790_v25 = vadd.f32 %v5534_v12, %v4879_v31  ;;  %5176 = vmatmul.mubr.bf16.gmra.mrb[108].mxu1 %v11074_v48 }
 0x590   : > { %v6043_v57 = vmax.f32 %v5787_v32, 0.0  ;;  %v5791_v61 = vadd.f32 %v5535_v26, %v4881_v29  ;;  %5185 = vmatprep.mubr.bf16.mxu1 %v12038_v9  ;;  %v5546_v32 = vunpack.c.l.bf16 %v9043_v3 }
 0x591   : > { %v6046_v35 = vmax.f32 %v5790_v25, 0.0 }
 0x592   : > { %v8096_v47 = vpack.c.bf16 %v6043_v57, %v6042_v19  ;;  %v6047_v6 = vmax.f32 %v5791_v61, 0.0  ;;  %v4884_v8 = vpop.f32.mrb[164].mxu1  ;;  %v5547_v57 = vunpack.c.h.bf16 %v9043_v3 }
 0x593   : > { %v4885_v40 = vadd.f32 %v4884_v8, %v11351_v1  ;;  %v4886_v14 = vpop.f32.mrb[165].mxu1  ;;  %v5551_v8 = vunpack.c.h.bf16 %v9044_v62 }
 0x594   : > { %7034 = vst [vmem:[%s11368_s15 + $0x100] sm:$0xff] %v8096_v47  ;;  %v8098_v41 = vpack.c.bf16 %v6047_v6, %v6046_v35  ;;  %v4887_v48 = vadd.f32 %v4886_v14, %v11353_v51  ;;  %v4888_v2 = vpop.f32.mrb[166].mxu1 }
 0x595   : > { %v5794_v11 = vadd.f32 %v5538_v23, %v4885_v40  ;;  %v4889_v24 = vadd.f32 %v4888_v2, %v11351_v1  ;;  %v4890_v10 = vpop.f32.mrb[167].mxu1  ;;  %v5550_v23 = vunpack.c.l.bf16 %v9044_v62 }
 0x596   : > { %7036 = vst [vmem:[%s11368_s15 + $0x110] sm:$0xff] %v8098_v41  ;;  %v5795_v12 = vadd.f32 %v5539_v59, %v4887_v48  ;;  %v4891_v0 = vadd.f32 %v4890_v10, %v11353_v51 }
 0x597   : > { %v6050_v44 = vmax.f32 %v5794_v11, 0.0  ;;  %v5798_v17 = vadd.f32 %v5542_v38, %v4889_v24  ;;  %5186 = vmatmul.mubr.bf16.gmra.mrb[112].mxu1 %v11076_v42  ;;  %v9045_v24 = vld [vmem:[%s9329_s8 + $0x160] sm:$0xff] }
 0x598   : > { %v6051_v26 = vmax.f32 %v5795_v12, 0.0  ;;  %v5799_v36 = vadd.f32 %v5543_v39, %v4891_v0  ;;  %5195 = vmatprep.mubr.bf16.mxu1 %v12038_v9  ;;  %v5554_v10 = vunpack.c.l.bf16 %v9045_v24 }
 0x599   : > { %v6054_v31 = vmax.f32 %v5798_v17, 0.0  ;;  %v5555_v17 = vunpack.c.h.bf16 %v9045_v24 }
 0x59a   : > { %v8100_v29 = vpack.c.bf16 %v6051_v26, %v6050_v44  ;;  %v6055_v19 = vmax.f32 %v5799_v36, 0.0  ;;  %v4894_v25 = vpop.f32.mrb[168].mxu1 }
 0x59b   : > { %v4895_v61 = vadd.f32 %v4894_v25, %v11351_v1  ;;  %v4896_v35 = vpop.f32.mrb[169].mxu1 }
 0x59c   : > { %7038 = vst [vmem:[%s11368_s15 + $0x120] sm:$0xff] %v8100_v29  ;;  %v8102_v47 = vpack.c.bf16 %v6055_v19, %v6054_v31  ;;  %v4897_v42 = vadd.f32 %v4896_v35, %v11353_v51  ;;  %v4898_v6 = vpop.f32.mrb[170].mxu1  ;;  %v9046_v31 = vld [vmem:[%s9329_s8 + $0x170] sm:$0xff] }
 0x59d   : > { %v5802_v59 = vadd.f32 %v5546_v32, %v4895_v61  ;;  %v4899_v40 = vadd.f32 %v4898_v6, %v11351_v1  ;;  %v4900_v14 = vpop.f32.mrb[171].mxu1  ;;  %v5558_v3 = vunpack.c.l.bf16 %v9046_v31  ;;  %v5559_v19 = vunpack.c.h.bf16 %v9046_v31 }
 0x59e   : > { %7040 = vst [vmem:[%s11368_s15 + $0x130] sm:$0xff] %v8102_v47  ;;  %v5803_v45 = vadd.f32 %v5547_v57, %v4897_v42  ;;  %v4901_v38 = vadd.f32 %v4900_v14, %v11353_v51 }
 0x59f   : > { %v6058_v41 = vmax.f32 %v5802_v59, 0.0  ;;  %v5806_v48 = vadd.f32 %v5550_v23, %v4899_v40  ;;  %5196 = vmatmul.mubr.bf16.gmra.mrb[116].mxu1 %v11101_v21  ;;  %v9047_v59 = vld [vmem:[%s9329_s8 + $0x180] sm:$0xff] }
 0x5a0   : > { %v6059_v2 = vmax.f32 %v5803_v45, 0.0  ;;  %v5807_v39 = vadd.f32 %v5551_v8, %v4901_v38  ;;  %5205 = vmatprep.mubr.bf16.mxu1 %v12038_v9  ;;  %v5562_v40 = vunpack.c.l.bf16 %v9047_v59 }
 0x5a1   : > { %v6062_v11 = vmax.f32 %v5806_v48, 0.0 }
 0x5a2   : > { %v8104_v12 = vpack.c.bf16 %v6059_v2, %v6058_v41  ;;  %v6063_v0 = vmax.f32 %v5807_v39, 0.0  ;;  %v4904_v44 = vpop.f32.mrb[172].mxu1  ;;  %v5563_v41 = vunpack.c.h.bf16 %v9047_v59  ;;  %v9048_v39 = vld [vmem:[%s9329_s8 + $0x190] sm:$0xff] }
 0x5a3   : > { %v4905_v26 = vadd.f32 %v4904_v44, %v11351_v1  ;;  %v4906_v36 = vpop.f32.mrb[173].mxu1 }
 0x5a4   : > { %7042 = vst [vmem:[%s11368_s15 + $0x140] sm:$0xff] %v8104_v12  ;;  %v8106_v32 = vpack.c.bf16 %v6063_v0, %v6062_v11  ;;  %v4907_v21 = vadd.f32 %v4906_v36, %v11353_v51  ;;  %v4908_v29 = vpop.f32.mrb[174].mxu1  ;;  %v5566_v11 = vunpack.c.l.bf16 %v9048_v39  ;;  %v5567_v12 = vunpack.c.h.bf16 %v9048_v39 }
 0x5a5   : > { %v5810_v25 = vadd.f32 %v5554_v10, %v4905_v26  ;;  %v4909_v57 = vadd.f32 %v4908_v29, %v11351_v1  ;;  %v4910_v61 = vpop.f32.mrb[175].mxu1 }
 0x5a6   : > { %7044 = vst [vmem:[%s11368_s15 + $0x150] sm:$0xff] %v8106_v32  ;;  %v5811_v35 = vadd.f32 %v5555_v17, %v4907_v21  ;;  %v4911_v62 = vadd.f32 %v4910_v61, %v11353_v51 }
 0x5a7   : > { %v6066_v23 = vmax.f32 %v5810_v25, 0.0  ;;  %v5814_v47 = vadd.f32 %v5558_v3, %v4909_v57  ;;  %5206 = vmatmul.mubr.bf16.gmra.mrb[120].mxu1 %v11097_v18 }
 0x5a8   : > { %v6067_v42 = vmax.f32 %v5811_v35, 0.0  ;;  %v5815_v6 = vadd.f32 %v5559_v19, %v4911_v62  ;;  %5215 = vmatprep.mubr.bf16.mxu1 %v12038_v9  ;;  %v9049_v19 = vld [vmem:[%s9329_s8 + $0x1a0] sm:$0xff] }
 0x5a9   : > { %v6070_v8 = vmax.f32 %v5814_v47, 0.0  ;;  %v5570_v25 = vunpack.c.l.bf16 %v9049_v19  ;;  %v5571_v62 = vunpack.c.h.bf16 %v9049_v19 }
 0x5aa   : > { %v8108_v14 = vpack.c.bf16 %v6067_v42, %v6066_v23  ;;  %v6071_v45 = vmax.f32 %v5815_v6, 0.0  ;;  %v4914_v38 = vpop.f32.mrb[176].mxu1  ;;  %v9050_v42 = vld [vmem:[%s9329_s8 + $0x1b0] sm:$0xff] }
 0x5ab   : > { %v4915_v48 = vadd.f32 %v4914_v38, %v11351_v1  ;;  %v4916_v2 = vpop.f32.mrb[177].mxu1  ;;  %v5574_v6 = vunpack.c.l.bf16 %v9050_v42 }
 0x5ac   : > { %7046 = vst [vmem:[%s11368_s15 + $0x160] sm:$0xff] %v8108_v14  ;;  %v8110_v24 = vpack.c.bf16 %v6071_v45, %v6070_v8  ;;  %v4917_v18 = vadd.f32 %v4916_v2, %v11353_v51  ;;  %v4918_v10 = vpop.f32.mrb[178].mxu1 }
 0x5ad   : > { %v5818_v0 = vadd.f32 %v5562_v40, %v4915_v48  ;;  %v4919_v44 = vadd.f32 %v4918_v10, %v11351_v1  ;;  %v4920_v17 = vpop.f32.mrb[179].mxu1  ;;  %v5575_v40 = vunpack.c.h.bf16 %v9050_v42  ;;  %v9051_v10 = vld [vmem:[%s9329_s8 + $0x1c0] sm:$0xff] }
 0x5ae   : > { %7048 = vst [vmem:[%s11368_s15 + $0x170] sm:$0xff] %v8110_v24  ;;  %v5819_v26 = vadd.f32 %v5563_v41, %v4917_v18  ;;  %v4921_v36 = vadd.f32 %v4920_v17, %v11353_v51 }
 0x5af   : > { %v6074_v31 = vmax.f32 %v5818_v0, 0.0  ;;  %v5822_v3 = vadd.f32 %v5566_v11, %v4919_v44  ;;  %5216 = vmatmul.mubr.bf16.gmra.mrb[124].mxu1 %v11123_v56 }
 0x5b0   : > { %v6075_v32 = vmax.f32 %v5819_v26, 0.0  ;;  %v5823_v21 = vadd.f32 %v5567_v12, %v4921_v36  ;;  %5225 = vmatprep.mubr.bf16.mxu1 %v12038_v9  ;;  %v5578_v12 = vunpack.c.l.bf16 %v9051_v10  ;;  %v5579_v26 = vunpack.c.h.bf16 %v9051_v10 }
 0x5b1   : > { %v6078_v29 = vmax.f32 %v5822_v3, 0.0  ;;  %v9052_v3 = vld [vmem:[%s9329_s8 + $0x1d0] sm:$0xff] }
 0x5b2   : > { %v8112_v57 = vpack.c.bf16 %v6075_v32, %v6074_v31  ;;  %v6079_v61 = vmax.f32 %v5823_v21, 0.0  ;;  %v4924_v35 = vpop.f32.mrb[180].mxu1  ;;  %v5582_v32 = vunpack.c.l.bf16 %v9052_v3  ;;  %v5583_v19 = vunpack.c.h.bf16 %v9052_v3 }
 0x5b3   : > { %v4925_v23 = vadd.f32 %v4924_v35, %v11351_v1  ;;  %v4926_v47 = vpop.f32.mrb[181].mxu1 }
 0x5b4   : > { %7050 = vst [vmem:[%s11368_s15 + $0x180] sm:$0xff] %v8112_v57  ;;  %v8114_v8 = vpack.c.bf16 %v6079_v61, %v6078_v29  ;;  %v4927_v56 = vadd.f32 %v4926_v47, %v11353_v51  ;;  %v4928_v59 = vpop.f32.mrb[182].mxu1 }
 0x5b5   : > { %v5826_v14 = vadd.f32 %v5570_v25, %v4925_v23  ;;  %v4929_v45 = vadd.f32 %v4928_v59, %v11351_v1  ;;  %v4930_v38 = vpop.f32.mrb[183].mxu1 }
 0x5b6   : > { %7052 = vst [vmem:[%s11368_s15 + $0x190] sm:$0xff] %v8114_v8  ;;  %v5827_v41 = vadd.f32 %v5571_v62, %v4927_v56  ;;  %v4931_v48 = vadd.f32 %v4930_v38, %v11353_v51  ;;  %v9053_v56 = vld [vmem:[%s9329_s8 + $0x1e0] sm:$0xff] }
 0x5b7   : > { %v6082_v2 = vmax.f32 %v5826_v14, 0.0  ;;  %v5830_v39 = vadd.f32 %v5574_v6, %v4929_v45  ;;  %5226 = vmatmul.mubr.bf16.gmra.mrb[0].mxu1 %v11119_v4  ;;  %v5586_v59 = vunpack.c.l.bf16 %v9053_v56  ;;  %v5587_v38 = vunpack.c.h.bf16 %v9053_v56 }
 0x5b8   : > { %v6083_v11 = vmax.f32 %v5827_v41, 0.0  ;;  %v5831_v24 = vadd.f32 %v5575_v40, %v4931_v48  ;;  %5235 = vmatprep.mubr.bf16.mxu1 %v12038_v9 }
 0x5b9   : > { %v6086_v18 = vmax.f32 %v5830_v39, 0.0 }
 0x5ba   : > { %v8116_v0 = vpack.c.bf16 %v6083_v11, %v6082_v2  ;;  %v6087_v44 = vmax.f32 %v5831_v24, 0.0  ;;  %v4934_v17 = vpop.f32.mrb[184].mxu1  ;;  %v9054_v2 = vld [vmem:[%s9329_s8 + $0x1f0] sm:$0xff] }
 0x5bb   : > { %v4935_v36 = vadd.f32 %v4934_v17, %v11351_v1  ;;  %v4936_v31 = vpop.f32.mrb[185].mxu1  ;;  %v5590_v39 = vunpack.c.l.bf16 %v9054_v2 }
 0x5bc   : > { %7054 = vst [vmem:[%s11368_s15 + $0x1a0] sm:$0xff] %v8116_v0  ;;  %v8118_v21 = vpack.c.bf16 %v6087_v44, %v6086_v18  ;;  %v4937_v4 = vadd.f32 %v4936_v31, %v11353_v51  ;;  %v4938_v29 = vpop.f32.mrb[186].mxu1  ;;  %v5591_v18 = vunpack.c.h.bf16 %v9054_v2 }
 0x5bd   : > { %v5834_v25 = vadd.f32 %v5578_v12, %v4935_v36  ;;  %v4939_v57 = vadd.f32 %v4938_v29, %v11351_v1  ;;  %v4940_v61 = vpop.f32.mrb[187].mxu1 }
 0x5be   : > { %7056 = vst [vmem:[%s11368_s15 + $0x1b0] sm:$0xff] %v8118_v21  ;;  %v5835_v35 = vadd.f32 %v5579_v26, %v4937_v4  ;;  %v4941_v62 = vadd.f32 %v4940_v61, %v11353_v51  ;;  %v9055_v21 = vld [vmem:[%s9329_s8 + $0x200] sm:$0xff] }
 0x5bf   : > { %v6090_v23 = vmax.f32 %v5834_v25, 0.0  ;;  %v5838_v47 = vadd.f32 %v5582_v32, %v4939_v57  ;;  %5236 = vmatmul.mubr.bf16.gmra.mrb[4].mxu1 %v11151_v52  ;;  %v5594_v4 = vunpack.c.l.bf16 %v9055_v21  ;;  %v5595_v57 = vunpack.c.h.bf16 %v9055_v21 }
 0x5c0   : > { %v6091_v42 = vmax.f32 %v5835_v35, 0.0  ;;  %v5839_v6 = vadd.f32 %v5583_v19, %v4941_v62  ;;  %5245 = vmatprep.mubr.bf16.mxu1 %v12038_v9  ;;  %v9056_v62 = vld [vmem:[%s9329_s8 + $0x210] sm:$0xff] }
 0x5c1   : > { %v6094_v8 = vmax.f32 %v5838_v47, 0.0 }
 0x5c2   : > { %v8120_v40 = vpack.c.bf16 %v6091_v42, %v6090_v23  ;;  %v6095_v14 = vmax.f32 %v5839_v6, 0.0  ;;  %v4944_v45 = vpop.f32.mrb[188].mxu1  ;;  %v5598_v23 = vunpack.c.l.bf16 %v9056_v62  ;;  %v5599_v6 = vunpack.c.h.bf16 %v9056_v62  ;;  %v9059_v62 = vld [vmem:[%s9329_s8 + $0x240] sm:$0xff] }
 0x5c3   : > { %v4945_v41 = vadd.f32 %v4944_v45, %v11351_v1  ;;  %v4946_v48 = vpop.f32.mrb[189].mxu1 }
 0x5c4   : > { %7058 = vst [vmem:[%s11368_s15 + $0x1c0] sm:$0xff] %v8120_v40  ;;  %v8122_v11 = vpack.c.bf16 %v6095_v14, %v6094_v8  ;;  %v4947_v52 = vadd.f32 %v4946_v48, %v11353_v51  ;;  %v4948_v24 = vpop.f32.mrb[190].mxu1 }
 0x5c5   : > { %v5842_v10 = vadd.f32 %v5586_v59, %v4945_v41  ;;  %v4949_v12 = vadd.f32 %v4948_v24, %v11351_v1  ;;  %v4950_v0 = vpop.f32.mrb[191].mxu1 }
 0x5c6   : > { %7060 = vst [vmem:[%s11368_s15 + $0x1d0] sm:$0xff] %v8122_v11  ;;  %v5843_v44 = vadd.f32 %v5587_v38, %v4947_v52  ;;  %v4951_v17 = vadd.f32 %v4950_v0, %v11353_v51 }
 0x5c7   : > { %v6098_v26 = vmax.f32 %v5842_v10, 0.0  ;;  %v5846_v36 = vadd.f32 %v5590_v39, %v4949_v12  ;;  %5246 = vmatmul.mubr.bf16.gmra.mrb[8].mxu1 %v11147_v58  ;;  %v9057_v39 = vld [vmem:[%s9329_s8 + $0x220] sm:$0xff] }
 0x5c8   : > { %v6099_v31 = vmax.f32 %v5843_v44, 0.0  ;;  %v5847_v3 = vadd.f32 %v5591_v18, %v4951_v17  ;;  %5255 = vmatprep.mubr.bf16.mxu1 %v12038_v9  ;;  %v5602_v11 = vunpack.c.l.bf16 %v9057_v39  ;;  %v5603_v10 = vunpack.c.h.bf16 %v9057_v39  ;;  %v9058_v44 = vld [vmem:[%s9329_s8 + $0x230] sm:$0xff] }
 0x5c9   : > { %v6102_v32 = vmax.f32 %v5846_v36, 0.0  ;;  %v5606_v17 = vunpack.c.l.bf16 %v9058_v44 }
 0x5ca   : > { %v8124_v29 = vpack.c.bf16 %v6099_v31, %v6098_v26  ;;  %v6103_v19 = vmax.f32 %v5847_v3, 0.0  ;;  %v4954_v25 = vpop.f32.mrb[192].mxu1  ;;  %v5607_v31 = vunpack.c.h.bf16 %v9058_v44 }
 0x5cb   : > { %v4955_v61 = vadd.f32 %v4954_v25, %v11351_v1  ;;  %v4956_v35 = vpop.f32.mrb[193].mxu1 }
 0x5cc   : > { %7062 = vst [vmem:[%s11368_s15 + $0x1e0] sm:$0xff] %v8124_v29  ;;  %v8126_v47 = vpack.c.bf16 %v6103_v19, %v6102_v32  ;;  %v4957_v58 = vadd.f32 %v4956_v35, %v11353_v51  ;;  %v4958_v42 = vpop.f32.mrb[194].mxu1 }
 0x5cd   : > { %v5850_v8 = vadd.f32 %v5594_v4, %v4955_v61  ;;  %v4959_v56 = vadd.f32 %v4958_v42, %v11351_v1  ;;  %v4960_v59 = vpop.f32.mrb[195].mxu1 }
 0x5ce   : > { %7064 = vst [vmem:[%s11368_s15 + $0x1f0] sm:$0xff] %v8126_v47  ;;  %v5851_v40 = vadd.f32 %v5595_v57, %v4957_v58  ;;  %v4961_v14 = vadd.f32 %v4960_v59, %v11353_v51  ;;  %v9060_v59 = vld [vmem:[%s9329_s8 + $0x250] sm:$0xff] }
 0x5cf   : > { %v6106_v45 = vmax.f32 %v5850_v8, 0.0  ;;  %v5854_v38 = vadd.f32 %v5598_v23, %v4959_v56  ;;  %5256 = vmatmul.mubr.bf16.gmra.mrb[12].mxu1 %v11173_v43  ;;  %v5610_v23 = vunpack.c.l.bf16 %v9059_v62 }
 0x5d0   : > { %v6107_v41 = vmax.f32 %v5851_v40, 0.0  ;;  %v5855_v48 = vadd.f32 %v5599_v6, %v4961_v14  ;;  %5265 = vmatprep.mubr.bf16.mxu1 %v12038_v9  ;;  %v5611_v6 = vunpack.c.h.bf16 %v9059_v62  ;;  %v5614_v40 = vunpack.c.l.bf16 %v9060_v59 }
 0x5d1   : > { %v6110_v2 = vmax.f32 %v5854_v38, 0.0  ;;  %v5615_v38 = vunpack.c.h.bf16 %v9060_v59 }
 0x5d2   : > { %v8128_v52 = vpack.c.bf16 %v6107_v41, %v6106_v45  ;;  %v6111_v24 = vmax.f32 %v5855_v48, 0.0  ;;  %v4964_v18 = vpop.f32.mrb[196].mxu1 }
 0x5d3   : > { %v4965_v12 = vadd.f32 %v4964_v18, %v11351_v1  ;;  %v4966_v0 = vpop.f32.mrb[197].mxu1 }
 0x5d4   : > { %7066 = vst [vmem:[%s11368_s15 + $0x200] sm:$0xff] %v8128_v52  ;;  %v8130_v26 = vpack.c.bf16 %v6111_v24, %v6110_v2  ;;  %v4967_v43 = vadd.f32 %v4966_v0, %v11353_v51  ;;  %v4968_v36 = vpop.f32.mrb[198].mxu1  ;;  %v9061_v0 = vld [vmem:[%s9329_s8 + $0x260] sm:$0xff] }
 0x5d5   : > { %v5858_v3 = vadd.f32 %v5602_v11, %v4965_v12  ;;  %v4969_v32 = vadd.f32 %v4968_v36, %v11351_v1  ;;  %v4970_v21 = vpop.f32.mrb[199].mxu1  ;;  %v5618_v44 = vunpack.c.l.bf16 %v9061_v0  ;;  %v5619_v36 = vunpack.c.h.bf16 %v9061_v0 }
 0x5d6   : > { %7068 = vst [vmem:[%s11368_s15 + $0x210] sm:$0xff] %v8130_v26  ;;  %v5859_v4 = vadd.f32 %v5603_v10, %v4967_v43  ;;  %v4971_v29 = vadd.f32 %v4970_v21, %v11353_v51 }
 0x5d7   : > { %v6114_v19 = vmax.f32 %v5858_v3, 0.0  ;;  %v5862_v25 = vadd.f32 %v5606_v17, %v4969_v32  ;;  %5266 = vmatmul.mubr.bf16.gmra.mrb[16].mxu1 %v11169_v54  ;;  %v9062_v32 = vld [vmem:[%s9329_s8 + $0x270] sm:$0xff] }
 0x5d8   : > { %v6115_v57 = vmax.f32 %v5859_v4, 0.0  ;;  %v5863_v61 = vadd.f32 %v5607_v31, %v4971_v29  ;;  %5275 = vmatprep.mubr.bf16.mxu1 %v12038_v9  ;;  %v5622_v21 = vunpack.c.l.bf16 %v9062_v32 }
 0x5d9   : > { %v6118_v35 = vmax.f32 %v5862_v25, 0.0 }
 0x5da   : > { %v8132_v47 = vpack.c.bf16 %v6115_v57, %v6114_v19  ;;  %v6119_v58 = vmax.f32 %v5863_v61, 0.0  ;;  %v4974_v42 = vpop.f32.mrb[200].mxu1  ;;  %v5623_v19 = vunpack.c.h.bf16 %v9062_v32 }
 0x5db   : > { %v4975_v8 = vadd.f32 %v4974_v42, %v11351_v1  ;;  %v4976_v56 = vpop.f32.mrb[201].mxu1 }
 0x5dc   : > { %7070 = vst [vmem:[%s11368_s15 + $0x220] sm:$0xff] %v8132_v47  ;;  %v8134_v14 = vpack.c.bf16 %v6119_v58, %v6118_v35  ;;  %v4977_v54 = vadd.f32 %v4976_v56, %v11353_v51  ;;  %v4978_v45 = vpop.f32.mrb[202].mxu1 }
 0x5dd   : > { %v5866_v41 = vadd.f32 %v5610_v23, %v4975_v8  ;;  %v4979_v48 = vadd.f32 %v4978_v45, %v11351_v1  ;;  %v4980_v2 = vpop.f32.mrb[203].mxu1  ;;  %v9063_v8 = vld [vmem:[%s9329_s8 + $0x280] sm:$0xff] }
 0x5de   : > { %7072 = vst [vmem:[%s11368_s15 + $0x230] sm:$0xff] %v8134_v14  ;;  %v5867_v39 = vadd.f32 %v5611_v6, %v4977_v54  ;;  %v4981_v11 = vadd.f32 %v4980_v2, %v11353_v51  ;;  %v5626_v56 = vunpack.c.l.bf16 %v9063_v8  ;;  %v5627_v54 = vunpack.c.h.bf16 %v9063_v8 }
 0x5df   : > { %v6122_v52 = vmax.f32 %v5866_v41, 0.0  ;;  %v5870_v24 = vadd.f32 %v5614_v40, %v4979_v48  ;;  %5276 = vmatmul.mubr.bf16.gmra.mrb[20].mxu1 %v11188_v27  ;;  %v9064_v41 = vld [vmem:[%s9329_s8 + $0x290] sm:$0xff] }
 0x5e0   : > { %v6123_v18 = vmax.f32 %v5867_v39, 0.0  ;;  %v5871_v10 = vadd.f32 %v5615_v38, %v4981_v11  ;;  %5285 = vmatprep.mubr.bf16.mxu1 %v12038_v9  ;;  %v5630_v48 = vunpack.c.l.bf16 %v9064_v41  ;;  %v5631_v11 = vunpack.c.h.bf16 %v9064_v41 }
 0x5e1   : > { %v6126_v12 = vmax.f32 %v5870_v24, 0.0 }
 0x5e2   : > { %v8136_v17 = vpack.c.bf16 %v6123_v18, %v6122_v52  ;;  %v6127_v26 = vmax.f32 %v5871_v10, 0.0  ;;  %v4984_v43 = vpop.f32.mrb[204].mxu1 }
 0x5e3   : > { %v4985_v31 = vadd.f32 %v4984_v43, %v11351_v1  ;;  %v4986_v3 = vpop.f32.mrb[205].mxu1 }
 0x5e4   : > { %7074 = vst [vmem:[%s11368_s15 + $0x240] sm:$0xff] %v8136_v17  ;;  %v8138_v4 = vpack.c.bf16 %v6127_v26, %v6126_v12  ;;  %v4987_v27 = vadd.f32 %v4986_v3, %v11353_v51  ;;  %v4988_v29 = vpop.f32.mrb[206].mxu1 }
 0x5e5   : > { %v5874_v25 = vadd.f32 %v5618_v44, %v4985_v31  ;;  %v4989_v57 = vadd.f32 %v4988_v29, %v11351_v1  ;;  %v4990_v61 = vpop.f32.mrb[207].mxu1 }
 0x5e6   : > { %7076 = vst [vmem:[%s11368_s15 + $0x250] sm:$0xff] %v8138_v4  ;;  %v5875_v35 = vadd.f32 %v5619_v36, %v4987_v27  ;;  %v4991_v62 = vadd.f32 %v4990_v61, %v11353_v51  ;;  %v9065_v36 = vld [vmem:[%s9329_s8 + $0x2a0] sm:$0xff] }
 0x5e7   : > { %v6130_v23 = vmax.f32 %v5874_v25, 0.0  ;;  %v5878_v47 = vadd.f32 %v5622_v21, %v4989_v57  ;;  %5286 = vmatmul.mubr.bf16.gmra.mrb[24].mxu1 %v11186_v37  ;;  %v5634_v31 = vunpack.c.l.bf16 %v9065_v36  ;;  %v5635_v4 = vunpack.c.h.bf16 %v9065_v36 }
 0x5e8   : > { %v6131_v58 = vmax.f32 %v5875_v35, 0.0  ;;  %v5879_v42 = vadd.f32 %v5623_v19, %v4991_v62  ;;  %5295 = vmatprep.mubr.bf16.mxu1 %v12038_v9  ;;  %v9066_v19 = vld [vmem:[%s9329_s8 + $0x2b0] sm:$0xff] }
 0x5e9   : > { %v6134_v6 = vmax.f32 %v5878_v47, 0.0  ;;  %v5638_v25 = vunpack.c.l.bf16 %v9066_v19  ;;  %v5639_v35 = vunpack.c.h.bf16 %v9066_v19 }
 0x5ea   : > { %v8140_v59 = vpack.c.bf16 %v6131_v58, %v6130_v23  ;;  %v6135_v40 = vmax.f32 %v5879_v42, 0.0  ;;  %v4994_v14 = vpop.f32.mrb[208].mxu1 }
 0x5eb   : > { %v4995_v45 = vadd.f32 %v4994_v14, %v11351_v1  ;;  %v4996_v38 = vpop.f32.mrb[209].mxu1  ;;  %v9067_v14 = vld [vmem:[%s9329_s8 + $0x2c0] sm:$0xff] }
 0x5ec   : > { %7078 = vst [vmem:[%s11368_s15 + $0x260] sm:$0xff] %v8140_v59  ;;  %v8142_v2 = vpack.c.bf16 %v6135_v40, %v6134_v6  ;;  %v4997_v37 = vadd.f32 %v4996_v38, %v11353_v51  ;;  %v4998_v39 = vpop.f32.mrb[210].mxu1 }
 0x5ed   : > { %v5882_v52 = vadd.f32 %v5626_v56, %v4995_v45  ;;  %v4999_v24 = vadd.f32 %v4998_v39, %v11351_v1  ;;  %v5000_v18 = vpop.f32.mrb[211].mxu1  ;;  %v9068_v39 = vld [vmem:[%s9329_s8 + $0x2d0] sm:$0xff] }
 0x5ee   : > { %7080 = vst [vmem:[%s11368_s15 + $0x270] sm:$0xff] %v8142_v2  ;;  %v5883_v10 = vadd.f32 %v5627_v54, %v4997_v37  ;;  %v5001_v12 = vadd.f32 %v5000_v18, %v11353_v51  ;;  %v5642_v54 = vunpack.c.l.bf16 %v9067_v14  ;;  %v5647_v18 = vunpack.c.h.bf16 %v9068_v39 }
 0x5ef   : > { %v6138_v0 = vmax.f32 %v5882_v52, 0.0  ;;  %v5886_v44 = vadd.f32 %v5630_v48, %v4999_v24  ;;  %5296 = vmatmul.mubr.bf16.gmra.mrb[28].mxu1 %v11090_v15  ;;  %v5643_v48 = vunpack.c.h.bf16 %v9067_v14 }
 0x5f0   : > { %v6139_v17 = vmax.f32 %v5883_v10, 0.0  ;;  %v5887_v26 = vadd.f32 %v5631_v11, %v5001_v12  ;;  %5305 = vmatprep.mubr.bf16.mxu1 %v12038_v9  ;;  %v5646_v11 = vunpack.c.l.bf16 %v9068_v39 }
 0x5f1   : > { %v6142_v43 = vmax.f32 %v5886_v44, 0.0 }
 0x5f2   : > { %v8144_v3 = vpack.c.bf16 %v6139_v17, %v6138_v0  ;;  %v6143_v32 = vmax.f32 %v5887_v26, 0.0  ;;  %v5004_v21 = vpop.f32.mrb[212].mxu1 }
 0x5f3   : > { %v5005_v27 = vadd.f32 %v5004_v21, %v11351_v1  ;;  %v5006_v29 = vpop.f32.mrb[213].mxu1 }
 0x5f4   : > { %7082 = vst [vmem:[%s11368_s15 + $0x280] sm:$0xff] %v8144_v3  ;;  %v8146_v57 = vpack.c.bf16 %v6143_v32, %v6142_v43  ;;  %v5007_v15 = vadd.f32 %v5006_v29, %v11353_v51  ;;  %v5008_v61 = vpop.f32.mrb[214].mxu1  ;;  %v9069_v32 = vld [vmem:[%s9329_s8 + $0x2e0] sm:$0xff] }
 0x5f5   : > { %v5890_v62 = vadd.f32 %v5634_v31, %v5005_v27  ;;  %v5009_v23 = vadd.f32 %v5008_v61, %v11351_v1  ;;  %v5010_v47 = vpop.f32.mrb[215].mxu1  ;;  %v5650_v21 = vunpack.c.l.bf16 %v9069_v32  ;;  %v5651_v19 = vunpack.c.h.bf16 %v9069_v32 }
 0x5f6   : > { %7084 = vst [vmem:[%s11368_s15 + $0x290] sm:$0xff] %v8146_v57  ;;  %v5891_v58 = vadd.f32 %v5635_v4, %v5007_v15  ;;  %v5011_v42 = vadd.f32 %v5010_v47, %v11353_v51  ;;  %v9070_v15 = vld [vmem:[%s9329_s8 + $0x2f0] sm:$0xff] }
 0x5f7   : > { %v6146_v6 = vmax.f32 %v5890_v62, 0.0  ;;  %v5894_v8 = vadd.f32 %v5638_v25, %v5009_v23  ;;  %5306 = vmatmul.mubr.bf16.gmra.mrb[32].mxu1 %v11196_v20  ;;  %v5654_v61 = vunpack.c.l.bf16 %v9070_v15  ;;  %v5655_v23 = vunpack.c.h.bf16 %v9070_v15 }
 0x5f8   : > { %v6147_v56 = vmax.f32 %v5891_v58, 0.0  ;;  %v5895_v59 = vadd.f32 %v5639_v35, %v5011_v42  ;;  %5315 = vmatprep.mubr.bf16.mxu1 %v12038_v9 }
 0x5f9   : > { %v6150_v40 = vmax.f32 %v5894_v8, 0.0 }
 0x5fa   : > { %v8148_v45 = vpack.c.bf16 %v6147_v56, %v6146_v6  ;;  %v6151_v38 = vmax.f32 %v5895_v59, 0.0  ;;  %v5014_v41 = vpop.f32.mrb[216].mxu1 }
 0x5fb   : > { %v5015_v2 = vadd.f32 %v5014_v41, %v11351_v1  ;;  %v5016_v37 = vpop.f32.mrb[217].mxu1 }
 0x5fc   : > { %7086 = vst [vmem:[%s11368_s15 + $0x2a0] sm:$0xff] %v8148_v45  ;;  %v8150_v52 = vpack.c.bf16 %v6151_v38, %v6150_v40  ;;  %v5017_v20 = vadd.f32 %v5016_v37, %v11353_v51  ;;  %v5018_v24 = vpop.f32.mrb[218].mxu1  ;;  %v9071_v45 = vld [vmem:[%s9329_s8 + $0x300] sm:$0xff] }
 0x5fd   : > { %v5898_v10 = vadd.f32 %v5642_v54, %v5015_v2  ;;  %v5019_v12 = vadd.f32 %v5018_v24, %v11351_v1  ;;  %v5020_v0 = vpop.f32.mrb[219].mxu1  ;;  %v5658_v38 = vunpack.c.l.bf16 %v9071_v45  ;;  %v5659_v37 = vunpack.c.h.bf16 %v9071_v45  ;;  %v9075_v45 = vld [vmem:[%s9329_s8 + $0x340] sm:$0xff] }
 0x5fe   : > { %7088 = vst [vmem:[%s11368_s15 + $0x2b0] sm:$0xff] %v8150_v52  ;;  %v5899_v44 = vadd.f32 %v5643_v48, %v5017_v20  ;;  %v5021_v17 = vadd.f32 %v5020_v0, %v11353_v51  ;;  %v9072_v52 = vld [vmem:[%s9329_s8 + $0x310] sm:$0xff] }
 0x5ff   : > { %v6154_v26 = vmax.f32 %v5898_v10, 0.0  ;;  %v5902_v43 = vadd.f32 %v5646_v11, %v5019_v12  ;;  %5316 = vmatmul.mubr.bf16.gmra.mrb[36].mxu1 %v11226_v22  ;;  %v5662_v20 = vunpack.c.l.bf16 %v9072_v52  ;;  %v5663_v10 = vunpack.c.h.bf16 %v9072_v52  ;;  %v9076_v52 = vld [vmem:[%s9329_s8 + $0x350] sm:$0xff] }
 0x600   : > { %v6155_v36 = vmax.f32 %v5899_v44, 0.0  ;;  %v5903_v31 = vadd.f32 %v5647_v18, %v5021_v17  ;;  %5325 = vmatprep.mubr.bf16.mxu1 %v12038_v9 }
 0x601   : > { %v6158_v3 = vmax.f32 %v5902_v43, 0.0 }
 0x602   : > { %v8152_v4 = vpack.c.bf16 %v6155_v36, %v6154_v26  ;;  %v6159_v27 = vmax.f32 %v5903_v31, 0.0  ;;  %v5024_v29 = vpop.f32.mrb[220].mxu1 }
 0x603   : > { %v5025_v25 = vadd.f32 %v5024_v29, %v11351_v1  ;;  %v5026_v57 = vpop.f32.mrb[221].mxu1 }
 0x604   : > { %7090 = vst [vmem:[%s11368_s15 + $0x2c0] sm:$0xff] %v8152_v4  ;;  %v8154_v35 = vpack.c.bf16 %v6159_v27, %v6158_v3  ;;  %v5027_v22 = vadd.f32 %v5026_v57, %v11353_v51  ;;  %v5028_v62 = vpop.f32.mrb[222].mxu1 }
 0x605   : > { %v5906_v47 = vadd.f32 %v5650_v21, %v5025_v25  ;;  %v5029_v58 = vadd.f32 %v5028_v62, %v11351_v1  ;;  %v5030_v42 = vpop.f32.mrb[223].mxu1  ;;  %v9073_v21 = vld [vmem:[%s9329_s8 + $0x320] sm:$0xff] }
 0x606   : > { %7092 = vst [vmem:[%s11368_s15 + $0x2d0] sm:$0xff] %v8154_v35  ;;  %v5907_v6 = vadd.f32 %v5651_v19, %v5027_v22  ;;  %v5031_v8 = vadd.f32 %v5030_v42, %v11353_v51  ;;  %v5666_v4 = vunpack.c.l.bf16 %v9073_v21  ;;  %v5667_v25 = vunpack.c.h.bf16 %v9073_v21 }
 0x607   : > { %v6162_v56 = vmax.f32 %v5906_v47, 0.0  ;;  %v5910_v59 = vadd.f32 %v5654_v61, %v5029_v58  ;;  %5326 = vmatmul.mubr.bf16.gmra.mrb[40].mxu1 %v11222_v34  ;;  %v9074_v61 = vld [vmem:[%s9329_s8 + $0x330] sm:$0xff] }
 0x608   : > { %v6163_v40 = vmax.f32 %v5907_v6, 0.0  ;;  %v5911_v14 = vadd.f32 %v5655_v23, %v5031_v8  ;;  %5335 = vmatprep.mubr.bf16.mxu1 %v12038_v9  ;;  %v5670_v35 = vunpack.c.l.bf16 %v9074_v61  ;;  %v5671_v23 = vunpack.c.h.bf16 %v9074_v61 }
 0x609   : > { %v6166_v54 = vmax.f32 %v5910_v59, 0.0 }
 0x60a   : > { %v8156_v41 = vpack.c.bf16 %v6163_v40, %v6162_v56  ;;  %v6167_v48 = vmax.f32 %v5911_v14, 0.0  ;;  %v5034_v2 = vpop.f32.mrb[224].mxu1 }
 0x60b   : > { %v5035_v39 = vadd.f32 %v5034_v2, %v11351_v1  ;;  %v5036_v11 = vpop.f32.mrb[225].mxu1 }
 0x60c   : > { %7094 = vst [vmem:[%s11368_s15 + $0x2e0] sm:$0xff] %v8156_v41  ;;  %v8158_v24 = vpack.c.bf16 %v6167_v48, %v6166_v54  ;;  %v5037_v34 = vadd.f32 %v5036_v11, %v11353_v51  ;;  %v5038_v18 = vpop.f32.mrb[226].mxu1 }
 0x60d   : > { %v5914_v12 = vadd.f32 %v5658_v38, %v5035_v39  ;;  %v5039_v0 = vadd.f32 %v5038_v18, %v11351_v1  ;;  %v5040_v44 = vpop.f32.mrb[227].mxu1  ;;  %v5674_v38 = vunpack.c.l.bf16 %v9075_v45  ;;  %v5679_v18 = vunpack.c.h.bf16 %v9076_v52 }
 0x60e   : > { %7096 = vst [vmem:[%s11368_s15 + $0x2f0] sm:$0xff] %v8158_v24  ;;  %v5915_v17 = vadd.f32 %v5659_v37, %v5037_v34  ;;  %v5041_v26 = vadd.f32 %v5040_v44, %v11353_v51  ;;  %v5675_v37 = vunpack.c.h.bf16 %v9075_v45 }
 0x60f   : > { %v6170_v43 = vmax.f32 %v5914_v12, 0.0  ;;  %v5918_v36 = vadd.f32 %v5662_v20, %v5039_v0  ;;  %5336 = vmatmul.mubr.bf16.gmra.mrb[44].mxu1 %v11242_v63  ;;  %v5678_v20 = vunpack.c.l.bf16 %v9076_v52 }
 0x610   : > { %v6171_v31 = vmax.f32 %v5915_v17, 0.0  ;;  %v5919_v3 = vadd.f32 %v5663_v10, %v5041_v26  ;;  %5345 = vmatprep.mubr.bf16.mxu1 %v12038_v9 }
 0x611   : > { %v6174_v32 = vmax.f32 %v5918_v36, 0.0 }
 0x612   : > { %v8160_v27 = vpack.c.bf16 %v6171_v31, %v6170_v43  ;;  %v6175_v29 = vmax.f32 %v5919_v3, 0.0  ;;  %v5044_v19 = vpop.f32.mrb[228].mxu1 }
 0x613   : > { %v5045_v57 = vadd.f32 %v5044_v19, %v11351_v1  ;;  %v5046_v15 = vpop.f32.mrb[229].mxu1 }
 0x614   : > { %7098 = vst [vmem:[%s11368_s15 + $0x300] sm:$0xff] %v8160_v27  ;;  %v8162_v22 = vpack.c.bf16 %v6175_v29, %v6174_v32  ;;  %v5047_v63 = vadd.f32 %v5046_v15, %v11353_v51  ;;  %v5048_v62 = vpop.f32.mrb[230].mxu1  ;;  %v9077_v32 = vld [vmem:[%s9329_s8 + $0x360] sm:$0xff]  ;;  %v9078_v15 = vld [vmem:[%s9329_s8 + $0x370] sm:$0xff] }
 0x615   : > { %v5922_v47 = vadd.f32 %v5666_v4, %v5045_v57  ;;  %v5049_v58 = vadd.f32 %v5048_v62, %v11351_v1  ;;  %v5050_v42 = vpop.f32.mrb[231].mxu1  ;;  %v5682_v21 = vunpack.c.l.bf16 %v9077_v32  ;;  %v5683_v19 = vunpack.c.h.bf16 %v9077_v32 }
 0x616   : > { %7100 = vst [vmem:[%s11368_s15 + $0x310] sm:$0xff] %v8162_v22  ;;  %v5923_v6 = vadd.f32 %v5667_v25, %v5047_v63  ;;  %v5051_v8 = vadd.f32 %v5050_v42, %v11353_v51  ;;  %v5686_v61 = vunpack.c.l.bf16 %v9078_v15  ;;  %v5687_v63 = vunpack.c.h.bf16 %v9078_v15 }
 0x617   : > { %v6178_v56 = vmax.f32 %v5922_v47, 0.0  ;;  %v5926_v59 = vadd.f32 %v5670_v35, %v5049_v58  ;;  %5346 = vmatmul.mubr.bf16.gmra.mrb[48].mxu1 %v11238_v30 }
 0x618   : > { %v6179_v40 = vmax.f32 %v5923_v6, 0.0  ;;  %v5927_v14 = vadd.f32 %v5671_v23, %v5051_v8  ;;  %5355 = vmatprep.mubr.bf16.mxu1 %v12038_v9 }
 0x619   : > { %v6182_v54 = vmax.f32 %v5926_v59, 0.0 }
 0x61a   : > { %v8164_v41 = vpack.c.bf16 %v6179_v40, %v6178_v56  ;;  %v6183_v48 = vmax.f32 %v5927_v14, 0.0  ;;  %v5054_v2 = vpop.f32.mrb[232].mxu1  ;;  %v9079_v14 = vld [vmem:[%s9329_s8 + $0x380] sm:$0xff] }
 0x61b   : > { %v5055_v39 = vadd.f32 %v5054_v2, %v11351_v1  ;;  %v5056_v11 = vpop.f32.mrb[233].mxu1 }
 0x61c   : > { %7102 = vst [vmem:[%s11368_s15 + $0x320] sm:$0xff] %v8164_v41  ;;  %v8166_v24 = vpack.c.bf16 %v6183_v48, %v6182_v54  ;;  %v5057_v30 = vadd.f32 %v5056_v11, %v11353_v51  ;;  %v5058_v34 = vpop.f32.mrb[234].mxu1  ;;  %v5690_v54 = vunpack.c.l.bf16 %v9079_v14  ;;  %v5691_v48 = vunpack.c.h.bf16 %v9079_v14 }
 0x61d   : > { %v5930_v10 = vadd.f32 %v5674_v38, %v5055_v39  ;;  %v5059_v12 = vadd.f32 %v5058_v34, %v11351_v1  ;;  %v5060_v0 = vpop.f32.mrb[235].mxu1  ;;  %v9080_v39 = vld [vmem:[%s9329_s8 + $0x390] sm:$0xff] }
 0x61e   : > { %7104 = vst [vmem:[%s11368_s15 + $0x330] sm:$0xff] %v8166_v24  ;;  %v5931_v44 = vadd.f32 %v5675_v37, %v5057_v30  ;;  %v5061_v17 = vadd.f32 %v5060_v0, %v11353_v51  ;;  %v5694_v11 = vunpack.c.l.bf16 %v9080_v39  ;;  %v5695_v24 = vunpack.c.h.bf16 %v9080_v39 }
 0x61f   : > { %v6186_v26 = vmax.f32 %v5930_v10, 0.0  ;;  %v5934_v43 = vadd.f32 %v5678_v20, %v5059_v12  ;;  %5356 = vmatmul.mubr.bf16.gmra.mrb[52].mxu1 %v11257_v50 }
 0x620   : > { %v6187_v36 = vmax.f32 %v5931_v44, 0.0  ;;  %v5935_v31 = vadd.f32 %v5679_v18, %v5061_v17  ;;  %5365 = vmatprep.mubr.bf16.mxu1 %v12038_v9 }
 0x621   : > { %v6190_v3 = vmax.f32 %v5934_v43, 0.0 }
 0x622   : > { %v8168_v4 = vpack.c.bf16 %v6187_v36, %v6186_v26  ;;  %v6191_v27 = vmax.f32 %v5935_v31, 0.0  ;;  %v5064_v29 = vpop.f32.mrb[236].mxu1  ;;  %v9081_v36 = vld [vmem:[%s9329_s8 + $0x3a0] sm:$0xff] }
 0x623   : > { %v5065_v25 = vadd.f32 %v5064_v29, %v11351_v1  ;;  %v5066_v57 = vpop.f32.mrb[237].mxu1  ;;  %v5698_v31 = vunpack.c.l.bf16 %v9081_v36 }
 0x624   : > { %7106 = vst [vmem:[%s11368_s15 + $0x340] sm:$0xff] %v8168_v4  ;;  %v8170_v35 = vpack.c.bf16 %v6191_v27, %v6190_v3  ;;  %v5067_v50 = vadd.f32 %v5066_v57, %v11353_v51  ;;  %v5068_v22 = vpop.f32.mrb[238].mxu1  ;;  %v5699_v4 = vunpack.c.h.bf16 %v9081_v36 }
 0x625   : > { %v5938_v62 = vadd.f32 %v5682_v21, %v5065_v25  ;;  %v5069_v23 = vadd.f32 %v5068_v22, %v11351_v1  ;;  %v5070_v47 = vpop.f32.mrb[239].mxu1 }
 0x626   : > { %7108 = vst [vmem:[%s11368_s15 + $0x350] sm:$0xff] %v8170_v35  ;;  %v5939_v58 = vadd.f32 %v5683_v19, %v5067_v50  ;;  %v5071_v42 = vadd.f32 %v5070_v47, %v11353_v51  ;;  %v9082_v19 = vld [vmem:[%s9329_s8 + $0x3b0] sm:$0xff] }
 0x627   : > { %v6194_v6 = vmax.f32 %v5938_v62, 0.0  ;;  %v5942_v8 = vadd.f32 %v5686_v61, %v5069_v23  ;;  %5366 = vmatmul.mubr.bf16.gmra.mrb[56].mxu1 %v11254_v55  ;;  %v5702_v25 = vunpack.c.l.bf16 %v9082_v19  ;;  %v5703_v61 = vunpack.c.h.bf16 %v9082_v19 }
 0x628   : > { %v6195_v56 = vmax.f32 %v5939_v58, 0.0  ;;  %v5943_v59 = vadd.f32 %v5687_v63, %v5071_v42  ;;  %5375 = vmatprep.mubr.bf16.mxu1 %v12038_v9 }
 0x629   : > { %v6198_v40 = vmax.f32 %v5942_v8, 0.0  ;;  %v9083_v8 = vld [vmem:[%s9329_s8 + $0x3c0] sm:$0xff] }
 0x62a   : > { %v8172_v45 = vpack.c.bf16 %v6195_v56, %v6194_v6  ;;  %v6199_v38 = vmax.f32 %v5943_v59, 0.0  ;;  %v5074_v41 = vpop.f32.mrb[240].mxu1  ;;  %v5706_v56 = vunpack.c.l.bf16 %v9083_v8 }
 0x62b   : > { %v5075_v2 = vadd.f32 %v5074_v41, %v11351_v1  ;;  %v5076_v37 = vpop.f32.mrb[241].mxu1  ;;  %v9084_v41 = vld [vmem:[%s9329_s8 + $0x3d0] sm:$0xff] }
 0x62c   : > { %7110 = vst [vmem:[%s11368_s15 + $0x360] sm:$0xff] %v8172_v45  ;;  %v8174_v52 = vpack.c.bf16 %v6199_v38, %v6198_v40  ;;  %v5077_v55 = vadd.f32 %v5076_v37, %v11353_v51  ;;  %v5078_v20 = vpop.f32.mrb[242].mxu1  ;;  %v5711_v39 = vunpack.c.h.bf16 %v9084_v41 }
 0x62d   : > { %v5946_v30 = vadd.f32 %v5690_v54, %v5075_v2  ;;  %v5079_v34 = vadd.f32 %v5078_v20, %v11351_v1  ;;  %v5080_v18 = vpop.f32.mrb[243].mxu1  ;;  %v5707_v54 = vunpack.c.h.bf16 %v9083_v8 }
 0x62e   : > { %7112 = vst [vmem:[%s11368_s15 + $0x370] sm:$0xff] %v8174_v52  ;;  %v5947_v10 = vadd.f32 %v5691_v48, %v5077_v55  ;;  %v5081_v12 = vadd.f32 %v5080_v18, %v11353_v51  ;;  %v5710_v48 = vunpack.c.l.bf16 %v9084_v41 }
 0x62f   : > { %v6202_v0 = vmax.f32 %v5946_v30, 0.0  ;;  %v5950_v44 = vadd.f32 %v5694_v11, %v5079_v34  ;;  %5376 = vmatmul.mubr.bf16.gmra.mrb[60].mxu1 %v11271_v5 }
 0x630   : > { %v6203_v17 = vmax.f32 %v5947_v10, 0.0  ;;  %v5951_v26 = vadd.f32 %v5695_v24, %v5081_v12  ;;  %5385 = vmatprep.mubr.bf16.mxu1 %v12038_v9 }
 0x631   : > { %v6206_v43 = vmax.f32 %v5950_v44, 0.0 }
 0x632   : > { %v8176_v3 = vpack.c.bf16 %v6203_v17, %v6202_v0  ;;  %v6207_v32 = vmax.f32 %v5951_v26, 0.0  ;;  %v5084_v21 = vpop.f32.mrb[244].mxu1  ;;  %v9085_v0 = vld [vmem:[%s9329_s8 + $0x3e0] sm:$0xff] }
 0x633   : > { %v5085_v27 = vadd.f32 %v5084_v21, %v11351_v1  ;;  %v5086_v29 = vpop.f32.mrb[245].mxu1  ;;  %v5714_v44 = vunpack.c.l.bf16 %v9085_v0  ;;  %v5715_v36 = vunpack.c.h.bf16 %v9085_v0 }
 0x634   : > { %7114 = vst [vmem:[%s11368_s15 + $0x380] sm:$0xff] %v8176_v3  ;;  %v8178_v57 = vpack.c.bf16 %v6207_v32, %v6206_v43  ;;  %v5087_v5 = vadd.f32 %v5086_v29, %v11353_v51  ;;  %v5088_v15 = vpop.f32.mrb[246].mxu1  ;;  %v9086_v32 = vld [vmem:[%s9329_s8 + $0x3f0] sm:$0xff] }
 0x635   : > { %v5954_v35 = vadd.f32 %v5698_v31, %v5085_v27  ;;  %v5089_v50 = vadd.f32 %v5088_v15, %v11351_v1  ;;  %v5090_v22 = vpop.f32.mrb[247].mxu1  ;;  %v5718_v21 = vunpack.c.l.bf16 %v9086_v32  ;;  %v5719_v19 = vunpack.c.h.bf16 %v9086_v32 }
 0x636   : > { %7116 = vst [vmem:[%s11368_s15 + $0x390] sm:$0xff] %v8178_v57  ;;  %v5955_v63 = vadd.f32 %v5699_v4, %v5087_v5  ;;  %v5091_v62 = vadd.f32 %v5090_v22, %v11353_v51 }
 0x637   : > { %v6210_v23 = vmax.f32 %v5954_v35, 0.0  ;;  %v5958_v47 = vadd.f32 %v5702_v25, %v5089_v50  ;;  %5386 = vmatmul.mubr.bf16.gmra.mrb[64].mxu1 %v11268_v53  ;;  %v4594_v25 = vsub.s32 3, %v11342_v28 }
 0x638   : > { %v6211_v58 = vmax.f32 %v5955_v63, 0.0  ;;  %v5959_v42 = vadd.f32 %v5703_v61, %v5091_v62  ;;  %5395 = vmatprep.mubr.bf16.mxu1 %v12038_v9  ;;  %v9087_v63 = vld [vmem:[%s12014_s6] sm:$0xf] }
 0x639   : > { %v6214_v6 = vmax.f32 %v5958_v47, 0.0 }
 0x63a   : > { %v8180_v59 = vpack.c.bf16 %v6211_v58, %v6210_v23  ;;  %v6215_v40 = vmax.f32 %v5959_v42, 0.0  ;;  %v5094_v14 = vpop.f32.mrb[248].mxu1 }
 0x63b   : > { %v5095_v45 = vadd.f32 %v5094_v14, %v11351_v1  ;;  %v5096_v38 = vpop.f32.mrb[249].mxu1 }
 0x63c   : > { %7118 = vst [vmem:[%s11368_s15 + $0x3a0] sm:$0xff] %v8180_v59  ;;  %v8182_v2 = vpack.c.bf16 %v6215_v40, %v6214_v6  ;;  %v5097_v53 = vadd.f32 %v5096_v38, %v11353_v51  ;;  %v5098_v37 = vpop.f32.mrb[250].mxu1  ;;  %v9089_v40 = vld [vmem:[%s9329_s8 + $0x18] sm:$0xff] }
 0x63d   : > { %v5962_v11 = vadd.f32 %v5706_v56, %v5095_v45  ;;  %v5099_v52 = vadd.f32 %v5098_v37, %v11351_v1  ;;  %v5100_v55 = vpop.f32.mrb[251].mxu1  ;;  %v5472_v14 = vunpack.c.l.bf16 %v9089_v40  ;;  %v5473_v41 = vunpack.c.h.bf16 %v9089_v40 }
 0x63e   : > { %7120 = vst [vmem:[%s11368_s15 + $0x3b0] sm:$0xff] %v8182_v2  ;;  %v5963_v20 = vadd.f32 %v5707_v54, %v5097_v53  ;;  %v5101_v24 = vadd.f32 %v5100_v55, %v11353_v51 }
 0x63f   : > { %v6218_v30 = vmax.f32 %v5962_v11, 0.0  ;;  %v5966_v34 = vadd.f32 %v5710_v48, %v5099_v52  ;;  %5396 = vmatmul.mubr.bf16.gmra.mrb[68].mxu1 %v11281_v49  ;;  %v4590_v49 = vsub.s32 2, %v11342_v28 }
 0x640   : > { %v6219_v18 = vmax.f32 %v5963_v20, 0.0  ;;  %v5967_v10 = vadd.f32 %v5711_v39, %v5101_v24  ;;  %5405 = vmatprep.mubr.bf16.mxu1 %v12038_v9 }
 0x641   : > { %v6222_v12 = vmax.f32 %v5966_v34, 0.0  ;;  %v11684_v62 = vrot.slane %v9087_v63, %v4590_v49 }
 0x642   : > { %v8184_v17 = vpack.c.bf16 %v6219_v18, %v6218_v30  ;;  %v6223_v26 = vmax.f32 %v5967_v10, 0.0  ;;  %v5104_v43 = vpop.f32.mrb[252].mxu1  ;;  %v9090_v30 = vld [vmem:[%s9329_s8 + $0x28] sm:$0xff] }
 0x643   : > { %v5105_v31 = vadd.f32 %v5104_v43, %v11351_v1  ;;  %v5106_v3 = vpop.f32.mrb[253].mxu1  ;;  %v5476_v34 = vunpack.c.l.bf16 %v9090_v30  ;;  %v5477_v0 = vunpack.c.h.bf16 %v9090_v30 }
 0x644   : > { %7122 = vst [vmem:[%s11368_s15 + $0x3c0] sm:$0xff] %v8184_v17  ;;  %v8186_v4 = vpack.c.bf16 %v6223_v26, %v6222_v12  ;;  %v5107_v27 = vadd.f32 %v5106_v3, %v11353_v51  ;;  %v5108_v29 = vpop.f32.mrb[254].mxu1  ;;  %v9091_v26 = vld [vmem:[%s9329_s8 + $0x38] sm:$0xff] }
 0x645   : > { %v5970_v57 = vadd.f32 %v5714_v44, %v5105_v31  ;;  %v5109_v5 = vadd.f32 %v5108_v29, %v11351_v1  ;;  %v5110_v15 = vpop.f32.mrb[255].mxu1  ;;  %v11686_v1 = vrot.slane %v9087_v63, %v4594_v25  ;;  %v5480_v43 = vunpack.c.l.bf16 %v9091_v26 }
 0x646   : > { %7124 = vst [vmem:[%s11368_s15 + $0x3d0] sm:$0xff] %v8186_v4  ;;  %v5971_v61 = vadd.f32 %v5715_v36, %v5107_v27  ;;  %v5111_v35 = vadd.f32 %v5110_v15, %v11353_v51  ;;  %v9088_v51 = vld [vmem:[%s9329_s8 + $0x8] sm:$0xff]  ;;  %v5481_v3 = vunpack.c.h.bf16 %v9091_v26 }
 0x647   : > { %v6226_v50 = vmax.f32 %v5970_v57, 0.0  ;;  %v5974_v22 = vadd.f32 %v5718_v21, %v5109_v5  ;;  %5406 = vmatmul.mubr.bf16.gmra.mrb[72].mxu1 %v11296_v13  ;;  %v5468_v58 = vunpack.c.l.bf16 %v9088_v51  ;;  %v5469_v8 = vunpack.c.h.bf16 %v9088_v51  ;;  %v9092_v15 = vld [vmem:[%s9329_s8 + $0x48] sm:$0xff] }
 0x648   : > { %v6227_v28 = vmax.f32 %v5971_v61, 0.0  ;;  %v5975_v23 = vadd.f32 %v5719_v19, %v5111_v35  ;;  %5415 = vmatprep.mubr.bf16.mxu1 %v12038_v9  ;;  %v5484_v61 = vunpack.c.l.bf16 %v9092_v15  ;;  %v5485_v63 = vunpack.c.h.bf16 %v9092_v15 }
 0x649   : > { %v6230_v47 = vmax.f32 %v5974_v22, 0.0 }
 0x64a   : > { %v8188_v42 = vpack.c.bf16 %v6227_v28, %v6226_v50  ;;  %v6231_v13 = vmax.f32 %v5975_v23, 0.0  ;;  %v5147_v6 = vpop.f32.mrb[96].mxu1 }
 0x64b   : > { %v5148_v56 = vadd.f32 %v5147_v6, %v11684_v62  ;;  %v5149_v59 = vpop.f32.mrb[97].mxu1 }
 0x64c   : > { %7126 = vst [vmem:[%s11368_s15 + $0x3e0] sm:$0xff] %v8188_v42  ;;  %v8190_v54 = vpack.c.bf16 %v6231_v13, %v6230_v47  ;;  %v5150_v45 = vadd.f32 %v5149_v59, %v11686_v1  ;;  %v5151_v38 = vpop.f32.mrb[98].mxu1  ;;  %v9093_v47 = vld [vmem:[%s9329_s8 + $0x58] sm:$0xff] }
 0x64d   : > { %v5724_v48 = vadd.f32 %v5468_v58, %v5148_v56  ;;  %v5152_v2 = vadd.f32 %v5151_v38, %v11684_v62  ;;  %v5153_v53 = vpop.f32.mrb[99].mxu1  ;;  %v5488_v51 = vunpack.c.l.bf16 %v9093_v47  ;;  %v5489_v13 = vunpack.c.h.bf16 %v9093_v47 }
 0x64e   : > { %7128 = vst [vmem:[%s11368_s15 + $0x3f0] sm:$0xff] %v8190_v54  ;;  %v5725_v37 = vadd.f32 %v5469_v8, %v5150_v45  ;;  %v5154_v39 = vadd.f32 %v5153_v53, %v11686_v1 }
 0x64f   : > { %v5980_v11 = vmax.f32 %v5724_v48, 0.0  ;;  %v5728_v52 = vadd.f32 %v5472_v14, %v5152_v2  ;;  %5416 = vmatmul.mubr.bf16.gmra.mrb[76].mxu1 %v11303_v16  ;;  %v9094_v48 = vld [vmem:[%s9329_s8 + $0x68] sm:$0xff] }
 0x650   : > { %v5981_v55 = vmax.f32 %v5725_v37, 0.0  ;;  %v5729_v20 = vadd.f32 %v5473_v41, %v5154_v39  ;;  %5425 = vmatprep.mubr.bf16.mxu1 %v12038_v9  ;;  %v5492_v2 = vunpack.c.l.bf16 %v9094_v48 }
 0x651   : > { %v5984_v24 = vmax.f32 %v5728_v52, 0.0 }
 0x652   : > { %v8065_v18 = vpack.c.bf16 %v5981_v55, %v5980_v11  ;;  %v5985_v10 = vmax.f32 %v5729_v20, 0.0  ;;  %v5157_v12 = vpop.f32.mrb[100].mxu1  ;;  %v5493_v11 = vunpack.c.h.bf16 %v9094_v48  ;;  %v9095_v20 = vld [vmem:[%s9329_s8 + $0x78] sm:$0xff] }
 0x653   : > { %v5158_v44 = vadd.f32 %v5157_v12, %v11684_v62  ;;  %v5159_v17 = vpop.f32.mrb[101].mxu1 }
 0x654   : > { %7003 = vst [vmem:[%s11368_s15 + $0x8] sm:$0xff] %v8065_v18  ;;  %v8067_v36 = vpack.c.bf16 %v5985_v10, %v5984_v24  ;;  %v5160_v16 = vadd.f32 %v5159_v17, %v11686_v1  ;;  %v5161_v31 = vpop.f32.mrb[102].mxu1  ;;  %v5496_v24 = vunpack.c.l.bf16 %v9095_v20  ;;  %v5497_v18 = vunpack.c.h.bf16 %v9095_v20 }
 0x655   : > { %v5732_v32 = vadd.f32 %v5476_v34, %v5158_v44  ;;  %v5162_v21 = vadd.f32 %v5161_v31, %v11684_v62  ;;  %v5163_v49 = vpop.f32.mrb[103].mxu1 }
 0x656   : > { %7005 = vst [vmem:[%s11368_s15 + $0x18] sm:$0xff] %v8067_v36  ;;  %v5733_v4 = vadd.f32 %v5477_v0, %v5160_v16  ;;  %v5164_v27 = vadd.f32 %v5163_v49, %v11686_v1 }
 0x657   : > { %v5988_v29 = vmax.f32 %v5732_v32, 0.0  ;;  %v5736_v19 = vadd.f32 %v5480_v43, %v5162_v21  ;;  %5426 = vmatmul.mubr.bf16.gmra.mrb[80].mxu1 %v11309_v33 }
 0x658   : > { %v5989_v25 = vmax.f32 %v5733_v4, 0.0  ;;  %v5737_v57 = vadd.f32 %v5481_v3, %v5164_v27  ;;  %5435 = vmatprep.mubr.bf16.mxu1 %v12038_v9  ;;  %v9096_v3 = vld [vmem:[%s9329_s8 + $0x88] sm:$0xff] }
 0x659   : > { %v5992_v5 = vmax.f32 %v5736_v19, 0.0  ;;  %v5500_v32 = vunpack.c.l.bf16 %v9096_v3  ;;  %v5501_v27 = vunpack.c.h.bf16 %v9096_v3 }
 0x65a   : > { %v8069_v35 = vpack.c.bf16 %v5989_v25, %v5988_v29  ;;  %v5993_v50 = vmax.f32 %v5737_v57, 0.0  ;;  %v5167_v22 = vpop.f32.mrb[104].mxu1  ;;  %v9097_v25 = vld [vmem:[%s9329_s8 + $0x98] sm:$0xff] }
 0x65b   : > { %v5168_v28 = vadd.f32 %v5167_v22, %v11684_v62  ;;  %v5169_v23 = vpop.f32.mrb[105].mxu1  ;;  %v5504_v57 = vunpack.c.l.bf16 %v9097_v25 }
 0x65c   : > { %7007 = vst [vmem:[%s11368_s15 + $0x28] sm:$0xff] %v8069_v35  ;;  %v8071_v58 = vpack.c.bf16 %v5993_v50, %v5992_v5  ;;  %v5170_v33 = vadd.f32 %v5169_v23, %v11686_v1  ;;  %v5171_v42 = vpop.f32.mrb[106].mxu1 }
 0x65d   : > { %v5740_v6 = vadd.f32 %v5484_v61, %v5168_v28  ;;  %v5172_v8 = vadd.f32 %v5171_v42, %v11684_v62  ;;  %v5173_v56 = vpop.f32.mrb[107].mxu1 }
 0x65e   : > { %7009 = vst [vmem:[%s11368_s15 + $0x38] sm:$0xff] %v8071_v58  ;;  %v5741_v59 = vadd.f32 %v5485_v63, %v5170_v33  ;;  %v5174_v40 = vadd.f32 %v5173_v56, %v11686_v1  ;;  %v9098_v33 = vld [vmem:[%s9329_s8 + $0xa8] sm:$0xff] }
 0x65f   : > { %v5996_v14 = vmax.f32 %v5740_v6, 0.0  ;;  %v5744_v54 = vadd.f32 %v5488_v51, %v5172_v8  ;;  %5436 = vmatmul.mubr.bf16.gmra.mrb[84].mxu1 %v11315_v60  ;;  %v5508_v42 = vunpack.c.l.bf16 %v9098_v33  ;;  %v5509_v56 = vunpack.c.h.bf16 %v9098_v33 }
 0x660   : > { %v5997_v45 = vmax.f32 %v5741_v59, 0.0  ;;  %v5745_v38 = vadd.f32 %v5489_v13, %v5174_v40  ;;  %5445 = vmatprep.mubr.bf16.mxu1 %v12038_v9 }
 0x661   : > { %v6000_v41 = vmax.f32 %v5744_v54, 0.0 }
 0x662   : > { %v8073_v53 = vpack.c.bf16 %v5997_v45, %v5996_v14  ;;  %v6001_v37 = vmax.f32 %v5745_v38, 0.0  ;;  %v5177_v39 = vpop.f32.mrb[108].mxu1  ;;  %v9099_v14 = vld [vmem:[%s9329_s8 + $0xb8] sm:$0xff] }
 0x663   : > { %v5178_v52 = vadd.f32 %v5177_v39, %v11684_v62  ;;  %v5179_v55 = vpop.f32.mrb[109].mxu1  ;;  %v5512_v54 = vunpack.c.l.bf16 %v9099_v14 }
 0x664   : > { %7011 = vst [vmem:[%s11368_s15 + $0x48] sm:$0xff] %v8073_v53  ;;  %v8075_v30 = vpack.c.bf16 %v6001_v37, %v6000_v41  ;;  %v5180_v60 = vadd.f32 %v5179_v55, %v11686_v1  ;;  %v5181_v34 = vpop.f32.mrb[110].mxu1  ;;  %v5513_v41 = vunpack.c.h.bf16 %v9099_v14 }
 0x665   : > { %v5748_v10 = vadd.f32 %v5492_v2, %v5178_v52  ;;  %v5182_v12 = vadd.f32 %v5181_v34, %v11684_v62  ;;  %v5183_v0 = vpop.f32.mrb[111].mxu1 }
 0x666   : > { %7013 = vst [vmem:[%s11368_s15 + $0x58] sm:$0xff] %v8075_v30  ;;  %v5749_v44 = vadd.f32 %v5493_v11, %v5180_v60  ;;  %v5184_v17 = vadd.f32 %v5183_v0, %v11686_v1  ;;  %v9100_v30 = vld [vmem:[%s9329_s8 + $0xc8] sm:$0xff] }
 0x667   : > { %v6004_v26 = vmax.f32 %v5748_v10, 0.0  ;;  %v5752_v43 = vadd.f32 %v5496_v24, %v5182_v12  ;;  %5446 = vmatmul.mubr.bf16.gmra.mrb[88].mxu1 %v11324_v46  ;;  %v5516_v60 = vunpack.c.l.bf16 %v9100_v30  ;;  %v5517_v12 = vunpack.c.h.bf16 %v9100_v30 }
 0x668   : > { %v6005_v36 = vmax.f32 %v5749_v44, 0.0  ;;  %v5753_v16 = vadd.f32 %v5497_v18, %v5184_v17  ;;  %5455 = vmatprep.mubr.bf16.mxu1 %v12038_v9  ;;  %v5505_v9 = vunpack.c.h.bf16 %v9097_v25  ;;  %v9101_v17 = vld [vmem:[%s9329_s8 + $0xd8] sm:$0xff] }
 0x669   : > { %v6008_v31 = vmax.f32 %v5752_v43, 0.0 }
 0x66a   : > { %v8077_v21 = vpack.c.bf16 %v6005_v36, %v6004_v26  ;;  %v6009_v49 = vmax.f32 %v5753_v16, 0.0  ;;  %v5187_v4 = vpop.f32.mrb[112].mxu1  ;;  %v5520_v26 = vunpack.c.l.bf16 %v9101_v17 }
 0x66b   : > { %v5188_v29 = vadd.f32 %v5187_v4, %v11684_v62  ;;  %v5189_v19 = vpop.f32.mrb[113].mxu1 }
 0x66c   : > { %7015 = vst [vmem:[%s11368_s15 + $0x68] sm:$0xff] %v8077_v21  ;;  %v8079_v5 = vpack.c.bf16 %v6009_v49, %v6008_v31  ;;  %v5190_v46 = vadd.f32 %v5189_v19, %v11686_v1  ;;  %v5191_v15 = vpop.f32.mrb[114].mxu1  ;;  %v5521_v31 = vunpack.c.h.bf16 %v9101_v17 }
 0x66d   : > { %v5756_v61 = vadd.f32 %v5500_v32, %v5188_v29  ;;  %v5192_v35 = vadd.f32 %v5191_v15, %v11684_v62  ;;  %v5193_v50 = vpop.f32.mrb[115].mxu1 }
 0x66e   : > { %7017 = vst [vmem:[%s11368_s15 + $0x78] sm:$0xff] %v8079_v5  ;;  %v5757_v22 = vadd.f32 %v5501_v27, %v5190_v46  ;;  %v5194_v63 = vadd.f32 %v5193_v50, %v11686_v1  ;;  %v9102_v5 = vld [vmem:[%s9329_s8 + $0xe8] sm:$0xff] }
 0x66f   : > { %v6012_v28 = vmax.f32 %v5756_v61, 0.0  ;;  %v5760_v23 = vadd.f32 %v5504_v57, %v5192_v35  ;;  %5456 = vmatmul.mubr.bf16.gmra.mrb[92].mxu1 %v11328_v7  ;;  %v5524_v46 = vunpack.c.l.bf16 %v9102_v5  ;;  %v5525_v35 = vunpack.c.h.bf16 %v9102_v5 }
 0x670   : > { %v6013_v47 = vmax.f32 %v5757_v22, 0.0  ;;  %v5761_v51 = vadd.f32 %v5505_v9, %v5194_v63  ;;  %v9103_v63 = vld [vmem:[%s9329_s8 + $0xf8] sm:$0xff] }
 0x671   : > { %v6016_v58 = vmax.f32 %v5760_v23, 0.0 }
 0x672   : > { %v8081_v13 = vpack.c.bf16 %v6013_v47, %v6012_v28  ;;  %v6017_v6 = vmax.f32 %v5761_v51, 0.0  ;;  %v5197_v8 = vpop.f32.mrb[116].mxu1  ;;  %v5528_v28 = vunpack.c.l.bf16 %v9103_v63 }
 0x673   : > { %v5198_v59 = vadd.f32 %v5197_v8, %v11684_v62  ;;  %v5199_v40 = vpop.f32.mrb[117].mxu1 }
 0x674   : > { %7019 = vst [vmem:[%s11368_s15 + $0x88] sm:$0xff] %v8081_v13  ;;  %v8083_v45 = vpack.c.bf16 %v6017_v6, %v6016_v58  ;;  %v5200_v7 = vadd.f32 %v5199_v40, %v11686_v1  ;;  %v5201_v38 = vpop.f32.mrb[118].mxu1  ;;  %v5529_v58 = vunpack.c.h.bf16 %v9103_v63 }
 0x675   : > { %v5764_v48 = vadd.f32 %v5508_v42, %v5198_v59  ;;  %v5202_v2 = vadd.f32 %v5201_v38, %v11684_v62  ;;  %v5203_v53 = vpop.f32.mrb[119].mxu1 }
 0x676   : > { %7021 = vst [vmem:[%s11368_s15 + $0x98] sm:$0xff] %v8083_v45  ;;  %v5765_v37 = vadd.f32 %v5509_v56, %v5200_v7  ;;  %v5204_v39 = vadd.f32 %v5203_v53, %v11686_v1  ;;  %v9104_v45 = vld [vmem:[%s9329_s8 + $0x108] sm:$0xff] }
 0x677   : > { %v6020_v11 = vmax.f32 %v5764_v48, 0.0  ;;  %v5768_v52 = vadd.f32 %v5512_v54, %v5202_v2  ;;  %v5532_v7 = vunpack.c.l.bf16 %v9104_v45  ;;  %v5533_v2 = vunpack.c.h.bf16 %v9104_v45 }
 0x678   : > { %v6021_v55 = vmax.f32 %v5765_v37, 0.0  ;;  %v5769_v20 = vadd.f32 %v5513_v41, %v5204_v39  ;;  %v9105_v39 = vld [vmem:[%s9329_s8 + $0x118] sm:$0xff] }
 0x679   : > { %v6024_v24 = vmax.f32 %v5768_v52, 0.0 }
 0x67a   : > { %v8085_v34 = vpack.c.bf16 %v6021_v55, %v6020_v11  ;;  %v6025_v18 = vmax.f32 %v5769_v20, 0.0  ;;  %v5207_v10 = vpop.f32.mrb[120].mxu1  ;;  %v5536_v11 = vunpack.c.l.bf16 %v9105_v39 }
 0x67b   : > { %v5208_v0 = vadd.f32 %v5207_v10, %v11684_v62  ;;  %v5209_v44 = vpop.f32.mrb[121].mxu1 }
 0x67c   : > { %7023 = vst [vmem:[%s11368_s15 + $0xa8] sm:$0xff] %v8085_v34  ;;  %v8087_v43 = vpack.c.bf16 %v6025_v18, %v6024_v24  ;;  %v5210_v36 = vadd.f32 %v5209_v44, %v11686_v1  ;;  %v5211_v16 = vpop.f32.mrb[122].mxu1  ;;  %v5537_v24 = vunpack.c.h.bf16 %v9105_v39 }
 0x67d   : > { %v5772_v3 = vadd.f32 %v5516_v60, %v5208_v0  ;;  %v5212_v32 = vadd.f32 %v5211_v16, %v11684_v62  ;;  %v5213_v21 = vpop.f32.mrb[123].mxu1 }
 0x67e   : > { %7025 = vst [vmem:[%s11368_s15 + $0xb8] sm:$0xff] %v8087_v43  ;;  %v5773_v49 = vadd.f32 %v5517_v12, %v5210_v36  ;;  %v5214_v4 = vadd.f32 %v5213_v21, %v11686_v1  ;;  %v9106_v43 = vld [vmem:[%s9329_s8 + $0x128] sm:$0xff] }
 0x67f   : > { %v6028_v27 = vmax.f32 %v5772_v3, 0.0  ;;  %v5776_v29 = vadd.f32 %v5520_v26, %v5212_v32  ;;  %v5540_v36 = vunpack.c.l.bf16 %v9106_v43  ;;  %v5541_v32 = vunpack.c.h.bf16 %v9106_v43 }
 0x680   : > { %v6029_v19 = vmax.f32 %v5773_v49, 0.0  ;;  %v5777_v25 = vadd.f32 %v5521_v31, %v5214_v4  ;;  %v9107_v4 = vld [vmem:[%s9329_s8 + $0x138] sm:$0xff] }
 0x681   : > { %v6032_v57 = vmax.f32 %v5776_v29, 0.0 }
 0x682   : > { %v8089_v15 = vpack.c.bf16 %v6029_v19, %v6028_v27  ;;  %v6033_v9 = vmax.f32 %v5777_v25, 0.0  ;;  %v5217_v61 = vpop.f32.mrb[124].mxu1  ;;  %v5544_v27 = vunpack.c.l.bf16 %v9107_v4 }
 0x683   : > { %v5218_v50 = vadd.f32 %v5217_v61, %v11684_v62  ;;  %v5219_v22 = vpop.f32.mrb[125].mxu1 }
 0x684   : > { %7027 = vst [vmem:[%s11368_s15 + $0xc8] sm:$0xff] %v8089_v15  ;;  %v8091_v23 = vpack.c.bf16 %v6033_v9, %v6032_v57  ;;  %v5220_v47 = vadd.f32 %v5219_v22, %v11686_v1  ;;  %v5221_v51 = vpop.f32.mrb[126].mxu1  ;;  %v5545_v57 = vunpack.c.h.bf16 %v9107_v4 }
 0x685   : > { %v5780_v33 = vadd.f32 %v5524_v46, %v5218_v50  ;;  %v5222_v42 = vadd.f32 %v5221_v51, %v11684_v62  ;;  %v5223_v13 = vpop.f32.mrb[127].mxu1 }
 0x686   : > { %7029 = vst [vmem:[%s11368_s15 + $0xd8] sm:$0xff] %v8091_v23  ;;  %v5781_v6 = vadd.f32 %v5525_v35, %v5220_v47  ;;  %v5224_v8 = vadd.f32 %v5223_v13, %v11686_v1  ;;  %v9108_v23 = vld [vmem:[%s9329_s8 + $0x148] sm:$0xff] }
 0x687   : > { %v6036_v56 = vmax.f32 %v5780_v33, 0.0  ;;  %v5784_v59 = vadd.f32 %v5528_v28, %v5222_v42  ;;  %v5548_v47 = vunpack.c.l.bf16 %v9108_v23  ;;  %v5549_v42 = vunpack.c.h.bf16 %v9108_v23 }
 0x688   : > { %v6037_v40 = vmax.f32 %v5781_v6, 0.0  ;;  %v5785_v14 = vadd.f32 %v5529_v58, %v5224_v8  ;;  %v9109_v8 = vld [vmem:[%s9329_s8 + $0x158] sm:$0xff] }
 0x689   : > { %v6040_v54 = vmax.f32 %v5784_v59, 0.0 }
 0x68a   : > { %v8093_v38 = vpack.c.bf16 %v6037_v40, %v6036_v56  ;;  %v6041_v41 = vmax.f32 %v5785_v14, 0.0  ;;  %v5227_v48 = vpop.f32.mrb[0].mxu1  ;;  %v5552_v56 = vunpack.c.l.bf16 %v9109_v8 }
 0x68b   : > { %v5228_v53 = vadd.f32 %v5227_v48, %v11684_v62  ;;  %v5229_v37 = vpop.f32.mrb[1].mxu1 }
 0x68c   : > { %7031 = vst [vmem:[%s11368_s15 + $0xe8] sm:$0xff] %v8093_v38  ;;  %v8095_v52 = vpack.c.bf16 %v6041_v41, %v6040_v54  ;;  %v5230_v55 = vadd.f32 %v5229_v37, %v11686_v1  ;;  %v5231_v20 = vpop.f32.mrb[2].mxu1  ;;  %v5553_v54 = vunpack.c.h.bf16 %v9109_v8 }
 0x68d   : > { %v5788_v30 = vadd.f32 %v5532_v7, %v5228_v53  ;;  %v5232_v60 = vadd.f32 %v5231_v20, %v11684_v62  ;;  %v5233_v34 = vpop.f32.mrb[3].mxu1 }
 0x68e   : > { %7033 = vst [vmem:[%s11368_s15 + $0xf8] sm:$0xff] %v8095_v52  ;;  %v5789_v18 = vadd.f32 %v5533_v2, %v5230_v55  ;;  %v5234_v10 = vadd.f32 %v5233_v34, %v11686_v1  ;;  %v9110_v52 = vld [vmem:[%s9329_s8 + $0x168] sm:$0xff] }
 0x68f   : > { %v6044_v12 = vmax.f32 %v5788_v30, 0.0  ;;  %v5792_v0 = vadd.f32 %v5536_v11, %v5232_v60  ;;  %v5556_v55 = vunpack.c.l.bf16 %v9110_v52  ;;  %v5557_v60 = vunpack.c.h.bf16 %v9110_v52 }
 0x690   : > { %v6045_v44 = vmax.f32 %v5789_v18, 0.0  ;;  %v5793_v17 = vadd.f32 %v5537_v24, %v5234_v10  ;;  %v9111_v10 = vld [vmem:[%s9329_s8 + $0x178] sm:$0xff] }
 0x691   : > { %v6048_v26 = vmax.f32 %v5792_v0, 0.0 }
 0x692   : > { %v8097_v16 = vpack.c.bf16 %v6045_v44, %v6044_v12  ;;  %v6049_v31 = vmax.f32 %v5793_v17, 0.0  ;;  %v5237_v3 = vpop.f32.mrb[4].mxu1  ;;  %v5560_v12 = vunpack.c.l.bf16 %v9111_v10 }
 0x693   : > { %v5238_v21 = vadd.f32 %v5237_v3, %v11684_v62  ;;  %v5239_v49 = vpop.f32.mrb[5].mxu1 }
 0x694   : > { %7035 = vst [vmem:[%s11368_s15 + $0x108] sm:$0xff] %v8097_v16  ;;  %v8099_v29 = vpack.c.bf16 %v6049_v31, %v6048_v26  ;;  %v5240_v19 = vadd.f32 %v5239_v49, %v11686_v1  ;;  %v5241_v25 = vpop.f32.mrb[6].mxu1  ;;  %v5561_v26 = vunpack.c.h.bf16 %v9111_v10 }
 0x695   : > { %v5796_v5 = vadd.f32 %v5540_v36, %v5238_v21  ;;  %v5242_v46 = vadd.f32 %v5241_v25, %v11684_v62  ;;  %v5243_v15 = vpop.f32.mrb[7].mxu1 }
 0x696   : > { %7037 = vst [vmem:[%s11368_s15 + $0x118] sm:$0xff] %v8099_v29  ;;  %v5797_v9 = vadd.f32 %v5541_v32, %v5240_v19  ;;  %v5244_v61 = vadd.f32 %v5243_v15, %v11686_v1  ;;  %v9112_v29 = vld [vmem:[%s9329_s8 + $0x188] sm:$0xff] }
 0x697   : > { %v6052_v35 = vmax.f32 %v5796_v5, 0.0  ;;  %v5800_v50 = vadd.f32 %v5544_v27, %v5242_v46  ;;  %v5564_v19 = vunpack.c.l.bf16 %v9112_v29  ;;  %v5565_v46 = vunpack.c.h.bf16 %v9112_v29 }
 0x698   : > { %v6053_v22 = vmax.f32 %v5797_v9, 0.0  ;;  %v5801_v63 = vadd.f32 %v5545_v57, %v5244_v61  ;;  %v9113_v61 = vld [vmem:[%s9329_s8 + $0x198] sm:$0xff] }
 0x699   : > { %v6056_v28 = vmax.f32 %v5800_v50, 0.0 }
 0x69a   : > { %v8101_v51 = vpack.c.bf16 %v6053_v22, %v6052_v35  ;;  %v6057_v58 = vmax.f32 %v5801_v63, 0.0  ;;  %v5247_v33 = vpop.f32.mrb[8].mxu1  ;;  %v5568_v35 = vunpack.c.l.bf16 %v9113_v61 }
 0x69b   : > { %v5248_v13 = vadd.f32 %v5247_v33, %v11684_v62  ;;  %v5249_v6 = vpop.f32.mrb[9].mxu1 }
 0x69c   : > { %7039 = vst [vmem:[%s11368_s15 + $0x128] sm:$0xff] %v8101_v51  ;;  %v8103_v59 = vpack.c.bf16 %v6057_v58, %v6056_v28  ;;  %v5250_v40 = vadd.f32 %v5249_v6, %v11686_v1  ;;  %v5251_v14 = vpop.f32.mrb[10].mxu1  ;;  %v5569_v28 = vunpack.c.h.bf16 %v9113_v61 }
 0x69d   : > { %v5804_v45 = vadd.f32 %v5548_v47, %v5248_v13  ;;  %v5252_v7 = vadd.f32 %v5251_v14, %v11684_v62  ;;  %v5253_v38 = vpop.f32.mrb[11].mxu1 }
 0x69e   : > { %7041 = vst [vmem:[%s11368_s15 + $0x138] sm:$0xff] %v8103_v59  ;;  %v5805_v41 = vadd.f32 %v5549_v42, %v5250_v40  ;;  %v5254_v48 = vadd.f32 %v5253_v38, %v11686_v1  ;;  %v9114_v59 = vld [vmem:[%s9329_s8 + $0x1a8] sm:$0xff] }
 0x69f   : > { %v6060_v2 = vmax.f32 %v5804_v45, 0.0  ;;  %v5808_v53 = vadd.f32 %v5552_v56, %v5252_v7  ;;  %v5572_v40 = vunpack.c.l.bf16 %v9114_v59  ;;  %v5573_v7 = vunpack.c.h.bf16 %v9114_v59 }
 0x6a0   : > { %v6061_v37 = vmax.f32 %v5805_v41, 0.0  ;;  %v5809_v39 = vadd.f32 %v5553_v54, %v5254_v48  ;;  %v9115_v48 = vld [vmem:[%s9329_s8 + $0x1b8] sm:$0xff] }
 0x6a1   : > { %v6064_v11 = vmax.f32 %v5808_v53, 0.0 }
 0x6a2   : > { %v8105_v20 = vpack.c.bf16 %v6061_v37, %v6060_v2  ;;  %v6065_v24 = vmax.f32 %v5809_v39, 0.0  ;;  %v5257_v30 = vpop.f32.mrb[12].mxu1  ;;  %v5576_v2 = vunpack.c.l.bf16 %v9115_v48 }
 0x6a3   : > { %v5258_v34 = vadd.f32 %v5257_v30, %v11684_v62  ;;  %v5259_v18 = vpop.f32.mrb[13].mxu1 }
 0x6a4   : > { %7043 = vst [vmem:[%s11368_s15 + $0x148] sm:$0xff] %v8105_v20  ;;  %v8107_v0 = vpack.c.bf16 %v6065_v24, %v6064_v11  ;;  %v5260_v44 = vadd.f32 %v5259_v18, %v11686_v1  ;;  %v5261_v17 = vpop.f32.mrb[14].mxu1  ;;  %v5577_v11 = vunpack.c.h.bf16 %v9115_v48 }
 0x6a5   : > { %v5812_v43 = vadd.f32 %v5556_v55, %v5258_v34  ;;  %v5262_v36 = vadd.f32 %v5261_v17, %v11684_v62  ;;  %v5263_v16 = vpop.f32.mrb[15].mxu1 }
 0x6a6   : > { %7045 = vst [vmem:[%s11368_s15 + $0x158] sm:$0xff] %v8107_v0  ;;  %v5813_v31 = vadd.f32 %v5557_v60, %v5260_v44  ;;  %v5264_v3 = vadd.f32 %v5263_v16, %v11686_v1  ;;  %v9116_v0 = vld [vmem:[%s9329_s8 + $0x1c8] sm:$0xff] }
 0x6a7   : > { %v6068_v32 = vmax.f32 %v5812_v43, 0.0  ;;  %v5816_v21 = vadd.f32 %v5560_v12, %v5262_v36  ;;  %v5580_v44 = vunpack.c.l.bf16 %v9116_v0  ;;  %v5581_v36 = vunpack.c.h.bf16 %v9116_v0 }
 0x6a8   : > { %v6069_v49 = vmax.f32 %v5813_v31, 0.0  ;;  %v5817_v4 = vadd.f32 %v5561_v26, %v5264_v3  ;;  %v9117_v3 = vld [vmem:[%s9329_s8 + $0x1d8] sm:$0xff] }
 0x6a9   : > { %v6072_v27 = vmax.f32 %v5816_v21, 0.0 }
 0x6aa   : > { %v8109_v25 = vpack.c.bf16 %v6069_v49, %v6068_v32  ;;  %v6073_v57 = vmax.f32 %v5817_v4, 0.0  ;;  %v5267_v5 = vpop.f32.mrb[16].mxu1  ;;  %v5584_v32 = vunpack.c.l.bf16 %v9117_v3 }
 0x6ab   : > { %v5268_v15 = vadd.f32 %v5267_v5, %v11684_v62  ;;  %v5269_v9 = vpop.f32.mrb[17].mxu1 }
 0x6ac   : > { %7047 = vst [vmem:[%s11368_s15 + $0x168] sm:$0xff] %v8109_v25  ;;  %v8111_v50 = vpack.c.bf16 %v6073_v57, %v6072_v27  ;;  %v5270_v22 = vadd.f32 %v5269_v9, %v11686_v1  ;;  %v5271_v63 = vpop.f32.mrb[18].mxu1  ;;  %v5585_v27 = vunpack.c.h.bf16 %v9117_v3 }
 0x6ad   : > { %v5820_v23 = vadd.f32 %v5564_v19, %v5268_v15  ;;  %v5272_v47 = vadd.f32 %v5271_v63, %v11684_v62  ;;  %v5273_v51 = vpop.f32.mrb[19].mxu1 }
 0x6ae   : > { %7049 = vst [vmem:[%s11368_s15 + $0x178] sm:$0xff] %v8111_v50  ;;  %v5821_v58 = vadd.f32 %v5565_v46, %v5270_v22  ;;  %v5274_v33 = vadd.f32 %v5273_v51, %v11686_v1  ;;  %v9118_v50 = vld [vmem:[%s9329_s8 + $0x1e8] sm:$0xff] }
 0x6af   : > { %v6076_v42 = vmax.f32 %v5820_v23, 0.0  ;;  %v5824_v13 = vadd.f32 %v5568_v35, %v5272_v47  ;;  %v5588_v22 = vunpack.c.l.bf16 %v9118_v50  ;;  %v5589_v47 = vunpack.c.h.bf16 %v9118_v50 }
 0x6b0   : > { %v6077_v6 = vmax.f32 %v5821_v58, 0.0  ;;  %v5825_v8 = vadd.f32 %v5569_v28, %v5274_v33  ;;  %v9119_v33 = vld [vmem:[%s9329_s8 + $0x1f8] sm:$0xff] }
 0x6b1   : > { %v6080_v56 = vmax.f32 %v5824_v13, 0.0 }
 0x6b2   : > { %v8113_v14 = vpack.c.bf16 %v6077_v6, %v6076_v42  ;;  %v6081_v54 = vmax.f32 %v5825_v8, 0.0  ;;  %v5277_v45 = vpop.f32.mrb[20].mxu1  ;;  %v5592_v42 = vunpack.c.l.bf16 %v9119_v33 }
 0x6b3   : > { %v5278_v38 = vadd.f32 %v5277_v45, %v11684_v62  ;;  %v5279_v41 = vpop.f32.mrb[21].mxu1 }
 0x6b4   : > { %7051 = vst [vmem:[%s11368_s15 + $0x188] sm:$0xff] %v8113_v14  ;;  %v8115_v53 = vpack.c.bf16 %v6081_v54, %v6080_v56  ;;  %v5280_v37 = vadd.f32 %v5279_v41, %v11686_v1  ;;  %v5281_v39 = vpop.f32.mrb[22].mxu1  ;;  %v5593_v56 = vunpack.c.h.bf16 %v9119_v33 }
 0x6b5   : > { %v5828_v52 = vadd.f32 %v5572_v40, %v5278_v38  ;;  %v5282_v55 = vadd.f32 %v5281_v39, %v11684_v62  ;;  %v5283_v20 = vpop.f32.mrb[23].mxu1 }
 0x6b6   : > { %7053 = vst [vmem:[%s11368_s15 + $0x198] sm:$0xff] %v8115_v53  ;;  %v5829_v24 = vadd.f32 %v5573_v7, %v5280_v37  ;;  %v5284_v30 = vadd.f32 %v5283_v20, %v11686_v1  ;;  %v9120_v53 = vld [vmem:[%s9329_s8 + $0x208] sm:$0xff] }
 0x6b7   : > { %v6084_v60 = vmax.f32 %v5828_v52, 0.0  ;;  %v5832_v34 = vadd.f32 %v5576_v2, %v5282_v55  ;;  %v5596_v37 = vunpack.c.l.bf16 %v9120_v53  ;;  %v5597_v55 = vunpack.c.h.bf16 %v9120_v53 }
 0x6b8   : > { %v6085_v18 = vmax.f32 %v5829_v24, 0.0  ;;  %v5833_v10 = vadd.f32 %v5577_v11, %v5284_v30  ;;  %v9121_v30 = vld [vmem:[%s9329_s8 + $0x218] sm:$0xff] }
 0x6b9   : > { %v6088_v12 = vmax.f32 %v5832_v34, 0.0 }
 0x6ba   : > { %v8117_v17 = vpack.c.bf16 %v6085_v18, %v6084_v60  ;;  %v6089_v26 = vmax.f32 %v5833_v10, 0.0  ;;  %v5287_v43 = vpop.f32.mrb[24].mxu1  ;;  %v5600_v60 = vunpack.c.l.bf16 %v9121_v30 }
 0x6bb   : > { %v5288_v16 = vadd.f32 %v5287_v43, %v11684_v62  ;;  %v5289_v31 = vpop.f32.mrb[25].mxu1 }
 0x6bc   : > { %7055 = vst [vmem:[%s11368_s15 + $0x1a8] sm:$0xff] %v8117_v17  ;;  %v8119_v21 = vpack.c.bf16 %v6089_v26, %v6088_v12  ;;  %v5290_v49 = vadd.f32 %v5289_v31, %v11686_v1  ;;  %v5291_v4 = vpop.f32.mrb[26].mxu1  ;;  %v5601_v12 = vunpack.c.h.bf16 %v9121_v30 }
 0x6bd   : > { %v5836_v29 = vadd.f32 %v5580_v44, %v5288_v16  ;;  %v5292_v19 = vadd.f32 %v5291_v4, %v11684_v62  ;;  %v5293_v25 = vpop.f32.mrb[27].mxu1 }
 0x6be   : > { %7057 = vst [vmem:[%s11368_s15 + $0x1b8] sm:$0xff] %v8119_v21  ;;  %v5837_v57 = vadd.f32 %v5581_v36, %v5290_v49  ;;  %v5294_v5 = vadd.f32 %v5293_v25, %v11686_v1  ;;  %v9122_v21 = vld [vmem:[%s9329_s8 + $0x228] sm:$0xff] }
 0x6bf   : > { %v6092_v46 = vmax.f32 %v5836_v29, 0.0  ;;  %v5840_v15 = vadd.f32 %v5584_v32, %v5292_v19  ;;  %v5604_v49 = vunpack.c.l.bf16 %v9122_v21  ;;  %v5605_v19 = vunpack.c.h.bf16 %v9122_v21 }
 0x6c0   : > { %v6093_v9 = vmax.f32 %v5837_v57, 0.0  ;;  %v5841_v61 = vadd.f32 %v5585_v27, %v5294_v5  ;;  %v9123_v5 = vld [vmem:[%s9329_s8 + $0x238] sm:$0xff] }
 0x6c1   : > { %v6096_v35 = vmax.f32 %v5840_v15, 0.0 }
 0x6c2   : > { %v8121_v63 = vpack.c.bf16 %v6093_v9, %v6092_v46  ;;  %v6097_v28 = vmax.f32 %v5841_v61, 0.0  ;;  %v5297_v23 = vpop.f32.mrb[28].mxu1  ;;  %v5608_v46 = vunpack.c.l.bf16 %v9123_v5 }
 0x6c3   : > { %v5298_v51 = vadd.f32 %v5297_v23, %v11684_v62  ;;  %v5299_v58 = vpop.f32.mrb[29].mxu1 }
 0x6c4   : > { %7059 = vst [vmem:[%s11368_s15 + $0x1c8] sm:$0xff] %v8121_v63  ;;  %v8123_v13 = vpack.c.bf16 %v6097_v28, %v6096_v35  ;;  %v5300_v6 = vadd.f32 %v5299_v58, %v11686_v1  ;;  %v5301_v8 = vpop.f32.mrb[30].mxu1  ;;  %v5609_v35 = vunpack.c.h.bf16 %v9123_v5 }
 0x6c5   : > { %v5844_v59 = vadd.f32 %v5588_v22, %v5298_v51  ;;  %v5302_v40 = vadd.f32 %v5301_v8, %v11684_v62  ;;  %v5303_v14 = vpop.f32.mrb[31].mxu1 }
 0x6c6   : > { %7061 = vst [vmem:[%s11368_s15 + $0x1d8] sm:$0xff] %v8123_v13  ;;  %v5845_v54 = vadd.f32 %v5589_v47, %v5300_v6  ;;  %v5304_v45 = vadd.f32 %v5303_v14, %v11686_v1  ;;  %v9124_v13 = vld [vmem:[%s9329_s8 + $0x248] sm:$0xff] }
 0x6c7   : > { %v6100_v7 = vmax.f32 %v5844_v59, 0.0  ;;  %v5848_v38 = vadd.f32 %v5592_v42, %v5302_v40  ;;  %v5612_v6 = vunpack.c.l.bf16 %v9124_v13  ;;  %v5613_v40 = vunpack.c.h.bf16 %v9124_v13 }
 0x6c8   : > { %v6101_v41 = vmax.f32 %v5845_v54, 0.0  ;;  %v5849_v48 = vadd.f32 %v5593_v56, %v5304_v45  ;;  %v9125_v45 = vld [vmem:[%s9329_s8 + $0x258] sm:$0xff] }
 0x6c9   : > { %v6104_v2 = vmax.f32 %v5848_v38, 0.0 }
 0x6ca   : > { %v8125_v39 = vpack.c.bf16 %v6101_v41, %v6100_v7  ;;  %v6105_v11 = vmax.f32 %v5849_v48, 0.0  ;;  %v5307_v52 = vpop.f32.mrb[32].mxu1  ;;  %v5616_v7 = vunpack.c.l.bf16 %v9125_v45 }
 0x6cb   : > { %v5308_v20 = vadd.f32 %v5307_v52, %v11684_v62  ;;  %v5309_v24 = vpop.f32.mrb[33].mxu1 }
 0x6cc   : > { %7063 = vst [vmem:[%s11368_s15 + $0x1e8] sm:$0xff] %v8125_v39  ;;  %v8127_v34 = vpack.c.bf16 %v6105_v11, %v6104_v2  ;;  %v5310_v18 = vadd.f32 %v5309_v24, %v11686_v1  ;;  %v5311_v10 = vpop.f32.mrb[34].mxu1  ;;  %v5617_v2 = vunpack.c.h.bf16 %v9125_v45 }
 0x6cd   : > { %v5852_v0 = vadd.f32 %v5596_v37, %v5308_v20  ;;  %v5312_v44 = vadd.f32 %v5311_v10, %v11684_v62  ;;  %v5313_v17 = vpop.f32.mrb[35].mxu1 }
 0x6ce   : > { %7065 = vst [vmem:[%s11368_s15 + $0x1f8] sm:$0xff] %v8127_v34  ;;  %v5853_v26 = vadd.f32 %v5597_v55, %v5310_v18  ;;  %v5314_v43 = vadd.f32 %v5313_v17, %v11686_v1  ;;  %v9126_v34 = vld [vmem:[%s9329_s8 + $0x268] sm:$0xff] }
 0x6cf   : > { %v6108_v36 = vmax.f32 %v5852_v0, 0.0  ;;  %v5856_v16 = vadd.f32 %v5600_v60, %v5312_v44  ;;  %v5620_v18 = vunpack.c.l.bf16 %v9126_v34  ;;  %v5621_v44 = vunpack.c.h.bf16 %v9126_v34 }
 0x6d0   : > { %v6109_v31 = vmax.f32 %v5853_v26, 0.0  ;;  %v5857_v3 = vadd.f32 %v5601_v12, %v5314_v43  ;;  %v9127_v43 = vld [vmem:[%s9329_s8 + $0x278] sm:$0xff] }
 0x6d1   : > { %v6112_v32 = vmax.f32 %v5856_v16, 0.0 }
 0x6d2   : > { %v8129_v4 = vpack.c.bf16 %v6109_v31, %v6108_v36  ;;  %v6113_v27 = vmax.f32 %v5857_v3, 0.0  ;;  %v5317_v29 = vpop.f32.mrb[36].mxu1  ;;  %v5624_v36 = vunpack.c.l.bf16 %v9127_v43 }
 0x6d3   : > { %v5318_v25 = vadd.f32 %v5317_v29, %v11684_v62  ;;  %v5319_v57 = vpop.f32.mrb[37].mxu1 }
 0x6d4   : > { %7067 = vst [vmem:[%s11368_s15 + $0x208] sm:$0xff] %v8129_v4  ;;  %v8131_v15 = vpack.c.bf16 %v6113_v27, %v6112_v32  ;;  %v5320_v9 = vadd.f32 %v5319_v57, %v11686_v1  ;;  %v5321_v61 = vpop.f32.mrb[38].mxu1  ;;  %v5625_v32 = vunpack.c.h.bf16 %v9127_v43 }
 0x6d5   : > { %v5860_v50 = vadd.f32 %v5604_v49, %v5318_v25  ;;  %v5322_v22 = vadd.f32 %v5321_v61, %v11684_v62  ;;  %v5323_v63 = vpop.f32.mrb[39].mxu1 }
 0x6d6   : > { %7069 = vst [vmem:[%s11368_s15 + $0x218] sm:$0xff] %v8131_v15  ;;  %v5861_v28 = vadd.f32 %v5605_v19, %v5320_v9  ;;  %v5324_v23 = vadd.f32 %v5323_v63, %v11686_v1  ;;  %v9128_v15 = vld [vmem:[%s9329_s8 + $0x288] sm:$0xff] }
 0x6d7   : > { %v6116_v47 = vmax.f32 %v5860_v50, 0.0  ;;  %v5864_v51 = vadd.f32 %v5608_v46, %v5322_v22  ;;  %v5628_v9 = vunpack.c.l.bf16 %v9128_v15  ;;  %v5629_v22 = vunpack.c.h.bf16 %v9128_v15 }
 0x6d8   : > { %v6117_v58 = vmax.f32 %v5861_v28, 0.0  ;;  %v5865_v33 = vadd.f32 %v5609_v35, %v5324_v23  ;;  %v9129_v23 = vld [vmem:[%s9329_s8 + $0x298] sm:$0xff] }
 0x6d9   : > { %v6120_v42 = vmax.f32 %v5864_v51, 0.0 }
 0x6da   : > { %v8133_v8 = vpack.c.bf16 %v6117_v58, %v6116_v47  ;;  %v6121_v56 = vmax.f32 %v5865_v33, 0.0  ;;  %v5327_v59 = vpop.f32.mrb[40].mxu1  ;;  %v5632_v47 = vunpack.c.l.bf16 %v9129_v23 }
 0x6db   : > { %v5328_v14 = vadd.f32 %v5327_v59, %v11684_v62  ;;  %v5329_v54 = vpop.f32.mrb[41].mxu1 }
 0x6dc   : > { %7071 = vst [vmem:[%s11368_s15 + $0x228] sm:$0xff] %v8133_v8  ;;  %v8135_v38 = vpack.c.bf16 %v6121_v56, %v6120_v42  ;;  %v5330_v41 = vadd.f32 %v5329_v54, %v11686_v1  ;;  %v5331_v48 = vpop.f32.mrb[42].mxu1  ;;  %v5633_v42 = vunpack.c.h.bf16 %v9129_v23 }
 0x6dd   : > { %v5868_v53 = vadd.f32 %v5612_v6, %v5328_v14  ;;  %v5332_v37 = vadd.f32 %v5331_v48, %v11684_v62  ;;  %v5333_v39 = vpop.f32.mrb[43].mxu1 }
 0x6de   : > { %7073 = vst [vmem:[%s11368_s15 + $0x238] sm:$0xff] %v8135_v38  ;;  %v5869_v11 = vadd.f32 %v5613_v40, %v5330_v41  ;;  %v5334_v52 = vadd.f32 %v5333_v39, %v11686_v1  ;;  %v9130_v38 = vld [vmem:[%s9329_s8 + $0x2a8] sm:$0xff] }
 0x6df   : > { %v6124_v55 = vmax.f32 %v5868_v53, 0.0  ;;  %v5872_v20 = vadd.f32 %v5616_v7, %v5332_v37  ;;  %v5636_v41 = vunpack.c.l.bf16 %v9130_v38  ;;  %v5637_v37 = vunpack.c.h.bf16 %v9130_v38 }
 0x6e0   : > { %v6125_v24 = vmax.f32 %v5869_v11, 0.0  ;;  %v5873_v30 = vadd.f32 %v5617_v2, %v5334_v52  ;;  %v9131_v52 = vld [vmem:[%s9329_s8 + $0x2b8] sm:$0xff] }
 0x6e1   : > { %v6128_v60 = vmax.f32 %v5872_v20, 0.0 }
 0x6e2   : > { %v8137_v10 = vpack.c.bf16 %v6125_v24, %v6124_v55  ;;  %v6129_v12 = vmax.f32 %v5873_v30, 0.0  ;;  %v5337_v0 = vpop.f32.mrb[44].mxu1  ;;  %v5640_v55 = vunpack.c.l.bf16 %v9131_v52 }
 0x6e3   : > { %v5338_v17 = vadd.f32 %v5337_v0, %v11684_v62  ;;  %v5339_v26 = vpop.f32.mrb[45].mxu1 }
 0x6e4   : > { %7075 = vst [vmem:[%s11368_s15 + $0x248] sm:$0xff] %v8137_v10  ;;  %v8139_v16 = vpack.c.bf16 %v6129_v12, %v6128_v60  ;;  %v5340_v31 = vadd.f32 %v5339_v26, %v11686_v1  ;;  %v5341_v3 = vpop.f32.mrb[46].mxu1  ;;  %v5641_v60 = vunpack.c.h.bf16 %v9131_v52 }
 0x6e5   : > { %v5876_v21 = vadd.f32 %v5620_v18, %v5338_v17  ;;  %v5342_v49 = vadd.f32 %v5341_v3, %v11684_v62  ;;  %v5343_v4 = vpop.f32.mrb[47].mxu1 }
 0x6e6   : > { %7077 = vst [vmem:[%s11368_s15 + $0x258] sm:$0xff] %v8139_v16  ;;  %v5877_v27 = vadd.f32 %v5621_v44, %v5340_v31  ;;  %v5344_v29 = vadd.f32 %v5343_v4, %v11686_v1  ;;  %v9132_v16 = vld [vmem:[%s9329_s8 + $0x2c8] sm:$0xff] }
 0x6e7   : > { %v6132_v19 = vmax.f32 %v5876_v21, 0.0  ;;  %v5880_v25 = vadd.f32 %v5624_v36, %v5342_v49  ;;  %v5644_v31 = vunpack.c.l.bf16 %v9132_v16  ;;  %v5645_v49 = vunpack.c.h.bf16 %v9132_v16 }
 0x6e8   : > { %v6133_v57 = vmax.f32 %v5877_v27, 0.0  ;;  %v5881_v5 = vadd.f32 %v5625_v32, %v5344_v29  ;;  %v9133_v29 = vld [vmem:[%s9329_s8 + $0x2d8] sm:$0xff] }
 0x6e9   : > { %v6136_v46 = vmax.f32 %v5880_v25, 0.0 }
 0x6ea   : > { %v8141_v61 = vpack.c.bf16 %v6133_v57, %v6132_v19  ;;  %v6137_v35 = vmax.f32 %v5881_v5, 0.0  ;;  %v5347_v50 = vpop.f32.mrb[48].mxu1  ;;  %v5648_v19 = vunpack.c.l.bf16 %v9133_v29 }
 0x6eb   : > { %v5348_v63 = vadd.f32 %v5347_v50, %v11684_v62  ;;  %v5349_v28 = vpop.f32.mrb[49].mxu1 }
 0x6ec   : > { %7079 = vst [vmem:[%s11368_s15 + $0x268] sm:$0xff] %v8141_v61  ;;  %v8143_v51 = vpack.c.bf16 %v6137_v35, %v6136_v46  ;;  %v5350_v58 = vadd.f32 %v5349_v28, %v11686_v1  ;;  %v5351_v33 = vpop.f32.mrb[50].mxu1  ;;  %v5649_v46 = vunpack.c.h.bf16 %v9133_v29 }
 0x6ed   : > { %v5884_v13 = vadd.f32 %v5628_v9, %v5348_v63  ;;  %v5352_v6 = vadd.f32 %v5351_v33, %v11684_v62  ;;  %v5353_v8 = vpop.f32.mrb[51].mxu1 }
 0x6ee   : > { %7081 = vst [vmem:[%s11368_s15 + $0x278] sm:$0xff] %v8143_v51  ;;  %v5885_v56 = vadd.f32 %v5629_v22, %v5350_v58  ;;  %v5354_v59 = vadd.f32 %v5353_v8, %v11686_v1  ;;  %v9134_v51 = vld [vmem:[%s9329_s8 + $0x2e8] sm:$0xff] }
 0x6ef   : > { %v6140_v40 = vmax.f32 %v5884_v13, 0.0  ;;  %v5888_v14 = vadd.f32 %v5632_v47, %v5352_v6  ;;  %v5652_v58 = vunpack.c.l.bf16 %v9134_v51  ;;  %v5653_v6 = vunpack.c.h.bf16 %v9134_v51 }
 0x6f0   : > { %v6141_v54 = vmax.f32 %v5885_v56, 0.0  ;;  %v5889_v45 = vadd.f32 %v5633_v42, %v5354_v59  ;;  %v9135_v59 = vld [vmem:[%s9329_s8 + $0x2f8] sm:$0xff] }
 0x6f1   : > { %v6144_v7 = vmax.f32 %v5888_v14, 0.0 }
 0x6f2   : > { %v8145_v48 = vpack.c.bf16 %v6141_v54, %v6140_v40  ;;  %v6145_v2 = vmax.f32 %v5889_v45, 0.0  ;;  %v5357_v53 = vpop.f32.mrb[52].mxu1  ;;  %v5656_v40 = vunpack.c.l.bf16 %v9135_v59 }
 0x6f3   : > { %v5358_v39 = vadd.f32 %v5357_v53, %v11684_v62  ;;  %v5359_v11 = vpop.f32.mrb[53].mxu1 }
 0x6f4   : > { %7083 = vst [vmem:[%s11368_s15 + $0x288] sm:$0xff] %v8145_v48  ;;  %v8147_v20 = vpack.c.bf16 %v6145_v2, %v6144_v7  ;;  %v5360_v24 = vadd.f32 %v5359_v11, %v11686_v1  ;;  %v5361_v30 = vpop.f32.mrb[54].mxu1  ;;  %v5657_v7 = vunpack.c.h.bf16 %v9135_v59 }
 0x6f5   : > { %v5892_v34 = vadd.f32 %v5636_v41, %v5358_v39  ;;  %v5362_v18 = vadd.f32 %v5361_v30, %v11684_v62  ;;  %v5363_v10 = vpop.f32.mrb[55].mxu1 }
 0x6f6   : > { %7085 = vst [vmem:[%s11368_s15 + $0x298] sm:$0xff] %v8147_v20  ;;  %v5893_v12 = vadd.f32 %v5637_v37, %v5360_v24  ;;  %v5364_v0 = vadd.f32 %v5363_v10, %v11686_v1  ;;  %v9136_v20 = vld [vmem:[%s9329_s8 + $0x308] sm:$0xff] }
 0x6f7   : > { %v6148_v44 = vmax.f32 %v5892_v34, 0.0  ;;  %v5896_v17 = vadd.f32 %v5640_v55, %v5362_v18  ;;  %v5660_v24 = vunpack.c.l.bf16 %v9136_v20  ;;  %v5661_v18 = vunpack.c.h.bf16 %v9136_v20 }
 0x6f8   : > { %v6149_v26 = vmax.f32 %v5893_v12, 0.0  ;;  %v5897_v43 = vadd.f32 %v5641_v60, %v5364_v0  ;;  %v9137_v0 = vld [vmem:[%s9329_s8 + $0x318] sm:$0xff] }
 0x6f9   : > { %v6152_v36 = vmax.f32 %v5896_v17, 0.0 }
 0x6fa   : > { %v8149_v3 = vpack.c.bf16 %v6149_v26, %v6148_v44  ;;  %v6153_v32 = vmax.f32 %v5897_v43, 0.0  ;;  %v5367_v21 = vpop.f32.mrb[56].mxu1  ;;  %v5664_v44 = vunpack.c.l.bf16 %v9137_v0 }
 0x6fb   : > { %v5368_v4 = vadd.f32 %v5367_v21, %v11684_v62  ;;  %v5369_v27 = vpop.f32.mrb[57].mxu1 }
 0x6fc   : > { %7087 = vst [vmem:[%s11368_s15 + $0x2a8] sm:$0xff] %v8149_v3  ;;  %v8151_v25 = vpack.c.bf16 %v6153_v32, %v6152_v36  ;;  %v5370_v57 = vadd.f32 %v5369_v27, %v11686_v1  ;;  %v5371_v5 = vpop.f32.mrb[58].mxu1  ;;  %v5665_v36 = vunpack.c.h.bf16 %v9137_v0 }
 0x6fd   : > { %v5900_v15 = vadd.f32 %v5644_v31, %v5368_v4  ;;  %v5372_v9 = vadd.f32 %v5371_v5, %v11684_v62  ;;  %v5373_v61 = vpop.f32.mrb[59].mxu1 }
 0x6fe   : > { %7089 = vst [vmem:[%s11368_s15 + $0x2b8] sm:$0xff] %v8151_v25  ;;  %v5901_v35 = vadd.f32 %v5645_v49, %v5370_v57  ;;  %v5374_v50 = vadd.f32 %v5373_v61, %v11686_v1  ;;  %v9138_v25 = vld [vmem:[%s9329_s8 + $0x328] sm:$0xff] }
 0x6ff   : > { %v6156_v22 = vmax.f32 %v5900_v15, 0.0  ;;  %v5904_v63 = vadd.f32 %v5648_v19, %v5372_v9  ;;  %v5668_v57 = vunpack.c.l.bf16 %v9138_v25  ;;  %v5669_v9 = vunpack.c.h.bf16 %v9138_v25 }
 0x700   : > { %v6157_v28 = vmax.f32 %v5901_v35, 0.0  ;;  %v5905_v23 = vadd.f32 %v5649_v46, %v5374_v50  ;;  %v9139_v50 = vld [vmem:[%s9329_s8 + $0x338] sm:$0xff] }
 0x701   : > { %v6160_v47 = vmax.f32 %v5904_v63, 0.0 }
 0x702   : > { %v8153_v33 = vpack.c.bf16 %v6157_v28, %v6156_v22  ;;  %v6161_v42 = vmax.f32 %v5905_v23, 0.0  ;;  %v5377_v13 = vpop.f32.mrb[60].mxu1  ;;  %v5672_v22 = vunpack.c.l.bf16 %v9139_v50 }
 0x703   : > { %v5378_v8 = vadd.f32 %v5377_v13, %v11684_v62  ;;  %v5379_v56 = vpop.f32.mrb[61].mxu1 }
 0x704   : > { %7091 = vst [vmem:[%s11368_s15 + $0x2c8] sm:$0xff] %v8153_v33  ;;  %v8155_v14 = vpack.c.bf16 %v6161_v42, %v6160_v47  ;;  %v5380_v54 = vadd.f32 %v5379_v56, %v11686_v1  ;;  %v5381_v45 = vpop.f32.mrb[62].mxu1  ;;  %v5673_v47 = vunpack.c.h.bf16 %v9139_v50 }
 0x705   : > { %v5908_v38 = vadd.f32 %v5652_v58, %v5378_v8  ;;  %v5382_v41 = vadd.f32 %v5381_v45, %v11684_v62  ;;  %v5383_v48 = vpop.f32.mrb[63].mxu1 }
 0x706   : > { %7093 = vst [vmem:[%s11368_s15 + $0x2d8] sm:$0xff] %v8155_v14  ;;  %v5909_v2 = vadd.f32 %v5653_v6, %v5380_v54  ;;  %v5384_v53 = vadd.f32 %v5383_v48, %v11686_v1  ;;  %v9140_v14 = vld [vmem:[%s9329_s8 + $0x348] sm:$0xff] }
 0x707   : > { %v6164_v37 = vmax.f32 %v5908_v38, 0.0  ;;  %v5912_v39 = vadd.f32 %v5656_v40, %v5382_v41  ;;  %v5676_v54 = vunpack.c.l.bf16 %v9140_v14  ;;  %v5677_v41 = vunpack.c.h.bf16 %v9140_v14 }
 0x708   : > { %v6165_v11 = vmax.f32 %v5909_v2, 0.0  ;;  %v5913_v52 = vadd.f32 %v5657_v7, %v5384_v53  ;;  %v9141_v53 = vld [vmem:[%s9329_s8 + $0x358] sm:$0xff] }
 0x709   : > { %v6168_v55 = vmax.f32 %v5912_v39, 0.0 }
 0x70a   : > { %v8157_v30 = vpack.c.bf16 %v6165_v11, %v6164_v37  ;;  %v6169_v60 = vmax.f32 %v5913_v52, 0.0  ;;  %v5387_v34 = vpop.f32.mrb[64].mxu1  ;;  %v5680_v37 = vunpack.c.l.bf16 %v9141_v53 }
 0x70b   : > { %v5388_v10 = vadd.f32 %v5387_v34, %v11684_v62  ;;  %v5389_v12 = vpop.f32.mrb[65].mxu1 }
 0x70c   : > { %7095 = vst [vmem:[%s11368_s15 + $0x2e8] sm:$0xff] %v8157_v30  ;;  %v8159_v17 = vpack.c.bf16 %v6169_v60, %v6168_v55  ;;  %v5390_v26 = vadd.f32 %v5389_v12, %v11686_v1  ;;  %v5391_v43 = vpop.f32.mrb[66].mxu1  ;;  %v5681_v55 = vunpack.c.h.bf16 %v9141_v53 }
 0x70d   : > { %v5916_v16 = vadd.f32 %v5660_v24, %v5388_v10  ;;  %v5392_v31 = vadd.f32 %v5391_v43, %v11684_v62  ;;  %v5393_v3 = vpop.f32.mrb[67].mxu1 }
 0x70e   : > { %7097 = vst [vmem:[%s11368_s15 + $0x2f8] sm:$0xff] %v8159_v17  ;;  %v5917_v32 = vadd.f32 %v5661_v18, %v5390_v26  ;;  %v5394_v21 = vadd.f32 %v5393_v3, %v11686_v1  ;;  %v9142_v17 = vld [vmem:[%s9329_s8 + $0x368] sm:$0xff] }
 0x70f   : > { %v6172_v49 = vmax.f32 %v5916_v16, 0.0  ;;  %v5920_v4 = vadd.f32 %v5664_v44, %v5392_v31  ;;  %v5684_v26 = vunpack.c.l.bf16 %v9142_v17  ;;  %v5685_v31 = vunpack.c.h.bf16 %v9142_v17 }
 0x710   : > { %v6173_v27 = vmax.f32 %v5917_v32, 0.0  ;;  %v5921_v29 = vadd.f32 %v5665_v36, %v5394_v21  ;;  %v9143_v21 = vld [vmem:[%s9329_s8 + $0x378] sm:$0xff] }
 0x711   : > { %v6176_v19 = vmax.f32 %v5920_v4, 0.0 }
 0x712   : > { %v8161_v5 = vpack.c.bf16 %v6173_v27, %v6172_v49  ;;  %v6177_v46 = vmax.f32 %v5921_v29, 0.0  ;;  %v5397_v15 = vpop.f32.mrb[68].mxu1  ;;  %v5688_v49 = vunpack.c.l.bf16 %v9143_v21 }
 0x713   : > { %v5398_v61 = vadd.f32 %v5397_v15, %v11684_v62  ;;  %v5399_v35 = vpop.f32.mrb[69].mxu1 }
 0x714   : > { %7099 = vst [vmem:[%s11368_s15 + $0x308] sm:$0xff] %v8161_v5  ;;  %v8163_v63 = vpack.c.bf16 %v6177_v46, %v6176_v19  ;;  %v5400_v28 = vadd.f32 %v5399_v35, %v11686_v1  ;;  %v5401_v23 = vpop.f32.mrb[70].mxu1  ;;  %v5689_v19 = vunpack.c.h.bf16 %v9143_v21 }
 0x715   : > { %v5924_v51 = vadd.f32 %v5668_v57, %v5398_v61  ;;  %v5402_v58 = vadd.f32 %v5401_v23, %v11684_v62  ;;  %v5403_v33 = vpop.f32.mrb[71].mxu1 }
 0x716   : > { %7101 = vst [vmem:[%s11368_s15 + $0x318] sm:$0xff] %v8163_v63  ;;  %v5925_v42 = vadd.f32 %v5669_v9, %v5400_v28  ;;  %v5404_v13 = vadd.f32 %v5403_v33, %v11686_v1  ;;  %v9144_v63 = vld [vmem:[%s9329_s8 + $0x388] sm:$0xff] }
 0x717   : > { %v6180_v6 = vmax.f32 %v5924_v51, 0.0  ;;  %v5928_v8 = vadd.f32 %v5672_v22, %v5402_v58  ;;  %v5692_v28 = vunpack.c.l.bf16 %v9144_v63  ;;  %v5693_v58 = vunpack.c.h.bf16 %v9144_v63 }
 0x718   : > { %v6181_v56 = vmax.f32 %v5925_v42, 0.0  ;;  %v5929_v59 = vadd.f32 %v5673_v47, %v5404_v13  ;;  %v9145_v13 = vld [vmem:[%s9329_s8 + $0x398] sm:$0xff] }
 0x719   : > { %v6184_v40 = vmax.f32 %v5928_v8, 0.0 }
 0x71a   : > { %v8165_v45 = vpack.c.bf16 %v6181_v56, %v6180_v6  ;;  %v6185_v7 = vmax.f32 %v5929_v59, 0.0  ;;  %v5407_v38 = vpop.f32.mrb[72].mxu1  ;;  %v5696_v6 = vunpack.c.l.bf16 %v9145_v13 }
 0x71b   : > { %v5408_v48 = vadd.f32 %v5407_v38, %v11684_v62  ;;  %v5409_v2 = vpop.f32.mrb[73].mxu1 }
 0x71c   : > { %7103 = vst [vmem:[%s11368_s15 + $0x328] sm:$0xff] %v8165_v45  ;;  %v8167_v39 = vpack.c.bf16 %v6185_v7, %v6184_v40  ;;  %v5410_v11 = vadd.f32 %v5409_v2, %v11686_v1  ;;  %v5411_v52 = vpop.f32.mrb[74].mxu1  ;;  %v5697_v40 = vunpack.c.h.bf16 %v9145_v13 }
 0x71d   : > { %v5932_v20 = vadd.f32 %v5676_v54, %v5408_v48  ;;  %v5412_v24 = vadd.f32 %v5411_v52, %v11684_v62  ;;  %v5413_v30 = vpop.f32.mrb[75].mxu1 }
 0x71e   : > { %7105 = vst [vmem:[%s11368_s15 + $0x338] sm:$0xff] %v8167_v39  ;;  %v5933_v60 = vadd.f32 %v5677_v41, %v5410_v11  ;;  %v5414_v34 = vadd.f32 %v5413_v30, %v11686_v1  ;;  %v9146_v39 = vld [vmem:[%s9329_s8 + $0x3a8] sm:$0xff] }
 0x71f   : > { %v6188_v18 = vmax.f32 %v5932_v20, 0.0  ;;  %v5936_v10 = vadd.f32 %v5680_v37, %v5412_v24  ;;  %v5700_v11 = vunpack.c.l.bf16 %v9146_v39  ;;  %v5701_v24 = vunpack.c.h.bf16 %v9146_v39 }
 0x720   : > { %v6189_v12 = vmax.f32 %v5933_v60, 0.0  ;;  %v5937_v0 = vadd.f32 %v5681_v55, %v5414_v34  ;;  %v9147_v34 = vld [vmem:[%s9329_s8 + $0x3b8] sm:$0xff] }
 0x721   : > { %v6192_v44 = vmax.f32 %v5936_v10, 0.0 }
 0x722   : > { %v8169_v43 = vpack.c.bf16 %v6189_v12, %v6188_v18  ;;  %v6193_v36 = vmax.f32 %v5937_v0, 0.0  ;;  %v5417_v16 = vpop.f32.mrb[76].mxu1  ;;  %v5704_v18 = vunpack.c.l.bf16 %v9147_v34 }
 0x723   : > { %v5418_v3 = vadd.f32 %v5417_v16, %v11684_v62  ;;  %v5419_v32 = vpop.f32.mrb[77].mxu1 }
 0x724   : > { %7107 = vst [vmem:[%s11368_s15 + $0x348] sm:$0xff] %v8169_v43  ;;  %v8171_v4 = vpack.c.bf16 %v6193_v36, %v6192_v44  ;;  %v5420_v27 = vadd.f32 %v5419_v32, %v11686_v1  ;;  %v5421_v29 = vpop.f32.mrb[78].mxu1  ;;  %v5705_v44 = vunpack.c.h.bf16 %v9147_v34 }
 0x725   : > { %v5940_v25 = vadd.f32 %v5684_v26, %v5418_v3  ;;  %v5422_v57 = vadd.f32 %v5421_v29, %v11684_v62  ;;  %v5423_v5 = vpop.f32.mrb[79].mxu1 }
 0x726   : > { %7109 = vst [vmem:[%s11368_s15 + $0x358] sm:$0xff] %v8171_v4  ;;  %v5941_v46 = vadd.f32 %v5685_v31, %v5420_v27  ;;  %v5424_v15 = vadd.f32 %v5423_v5, %v11686_v1  ;;  %v9148_v4 = vld [vmem:[%s9329_s8 + $0x3c8] sm:$0xff] }
 0x727   : > { %v6196_v9 = vmax.f32 %v5940_v25, 0.0  ;;  %v5944_v61 = vadd.f32 %v5688_v49, %v5422_v57  ;;  %v5708_v27 = vunpack.c.l.bf16 %v9148_v4  ;;  %v5709_v57 = vunpack.c.h.bf16 %v9148_v4 }
 0x728   : > { %v6197_v35 = vmax.f32 %v5941_v46, 0.0  ;;  %v5945_v50 = vadd.f32 %v5689_v19, %v5424_v15  ;;  %v9149_v15 = vld [vmem:[%s9329_s8 + $0x3d8] sm:$0xff] }
 0x729   : > { %v6200_v22 = vmax.f32 %v5944_v61, 0.0 }
 0x72a   : > { %v8173_v23 = vpack.c.bf16 %v6197_v35, %v6196_v9  ;;  %v6201_v47 = vmax.f32 %v5945_v50, 0.0  ;;  %v5427_v51 = vpop.f32.mrb[80].mxu1  ;;  %v5712_v9 = vunpack.c.l.bf16 %v9149_v15 }
 0x72b   : > { %v5428_v33 = vadd.f32 %v5427_v51, %v11684_v62  ;;  %v5429_v42 = vpop.f32.mrb[81].mxu1 }
 0x72c   : > { %7111 = vst [vmem:[%s11368_s15 + $0x368] sm:$0xff] %v8173_v23  ;;  %v8175_v8 = vpack.c.bf16 %v6201_v47, %v6200_v22  ;;  %v5430_v56 = vadd.f32 %v5429_v42, %v11686_v1  ;;  %v5431_v59 = vpop.f32.mrb[82].mxu1  ;;  %v5713_v22 = vunpack.c.h.bf16 %v9149_v15 }
 0x72d   : > { %v5948_v14 = vadd.f32 %v5692_v28, %v5428_v33  ;;  %v5432_v54 = vadd.f32 %v5431_v59, %v11684_v62  ;;  %v5433_v45 = vpop.f32.mrb[83].mxu1 }
 0x72e   : > { %7113 = vst [vmem:[%s11368_s15 + $0x378] sm:$0xff] %v8175_v8  ;;  %v5949_v7 = vadd.f32 %v5693_v58, %v5430_v56  ;;  %v5434_v38 = vadd.f32 %v5433_v45, %v11686_v1  ;;  %v9150_v8 = vld [vmem:[%s9329_s8 + $0x3e8] sm:$0xff] }
 0x72f   : > { %v6204_v41 = vmax.f32 %v5948_v14, 0.0  ;;  %v5952_v48 = vadd.f32 %v5696_v6, %v5432_v54  ;;  %v5716_v56 = vunpack.c.l.bf16 %v9150_v8  ;;  %v5717_v54 = vunpack.c.h.bf16 %v9150_v8 }
 0x730   : > { %v6205_v2 = vmax.f32 %v5949_v7, 0.0  ;;  %v5953_v53 = vadd.f32 %v5697_v40, %v5434_v38  ;;  %v9151_v38 = vld [vmem:[%s9329_s8 + $0x3f8] sm:$0xff]  ;;  %s8193_s8 = sshll.u32 %s9282_s28, 14  ;;  %s9152_s28 = scalar_lea.vmem %s11961_s18, 16384 }
 0x731   : > { %v6208_v37 = vmax.f32 %v5952_v48, 0.0  ;;  %s11959_s21 = scalar_lea.hbm %s12015_s7, %s8193_s8  ;;  %p9153_p11 = scmp.ne.s32.totalorder %s11961_s18, %s9152_s28 }
 0x732   : > { %v8177_v52 = vpack.c.bf16 %v6205_v2, %v6204_v41  ;;  %v6209_v55 = vmax.f32 %v5953_v53, 0.0  ;;  %v5437_v20 = vpop.f32.mrb[84].mxu1  ;;  %v5720_v41 = vunpack.c.l.bf16 %v9151_v38  ;;  %p9160_p1 = scmp.lt.s32.totalorder %s9158_s9, %s9152_s28 }
 0x733   : > { %v5438_v30 = vadd.f32 %v5437_v20, %v11684_v62  ;;  %v5439_v60 = vpop.f32.mrb[85].mxu1  ;;  %p9154_p12 = pnand %p9153_p11, %p9299_p5 }
 0x734   : > { %7115 = vst [vmem:[%s11368_s15 + $0x388] sm:$0xff] %v8177_v52  ;;  %v8179_v10 = vpack.c.bf16 %v6209_v55, %v6208_v37  ;;  %v5440_v12 = vadd.f32 %v5439_v60, %v11686_v1  ;;  %v5441_v0 = vpop.f32.mrb[86].mxu1  ;;  %v5721_v37 = vunpack.c.h.bf16 %v9151_v38  ;;  %p9161_p2 = por %p9160_p1, %p9159_p0 }
 0x735   : > { %v5956_v17 = vadd.f32 %v5700_v11, %v5438_v30  ;;  %v5442_v26 = vadd.f32 %v5441_v0, %v11684_v62  ;;  %v5443_v43 = vpop.f32.mrb[87].mxu1  ;;  %p9155_p13 = pneg %p9154_p12 }
 0x736   : > { %7117 = vst [vmem:[%s11368_s15 + $0x398] sm:$0xff] %v8179_v10  ;;  %v5957_v36 = vadd.f32 %v5701_v24, %v5440_v12  ;;  %v5444_v16 = vadd.f32 %v5443_v43, %v11686_v1 }
 0x737   : > { %v6212_v31 = vmax.f32 %v5956_v17, 0.0  ;;  %v5960_v3 = vadd.f32 %v5704_v18, %v5442_v26  ;;  %p9162_p3 = pnand %p9161_p2, %p9155_p13 }
 0x738   : > { %v6213_v32 = vmax.f32 %v5957_v36, 0.0  ;;  %v5961_v21 = vadd.f32 %v5705_v44, %v5444_v16 }
 0x739   : > { %v6216_v49 = vmax.f32 %v5960_v3, 0.0 }
 0x73a   : > { %v8181_v29 = vpack.c.bf16 %v6213_v32, %v6212_v31  ;;  %v6217_v19 = vmax.f32 %v5961_v21, 0.0  ;;  %v5447_v25 = vpop.f32.mrb[88].mxu1 }
 0x73b   : > { %v5448_v5 = vadd.f32 %v5447_v25, %v11684_v62  ;;  %v5449_v46 = vpop.f32.mrb[89].mxu1 }
 0x73c   : > { %7119 = vst [vmem:[%s11368_s15 + $0x3a8] sm:$0xff] %v8181_v29  ;;  %v8183_v61 = vpack.c.bf16 %v6217_v19, %v6216_v49  ;;  %v5450_v35 = vadd.f32 %v5449_v46, %v11686_v1  ;;  %v5451_v50 = vpop.f32.mrb[90].mxu1 }
 0x73d   : > { %v5964_v63 = vadd.f32 %v5708_v27, %v5448_v5  ;;  %v5452_v28 = vadd.f32 %v5451_v50, %v11684_v62  ;;  %v5453_v23 = vpop.f32.mrb[91].mxu1 }
 0x73e   : > { %7121 = vst [vmem:[%s11368_s15 + $0x3b8] sm:$0xff] %v8183_v61  ;;  %v5965_v47 = vadd.f32 %v5709_v57, %v5450_v35  ;;  %v5454_v51 = vadd.f32 %v5453_v23, %v11686_v1 }
 0x73f   : > { %v6220_v58 = vmax.f32 %v5964_v63, 0.0  ;;  %v5968_v33 = vadd.f32 %v5712_v9, %v5452_v28 }
 0x740   : > { %v6221_v42 = vmax.f32 %v5965_v47, 0.0  ;;  %v5969_v13 = vadd.f32 %v5713_v22, %v5454_v51 }
 0x741   : > { %v6224_v6 = vmax.f32 %v5968_v33, 0.0 }
 0x742   : > { %v8185_v59 = vpack.c.bf16 %v6221_v42, %v6220_v58  ;;  %v6225_v40 = vmax.f32 %v5969_v13, 0.0  ;;  %v5457_v14 = vpop.f32.mrb[92].mxu1 }
 0x743   : > { %v5458_v45 = vadd.f32 %v5457_v14, %v11684_v62  ;;  %v5459_v7 = vpop.f32.mrb[93].mxu1 }
 0x744   : > { %7123 = vst [vmem:[%s11368_s15 + $0x3c8] sm:$0xff] %v8185_v59  ;;  %v8187_v48 = vpack.c.bf16 %v6225_v40, %v6224_v6  ;;  %v5460_v2 = vadd.f32 %v5459_v7, %v11686_v1  ;;  %v5461_v53 = vpop.f32.mrb[94].mxu1 }
 0x745   : > { %v5972_v39 = vadd.f32 %v5716_v56, %v5458_v45  ;;  %v5462_v11 = vadd.f32 %v5461_v53, %v11684_v62  ;;  %v5463_v52 = vpop.f32.mrb[95].mxu1 }
 0x746   : > { %7125 = vst [vmem:[%s11368_s15 + $0x3d8] sm:$0xff] %v8187_v48  ;;  %v5973_v55 = vadd.f32 %v5717_v54, %v5460_v2  ;;  %v5464_v20 = vadd.f32 %v5463_v52, %v11686_v1 }
 0x747   : > { %v6228_v24 = vmax.f32 %v5972_v39, 0.0  ;;  %v5976_v30 = vadd.f32 %v5720_v41, %v5462_v11 }
 0x748   : > { %v6229_v60 = vmax.f32 %v5973_v55, 0.0  ;;  %v5977_v34 = vadd.f32 %v5721_v37, %v5464_v20 }
 0x749   : > { %v6232_v18 = vmax.f32 %v5976_v30, 0.0 }
 0x74a   : > { %v8189_v10 = vpack.c.bf16 %v6229_v60, %v6228_v24  ;;  %v6233_v12 = vmax.f32 %v5977_v34, 0.0 }
 0x74c   : > { %7127 = vst [vmem:[%s11368_s15 + $0x3e8] sm:$0xff] %v8189_v10  ;;  %v8191_v62 = vpack.c.bf16 %v6233_v12, %v6232_v18 }
 0x74e   : > { %7129 = vst [vmem:[%s11368_s15 + $0x3f8] sm:$0xff] %v8191_v62 }
 0x74f   : > { %9165 = shalt.err (!%p9162_p3)
}
 0x750   : > { %s9166_s13 = scalar_lea.hbm %s11959_s21, 16384  ;;  %s9170_s16 = scalar_lea.hbm %s12015_s7, 32768 }
 0x751   : > { %p9167_p4 = scmp.ne.s32.totalorder %s11959_s21, %s9166_s13  ;;  %p9171_p9 = scmp.lt.u32.totalorder %s11959_s21, %s12015_s7 }
 0x752   : > { %p9172_p10 = scmp.lt.u32.totalorder %s9170_s16, %s9166_s13  ;;  %p9174_p12 = scmp.lt.u32.totalorder %s9166_s13, %s11959_s21 }
 0x753   : > { %p9168_p7 = pnand %p9167_p4, %p9299_p5 }
 0x754   : > { %p9173_p11 = por %p9172_p10, %p9171_p9 }
 0x755   : > { %p9169_p8 = pneg %p9168_p7 }
 0x756   : > { %p9175_p13 = por %p9174_p12, %p9173_p11 }
 0x758   : > { %p9176_p0 = pnand %p9175_p13, %p9169_p8 }
 0x75a   : > { %9179 = shalt.err (!%p9176_p0)
}
 0x75b   : > { %s9219_s19 = smov 256   ;;  %s9220_s20 = smov 16  }
 0x75c   : > { %8674 = dma.vmem_to_hbm [thread:$0]  (%p9299_p5), %s11961_s18, 16384, %s11959_s21, %s11967_s22, %s9219_s19, %s9219_s19, %s9220_s20  }
 0x75d PF: > { %p8680_p1 = scmp.ge.s32.totalorder %s9214_s27, 2  ;;  %s7160_s28 = sand.u32 1, %s9202_s24  }
 0x75e   : > { %s7161_s23 = scalar_lea.sflag [#allocation3], %s7160_s28 }
 0x75f   : > { %p8677_p2 = pnand %p8680_p1, %p9303_p6 }
 0x761   : > { %9197 = dma.done.wait (!%p8677_p2), %s7161_s23, 16384  }
 0x762   : > { %9199 = vsyncadd (!%p8677_p2), %s7161_s23, 4294950912  ;;  %p17_p3 = scmp.ge.s32.totalorder %s9286_s30, 4   ;;  %s12143_s24 = smov %s9206_s25 }
 0x763   : > { %s12144_s25 = smov %s9210_s26  ;;  %s12145_s26 = smov %s9297_s10 }
 0x764   : > { %s12146_s27 = smov %s9286_s30  ;;  %19 = sbr.rel (!%p17_p3) target bundleno = 3 (0x3), region = 83 }
 0x76b   :  { %7166 = vsyncpa [#allocation3], 1 }
 0x76c   :  { %7168 = vsyncpa [#allocation3 + $0x1], 1 }

</bundles_post_ra>
